<compile_context>
chip_gen: v7x
topology: tpu7x:2x2x1
jax: 0.10.0
libtpu: 0.0.40
codegen_flags: <defaults>
</compile_context>

<pallas_src>
import functools

import jax
import jax.numpy as jnp
from jax.experimental import pallas as pl
from jax.experimental.pallas import tpu as pltpu


def _double_conv_kernel(x_ref, w1_ref, b1_ref, w2_ref, b2_ref, o_ref,
                        xpad, col1, ypad, col2, *, H, W, Cin, CP):
    """Fused (conv3x3 + folded BN + ReLU) x2 for one NHWC image.

    x_ref : (1, H, W, Cin)   bf16 unpadded activations (halo built in VMEM)
    w1_ref: (9*Cin, CP)      bf16, BN1 scale folded, Cout zero-padded to CP
    b1_ref: (1, CP)          f32 folded bias (conv bias + BN shift; 0 in padding)
    w2_ref: (9*CP, CP)       bf16, BN2 folded, in/out channels zero-padded to CP
    b2_ref: (1, CP)          f32
    o_ref : (1, H, W, CP)    f32 (padding channels come out as 0)
    """
    # Re-zero halo buffers every grid step: scratch persists across steps and across
    # megacore shards, so a program_id==0-only init would be wrong on v7x.
    xpad[...] = jnp.zeros(xpad.shape, xpad.dtype)
    ypad[...] = jnp.zeros(ypad.shape, ypad.dtype)

    # ---------------- stage 1: conv3x3 (+ folded BN) + ReLU ----------------
    xpad[1:H + 1, 1:W + 1, :] = x_ref[0]
    for t in range(9):                       # static unroll: im2col build
        dy, dx = t // 3, t % 3
        col1[:, t * Cin:(t + 1) * Cin] = (
            xpad[dy:dy + H, dx:dx + W, :].reshape(H * W, Cin))
    y1 = jnp.dot(col1[...], w1_ref[...], preferred_element_type=jnp.float32)
    y1 = jnp.maximum(y1 + b1_ref[...], 0.0)
    # Stage-1 output (with halo) stays in VMEM; never touches HBM.
    ypad[1:H + 1, 1:W + 1, :] = y1.astype(ypad.dtype).reshape(H, W, CP)

    # ---------------- stage 2: conv3x3 (+ folded BN) + ReLU ----------------
    for t in range(9):
        dy, dx = t // 3, t % 3
        col2[:, t * CP:(t + 1) * CP] = (
            ypad[dy:dy + H, dx:dx + W, :].reshape(H * W, CP))
    y2 = jnp.dot(col2[...], w2_ref[...], preferred_element_type=jnp.float32)
    y2 = jnp.maximum(y2 + b2_ref[...], 0.0)
    o_ref[...] = y2.reshape(1, H, W, CP)


def _fold_bn_into_weights(w_hwio, conv_b, gamma, beta, mean, var, eps=1e-5):
    """Fold eval-mode BN into the conv: w' = w*scale (over Cout), b' = b*scale+beta-mean*scale."""
    scale = gamma / jnp.sqrt(var + eps)
    return w_hwio * scale, conv_b * scale + beta - mean * scale


def conv_block_forward(x_nchw, params, eps=1e-5):
    """ConvBlock forward: NCHW in -> NCHW out (PyTorch module semantics, BN eval-mode)."""
    N, Cin, H, W = x_nchw.shape
    Cout = params["w1_hwio"].shape[-1]
    CP = max(128, ((Cout + 127) // 128) * 128)   # lane-dense channel width

    # Single NCHW -> NHWC transpose for the whole fused block; bf16 activations for MXU/DMA.
    x = jnp.transpose(x_nchw, (0, 2, 3, 1)).astype(jnp.bfloat16)

    # One-time parameter prep (outside the hot path): fold BN, pad channels to CP,
    # reshape weights to the 2D im2col layout (row index = (3*dy+dx)*C + ci).
    w1, b1 = _fold_bn_into_weights(params["w1_hwio"], params["b1"], params["gamma1"],
                                   params["beta1"], params["mean1"], params["var1"], eps)
    w2, b2 = _fold_bn_into_weights(params["w2_hwio"], params["b2"], params["gamma2"],
                                   params["beta2"], params["mean2"], params["var2"], eps)

    w1_2d = jnp.pad(w1, ((0, 0), (0, 0), (0, 0), (0, CP - Cout))
                    ).reshape(9 * Cin, CP).astype(jnp.bfloat16)
    b1_2d = jnp.pad(b1, (0, CP - Cout)).reshape(1, CP).astype(jnp.float32)
    w2_2d = jnp.pad(w2, ((0, 0), (0, 0), (0, CP - Cout), (0, CP - Cout))
                    ).reshape(9 * CP, CP).astype(jnp.bfloat16)
    b2_2d = jnp.pad(b2, (0, CP - Cout)).reshape(1, CP).astype(jnp.float32)

    kernel = functools.partial(_double_conv_kernel, H=H, W=W, Cin=Cin, CP=CP)

    out = pl.pallas_call(
        kernel,
        out_shape=jax.ShapeDtypeStruct((N, H, W, CP), jnp.float32),
        grid_spec=pltpu.PrefetchScalarGridSpec(
            num_scalar_prefetch=0,
            grid=(N,),
            in_specs=[
                pl.BlockSpec((1, H, W, Cin), lambda n: (n, 0, 0, 0)),
                pl.BlockSpec((9 * Cin, CP), lambda n: (0, 0)),
                pl.BlockSpec((1, CP), lambda n: (0, 0)),
                pl.BlockSpec((9 * CP, CP), lambda n: (0, 0)),
                pl.BlockSpec((1, CP), lambda n: (0, 0)),
            ],
            out_specs=pl.BlockSpec((1, H, W, CP), lambda n: (n, 0, 0, 0)),
            scratch_shapes=[
                pltpu.VMEM((H + 2, W + 2, Cin), jnp.bfloat16),   # xpad (halo input)
                pltpu.VMEM((H * W, 9 * Cin), jnp.bfloat16),      # col1 (im2col stage 1)
                pltpu.VMEM((H + 2, W + 2, CP), jnp.bfloat16),    # ypad (halo intermediate)
                pltpu.VMEM((H * W, 9 * CP), jnp.bfloat16),       # col2 (im2col stage 2)
            ],
        ),
        compiler_params=pltpu.CompilerParams(
            dimension_semantics=("parallel",),
            vmem_limit_bytes=32 * 1024 * 1024,
        ),
    )(x, w1_2d, b1_2d, w2_2d, b2_2d)

    # Slice off the channel padding and return to the module's NCHW layout.
    return jnp.transpose(out[..., :Cout], (0, 3, 1, 2))


def _reference_forward(x_nchw, params):
    """Pure-JAX f32 reference (lax.conv) used only for a correctness check."""
    def stage(x, w_hwio, b, gamma, beta, mean, var):
        w_oihw = jnp.transpose(w_hwio, (3, 2, 0, 1))
        y = jax.lax.conv_general_dilated(
            x, w_oihw, window_strides=(1, 1), padding=((1, 1), (1, 1)),
            dimension_numbers=("NCHW", "OIHW", "NCHW"))
        y = y + b[None, :, None, None]
        y = (y - mean[None, :, None, None]) / jnp.sqrt(var[None, :, None, None] + 1e-5)
        y = y * gamma[None, :, None, None] + beta[None, :, None, None]
        return jnp.maximum(y, 0.0)

    x = x_nchw.astype(jnp.float32)
    x = stage(x, params["w1_hwio"], params["b1"], params["gamma1"],
              params["beta1"], params["mean1"], params["var1"])
    x = stage(x, params["w2_hwio"], params["b2"], params["gamma2"],
              params["beta2"], params["mean2"], params["var2"])
    return x


def init_params(key, in_channels, out_channels):
    ks = jax.random.split(key, 10)
    # conv weights generated in PyTorch OIHW order, then transposed to HWIO
    w1_oihw = 0.1 * jax.random.normal(ks[0], (out_channels, in_channels, 3, 3), jnp.float32)
    w2_oihw = 0.1 * jax.random.normal(ks[1], (out_channels, out_channels, 3, 3), jnp.float32)
    return {
        "w1_hwio": jnp.transpose(w1_oihw, (2, 3, 1, 0)),
        "b1": 0.1 * jax.random.normal(ks[2], (out_channels,), jnp.float32),
        "gamma1": 1.0 + 0.1 * jax.random.normal(ks[3], (out_channels,), jnp.float32),
        "beta1": 0.1 * jax.random.normal(ks[4], (out_channels,), jnp.float32),
        "mean1": 0.1 * jax.random.normal(ks[5], (out_channels,), jnp.float32),
        "var1": 0.5 + jax.random.uniform(ks[6], (out_channels,), jnp.float32),
        "w2_hwio": jnp.transpose(w2_oihw, (2, 3, 1, 0)),
        "b2": 0.1 * jax.random.normal(ks[7], (out_channels,), jnp.float32),
        "gamma2": 1.0 + 0.1 * jax.random.normal(ks[8], (out_channels,), jnp.float32),
        "beta2": 0.1 * jax.random.normal(ks[9], (out_channels,), jnp.float32),
        "mean2": jnp.zeros((out_channels,), jnp.float32),
        "var2": jnp.ones((out_channels,), jnp.float32),
    }


if __name__ == "__main__":
    key = jax.random.PRNGKey(0)
    k_x, k_p = jax.random.split(key)

    N, Cin, Cout, H, W = 2, 4, 8, 16, 16
    x = jax.random.normal(k_x, (N, Cin, H, W), jnp.float32)   # PyTorch NCHW input
    params = init_params(k_p, Cin, Cout)

    fwd = jax.jit(conv_block_forward)
    out = jax.block_until_ready(fwd(x, params))

    ref = jax.block_until_ready(_reference_forward(x, params))
    assert out.shape == (N, Cout, H, W)
    # bf16 matmul operands (f32 accumulation) -> relaxed tolerance vs. the f32 reference.
    assert jnp.allclose(out, ref, atol=5e-2, rtol=5e-2), "mismatch vs JAX reference"

    print("KERNEL_OK")
</pallas_src>

<mosaic_0001>
module attributes {stable_mosaic.version = 11 : i64} {
  func.func @_double_conv_kernel(%arg0: i32, %arg1: memref<1x16x16x4xbf16, #tpu.memory_space<vmem>>, %arg2: memref<36x128xbf16, #tpu.memory_space<vmem>>, %arg3: memref<1x128xf32, #tpu.memory_space<vmem>>, %arg4: memref<1152x128xbf16, #tpu.memory_space<vmem>>, %arg5: memref<1x128xf32, #tpu.memory_space<vmem>>, %arg6: memref<1x16x16x128xf32, #tpu.memory_space<vmem>>, %arg7: memref<18x18x4xbf16, #tpu.memory_space<vmem>>, %arg8: memref<256x36xbf16, #tpu.memory_space<vmem>>, %arg9: memref<18x18x128xbf16, #tpu.memory_space<vmem>>, %arg10: memref<256x1152xbf16, #tpu.memory_space<vmem>>) attributes {dimension_semantics = [#tpu.dimension_semantics<parallel>], iteration_bounds = array<i64: 2>, scalar_prefetch = 0 : i64, scratch_operands = 4 : i64, tpu.core_type = #tpu.core_type<tc>, window_params = [{transform_indices = @transform_0, window_bounds = array<i64: 1, 16, 16, 4>}, {pipeline_mode = #tpu.pipeline_mode<synchronous>, transform_indices = @transform_1, window_bounds = array<i64: 36, 128>}, {pipeline_mode = #tpu.pipeline_mode<synchronous>, transform_indices = @transform_2, window_bounds = array<i64: 1, 128>}, {pipeline_mode = #tpu.pipeline_mode<synchronous>, transform_indices = @transform_3, window_bounds = array<i64: 1152, 128>}, {pipeline_mode = #tpu.pipeline_mode<synchronous>, transform_indices = @transform_4, window_bounds = array<i64: 1, 128>}, {transform_indices = @transform_5, window_bounds = array<i64: 1, 16, 16, 128>}]} {
    %cst = arith.constant 0.000000e+00 : bf16
    %0 = vector.broadcast %cst : bf16 to vector<18x18x4xbf16>
    %c0 = arith.constant 0 : index
    %c0_0 = arith.constant 0 : index
    %c0_1 = arith.constant 0 : index
    %1 = vector.load %arg7[%c0, %c0_0, %c0_1] : memref<18x18x4xbf16, #tpu.memory_space<vmem>>, vector<18x18x4xbf16>
    tpu.vector_store %arg7[%c0, %c0_0, %c0_1], %0 {strides = array<i32>} : memref<18x18x4xbf16, #tpu.memory_space<vmem>>, vector<18x18x4xbf16>,
    %cst_2 = arith.constant 0.000000e+00 : bf16
    %2 = vector.broadcast %cst_2 : bf16 to vector<18x18x128xbf16>
    %c0_3 = arith.constant 0 : index
    %c0_4 = arith.constant 0 : index
    %c0_5 = arith.constant 0 : index
    %3 = vector.load %arg9[%c0_3, %c0_4, %c0_5] : memref<18x18x128xbf16, #tpu.memory_space<vmem>>, vector<18x18x128xbf16>
    tpu.vector_store %arg9[%c0_3, %c0_4, %c0_5], %2 {strides = array<i32>} : memref<18x18x128xbf16, #tpu.memory_space<vmem>>, vector<18x18x128xbf16>,
    %c0_6 = arith.constant 0 : index
    %c0_7 = arith.constant 0 : index
    %c0_8 = arith.constant 0 : index
    %c0_9 = arith.constant 0 : index
    %4 = vector.load %arg1[%c0_6, %c0_7, %c0_8, %c0_9] : memref<1x16x16x4xbf16, #tpu.memory_space<vmem>>, vector<1x16x16x4xbf16>
    %5 = vector.shape_cast %4 : vector<1x16x16x4xbf16> to vector<16x16x4xbf16>
    %c1 = arith.constant 1 : index
    %c1_10 = arith.constant 1 : index
    %c0_11 = arith.constant 0 : index
    %6 = vector.load %arg7[%c1, %c1_10, %c0_11] : memref<18x18x4xbf16, #tpu.memory_space<vmem>>, vector<16x16x4xbf16>
    tpu.vector_store %arg7[%c1, %c1_10, %c0_11], %5 {strides = array<i32>} : memref<18x18x4xbf16, #tpu.memory_space<vmem>>, vector<16x16x4xbf16>,
    %c0_12 = arith.constant 0 : index
    %c0_13 = arith.constant 0 : index
    %c0_14 = arith.constant 0 : index
    %7 = vector.load %arg7[%c0_12, %c0_13, %c0_14] : memref<18x18x4xbf16, #tpu.memory_space<vmem>>, vector<16x16x4xbf16>
    %8 = vector.shape_cast %7 : vector<16x16x4xbf16> to vector<256x4xbf16>
    %c0_15 = arith.constant 0 : index
    %c0_16 = arith.constant 0 : index
    %9 = vector.load %arg8[%c0_15, %c0_16] : memref<256x36xbf16, #tpu.memory_space<vmem>>, vector<256x4xbf16>
    tpu.vector_store %arg8[%c0_15, %c0_16], %8 {strides = array<i32>} : memref<256x36xbf16, #tpu.memory_space<vmem>>, vector<256x4xbf16>,
    %c0_17 = arith.constant 0 : index
    %c1_18 = arith.constant 1 : index
    %c0_19 = arith.constant 0 : index
    %10 = vector.load %arg7[%c0_17, %c1_18, %c0_19] : memref<18x18x4xbf16, #tpu.memory_space<vmem>>, vector<16x16x4xbf16>
    %11 = vector.shape_cast %10 : vector<16x16x4xbf16> to vector<256x4xbf16>
    %c0_20 = arith.constant 0 : index
    %c4 = arith.constant 4 : index
    %12 = vector.load %arg8[%c0_20, %c4] : memref<256x36xbf16, #tpu.memory_space<vmem>>, vector<256x4xbf16>
    tpu.vector_store %arg8[%c0_20, %c4], %11 {strides = array<i32>} : memref<256x36xbf16, #tpu.memory_space<vmem>>, vector<256x4xbf16>,
    %c0_21 = arith.constant 0 : index
    %c2 = arith.constant 2 : index
    %c0_22 = arith.constant 0 : index
    %13 = vector.load %arg7[%c0_21, %c2, %c0_22] : memref<18x18x4xbf16, #tpu.memory_space<vmem>>, vector<16x16x4xbf16>
    %14 = vector.shape_cast %13 : vector<16x16x4xbf16> to vector<256x4xbf16>
    %c0_23 = arith.constant 0 : index
    %c8 = arith.constant 8 : index
    %15 = vector.load %arg8[%c0_23, %c8] : memref<256x36xbf16, #tpu.memory_space<vmem>>, vector<256x4xbf16>
    tpu.vector_store %arg8[%c0_23, %c8], %14 {strides = array<i32>} : memref<256x36xbf16, #tpu.memory_space<vmem>>, vector<256x4xbf16>,
    %c1_24 = arith.constant 1 : index
    %c0_25 = arith.constant 0 : index
    %c0_26 = arith.constant 0 : index
    %16 = vector.load %arg7[%c1_24, %c0_25, %c0_26] : memref<18x18x4xbf16, #tpu.memory_space<vmem>>, vector<16x16x4xbf16>
    %17 = vector.shape_cast %16 : vector<16x16x4xbf16> to vector<256x4xbf16>
    %c0_27 = arith.constant 0 : index
    %c12 = arith.constant 12 : index
    %18 = vector.load %arg8[%c0_27, %c12] : memref<256x36xbf16, #tpu.memory_space<vmem>>, vector<256x4xbf16>
    tpu.vector_store %arg8[%c0_27, %c12], %17 {strides = array<i32>} : memref<256x36xbf16, #tpu.memory_space<vmem>>, vector<256x4xbf16>,
    %c1_28 = arith.constant 1 : index
    %c1_29 = arith.constant 1 : index
    %c0_30 = arith.constant 0 : index
    %19 = vector.load %arg7[%c1_28, %c1_29, %c0_30] : memref<18x18x4xbf16, #tpu.memory_space<vmem>>, vector<16x16x4xbf16>
    %20 = vector.shape_cast %19 : vector<16x16x4xbf16> to vector<256x4xbf16>
    %c0_31 = arith.constant 0 : index
    %c16 = arith.constant 16 : index
    %21 = vector.load %arg8[%c0_31, %c16] : memref<256x36xbf16, #tpu.memory_space<vmem>>, vector<256x4xbf16>
    tpu.vector_store %arg8[%c0_31, %c16], %20 {strides = array<i32>} : memref<256x36xbf16, #tpu.memory_space<vmem>>, vector<256x4xbf16>,
    %c1_32 = arith.constant 1 : index
    %c2_33 = arith.constant 2 : index
    %c0_34 = arith.constant 0 : index
    %22 = vector.load %arg7[%c1_32, %c2_33, %c0_34] : memref<18x18x4xbf16, #tpu.memory_space<vmem>>, vector<16x16x4xbf16>
    %23 = vector.shape_cast %22 : vector<16x16x4xbf16> to vector<256x4xbf16>
    %c0_35 = arith.constant 0 : index
    %c20 = arith.constant 20 : index
    %24 = vector.load %arg8[%c0_35, %c20] : memref<256x36xbf16, #tpu.memory_space<vmem>>, vector<256x4xbf16>
    tpu.vector_store %arg8[%c0_35, %c20], %23 {strides = array<i32>} : memref<256x36xbf16, #tpu.memory_space<vmem>>, vector<256x4xbf16>,
    %c2_36 = arith.constant 2 : index
    %c0_37 = arith.constant 0 : index
    %c0_38 = arith.constant 0 : index
    %25 = vector.load %arg7[%c2_36, %c0_37, %c0_38] : memref<18x18x4xbf16, #tpu.memory_space<vmem>>, vector<16x16x4xbf16>
    %26 = vector.shape_cast %25 : vector<16x16x4xbf16> to vector<256x4xbf16>
    %c0_39 = arith.constant 0 : index
    %c24 = arith.constant 24 : index
    %27 = vector.load %arg8[%c0_39, %c24] : memref<256x36xbf16, #tpu.memory_space<vmem>>, vector<256x4xbf16>
    tpu.vector_store %arg8[%c0_39, %c24], %26 {strides = array<i32>} : memref<256x36xbf16, #tpu.memory_space<vmem>>, vector<256x4xbf16>,
    %c2_40 = arith.constant 2 : index
    %c1_41 = arith.constant 1 : index
    %c0_42 = arith.constant 0 : index
    %28 = vector.load %arg7[%c2_40, %c1_41, %c0_42] : memref<18x18x4xbf16, #tpu.memory_space<vmem>>, vector<16x16x4xbf16>
    %29 = vector.shape_cast %28 : vector<16x16x4xbf16> to vector<256x4xbf16>
    %c0_43 = arith.constant 0 : index
    %c28 = arith.constant 28 : index
    %30 = vector.load %arg8[%c0_43, %c28] : memref<256x36xbf16, #tpu.memory_space<vmem>>, vector<256x4xbf16>
    tpu.vector_store %arg8[%c0_43, %c28], %29 {strides = array<i32>} : memref<256x36xbf16, #tpu.memory_space<vmem>>, vector<256x4xbf16>,
    %c2_44 = arith.constant 2 : index
    %c2_45 = arith.constant 2 : index
    %c0_46 = arith.constant 0 : index
    %31 = vector.load %arg7[%c2_44, %c2_45, %c0_46] : memref<18x18x4xbf16, #tpu.memory_space<vmem>>, vector<16x16x4xbf16>
    %32 = vector.shape_cast %31 : vector<16x16x4xbf16> to vector<256x4xbf16>
    %c0_47 = arith.constant 0 : index
    %c32 = arith.constant 32 : index
    %33 = vector.load %arg8[%c0_47, %c32] : memref<256x36xbf16, #tpu.memory_space<vmem>>, vector<256x4xbf16>
    tpu.vector_store %arg8[%c0_47, %c32], %32 {strides = array<i32>} : memref<256x36xbf16, #tpu.memory_space<vmem>>, vector<256x4xbf16>,
    %c0_48 = arith.constant 0 : index
    %c0_49 = arith.constant 0 : index
    %34 = vector.load %arg8[%c0_48, %c0_49] : memref<256x36xbf16, #tpu.memory_space<vmem>>, vector<256x36xbf16>
    %c0_50 = arith.constant 0 : index
    %c0_51 = arith.constant 0 : index
    %35 = vector.load %arg2[%c0_50, %c0_51] : memref<36x128xbf16, #tpu.memory_space<vmem>>, vector<36x128xbf16>
    %cst_52 = arith.constant dense<0.000000e+00> : vector<256x128xf32>
    %36 = tpu.matmul %34, %35, %cst_52 {dimension_numbers = #tpu.dot_dimension_numbers<[1], [0], [0], [1], [0, 0, 1, 1], [], []>} : vector<256x36xbf16>, vector<36x128xbf16>, vector<256x128xf32> -> vector<256x128xf32>
    %c0_53 = arith.constant 0 : index
    %c0_54 = arith.constant 0 : index
    %37 = vector.load %arg3[%c0_53, %c0_54] : memref<1x128xf32, #tpu.memory_space<vmem>>, vector<1x128xf32>
    %38 = vector.broadcast %37 : vector<1x128xf32> to vector<256x128xf32>
    %39 = arith.addf %36, %38 : vector<256x128xf32>
    %cst_55 = arith.constant 0.000000e+00 : f32
    %40 = vector.broadcast %cst_55 : f32 to vector<256x128xf32>
    %41 = arith.maximumf %39, %40 : vector<256x128xf32>
    %42 = arith.truncf %41 : vector<256x128xf32> to vector<256x128xbf16>
    %43 = vector.shape_cast %42 : vector<256x128xbf16> to vector<16x16x128xbf16>
    %c1_56 = arith.constant 1 : index
    %c1_57 = arith.constant 1 : index
    %c0_58 = arith.constant 0 : index
    %44 = vector.load %arg9[%c1_56, %c1_57, %c0_58] : memref<18x18x128xbf16, #tpu.memory_space<vmem>>, vector<16x16x128xbf16>
    tpu.vector_store %arg9[%c1_56, %c1_57, %c0_58], %43 {strides = array<i32>} : memref<18x18x128xbf16, #tpu.memory_space<vmem>>, vector<16x16x128xbf16>,
    %c0_59 = arith.constant 0 : index
    %c0_60 = arith.constant 0 : index
    %c0_61 = arith.constant 0 : index
    %45 = vector.load %arg9[%c0_59, %c0_60, %c0_61] : memref<18x18x128xbf16, #tpu.memory_space<vmem>>, vector<16x16x128xbf16>
    %46 = vector.shape_cast %45 : vector<16x16x128xbf16> to vector<256x128xbf16>
    %c0_62 = arith.constant 0 : index
    %c0_63 = arith.constant 0 : index
    %47 = vector.load %arg10[%c0_62, %c0_63] : memref<256x1152xbf16, #tpu.memory_space<vmem>>, vector<256x128xbf16>
    tpu.vector_store %arg10[%c0_62, %c0_63], %46 {strides = array<i32>} : memref<256x1152xbf16, #tpu.memory_space<vmem>>, vector<256x128xbf16>,
    %c0_64 = arith.constant 0 : index
    %c1_65 = arith.constant 1 : index
    %c0_66 = arith.constant 0 : index
    %48 = vector.load %arg9[%c0_64, %c1_65, %c0_66] : memref<18x18x128xbf16, #tpu.memory_space<vmem>>, vector<16x16x128xbf16>
    %49 = vector.shape_cast %48 : vector<16x16x128xbf16> to vector<256x128xbf16>
    %c0_67 = arith.constant 0 : index
    %c128 = arith.constant 128 : index
    %50 = vector.load %arg10[%c0_67, %c128] : memref<256x1152xbf16, #tpu.memory_space<vmem>>, vector<256x128xbf16>
    tpu.vector_store %arg10[%c0_67, %c128], %49 {strides = array<i32>} : memref<256x1152xbf16, #tpu.memory_space<vmem>>, vector<256x128xbf16>,
    %c0_68 = arith.constant 0 : index
    %c2_69 = arith.constant 2 : index
    %c0_70 = arith.constant 0 : index
    %51 = vector.load %arg9[%c0_68, %c2_69, %c0_70] : memref<18x18x128xbf16, #tpu.memory_space<vmem>>, vector<16x16x128xbf16>
    %52 = vector.shape_cast %51 : vector<16x16x128xbf16> to vector<256x128xbf16>
    %c0_71 = arith.constant 0 : index
    %c256 = arith.constant 256 : index
    %53 = vector.load %arg10[%c0_71, %c256] : memref<256x1152xbf16, #tpu.memory_space<vmem>>, vector<256x128xbf16>
    tpu.vector_store %arg10[%c0_71, %c256], %52 {strides = array<i32>} : memref<256x1152xbf16, #tpu.memory_space<vmem>>, vector<256x128xbf16>,
    %c1_72 = arith.constant 1 : index
    %c0_73 = arith.constant 0 : index
    %c0_74 = arith.constant 0 : index
    %54 = vector.load %arg9[%c1_72, %c0_73, %c0_74] : memref<18x18x128xbf16, #tpu.memory_space<vmem>>, vector<16x16x128xbf16>
    %55 = vector.shape_cast %54 : vector<16x16x128xbf16> to vector<256x128xbf16>
    %c0_75 = arith.constant 0 : index
    %c384 = arith.constant 384 : index
    %56 = vector.load %arg10[%c0_75, %c384] : memref<256x1152xbf16, #tpu.memory_space<vmem>>, vector<256x128xbf16>
    tpu.vector_store %arg10[%c0_75, %c384], %55 {strides = array<i32>} : memref<256x1152xbf16, #tpu.memory_space<vmem>>, vector<256x128xbf16>,
    %c1_76 = arith.constant 1 : index
    %c1_77 = arith.constant 1 : index
    %c0_78 = arith.constant 0 : index
    %57 = vector.load %arg9[%c1_76, %c1_77, %c0_78] : memref<18x18x128xbf16, #tpu.memory_space<vmem>>, vector<16x16x128xbf16>
    %58 = vector.shape_cast %57 : vector<16x16x128xbf16> to vector<256x128xbf16>
    %c0_79 = arith.constant 0 : index
    %c512 = arith.constant 512 : index
    %59 = vector.load %arg10[%c0_79, %c512] : memref<256x1152xbf16, #tpu.memory_space<vmem>>, vector<256x128xbf16>
    tpu.vector_store %arg10[%c0_79, %c512], %58 {strides = array<i32>} : memref<256x1152xbf16, #tpu.memory_space<vmem>>, vector<256x128xbf16>,
    %c1_80 = arith.constant 1 : index
    %c2_81 = arith.constant 2 : index
    %c0_82 = arith.constant 0 : index
    %60 = vector.load %arg9[%c1_80, %c2_81, %c0_82] : memref<18x18x128xbf16, #tpu.memory_space<vmem>>, vector<16x16x128xbf16>
    %61 = vector.shape_cast %60 : vector<16x16x128xbf16> to vector<256x128xbf16>
    %c0_83 = arith.constant 0 : index
    %c640 = arith.constant 640 : index
    %62 = vector.load %arg10[%c0_83, %c640] : memref<256x1152xbf16, #tpu.memory_space<vmem>>, vector<256x128xbf16>
    tpu.vector_store %arg10[%c0_83, %c640], %61 {strides = array<i32>} : memref<256x1152xbf16, #tpu.memory_space<vmem>>, vector<256x128xbf16>,
    %c2_84 = arith.constant 2 : index
    %c0_85 = arith.constant 0 : index
    %c0_86 = arith.constant 0 : index
    %63 = vector.load %arg9[%c2_84, %c0_85, %c0_86] : memref<18x18x128xbf16, #tpu.memory_space<vmem>>, vector<16x16x128xbf16>
    %64 = vector.shape_cast %63 : vector<16x16x128xbf16> to vector<256x128xbf16>
    %c0_87 = arith.constant 0 : index
    %c768 = arith.constant 768 : index
    %65 = vector.load %arg10[%c0_87, %c768] : memref<256x1152xbf16, #tpu.memory_space<vmem>>, vector<256x128xbf16>
    tpu.vector_store %arg10[%c0_87, %c768], %64 {strides = array<i32>} : memref<256x1152xbf16, #tpu.memory_space<vmem>>, vector<256x128xbf16>,
    %c2_88 = arith.constant 2 : index
    %c1_89 = arith.constant 1 : index
    %c0_90 = arith.constant 0 : index
    %66 = vector.load %arg9[%c2_88, %c1_89, %c0_90] : memref<18x18x128xbf16, #tpu.memory_space<vmem>>, vector<16x16x128xbf16>
    %67 = vector.shape_cast %66 : vector<16x16x128xbf16> to vector<256x128xbf16>
    %c0_91 = arith.constant 0 : index
    %c896 = arith.constant 896 : index
    %68 = vector.load %arg10[%c0_91, %c896] : memref<256x1152xbf16, #tpu.memory_space<vmem>>, vector<256x128xbf16>
    tpu.vector_store %arg10[%c0_91, %c896], %67 {strides = array<i32>} : memref<256x1152xbf16, #tpu.memory_space<vmem>>, vector<256x128xbf16>,
    %c2_92 = arith.constant 2 : index
    %c2_93 = arith.constant 2 : index
    %c0_94 = arith.constant 0 : index
    %69 = vector.load %arg9[%c2_92, %c2_93, %c0_94] : memref<18x18x128xbf16, #tpu.memory_space<vmem>>, vector<16x16x128xbf16>
    %70 = vector.shape_cast %69 : vector<16x16x128xbf16> to vector<256x128xbf16>
    %c0_95 = arith.constant 0 : index
    %c1024 = arith.constant 1024 : index
    %71 = vector.load %arg10[%c0_95, %c1024] : memref<256x1152xbf16, #tpu.memory_space<vmem>>, vector<256x128xbf16>
    tpu.vector_store %arg10[%c0_95, %c1024], %70 {strides = array<i32>} : memref<256x1152xbf16, #tpu.memory_space<vmem>>, vector<256x128xbf16>,
    %c0_96 = arith.constant 0 : index
    %c0_97 = arith.constant 0 : index
    %72 = vector.load %arg10[%c0_96, %c0_97] : memref<256x1152xbf16, #tpu.memory_space<vmem>>, vector<256x1152xbf16>
    %c0_98 = arith.constant 0 : index
    %c0_99 = arith.constant 0 : index
    %73 = vector.load %arg4[%c0_98, %c0_99] : memref<1152x128xbf16, #tpu.memory_space<vmem>>, vector<1152x128xbf16>
    %cst_100 = arith.constant dense<0.000000e+00> : vector<256x128xf32>
    %74 = tpu.matmul %72, %73, %cst_100 {dimension_numbers = #tpu.dot_dimension_numbers<[1], [0], [0], [1], [0, 0, 1, 1], [], []>} : vector<256x1152xbf16>, vector<1152x128xbf16>, vector<256x128xf32> -> vector<256x128xf32>
    %c0_101 = arith.constant 0 : index
    %c0_102 = arith.constant 0 : index
    %75 = vector.load %arg5[%c0_101, %c0_102] : memref<1x128xf32, #tpu.memory_space<vmem>>, vector<1x128xf32>
    %76 = vector.broadcast %75 : vector<1x128xf32> to vector<256x128xf32>
    %77 = arith.addf %74, %76 : vector<256x128xf32>
    %cst_103 = arith.constant 0.000000e+00 : f32
    %78 = vector.broadcast %cst_103 : f32 to vector<256x128xf32>
    %79 = arith.maximumf %77, %78 : vector<256x128xf32>
    %80 = vector.shape_cast %79 : vector<256x128xf32> to vector<1x16x16x128xf32>
    %c0_104 = arith.constant 0 : index
    %c0_105 = arith.constant 0 : index
    %c0_106 = arith.constant 0 : index
    %c0_107 = arith.constant 0 : index
    %81 = vector.load %arg6[%c0_104, %c0_105, %c0_106, %c0_107] : memref<1x16x16x128xf32, #tpu.memory_space<vmem>>, vector<1x16x16x128xf32>
    tpu.vector_store %arg6[%c0_104, %c0_105, %c0_106, %c0_107], %80 {strides = array<i32>} : memref<1x16x16x128xf32, #tpu.memory_space<vmem>>, vector<1x16x16x128xf32>,
    return
  }
  func.func @transform_0(%arg0: i32) -> (i32, i32, i32, i32) {
    %c0_i32 = arith.constant 0 : i32
    %c0_i32_0 = arith.constant 0 : i32
    %c0_i32_1 = arith.constant 0 : i32
    %c0_i32_2 = arith.constant 0 : i32
    return %arg0, %c0_i32, %c0_i32_0, %c0_i32_1 : i32, i32, i32, i32
  }
  func.func @transform_1(%arg0: i32) -> (i32, i32) {
    %c0_i32 = arith.constant 0 : i32
    %c0_i32_0 = arith.constant 0 : i32
    %c0_i32_1 = arith.constant 0 : i32
    return %c0_i32, %c0_i32_0 : i32, i32
  }
  func.func @transform_2(%arg0: i32) -> (i32, i32) {
    %c0_i32 = arith.constant 0 : i32
    %c0_i32_0 = arith.constant 0 : i32
    %c0_i32_1 = arith.constant 0 : i32
    return %c0_i32, %c0_i32_0 : i32, i32
  }
  func.func @transform_3(%arg0: i32) -> (i32, i32) {
    %c0_i32 = arith.constant 0 : i32
    %c0_i32_0 = arith.constant 0 : i32
    %c0_i32_1 = arith.constant 0 : i32
    return %c0_i32, %c0_i32_0 : i32, i32
  }
  func.func @transform_4(%arg0: i32) -> (i32, i32) {
    %c0_i32 = arith.constant 0 : i32
    %c0_i32_0 = arith.constant 0 : i32
    %c0_i32_1 = arith.constant 0 : i32
    return %c0_i32, %c0_i32_0 : i32, i32
  }
  func.func @transform_5(%arg0: i32) -> (i32, i32, i32, i32) {
    %c0_i32 = arith.constant 0 : i32
    %c0_i32_0 = arith.constant 0 : i32
    %c0_i32_1 = arith.constant 0 : i32
    %c0_i32_2 = arith.constant 0 : i32
    return %arg0, %c0_i32, %c0_i32_0, %c0_i32_1 : i32, i32, i32, i32
  }
}

</mosaic_0001>

<bundles_post_ra>
// kernel: conv_block_forward.1
= control target key start
LH: loop header
LB: loop body
LE: loop exit
PB: predicated region body
PF: predicated region fallthrough
CT: control target
= control target key end

     0   :  { %s10607_s18 = smov 0   ;;  %s13871_s0 = inlined_call_operand.vmem [shape: bf16[2,16,16,4], index: 0, kind: input, shape index: {}]   ;;  %s13872_s1 = inlined_call_operand.vmem [shape: bf16[36,128], index: 1, kind: input, shape index: {}]   ;;  %s13873_s2 = inlined_call_operand.vmem [shape: f32[1,128], index: 2, kind: input, shape index: {}]   ;;  %s13874_s3 = inlined_call_operand.vmem [shape: bf16[1152,128], index: 3, kind: input, shape index: {}]   ;;  %s13875_s4 = inlined_call_operand.vmem [shape: f32[1,128], index: 4, kind: input, shape index: {}]   ;;  %s13876_s5 = inlined_call_operand.vmem [shape: f32[2,16,16,128], index: 5, kind: output, shape index: {}]  }
   0x1 LB: > { %s9219_s19 = sadd.s32 4294967295, %s10566_s18   ;;  %p9223_p0 = scmp.ge.s32.totalorder %s10566_s18, 1  ;;  %s10566_s18 = sphi %s10607_s18, %s15_s18  }
   0x2   : > { %p187_p1 = scmp.lt.s32.totalorder %s10566_s18, 3 }
   0x4   : > { %p188_p2 = pnand %p9223_p0, %p187_p1 }
   0x6   : > { %191 = sbr.rel (%p188_p2) target bundleno = 1209 (0x4b9), region = 40 }
   0xd   : > { %vm226_vm0 = vcmask 27648   ;;  %vm229_vm1 = vcmask 24576   ;;  %v10568_v0 = vmov 0   ;;  %p215_p3 = scmp.lt.s32.totalorder %s9219_s19, 1  ;;  %vm1598_vm2 = vcmask 1042432   ;;  %s10569_s24 = smov 8  }
   0xe   : > { %227 = vst.msk [vmem:[#allocation2] sm:$0xf] %vm226_vm0, %v10568_v0  ;;  %228 = vst.msk [vmem:[#allocation2 + $0x4] sm:$0xf] %vm226_vm0, %v10568_v0  ;;  %vm1599_vm3 = vcmask 1046532   ;;  %s10570_s25 = smov 4  }
   0xf   : > { %230 = vst.msk [vmem:[#allocation2 + $0x8] sm:$0x1] %vm229_vm1, %v10568_v0  ;;  %233 = vst.msk [vmem:[#allocation2 + $0x14] sm:$0x1] %vm229_vm1, %v10568_v0  ;;  %s13982_s19 = smov (!%p215_p3, %s9219_s19), 1  ;;  %s10571_s26 = smov 12  }
  0x10   : > { %231 = vst.msk [vmem:[#allocation2 + $0xc] sm:$0xf] %vm226_vm0, %v10568_v0  ;;  %232 = vst.msk [vmem:[#allocation2 + $0x10] sm:$0xf] %vm226_vm0, %v10568_v0  ;;  %vm1002_vm4 = vsmask.f32 3328 }
  0x11   : > { %234 = vst.msk [vmem:[#allocation2 + $0x18] sm:$0xf] %vm226_vm0, %v10568_v0  ;;  %235 = vst.msk [vmem:[#allocation2 + $0x1c] sm:$0xf] %vm226_vm0, %v10568_v0  ;;  %s9739_s20 = sshll.u32 %s13982_s19, 7  ;;  %s10572_s27 = smov 24  }
  0x12   : > { %236 = vst.msk [vmem:[#allocation2 + $0x20] sm:$0x1] %vm229_vm1, %v10568_v0  ;;  %239 = vst.msk [vmem:[#allocation2 + $0x2c] sm:$0x1] %vm229_vm1, %v10568_v0  ;;  %vm1003_vm5 = vsmask.f32 7440  ;;  %s10787_s23 = scalar_lea.vmem %s13871_s0, %s9739_s20 }
  0x13   : > { %237 = vst.msk [vmem:[#allocation2 + $0x24] sm:$0xf] %vm226_vm0, %v10568_v0  ;;  %238 = vst.msk [vmem:[#allocation2 + $0x28] sm:$0xf] %vm226_vm0, %v10568_v0  ;;  %v338_v2 = vld [vmem:[%s10787_s23 + $0x8] sm:$0xf] }
  0x14   : > { %240 = vst.msk [vmem:[#allocation2 + $0x30] sm:$0xf] %vm226_vm0, %v10568_v0  ;;  %241 = vst.msk [vmem:[#allocation2 + $0x34] sm:$0xf] %vm226_vm0, %v10568_v0  ;;  %vm13877_vm7 = vsmask.f32 256 }
  0x15   : > { %242 = vst.msk [vmem:[#allocation2 + $0x38] sm:$0x1] %vm229_vm1, %v10568_v0  ;;  %245 = vst.msk [vmem:[#allocation2 + $0x44] sm:$0x1] %vm229_vm1, %v10568_v0  ;;  %vm369_vm8 = vsmask.f32 4368 }
  0x16   : > { %243 = vst.msk [vmem:[#allocation2 + $0x3c] sm:$0xf] %vm226_vm0, %v10568_v0  ;;  %244 = vst.msk [vmem:[#allocation2 + $0x40] sm:$0xf] %vm226_vm0, %v10568_v0  ;;  %vm13878_vm9 = vsmask.f32 7938 }
  0x17   : > { %246 = vst.msk [vmem:[#allocation2 + $0x48] sm:$0xf] %vm226_vm0, %v10568_v0  ;;  %247 = vst.msk [vmem:[#allocation2 + $0x4c] sm:$0xf] %vm226_vm0, %v10568_v0  ;;  %v1502_v3 = vld [vmem:[#allocation2] sm:$0xe] }
  0x18   : > { %248 = vst.msk [vmem:[#allocation2 + $0x50] sm:$0x1] %vm229_vm1, %v10568_v0  ;;  %251 = vst.msk [vmem:[#allocation2 + $0x5c] sm:$0x1] %vm229_vm1, %v10568_v0  ;;  %v1503_v4 = vld [vmem:[#allocation2 + $0x4] sm:$0xf] }
  0x19   : > { %249 = vst.msk [vmem:[#allocation2 + $0x54] sm:$0xf] %vm226_vm0, %v10568_v0  ;;  %250 = vst.msk [vmem:[#allocation2 + $0x58] sm:$0xf] %vm226_vm0, %v10568_v0  ;;  %v1504_v5 = vld [vmem:[#allocation2 + $0x8] sm:$0x1] }
  0x1a   : > { %252 = vst.msk [vmem:[#allocation2 + $0x60] sm:$0xf] %vm226_vm0, %v10568_v0  ;;  %253 = vst.msk [vmem:[#allocation2 + $0x64] sm:$0xf] %vm226_vm0, %v10568_v0  ;;  %v9260_v6 = vrot.slane %v1502_v3, 9  ;;  %v1603_v7 = vrot.slane %v1503_v4, 5 }
  0x1b   : > { %254 = vst.msk [vmem:[#allocation2 + $0x68] sm:$0x1] %vm229_vm1, %v10568_v0  ;;  %257 = vst.msk [vmem:[#allocation2 + $0x74] sm:$0x1] %vm229_vm1, %v10568_v0  ;;  %v1606_v8 = vrot.slane %v1504_v5, 5  ;;  %v389_v10 = vshrl.u32 %v338_v2, 16 }
  0x1c   : > { %255 = vst.msk [vmem:[#allocation2 + $0x6c] sm:$0xf] %vm226_vm0, %v10568_v0  ;;  %256 = vst.msk [vmem:[#allocation2 + $0x70] sm:$0xf] %vm226_vm0, %v10568_v0  ;;  %v954_v9 = vld [vmem:[#allocation2] sm:$0xf] }
  0x1d   : > { %258 = vst.msk [vmem:[#allocation2 + $0x78] sm:$0xf] %vm226_vm0, %v10568_v0  ;;  %259 = vst.msk [vmem:[#allocation2 + $0x7c] sm:$0xf] %vm226_vm0, %v10568_v0  ;;  %v955_v11 = vld [vmem:[#allocation2 + $0x4] sm:$0xf] }
  0x1e   : > { %260 = vst.msk [vmem:[#allocation2 + $0x80] sm:$0x1] %vm229_vm1, %v10568_v0  ;;  %263 = vst.msk [vmem:[#allocation2 + $0x8c] sm:$0x1] %vm229_vm1, %v10568_v0  ;;  %v956_v12 = vld [vmem:[#allocation2 + $0x8] sm:$0x1] }
  0x1f   : > { %261 = vst.msk [vmem:[#allocation2 + $0x84] sm:$0xf] %vm226_vm0, %v10568_v0  ;;  %262 = vst.msk [vmem:[#allocation2 + $0x88] sm:$0xf] %vm226_vm0, %v10568_v0  ;;  %v1006_v13 = vshrl.u32 %v954_v9, 16  ;;  %v1009_v14 = vshll.u32 %v954_v9, 16 }
  0x20   : > { %264 = vst.msk [vmem:[#allocation2 + $0x90] sm:$0xf] %vm226_vm0, %v10568_v0  ;;  %265 = vst.msk [vmem:[#allocation2 + $0x94] sm:$0xf] %vm226_vm0, %v10568_v0  ;;  %v1605_v16 = vrot.slane %v1603_v7, 4  ;;  %v1015_v17 = vshll.u32 %v955_v11, 16 }
  0x21   : > { %266 = vst.msk [vmem:[#allocation2 + $0x98] sm:$0x1] %vm229_vm1, %v10568_v0  ;;  %269 = vst.msk [vmem:[#allocation2 + $0xa4] sm:$0x1] %vm229_vm1, %v10568_v0  ;;  %v1019_v18 = vshrl.u32 %v955_v11, 16  ;;  %v1008_v20 = vrot.slane %v1006_v13, 4 }
  0x22   : > { %267 = vst.msk [vmem:[#allocation2 + $0x9c] sm:$0xf] %vm226_vm0, %v10568_v0  ;;  %268 = vst.msk [vmem:[#allocation2 + $0xa0] sm:$0xf] %vm226_vm0, %v10568_v0  ;;  %v339_v19 = vld [vmem:[%s10787_s23 + $0xc] sm:$0xf] }
  0x23   : > { %270 = vst.msk [vmem:[#allocation2 + $0xa8] sm:$0xf] %vm226_vm0, %v10568_v0  ;;  %271 = vst.msk [vmem:[#allocation2 + $0xac] sm:$0xf] %vm226_vm0, %v10568_v0  ;;  %v1011_v21 = vrot.slane %v1009_v14, 5  ;;  %v1025_v22 = vshll.u32 %v956_v12, 16 }
  0x24   : > { %272 = vst.msk [vmem:[#allocation2 + $0xb0] sm:$0x1] %vm229_vm1, %v10568_v0  ;;  %275 = vst.msk [vmem:[#allocation2 + $0xbc] sm:$0x1] %vm229_vm1, %v10568_v0  ;;  %v391_v23 = vrot.slane %v389_v10, 7  ;;  %v1017_v26 = vrot.slane %v1015_v17, 5 }
  0x25   : > { %273 = vst.msk [vmem:[#allocation2 + $0xb4] sm:$0xf] %vm226_vm0, %v10568_v0  ;;  %274 = vst.msk [vmem:[#allocation2 + $0xb8] sm:$0xf] %vm226_vm0, %v10568_v0  ;;  %v336_v24 = vld [vmem:[%s10787_s23] sm:$0xf]  ;;  %v1012_v31 = vor.u32 %v1011_v21, %v1008_v20 }
  0x26   : > { %276 = vst.msk [vmem:[#allocation2 + $0xc0] sm:$0xf] %vm226_vm0, %v10568_v0  ;;  %277 = vst.msk [vmem:[#allocation2 + $0xc4] sm:$0xf] %vm226_vm0, %v10568_v0  ;;  %v1021_v27 = vrot.slane %v1019_v18, 4  ;;  %v392_v28 = vshll.u32 %v338_v2, 16 }
  0x27   : > { %278 = vst.msk [vmem:[#allocation2 + $0xc8] sm:$0x1] %vm229_vm1, %v10568_v0  ;;  %281 = vst.msk [vmem:[#allocation2 + $0xd4] sm:$0x1] %vm229_vm1, %v10568_v0  ;;  %v337_v29 = vld [vmem:[%s10787_s23 + $0x4] sm:$0xf] }
  0x28   : > { %279 = vst.msk [vmem:[#allocation2 + $0xcc] sm:$0xf] %vm226_vm0, %v10568_v0  ;;  %280 = vst.msk [vmem:[#allocation2 + $0xd0] sm:$0xf] %vm226_vm0, %v10568_v0  ;;  %v1027_v32 = vrot.slane %v1025_v22, 5  ;;  %v395_v33 = vrot.slane %v391_v23, 4  ;;  %v1022_v37 = vor.u32 %v1021_v27, %v1017_v26  ;;  %v394_v38 = vor.u32 %v392_v28, %v391_v23 }
  0x29   : > { %282 = vst [vmem:[#allocation4] sm:$0xf] %v10568_v0  ;;  %283 = vst [vmem:[#allocation4 + $0x4] sm:$0xf] %v10568_v0  ;;  %v704_v35 = vld [vmem:[#allocation2 + $0x18] sm:$0xf] }
  0x2a   : > { %284 = vst [vmem:[#allocation4 + $0x8] sm:$0x1] %v10568_v0  ;;  %285 = vst [vmem:[#allocation4 + $0xc] sm:$0xf] %v10568_v0  ;;  %v397_v39 = vshrl.u32 %v339_v19, 16  ;;  %v400_v40 = vshll.u32 %v339_v19, 16 }
  0x2b   : > { %286 = vst [vmem:[#allocation4 + $0x10] sm:$0xf] %v10568_v0  ;;  %287 = vst [vmem:[#allocation4 + $0x14] sm:$0x1] %v10568_v0  ;;  %v340_v41 = vld [vmem:[%s10787_s23 + $0x10] sm:$0xf] }
  0x2c   : > { %288 = vst [vmem:[#allocation4 + $0x18] sm:$0xf] %v10568_v0  ;;  %289 = vst [vmem:[#allocation4 + $0x1c] sm:$0xf] %v10568_v0  ;;  %v1013_v42 = vrot.slane %v1012_v31, 4  ;;  %v372_v43 = vshrl.u32 %v336_v24, 16 }
  0x2d   : > { %290 = vst [vmem:[#allocation4 + $0x20] sm:$0x1] %v10568_v0  ;;  %291 = vst [vmem:[#allocation4 + $0x24] sm:$0xf] %v10568_v0  ;;  %v375_v44 = vshll.u32 %v336_v24, 16  ;;  %v380_v45 = vshrl.u32 %v337_v29, 16 }
  0x2e   : > { %292 = vst [vmem:[#allocation4 + $0x28] sm:$0xf] %v10568_v0  ;;  %293 = vst [vmem:[#allocation4 + $0x2c] sm:$0x1] %v10568_v0  ;;  %v1023_v46 = vrot.slane %v1022_v37, 4  ;;  %v399_v47 = vrot.slane %v397_v39, 7 }
  0x2f   : > { %294 = vst [vmem:[#allocation4 + $0x30] sm:$0xf] %v10568_v0  ;;  %295 = vst [vmem:[#allocation4 + $0x34] sm:$0xf] %v10568_v0  ;;  %v383_v49 = vshll.u32 %v337_v29, 16  ;;  %v374_v52 = vrot.slane %v372_v43, 7 }
  0x30   : > { %296 = vst [vmem:[#allocation4 + $0x38] sm:$0x1] %v10568_v0  ;;  %297 = vst [vmem:[#allocation4 + $0x3c] sm:$0xf] %v10568_v0  ;;  %v382_v53 = vrot.slane %v380_v45, 7  ;;  %v406_v55 = vshrl.u32 %v340_v41, 16  ;;  %v402_v57 = vor.u32 %v400_v40, %v399_v47 }
  0x31   : > { %298 = vst [vmem:[#allocation4 + $0x40] sm:$0xf] %v10568_v0  ;;  %299 = vst [vmem:[#allocation4 + $0x44] sm:$0x1] %v10568_v0  ;;  %v341_v54 = vld [vmem:[%s10787_s23 + $0x14] sm:$0xf]  ;;  %v377_v63 = vor.u32 %v375_v44, %v374_v52 }
  0x32   : > { %300 = vst [vmem:[#allocation4 + $0x48] sm:$0xf] %v10568_v0  ;;  %301 = vst [vmem:[#allocation4 + $0x4c] sm:$0xf] %v10568_v0  ;;  %v404_v58 = vrot.slane %v399_v47, 4  ;;  %v409_v60 = vshll.u32 %v340_v41, 16  ;;  %v385_v2 = vor.u32 %v383_v49, %v382_v53 }
  0x33   : > { %302 = vst [vmem:[#allocation4 + $0x50] sm:$0x1] %v10568_v0  ;;  %303 = vst [vmem:[#allocation4 + $0x54] sm:$0xf] %v10568_v0  ;;  %v695_v59 = vld [vmem:[#allocation2 + $0xc] sm:$0xf] }
  0x34   : > { %304 = vst [vmem:[#allocation4 + $0x58] sm:$0xf] %v10568_v0  ;;  %305 = vst [vmem:[#allocation4 + $0x5c] sm:$0x1] %v10568_v0  ;;  %v708_v61 = vld [vmem:[#allocation2 + $0x20] sm:$0x1] }
  0x35   : > { %306 = vst [vmem:[#allocation4 + $0x60] sm:$0xf] %v10568_v0  ;;  %307 = vst [vmem:[#allocation4 + $0x64] sm:$0xf] %v10568_v0  ;;  %v701_v4 = vld [vmem:[#allocation2 + $0x14] sm:$0x1] }
  0x36   : > { %308 = vst [vmem:[#allocation4 + $0x68] sm:$0x1] %v10568_v0  ;;  %309 = vst [vmem:[#allocation4 + $0x6c] sm:$0xf] %v10568_v0  ;;  %v10835_v5 = vld [vmem:[%s10787_s23 + $0x18] sm:$0xf] }
  0x37   : > { %310 = vst [vmem:[#allocation4 + $0x70] sm:$0xf] %v10568_v0  ;;  %311 = vst [vmem:[#allocation4 + $0x74] sm:$0x1] %v10568_v0  ;;  %v414_v9 = vshrl.u32 %v341_v54, 16  ;;  %v417_v13 = vshll.u32 %v341_v54, 16 }
  0x38   : > { %312 = vst [vmem:[#allocation4 + $0x78] sm:$0xf] %v10568_v0  ;;  %313 = vst [vmem:[#allocation4 + $0x7c] sm:$0xf] %v10568_v0  ;;  %v10840_v10 = vld [vmem:[%s10787_s23 + $0x1c] sm:$0xf] }
  0x39   : > { %314 = vst [vmem:[#allocation4 + $0x80] sm:$0x1] %v10568_v0  ;;  %315 = vst [vmem:[#allocation4 + $0x84] sm:$0xf] %v10568_v0  ;;  %v711_v14 = vld [vmem:[#allocation2 + $0x24] sm:$0xf] }
  0x3a   : > { %316 = vst [vmem:[#allocation4 + $0x88] sm:$0xf] %v10568_v0  ;;  %317 = vst [vmem:[#allocation4 + $0x8c] sm:$0x1] %v10568_v0  ;;  %v416_v19 = vrot.slane %v414_v9, 7  ;;  %v423_v22 = vshrl.u32 %v10835_v5, 16 }
  0x3b   : > { %318 = vst [vmem:[#allocation4 + $0x90] sm:$0xf] %v10568_v0  ;;  %319 = vst [vmem:[#allocation4 + $0x94] sm:$0xf] %v10568_v0  ;;  %v715_v21 = vld [vmem:[#allocation2 + $0x2c] sm:$0x1] }
  0x3c   : > { %320 = vst [vmem:[#allocation4 + $0x98] sm:$0x1] %v10568_v0  ;;  %321 = vst [vmem:[#allocation4 + $0x9c] sm:$0xf] %v10568_v0  ;;  %v426_v23 = vshll.u32 %v10835_v5, 16  ;;  %v431_v24 = vshrl.u32 %v10840_v10, 16 }
  0x3d   : > { %322 = vst [vmem:[#allocation4 + $0xa0] sm:$0xf] %v10568_v0  ;;  %323 = vst [vmem:[#allocation4 + $0xa4] sm:$0x1] %v10568_v0  ;;  %v421_v27 = vrot.slane %v416_v19, 4  ;;  %s10573_s28 = smov 20  }
  0x3e   : > { %324 = vst [vmem:[#allocation4 + $0xa8] sm:$0xf] %v10568_v0  ;;  %325 = vst [vmem:[#allocation4 + $0xac] sm:$0xf] %v10568_v0  ;;  %s10574_s29 = smov 32   ;;  %s10575_s30 = smov 16  }
  0x3f   : > { %326 = vst [vmem:[#allocation4 + $0xb0] sm:$0x1] %v10568_v0  ;;  %327 = vst [vmem:[#allocation4 + $0xb4] sm:$0xf] %v10568_v0  ;;  %s10576_s6 = smov 28   ;;  %vm937_vm14 = vcmask 31744  }
  0x40   : > { %328 = vst [vmem:[#allocation4 + $0xb8] sm:$0xf] %v10568_v0  ;;  %329 = vst [vmem:[#allocation4 + $0xbc] sm:$0x1] %v10568_v0  ;;  %vm1485_vm15 = vcmask 64544   ;;  %s9740_s16 = sshll.u32 %s13982_s19, 8 }
  0x41   : > { %330 = vst [vmem:[#allocation4 + $0xc0] sm:$0xf] %v10568_v0  ;;  %331 = vst [vmem:[#allocation4 + $0xc4] sm:$0xf] %v10568_v0  ;;  %s13801_s21 = scalar_lea.vmem %s13876_s5, %s9740_s16 }
  0x42   : > { %332 = vst [vmem:[#allocation4 + $0xc8] sm:$0x1] %v10568_v0  ;;  %333 = vst [vmem:[#allocation4 + $0xcc] sm:$0xf] %v10568_v0 }
  0x43   : > { %334 = vst [vmem:[#allocation4 + $0xd0] sm:$0xf] %v10568_v0  ;;  %335 = vst [vmem:[#allocation4 + $0xd4] sm:$0x1] %v10568_v0  ;;  %v378_v0 = vrot.slane %v374_v52, 4 }
  0x44   : > { %vm10789_vm6 = vmor %vm1598_vm2, %vm1599_vm3  ;;  %vm1986_vm2 = vcmask 130144   ;;  %vm2531_vm3 = vcmask 162944  }
  0x45   : > { %v1604_v15 = vsel %vm10789_vm6, %v9260_v6, %v1603_v7  ;;  %v1607_v25 = vsel %vm10789_vm6, %v1605_v16, %v1606_v8  ;;  %vm10803_vm10 = vmand %vm226_vm0, %vm13878_vm9  ;;  %v387_v7 = vrot.slane %v382_v53, 4  ;;  %v408_v8 = vrot.slane %v406_v55, 7  ;;  %v10851_v16 = vld [vmem:[%s10787_s23 + $0x20] sm:$0xf] }
  0x46   : > { %v9276_v30 = vcombine.low %v1604_v15, %v1607_v25  ;;  %vm10809_vm11 = vmor %vm1002_vm4, %vm1003_vm5  ;;  %v705_v48 = vsel %vm10803_vm10, %v394_v38, %v704_v35  ;;  %v696_v12 = vsel %vm10803_vm10, %v377_v63, %v695_v59  ;;  %v434_v25 = vshll.u32 %v10840_v10, 16  ;;  %v345_v10 = vld [vmem:[%s10787_s23 + $0x24] sm:$0xf] }
  0x47   : > { %v1018_v50 = vsel %vm10809_vm11, %v1013_v42, %v1017_v26  ;;  %vm10821_vm12 = vmor %vm13877_vm7, %vm369_vm8  ;;  %706 = vst [vmem:[#allocation2 + $0x18] sm:$0xf] %v705_v48  ;;  %v1028_v56 = vsel %vm10809_vm11, %v1023_v46, %v1027_v32  ;;  %v411_v17 = vor.u32 %v409_v60, %v408_v8  ;;  %v412_v18 = vrot.slane %v408_v8, 4 }
  0x48   : > { %1761 = vrot.lane.b32.xlu1 %v9276_v30, %s10569_s24  ;;  %v9244_v62 = vcombine.low %v1018_v50, %v1028_v56  ;;  %vm10830_vm13 = vmand %vm229_vm1, %vm13877_vm7  ;;  %v403_v6 = vsel %vm10821_vm12, %v395_v33, %v402_v57  ;;  %v386_v11 = vsel %vm10821_vm12, %v378_v0, %v385_v2  ;;  %697 = vst [vmem:[#allocation2 + $0xc] sm:$0xf] %v696_v12  ;;  %v440_v29 = vshrl.u32 %v10851_v16, 16 }
  0x49   : > { %707 = vst.msk [vmem:[#allocation2 + $0x1c] sm:$0xf] %vm226_vm0, %v403_v6  ;;  %v709_v15 = vsel %vm10830_vm13, %v404_v58, %v708_v61  ;;  %698 = vst.msk [vmem:[#allocation2 + $0x10] sm:$0xf] %vm226_vm0, %v386_v11  ;;  %v702_v20 = vsel %vm10830_vm13, %v387_v7, %v701_v4  ;;  %v419_v26 = vor.u32 %v417_v13, %v416_v19  ;;  %vm1809_vm1 = vcmask 97344  }
  0x4a   : > { %1437 = vrot.lane.b32.xlu0 %v9244_v62, %s10570_s25  ;;  %710 = vst [vmem:[#allocation2 + $0x20] sm:$0x1] %v709_v15  ;;  %703 = vst [vmem:[#allocation2 + $0x14] sm:$0x1] %v702_v20  ;;  %v712_v28 = vsel %vm10803_vm10, %v411_v17, %v711_v14  ;;  %v716_v38 = vsel %vm10830_vm13, %v421_v27, %v715_v21  ;;  %vm13880_vm4 = vcmask 195744   ;;  %vm13879_vm5 = vcmask 228544  }
  0x4b   : > { %713 = vst [vmem:[#allocation2 + $0x24] sm:$0xf] %v712_v28  ;;  %v420_v33 = vsel %vm10821_vm12, %v412_v18, %v419_v26  ;;  %717 = vst [vmem:[#allocation2 + $0x2c] sm:$0x1] %v716_v38  ;;  %vm3575_vm8 = vcmask 261344   ;;  %vm3896_vm7 = vcmask 294144  }
  0x4c   : > { %714 = vst.msk [vmem:[#allocation2 + $0x28] sm:$0xf] %vm226_vm0, %v420_v33  ;;  %vm4005_vm9 = vcmask 1041408  }
  0x4e   : > { %v3592_v30 = vld [vmem:[#allocation2 + $0x18] sm:$0xe] }
  0x4f   : > { %v10863_v31 = vld [vmem:[#allocation2 + $0x18] sm:$0xe]  ;;  %v9388_v35 = vrot.slane %v3592_v30, 9  ;;  %v2548_v50 = vld [vmem:[#allocation2 + $0xc] sm:$0xe] }
  0x50   : > { %v2006_v32 = vld [vmem:[#allocation2 + $0x18] sm:$0xf]  ;;  %v9325_v37 = vrot.slane %v10863_v31, 9  ;;  %v10385_v47 = vld [vmem:[#allocation2 + $0xc] sm:$0xff]   ;;  %v9324_v55 = vrot.slane %v2548_v50, 9 }
  0x51   : > { %v10870_v39 = vld [vmem:[#allocation2 + $0x18] sm:$0xf]  ;;  %v2076_v41 = vshrl.u32 %v2006_v32, 16  ;;  %v2079_v42 = vshll.u32 %v2006_v32, 16  ;;  %v2549_v52 = vld [vmem:[#allocation2 + $0x10] sm:$0xf]  ;;  %1938 = vrot.lane.b32.xlu0 %v10385_v47, %s10571_s26 }
  0x52   : > { %v10872_v40 = vld [vmem:[#allocation2 + $0x18] sm:$0xf]  ;;  %v3096_v43 = vshrl.u32 %v10870_v39, 16  ;;  %v3099_v44 = vshll.u32 %v10870_v39, 16  ;;  %v2550_v54 = vld [vmem:[#allocation2 + $0x14] sm:$0x1] }
  0x53   : > { %v10384_v45 = vld [vmem:[#allocation2 + $0x18] sm:$0xff]   ;;  %v1054_v46 = vshrl.u32 %v10872_v40, 16  ;;  %v10878_v48 = vrot.slane %v2076_v41, 4  ;;  %v10881_v53 = vrot.slane %v2079_v42, 5  ;;  %v2646_v56 = vrot.slane %v2549_v52, 5  ;;  %v10386_v4 = vld [vmem:[#allocation2 + $0x24] sm:$0xff]  }
  0x54   : > { %1940 = vrot.lane.b32.xlu1 %v10384_v45, %s10571_s26  ;;  %v10387_v49 = vld [vmem:[#allocation2 + $0x18] sm:$0xff]   ;;  %v1505_v57 = vld [vmem:[#allocation2 + $0xc] sm:$0xe]  ;;  %v2649_v58 = vrot.slane %v2550_v54, 5  ;;  %v1506_v59 = vld [vmem:[#allocation2 + $0x10] sm:$0xf] }
  0x55   : > { %v9261_v60 = vrot.slane %v1505_v57, 9  ;;  %v2647_v61 = vsel %vm10789_vm6, %v9324_v55, %v2646_v56  ;;  %v2648_v62 = vrot.slane %v2646_v56, 4  ;;  %v1507_v63 = vld [vmem:[#allocation2 + $0x14] sm:$0x1]  ;;  %v1610_v0 = vrot.slane %v1506_v59, 5  ;;  %2982 = vrot.lane.b32.xlu0 %v10387_v49, %s10572_s27 }
  0x56   : > { %v3593_v2 = vld [vmem:[#allocation2 + $0x1c] sm:$0xf]  ;;  %v1613_v6 = vrot.slane %v1507_v63, 5  ;;  %v3594_v7 = vld [vmem:[#allocation2 + $0x20] sm:$0x1]  ;;  %v2082_v8 = vor.u32 %v10881_v53, %v10878_v48 }
  0x57   : > { %v2650_v9 = vsel %vm10789_vm6, %v2648_v62, %v2649_v58  ;;  %v1611_v11 = vsel %vm10789_vm6, %v9261_v60, %v1610_v0  ;;  %v1612_v12 = vrot.slane %v1610_v0, 4  ;;  %v3690_v13 = vrot.slane %v3593_v2, 5  ;;  %v2552_v14 = vld [vmem:[#allocation2 + $0x1c] sm:$0xf]  ;;  %v2553_v15 = vld [vmem:[#allocation2 + $0x20] sm:$0x1] }
  0x58   : > { %2984 = vrot.lane.b32.xlu1 %v10386_v4, %s10572_s27  ;;  %v9340_v17 = vcombine.low %v2647_v61, %v2650_v9  ;;  %v3693_v18 = vrot.slane %v3594_v7, 5  ;;  %v2653_v19 = vrot.slane %v2552_v14, 5  ;;  %v2656_v20 = vrot.slane %v2553_v15, 5  ;;  %v3595_v21 = vld [vmem:[#allocation2 + $0x24] sm:$0xe] }
  0x59   : > { %v1614_v26 = vsel %vm10789_vm6, %v1612_v12, %v1613_v6  ;;  %v3691_v27 = vsel %vm10789_vm6, %v9388_v35, %v3690_v13  ;;  %v3692_v28 = vrot.slane %v3690_v13, 4  ;;  %v3596_v30 = vld [vmem:[#allocation2 + $0x28] sm:$0xf]  ;;  %v3597_v31 = vld [vmem:[#allocation2 + $0x2c] sm:$0x1]  ;;  %v9389_v32 = vrot.slane %v3595_v21, 9 }
  0x5a   : > { %v9277_v33 = vcombine.low %v1611_v11, %v1614_v26  ;;  %v2654_v38 = vsel %vm10789_vm6, %v9325_v37, %v2653_v19  ;;  %v2655_v41 = vrot.slane %v2653_v19, 4  ;;  %v3697_v42 = vrot.slane %v3596_v30, 5  ;;  %v957_v45 = vld [vmem:[#allocation2 + $0xc] sm:$0xf]  ;;  %v958_v47 = vld [vmem:[#allocation2 + $0x10] sm:$0xf]  ;;  %2804 = vrot.lane.b32.xlu0 %v9340_v17, %s10573_s28 }
  0x5b   : > { %v3694_v48 = vsel %vm10789_vm6, %v3692_v28, %v3693_v18  ;;  %v3700_v49 = vrot.slane %v3597_v31, 5  ;;  %v959_v35 = vld [vmem:[#allocation2 + $0x14] sm:$0x1]  ;;  %v1030_v50 = vshrl.u32 %v957_v45, 16  ;;  %v1033_v52 = vshll.u32 %v957_v45, 16 }
  0x5c   : > { %1763 = vrot.lane.b32.xlu1 %v9277_v33, %s10569_s24  ;;  %v9404_v53 = vcombine.low %v3691_v27, %v3694_v48  ;;  %v2657_v37 = vsel %vm10789_vm6, %v2655_v41, %v2656_v20  ;;  %v3698_v54 = vsel %vm10789_vm6, %v9389_v32, %v3697_v42  ;;  %v3699_v55 = vrot.slane %v3697_v42, 4  ;;  %v2007_v56 = vld [vmem:[#allocation2 + $0x1c] sm:$0xf]  ;;  %v2008_v61 = vld [vmem:[#allocation2 + $0x20] sm:$0x1] }
  0x5d   : > { %v9341_v57 = vcombine.low %v2654_v38, %v2657_v37  ;;  %v1032_v58 = vrot.slane %v1030_v50, 4  ;;  %v1035_v59 = vrot.slane %v1033_v52, 5  ;;  %v1039_v60 = vshll.u32 %v958_v47, 16  ;;  %v2003_v4 = vld [vmem:[#allocation2 + $0xc] sm:$0xf] }
  0x5e   : > { %v3701_v62 = vsel %vm10789_vm6, %v3699_v55, %v3700_v49  ;;  %v1043_v63 = vshrl.u32 %v958_v47, 16  ;;  %v1049_v0 = vshll.u32 %v959_v35, 16  ;;  %v2083_v2 = vrot.slane %v2082_v8, 4  ;;  %3848 = vrot.lane.b32.xlu0 %v9404_v53, %s10574_s29  ;;  %v2004_v12 = vld [vmem:[#allocation2 + $0x10] sm:$0xf] }
  0x5f   : > { %v9405_v6 = vcombine.low %v3698_v54, %v3701_v62  ;;  %v1036_v7 = vor.u32 %v1035_v59, %v1032_v58  ;;  %v1041_v9 = vrot.slane %v1039_v60, 5  ;;  %v2085_v11 = vshll.u32 %v2007_v56, 16  ;;  %v2005_v20 = vld [vmem:[#allocation2 + $0x14] sm:$0x1]  ;;  %v3050_v31 = vld [vmem:[#allocation2 + $0x24] sm:$0xf] }
  0x60   : > { %2806 = vrot.lane.b32.xlu1 %v9341_v57, %s10573_s28  ;;  %v1045_v13 = vrot.slane %v1043_v63, 4  ;;  %v1051_v14 = vrot.slane %v1049_v0, 5  ;;  %v2089_v15 = vshrl.u32 %v2007_v56, 16  ;;  %v2095_v17 = vshll.u32 %v2008_v61, 16  ;;  %v3051_v42 = vld [vmem:[#allocation2 + $0x28] sm:$0xf] }
  0x61   : > { %v1037_v18 = vrot.slane %v1036_v7, 4  ;;  %v2087_v19 = vrot.slane %v2085_v11, 5  ;;  %v2052_v21 = vshrl.u32 %v2003_v4, 16  ;;  %v2055_v8 = vshll.u32 %v2003_v4, 16  ;;  %v3052_v56 = vld [vmem:[#allocation2 + $0x2c] sm:$0x1] }
  0x62   : > { %v1046_v26 = vor.u32 %v1045_v13, %v1041_v9  ;;  %v2091_v27 = vrot.slane %v2089_v15, 4  ;;  %v2097_v28 = vrot.slane %v2095_v17, 5  ;;  %v2061_v30 = vshll.u32 %v2004_v12, 16  ;;  %v3048_v4 = vld [vmem:[#allocation2 + $0x1c] sm:$0xf] }
  0x63   : > { %v1042_v32 = vsel %vm10809_vm11, %v1037_v18, %v1041_v9  ;;  %v2088_v33 = vsel %vm10809_vm11, %v2083_v2, %v2087_v19  ;;  %v2054_v38 = vrot.slane %v2052_v21, 4  ;;  %v2057_v41 = vrot.slane %v2055_v8, 5  ;;  %v962_v39 = vld [vmem:[#allocation2 + $0x20] sm:$0x1] }
  0x64   : > { %3850 = vrot.lane.b32.xlu1 %v9405_v6, %s10574_s29  ;;  %v1047_v45 = vrot.slane %v1046_v26, 4  ;;  %v2092_v47 = vor.u32 %v2091_v27, %v2087_v19  ;;  %v2063_v48 = vrot.slane %v2061_v30, 5  ;;  %v2065_v49 = vshrl.u32 %v2004_v12, 16  ;;  %v3049_v12 = vld [vmem:[#allocation2 + $0x20] sm:$0x1] }
  0x65   : > { %v2058_v35 = vor.u32 %v2057_v41, %v2054_v38  ;;  %v2071_v50 = vshll.u32 %v2005_v20, 16  ;;  %v3120_v52 = vshrl.u32 %v3050_v31, 16  ;;  %v3123_v53 = vshll.u32 %v3050_v31, 16  ;;  %v961_v30 = vld [vmem:[#allocation2 + $0x1c] sm:$0xf] }
  0x66   : > { %v1052_v37 = vsel %vm10809_vm11, %v1047_v45, %v1051_v14  ;;  %v2093_v54 = vrot.slane %v2092_v47, 4  ;;  %v2067_v55 = vrot.slane %v2065_v49, 4  ;;  %v3129_v57 = vshll.u32 %v3051_v42, 16 }
  0x67   : > { %v9245_v58 = vcombine.low %v1042_v32, %v1052_v37  ;;  %v2059_v59 = vrot.slane %v2058_v35, 4  ;;  %v2073_v60 = vrot.slane %v2071_v50, 5  ;;  %v3122_v61 = vrot.slane %v3120_v52, 4  ;;  %v964_v37 = vld [vmem:[#allocation2 + $0x28] sm:$0xf] }
  0x68   : > { %v2098_v62 = vsel %vm10809_vm11, %v2093_v54, %v2097_v28  ;;  %v2068_v63 = vor.u32 %v2067_v55, %v2063_v48  ;;  %v3125_v0 = vrot.slane %v3123_v53, 5  ;;  %v3131_v2 = vrot.slane %v3129_v57, 5 }
  0x69   : > { %1439 = vrot.lane.b32.xlu0 %v9245_v58, %s10570_s25  ;;  %v9309_v6 = vcombine.low %v2088_v33, %v2098_v62  ;;  %v2064_v7 = vsel %vm10809_vm11, %v2059_v59, %v2063_v48  ;;  %v3133_v9 = vshrl.u32 %v3051_v42, 16  ;;  %v3139_v11 = vshll.u32 %v3052_v56, 16  ;;  %v965_v58 = vld [vmem:[#allocation2 + $0x2c] sm:$0x1] }
  0x6a   : > { %v2069_v13 = vrot.slane %v2068_v63, 4  ;;  %v3126_v14 = vor.u32 %v3125_v0, %v3122_v61  ;;  %v3098_v15 = vrot.slane %v3096_v43, 4  ;;  %v3101_v17 = vrot.slane %v3099_v44, 5  ;;  %v963_v44 = vld [vmem:[#allocation2 + $0x24] sm:$0xf] }
  0x6b   : > { %2485 = vrot.lane.b32.xlu1 %v9309_v6, %s10575_s30  ;;  %v3135_v18 = vrot.slane %v3133_v9, 4  ;;  %v3141_v19 = vrot.slane %v3139_v11, 5  ;;  %v3105_v20 = vshll.u32 %v3048_v4, 16  ;;  %v3109_v21 = vshrl.u32 %v3048_v4, 16  ;;  %v1509_v6 = vld [vmem:[#allocation2 + $0x1c] sm:$0xf] }
  0x6c   : > { %v2074_v8 = vsel %vm10809_vm11, %v2069_v13, %v2073_v60  ;;  %v3127_v26 = vrot.slane %v3126_v14, 4  ;;  %v3102_v27 = vor.u32 %v3101_v17, %v3098_v15  ;;  %v3115_v28 = vshll.u32 %v3049_v12, 16  ;;  %v1510_v13 = vld [vmem:[#allocation2 + $0x20] sm:$0x1]  ;;  %v1511_v14 = vld [vmem:[#allocation2 + $0x24] sm:$0xe] }
  0x6d   : > { %v9308_v31 = vcombine.low %v2064_v7, %v2074_v8  ;;  %v3136_v32 = vor.u32 %v3135_v18, %v3131_v2  ;;  %v3107_v43 = vrot.slane %v3105_v20, 5  ;;  %v3111_v33 = vrot.slane %v3109_v21, 4  ;;  %v1512_v20 = vld [vmem:[#allocation2 + $0x28] sm:$0xf] }
  0x6e   : > { %v3132_v38 = vsel %vm10809_vm11, %v3127_v26, %v3131_v2  ;;  %v3103_v41 = vrot.slane %v3102_v27, 4  ;;  %v3117_v42 = vrot.slane %v3115_v28, 5  ;;  %v1056_v45 = vrot.slane %v1054_v46, 4  ;;  %v1513_v28 = vld [vmem:[#allocation2 + $0x2c] sm:$0x1] }
  0x6f   : > { %2483 = vrot.lane.b32.xlu0 %v9308_v31, %s10575_s30  ;;  %v3137_v47 = vrot.slane %v3136_v32, 4  ;;  %v3112_v48 = vor.u32 %v3111_v33, %v3107_v43  ;;  %v1057_v49 = vshll.u32 %v10872_v40, 16  ;;  %v1063_v35 = vshll.u32 %v961_v30, 16  ;;  %v1508_v40 = vld [vmem:[#allocation2 + $0x18] sm:$0xe] }
  0x70   : > { %v3108_v50 = vsel %vm10809_vm11, %v3103_v41, %v3107_v43  ;;  %v1067_v52 = vshrl.u32 %v961_v30, 16  ;;  %v1073_v53 = vshll.u32 %v962_v39, 16  ;;  %v1078_v54 = vshrl.u32 %v963_v44, 16 }
  0x71   : > { %v3142_v55 = vsel %vm10809_vm11, %v3137_v47, %v3141_v19  ;;  %v3113_v56 = vrot.slane %v3112_v48, 4  ;;  %v1059_v57 = vrot.slane %v1057_v49, 5  ;;  %v1065_v46 = vrot.slane %v1063_v35, 5  ;;  %v718_v48 = vld [vmem:[#allocation2 + $0x30] sm:$0xf] }
  0x72   : > { %v9373_v59 = vcombine.low %v3132_v38, %v3142_v55  ;;  %v1069_v60 = vrot.slane %v1067_v52, 4  ;;  %v1075_v61 = vrot.slane %v1073_v53, 5  ;;  %v1080_v62 = vrot.slane %v1078_v54, 4  ;;  %v2009_v49 = vld [vmem:[#allocation2 + $0x24] sm:$0xf] }
  0x73   : > { %v3118_v63 = vsel %vm10809_vm11, %v3113_v56, %v3117_v42  ;;  %v1060_v0 = vor.u32 %v1059_v57, %v1056_v45  ;;  %v1081_v2 = vshll.u32 %v963_v44, 16  ;;  %v1087_v4 = vshll.u32 %v964_v37, 16  ;;  %v2011_v54 = vld [vmem:[#allocation2 + $0x2c] sm:$0x1] }
  0x74   : > { %3529 = vrot.lane.b32.xlu1 %v9373_v59, %s10576_s6  ;;  %v9372_v7 = vcombine.low %v3108_v50, %v3118_v63  ;;  %v1070_v9 = vor.u32 %v1069_v60, %v1065_v46  ;;  %v1091_v11 = vshrl.u32 %v964_v37, 16  ;;  %v1097_v12 = vshll.u32 %v965_v58, 16  ;;  %v2010_v37 = vld [vmem:[#allocation2 + $0x28] sm:$0xf]  ;;  %v722_v58 = vld [vmem:[#allocation2 + $0x38] sm:$0x1] }
  0x75   : > { %v1061_v15 = vrot.slane %v1060_v0, 4  ;;  %v1083_v17 = vrot.slane %v1081_v2, 5  ;;  %v1089_v18 = vrot.slane %v1087_v4, 5  ;;  %v9262_v19 = vrot.slane %v1508_v40, 9  ;;  %v2554_v59 = vld [vmem:[#allocation2 + $0x24] sm:$0xe] }
  0x76   : > { %3527 = vrot.lane.b32.xlu0 %v9372_v7, %s10576_s6  ;;  %v1071_v21 = vrot.slane %v1070_v9, 4  ;;  %v1093_v8 = vrot.slane %v1091_v11, 4  ;;  %v1099_v26 = vrot.slane %v1097_v12, 5  ;;  %v1617_v27 = vrot.slane %v1509_v6, 5  ;;  %v2556_v4 = vld [vmem:[#allocation2 + $0x2c] sm:$0x1] }
  0x77   : > { %v1066_v30 = vsel %vm10809_vm11, %v1061_v15, %v1065_v46  ;;  %v1084_v31 = vor.u32 %v1083_v17, %v1080_v62  ;;  %v1620_v32 = vrot.slane %v1510_v13, 5  ;;  %v9263_v43 = vrot.slane %v1511_v14, 9  ;;  %v2555_v62 = vld [vmem:[#allocation2 + $0x28] sm:$0xf] }
  0x78   : > { %v1076_v33 = vsel %vm10809_vm11, %v1071_v21, %v1075_v61  ;;  %v1094_v39 = vor.u32 %v1093_v8, %v1089_v18  ;;  %v1618_v44 = vsel %vm10789_vm6, %v9262_v19, %v1617_v27  ;;  %v1619_v38 = vrot.slane %v1617_v27, 4  ;;  %v10388_v7 = vld [vmem:[#allocation2 + $0x24] sm:$0xff]  }
  0x79   : > { %v9246_v41 = vcombine.low %v1066_v30, %v1076_v33  ;;  %v1085_v42 = vrot.slane %v1084_v31, 4  ;;  %v1624_v45 = vrot.slane %v1512_v20, 5  ;;  %v1627_v47 = vrot.slane %v1513_v28, 5  ;;  %v10979_v14 = vld [vmem:[%s10787_s23 + $0x28] sm:$0xf] }
  0x7a   : > { %v1095_v35 = vrot.slane %v1094_v39, 4  ;;  %v1621_v50 = vsel %vm10789_vm6, %v1619_v38, %v1620_v32  ;;  %v425_v52 = vrot.slane %v423_v22, 7  ;;  %v433_v53 = vrot.slane %v431_v24, 7  ;;  %v725_v31 = vld [vmem:[#allocation2 + $0x3c] sm:$0xf] }
  0x7b   : > { %1441 = vrot.lane.b32.xlu0 %v9246_v41, %s10570_s25  ;;  %v1090_v55 = vsel %vm10809_vm11, %v1085_v42, %v1089_v18  ;;  %v9278_v56 = vcombine.low %v1618_v44, %v1621_v50  ;;  %v1625_v57 = vsel %vm10789_vm6, %v9263_v43, %v1624_v45  ;;  %v1626_v46 = vrot.slane %v1624_v45, 4 }
  0x7c   : > { %v1100_v22 = vsel %vm10809_vm11, %v1095_v35, %v1099_v26  ;;  %v428_v24 = vor.u32 %v426_v23, %v425_v52  ;;  %v429_v60 = vrot.slane %v425_v52, 4  ;;  %v436_v61 = vor.u32 %v434_v25, %v433_v53 }
  0x7d   : > { %v9247_v40 = vcombine.low %v1090_v55, %v1100_v22  ;;  %v1628_v63 = vsel %vm10789_vm6, %v1626_v46, %v1627_v47  ;;  %v438_v0 = vrot.slane %v433_v53, 4  ;;  %v2100_v2 = vshrl.u32 %v2009_v49, 16 }
  0x7e   : > { %v9279_v6 = vcombine.low %v1625_v57, %v1628_v63  ;;  %v437_v9 = vsel %vm10821_vm12, %v429_v60, %v436_v61  ;;  %v719_v5 = vsel %vm10803_vm10, %v428_v24, %v718_v48  ;;  %v2103_v23 = vshll.u32 %v2009_v49, 16 }
  0x7f   : > { %1443 = vrot.lane.b32.xlu1 %v9247_v40, %s10570_s25  ;;  %1765 = vrot.lane.b32.xlu0 %v9278_v56, %s10569_s24  ;;  %720 = vst [vmem:[#allocation2 + $0x30] sm:$0xf] %v719_v5  ;;  %721 = vst.msk [vmem:[#allocation2 + $0x34] sm:$0xf] %vm226_vm0, %v437_v9  ;;  %v2102_v25 = vrot.slane %v2100_v2, 4  ;;  %v2109_v11 = vshll.u32 %v2010_v37, 16  ;;  %v723_v17 = vsel %vm10830_vm13, %v438_v0, %v722_v58 }
  0x80   : > { %v2113_v12 = vshrl.u32 %v2010_v37, 16  ;;  %v2119_v13 = vshll.u32 %v2011_v54, 16  ;;  %v2105_v15 = vrot.slane %v2103_v23, 5  ;;  %v9326_v18 = vrot.slane %v2554_v59, 9  ;;  %724 = vst [vmem:[#allocation2 + $0x38] sm:$0x1] %v723_v17 }
  0x81   : > { %v2660_v19 = vrot.slane %v2555_v62, 5  ;;  %v2111_v20 = vrot.slane %v2109_v11, 5  ;;  %v2663_v26 = vrot.slane %v2556_v4, 5  ;;  %v442_v30 = vrot.slane %v440_v29, 7 }
  0x82   : > { %v2115_v21 = vrot.slane %v2113_v12, 4  ;;  %v2121_v8 = vrot.slane %v2119_v13, 5  ;;  %v2106_v27 = vor.u32 %v2105_v15, %v2102_v25  ;;  %v443_v43 = vshll.u32 %v10851_v16, 16 }
  0x83   : > { %v2662_v28 = vrot.slane %v2660_v19, 4  ;;  %1767 = vrot.lane.b32.xlu1 %v9279_v6, %s10569_s24  ;;  %1942 = vrot.lane.b32.xlu0 %v10388_v7, %s10571_s26  ;;  %v448_v33 = vshrl.u32 %v345_v10, 16  ;;  %v451_v39 = vshll.u32 %v345_v10, 16  ;;  %v446_v38 = vrot.slane %v442_v30, 4 }
  0x84   : > { %v2116_v32 = vor.u32 %v2115_v21, %v2111_v20  ;;  %v2107_v44 = vrot.slane %v2106_v27, 4  ;;  %v457_v41 = vshrl.u32 %v10979_v14, 16  ;;  %v445_v45 = vor.u32 %v443_v43, %v442_v30 }
  0x85   : > { %v10989_v47 = vrot.slane %v448_v33, 7  ;;  %v2661_v49 = vsel %vm10789_vm6, %v9326_v18, %v2660_v19  ;;  %v2664_v16 = vsel %vm10789_vm6, %v2662_v28, %v2663_v26  ;;  %v460_v12 = vshll.u32 %v10979_v14, 16 }
  0x86   : > { %v2117_v42 = vrot.slane %v2116_v32, 4  ;;  %v10389_v48 = vld [vmem:[#allocation2 + $0x30] sm:$0xff]   ;;  %v2112_v29 = vsel %vm10809_vm11, %v2107_v44, %v2111_v20  ;;  %v10997_v35 = vrot.slane %v457_v41, 7  ;;  %v726_v55 = vsel %vm10803_vm10, %v445_v45, %v725_v31  ;;  %v729_v20 = vld [vmem:[#allocation2 + $0x44] sm:$0x1] }
  0x87   : > { %v2012_v52 = vld [vmem:[#allocation2 + $0x30] sm:$0xf]  ;;  %v2013_v53 = vld [vmem:[#allocation2 + $0x34] sm:$0xf]  ;;  %v453_v54 = vor.u32 %v451_v39, %v10989_v47  ;;  %1944 = vrot.lane.b32.xlu1 %v10389_v48, %s10571_s26  ;;  %v2014_v57 = vld [vmem:[#allocation2 + $0x38] sm:$0x1]  ;;  %v9342_v60 = vcombine.low %v2661_v49, %v2664_v16 }
  0x88   : > { %v2122_v50 = vsel %vm10809_vm11, %v2117_v42, %v2121_v8  ;;  %v2557_v37 = vld [vmem:[#allocation2 + $0x30] sm:$0xe]  ;;  %v2124_v46 = vshrl.u32 %v2012_v52, 16  ;;  %v2127_v58 = vshll.u32 %v2012_v52, 16  ;;  %v2133_v59 = vshll.u32 %v2013_v53, 16 }
  0x89   : > { %v9310_v56 = vcombine.low %v2112_v29, %v2122_v50  ;;  %727 = vst [vmem:[#allocation2 + $0x3c] sm:$0xf] %v726_v55  ;;  %v2137_v22 = vshrl.u32 %v2013_v53, 16  ;;  %v2143_v24 = vshll.u32 %v2014_v57, 16  ;;  %v2558_v61 = vld [vmem:[#allocation2 + $0x34] sm:$0xf]  ;;  %v454_v40 = vsel %vm10821_vm12, %v446_v38, %v453_v54 }
  0x8a   : > { %v2559_v62 = vld [vmem:[#allocation2 + $0x38] sm:$0x1]  ;;  %v2126_v63 = vrot.slane %v2124_v46, 4  ;;  %v2129_v0 = vrot.slane %v2127_v58, 5  ;;  %v2135_v2 = vrot.slane %v2133_v59, 5  ;;  %v9327_v4 = vrot.slane %v2557_v37, 9 }
  0x8b   : > { %2487 = vrot.lane.b32.xlu0 %v9310_v56, %s10575_s30  ;;  %728 = vst.msk [vmem:[#allocation2 + $0x40] sm:$0xf] %vm226_vm0, %v454_v40  ;;  %v2139_v6 = vrot.slane %v2137_v22, 4  ;;  %v2145_v7 = vrot.slane %v2143_v24, 5  ;;  %v2667_v9 = vrot.slane %v2558_v61, 5  ;;  %v2670_v5 = vrot.slane %v2559_v62, 5 }
  0x8c   : > { %v2130_v23 = vor.u32 %v2129_v0, %v2126_v63  ;;  %v455_v10 = vrot.slane %v10989_v47, 4  ;;  %v3053_v25 = vld [vmem:[#allocation2 + $0x30] sm:$0xf]  ;;  %v3054_v11 = vld [vmem:[#allocation2 + $0x34] sm:$0xf]  ;;  %v10404_v59 = vld [vmem:[%s13872_s1] sm:$0xff]  }
  0x8d   : > { %v2140_v13 = vor.u32 %v2139_v6, %v2135_v2  ;;  %v11013_v15 = vsel %vm10789_vm6, %v9327_v4, %v2667_v9  ;;  %v2669_v17 = vrot.slane %v2667_v9, 4  ;;  %v3055_v18 = vld [vmem:[#allocation2 + $0x38] sm:$0x1]  ;;  %v3144_v19 = vshrl.u32 %v3053_v25, 16  ;;  %v10390_v8 = vld [vmem:[#allocation2 + $0x30] sm:$0xff]   ;;  %10264 = vmatprep.subr.bf16.mxu0 %v10404_v59 }
  0x8e   : > { %v2131_v21 = vrot.slane %v2130_v23, 4  ;;  %v3147_v26 = vshll.u32 %v3053_v25, 16  ;;  %v3153_v27 = vshll.u32 %v3054_v11, 16  ;;  %v3157_v28 = vshrl.u32 %v3054_v11, 16  ;;  %v3598_v42 = vld [vmem:[#allocation2 + $0x30] sm:$0xe]  ;;  %10265 = vmatpush3.bf16.msra.mxu0 %v10404_v59 }
  0x8f   : > { %2808 = vrot.lane.b32.xlu0 %v9342_v60, %s10573_s28  ;;  %v2141_v30 = vrot.slane %v2140_v13, 4  ;;  %v2671_v31 = vsel %vm10789_vm6, %v2669_v17, %v2670_v5  ;;  %v3146_v32 = vrot.slane %v3144_v19, 4  ;;  %v3163_v43 = vshll.u32 %v3055_v18, 16  ;;  %v3599_v49 = vld [vmem:[#allocation2 + $0x34] sm:$0xf] }
  0x90   : > { %v2136_v33 = vsel %vm10809_vm11, %v2131_v21, %v2135_v2  ;;  %v9343_v39 = vcombine.low %v11013_v15, %v2671_v31  ;;  %v3149_v44 = vrot.slane %v3147_v26, 5  ;;  %v3155_v38 = vrot.slane %v3153_v27, 5  ;;  %v3056_v41 = vld [vmem:[#allocation2 + $0x3c] sm:$0xf]  ;;  %v3600_v54 = vld [vmem:[#allocation2 + $0x38] sm:$0x1] }
  0x91   : > { %v2146_v45 = vsel %vm10809_vm11, %v2141_v30, %v2145_v7  ;;  %v3159_v47 = vrot.slane %v3157_v28, 4  ;;  %v3165_v48 = vrot.slane %v3163_v43, 5  ;;  %v730_v29 = vsel %vm10830_vm13, %v455_v10, %v729_v20  ;;  %v3601_v58 = vld [vmem:[#allocation2 + $0x3c] sm:$0xe]  ;;  %v966_v4 = vld [vmem:[#allocation2 + $0x30] sm:$0xf] }
  0x92   : > { %v9311_v16 = vcombine.low %v2136_v33, %v2146_v45  ;;  %v3150_v50 = vor.u32 %v3149_v44, %v3146_v32  ;;  %731 = vst [vmem:[#allocation2 + $0x44] sm:$0x1] %v730_v29  ;;  %v3057_v52 = vld [vmem:[#allocation2 + $0x40] sm:$0xf]  ;;  %v3168_v53 = vshrl.u32 %v3056_v41, 16  ;;  %v3171_v37 = vshll.u32 %v3056_v41, 16 }
  0x93   : > { %2986 = vrot.lane.b32.xlu0 %v10390_v8, %s10572_s27  ;;  %v3160_v55 = vor.u32 %v3159_v47, %v3155_v38  ;;  %v3177_v56 = vshll.u32 %v3057_v52, 16  ;;  %v3181_v57 = vshrl.u32 %v3057_v52, 16  ;;  %v9390_v46 = vrot.slane %v3598_v42, 9  ;;  %v3602_v62 = vld [vmem:[#allocation2 + $0x40] sm:$0xf] }
  0x94   : > { %2489 = vrot.lane.b32.xlu1 %v9311_v16, %s10575_s30  ;;  %v3151_v22 = vrot.slane %v3150_v50, 4  ;;  %v3170_v24 = vrot.slane %v3168_v53, 4  ;;  %v3173_v60 = vrot.slane %v3171_v37, 5  ;;  %v3704_v61 = vrot.slane %v3599_v49, 5  ;;  %v10391_v23 = vld [vmem:[#allocation2 + $0x3c] sm:$0xff]   ;;  %v10405_v53 = vld [vmem:[%s13872_s1 + $0x8] sm:$0xff]  }
  0x95   : > { %v3161_v40 = vrot.slane %v3160_v55, 4  ;;  %v3179_v63 = vrot.slane %v3177_v56, 5  ;;  %v3183_v0 = vrot.slane %v3181_v57, 4  ;;  %v3707_v2 = vrot.slane %v3600_v54, 5  ;;  %v967_v15 = vld [vmem:[#allocation2 + $0x34] sm:$0xf]  ;;  %10266 = vmatprep.subr.bf16.mxu0 %v10405_v53 }
  0x96   : > { %v3156_v6 = vsel %vm10809_vm11, %v3151_v22, %v3155_v38  ;;  %v3174_v7 = vor.u32 %v3173_v60, %v3170_v24  ;;  %v3705_v9 = vsel %vm10789_vm6, %v9390_v46, %v3704_v61  ;;  %v3706_v5 = vrot.slane %v3704_v61, 4  ;;  %v968_v20 = vld [vmem:[#allocation2 + $0x38] sm:$0x1]  ;;  %v969_v8 = vld [vmem:[#allocation2 + $0x3c] sm:$0xf]  ;;  %10267 = vmatpush3.bf16.msra.mxu0 %v10405_v53 }
  0x97   : > { %v3166_v10 = vsel %vm10809_vm11, %v3161_v40, %v3165_v48  ;;  %v3184_v25 = vor.u32 %v3183_v0, %v3179_v63  ;;  %v9391_v11 = vrot.slane %v3601_v58, 9  ;;  %v3711_v13 = vrot.slane %v3602_v62, 5  ;;  %v970_v38 = vld [vmem:[#allocation2 + $0x40] sm:$0xf]  ;;  %v1514_v48 = vld [vmem:[#allocation2 + $0x30] sm:$0xe] }
  0x98   : > { %2810 = vrot.lane.b32.xlu1 %v9343_v39, %s10573_s28  ;;  %v9374_v17 = vcombine.low %v3156_v6, %v3166_v10  ;;  %v3175_v18 = vrot.slane %v3174_v7, 4  ;;  %v3708_v19 = vsel %vm10789_vm6, %v3706_v5, %v3707_v2  ;;  %v1102_v21 = vshrl.u32 %v966_v4, 16  ;;  %v1515_v52 = vld [vmem:[#allocation2 + $0x34] sm:$0xf]  ;;  %v1516_v40 = vld [vmem:[#allocation2 + $0x38] sm:$0x1] }
  0x99   : > { %v3058_v26 = vld [vmem:[#allocation2 + $0x44] sm:$0x1]  ;;  %v3185_v27 = vrot.slane %v3184_v25, 4  ;;  %v9406_v28 = vcombine.low %v3705_v9, %v3708_v19  ;;  %v11041_v31 = vsel %vm10789_vm6, %v9391_v11, %v3711_v13  ;;  %v3713_v32 = vrot.slane %v3711_v13, 4  ;;  %v1517_v6 = vld [vmem:[#allocation2 + $0x3c] sm:$0xe] }
  0x9a   : > { %v3603_v30 = vld [vmem:[#allocation2 + $0x44] sm:$0x1]  ;;  %3531 = vrot.lane.b32.xlu0 %v9374_v17, %s10576_s6  ;;  %v3180_v43 = vsel %vm10809_vm11, %v3175_v18, %v3179_v63  ;;  %v3187_v33 = vshll.u32 %v3058_v26, 16  ;;  %v1104_v44 = vrot.slane %v1102_v21, 4  ;;  %v1105_v41 = vshll.u32 %v966_v4, 16 }
  0x9b   : > { %v3714_v39 = vrot.slane %v3603_v30, 5  ;;  %v1111_v42 = vshll.u32 %v967_v15, 16  ;;  %v1115_v45 = vshrl.u32 %v967_v15, 16  ;;  %v1121_v47 = vshll.u32 %v968_v20, 16  ;;  %v971_v57 = vld [vmem:[#allocation2 + $0x44] sm:$0x1] }
  0x9c   : > { %2988 = vrot.lane.b32.xlu1 %v10391_v23, %s10572_s27  ;;  %v3189_v29 = vrot.slane %v3187_v33, 5  ;;  %v1126_v16 = vshrl.u32 %v969_v8, 16  ;;  %v1129_v50 = vshll.u32 %v969_v8, 16  ;;  %v1107_v54 = vrot.slane %v1105_v41, 5  ;;  %v1518_v10 = vld [vmem:[#allocation2 + $0x40] sm:$0xf] }
  0x9d   : > { %v3715_v49 = vsel %vm10789_vm6, %v3713_v32, %v3714_v39  ;;  %v1113_v55 = vrot.slane %v1111_v42, 5  ;;  %v1117_v56 = vrot.slane %v1115_v45, 4  ;;  %v1123_v58 = vrot.slane %v1121_v47, 5  ;;  %v1519_v17 = vld [vmem:[#allocation2 + $0x44] sm:$0x1] }
  0x9e   : > { %v9407_v37 = vcombine.low %v11041_v31, %v3715_v49  ;;  %v3190_v46 = vsel %vm10809_vm11, %v3185_v27, %v3189_v29  ;;  %3852 = vrot.lane.b32.xlu0 %v9406_v28, %s10574_s29  ;;  %v1128_v59 = vrot.slane %v1126_v16, 4  ;;  %v1131_v22 = vrot.slane %v1129_v50, 5  ;;  %v347_v8 = vld [vmem:[%s10787_s23 + $0x2c] sm:$0xf]  ;;  %v732_v31 = vld [vmem:[#allocation2 + $0x48] sm:$0xf] }
  0x9f   : > { %v9375_v24 = vcombine.low %v3180_v43, %v3190_v46  ;;  %v1108_v60 = vor.u32 %v1107_v54, %v1104_v44  ;;  %v1118_v61 = vor.u32 %v1117_v56, %v1113_v55  ;;  %v1135_v62 = vshll.u32 %v970_v38, 16  ;;  %v2015_v44 = vld [vmem:[#allocation2 + $0x3c] sm:$0xf]  ;;  %v2016_v47 = vld [vmem:[#allocation2 + $0x40] sm:$0xf] }
  0xa0   : > { %v1132_v63 = vor.u32 %v1131_v22, %v1128_v59  ;;  %v1139_v0 = vshrl.u32 %v970_v38, 16  ;;  %v1145_v2 = vshll.u32 %v971_v57, 16  ;;  %v9264_v4 = vrot.slane %v1514_v48, 9  ;;  %v2017_v14 = vld [vmem:[#allocation2 + $0x44] sm:$0x1] }
  0xa1   : > { %3533 = vrot.lane.b32.xlu1 %v9375_v24, %s10576_s6  ;;  %v1109_v7 = vrot.slane %v1108_v60, 4  ;;  %v1119_v9 = vrot.slane %v1118_v61, 4  ;;  %v1137_v5 = vrot.slane %v1135_v62, 5  ;;  %v1631_v23 = vrot.slane %v1515_v52, 5  ;;  %v10392_v52 = vld [vmem:[#allocation2 + $0x3c] sm:$0xff]  }
  0xa2   : > { %v1133_v25 = vrot.slane %v1132_v63, 4  ;;  %v1141_v11 = vrot.slane %v1139_v0, 4  ;;  %v1147_v13 = vrot.slane %v1145_v2, 5  ;;  %v1634_v15 = vrot.slane %v1516_v40, 5  ;;  %v2560_v54 = vld [vmem:[#allocation2 + $0x3c] sm:$0xe] }
  0xa3   : > { %v1114_v18 = vsel %vm10809_vm11, %v1109_v7, %v1113_v55  ;;  %v1124_v19 = vsel %vm10809_vm11, %v1119_v9, %v1123_v58  ;;  %v1632_v20 = vsel %vm10789_vm6, %v9264_v4, %v1631_v23  ;;  %v1633_v21 = vrot.slane %v1631_v23, 4  ;;  %v2561_v58 = vld [vmem:[#allocation2 + $0x40] sm:$0xf]  ;;  %v2562_v59 = vld [vmem:[#allocation2 + $0x44] sm:$0x1] }
  0xa4   : > { %v9248_v26 = vcombine.low %v1114_v18, %v1124_v19  ;;  %v1138_v27 = vsel %vm10809_vm11, %v1133_v25, %v1137_v5  ;;  %v1142_v28 = vor.u32 %v1141_v11, %v1137_v5  ;;  %v9265_v30 = vrot.slane %v1517_v6, 9  ;;  %v348_v22 = vld [vmem:[%s10787_s23 + $0x30] sm:$0xf] }
  0xa5   : > { %3854 = vrot.lane.b32.xlu1 %v9407_v37, %s10574_s29  ;;  %v1635_v32 = vsel %vm10789_vm6, %v1633_v21, %v1634_v15  ;;  %v1638_v43 = vrot.slane %v1518_v10, 5  ;;  %v1641_v33 = vrot.slane %v1519_v17, 5  ;;  %v462_v39 = vor.u32 %v460_v12, %v10997_v35  ;;  %v736_v12 = vld [vmem:[#allocation2 + $0x50] sm:$0x1] }
  0xa6   : > { %1445 = vrot.lane.b32.xlu0 %v9248_v26, %s10570_s25  ;;  %v1143_v38 = vrot.slane %v1142_v28, 4  ;;  %v9280_v41 = vcombine.low %v1632_v20, %v1635_v32  ;;  %v463_v42 = vrot.slane %v10997_v35, 4  ;;  %v465_v45 = vshrl.u32 %v347_v8, 16 }
  0xa7   : > { %v1639_v48 = vsel %vm10789_vm6, %v9265_v30, %v1638_v43  ;;  %v1640_v29 = vrot.slane %v1638_v43, 4  ;;  %v468_v49 = vshll.u32 %v347_v8, 16  ;;  %v733_v16 = vsel %vm10803_vm10, %v462_v39, %v732_v31 }
  0xa8   : > { %v1148_v50 = vsel %vm10809_vm11, %v1143_v38, %v1147_v13  ;;  %v467_v53 = vrot.slane %v465_v45, 7  ;;  %734 = vst [vmem:[#allocation2 + $0x48] sm:$0xf] %v733_v16  ;;  %v2148_v35 = vshrl.u32 %v2015_v44, 16  ;;  %v2151_v37 = vshll.u32 %v2015_v44, 16 }
  0xa9   : > { %v9249_v55 = vcombine.low %v1138_v27, %v1148_v50  ;;  %v1642_v56 = vsel %vm10789_vm6, %v1640_v29, %v1641_v33  ;;  %v2157_v57 = vshll.u32 %v2016_v47, 16  ;;  %v2161_v46 = vshrl.u32 %v2016_v47, 16  ;;  %v349_v13 = vld [vmem:[%s10787_s23 + $0x34] sm:$0xf] }
  0xaa   : > { %1769 = vrot.lane.b32.xlu0 %v9280_v41, %s10569_s24  ;;  %v9281_v24 = vcombine.low %v1639_v48, %v1642_v56  ;;  %v470_v60 = vor.u32 %v468_v49, %v467_v53  ;;  %v472_v61 = vrot.slane %v467_v53, 4  ;;  %v2150_v62 = vrot.slane %v2148_v35, 4  ;;  %v739_v45 = vld [vmem:[#allocation2 + $0x54] sm:$0xf] }
  0xab   : > { %1447 = vrot.lane.b32.xlu1 %v9249_v55, %s10570_s25  ;;  %v2153_v40 = vrot.slane %v2151_v37, 5  ;;  %v2159_v63 = vrot.slane %v2157_v57, 5  ;;  %v2163_v0 = vrot.slane %v2161_v46, 4  ;;  %v2167_v2 = vshll.u32 %v2017_v14, 16 }
  0xac   : > { %v471_v4 = vsel %vm10821_vm12, %v463_v42, %v470_v60  ;;  %v737_v6 = vsel %vm10830_vm13, %v472_v61, %v736_v12  ;;  %v9328_v7 = vrot.slane %v2560_v54, 9  ;;  %v2674_v9 = vrot.slane %v2561_v58, 5  ;;  %v743_v60 = vld [vmem:[#allocation2 + $0x5c] sm:$0x1] }
  0xad   : > { %735 = vst.msk [vmem:[#allocation2 + $0x4c] sm:$0xf] %vm226_vm0, %v471_v4  ;;  %v2154_v5 = vor.u32 %v2153_v40, %v2150_v62  ;;  %v2164_v23 = vor.u32 %v2163_v0, %v2159_v63  ;;  %v2169_v10 = vrot.slane %v2167_v2, 5  ;;  %738 = vst [vmem:[#allocation2 + $0x50] sm:$0x1] %v737_v6  ;;  %v2677_v25 = vrot.slane %v2562_v59, 5 }
  0xae   : > { %1946 = vrot.lane.b32.xlu0 %v10392_v52, %s10571_s26  ;;  %v2676_v11 = vrot.slane %v2674_v9, 4  ;;  %v474_v15 = vshrl.u32 %v348_v22, 16  ;;  %v477_v17 = vshll.u32 %v348_v22, 16  ;;  %v2675_v26 = vsel %vm10789_vm6, %v9328_v7, %v2674_v9 }
  0xaf   : > { %1771 = vrot.lane.b32.xlu1 %v9281_v24, %s10569_s24  ;;  %v2155_v18 = vrot.slane %v2154_v5, 4  ;;  %v2165_v19 = vrot.slane %v2164_v23, 4  ;;  %v2018_v20 = vld [vmem:[#allocation2 + $0x48] sm:$0xf]  ;;  %v482_v41 = vshrl.u32 %v349_v13, 16  ;;  %v485_v42 = vshll.u32 %v349_v13, 16 }
  0xb0   : > { %v2172_v21 = vshrl.u32 %v2018_v20, 16  ;;  %v2175_v8 = vshll.u32 %v2018_v20, 16  ;;  %v2563_v27 = vld [vmem:[#allocation2 + $0x48] sm:$0xe]  ;;  %v2678_v31 = vsel %vm10789_vm6, %v2676_v11, %v2677_v25  ;;  %v476_v38 = vrot.slane %v474_v15, 7 }
  0xb1   : > { %v2160_v28 = vsel %vm10809_vm11, %v2155_v18, %v2159_v63  ;;  %v2170_v30 = vsel %vm10809_vm11, %v2165_v19, %v2169_v10  ;;  %v9329_v32 = vrot.slane %v2563_v27, 9  ;;  %v3059_v43 = vld [vmem:[#allocation2 + $0x48] sm:$0xf]  ;;  %v9344_v14 = vcombine.low %v2675_v26, %v2678_v31 }
  0xb2   : > { %v9312_v33 = vcombine.low %v2160_v28, %v2170_v30  ;;  %v2174_v39 = vrot.slane %v2172_v21, 4  ;;  %v2177_v44 = vrot.slane %v2175_v8, 5  ;;  %v3192_v47 = vshrl.u32 %v3059_v43, 16  ;;  %v3604_v9 = vld [vmem:[#allocation2 + $0x48] sm:$0xe] }
  0xb3   : > { %v3195_v48 = vshll.u32 %v3059_v43, 16  ;;  %v479_v12 = vor.u32 %v477_v17, %v476_v38  ;;  %v480_v50 = vrot.slane %v476_v38, 4  ;;  %v484_v24 = vrot.slane %v482_v41, 7  ;;  %v972_v26 = vld [vmem:[#allocation2 + $0x48] sm:$0xf] }
  0xb4   : > { %v10393_v29 = vld [vmem:[#allocation2 + $0x48] sm:$0xff]   ;;  %2491 = vrot.lane.b32.xlu0 %v9312_v33, %s10575_s30  ;;  %v2178_v16 = vor.u32 %v2177_v44, %v2174_v39  ;;  %v2020_v52 = vld [vmem:[#allocation2 + $0x50] sm:$0x1]  ;;  %v3194_v23 = vrot.slane %v3192_v47, 4  ;;  %v9392_v31 = vrot.slane %v3604_v9, 9 }
  0xb5   : > { %v2019_v49 = vld [vmem:[#allocation2 + $0x4c] sm:$0xf]  ;;  %1948 = vrot.lane.b32.xlu1 %v10393_v29, %s10571_s26  ;;  %v2191_v55 = vshll.u32 %v2020_v52, 16  ;;  %v2565_v56 = vld [vmem:[#allocation2 + $0x50] sm:$0x1]  ;;  %v740_v46 = vsel %vm10803_vm10, %v479_v12, %v739_v45  ;;  %v487_v4 = vor.u32 %v485_v42, %v484_v24  ;;  %v489_v6 = vrot.slane %v484_v24, 4 }
  0xb6   : > { %v2181_v53 = vshll.u32 %v2019_v49, 16  ;;  %v2185_v35 = vshrl.u32 %v2019_v49, 16  ;;  %v2564_v37 = vld [vmem:[#allocation2 + $0x4c] sm:$0xf]  ;;  %v2179_v54 = vrot.slane %v2178_v16, 4  ;;  %v2684_v22 = vrot.slane %v2565_v56, 5 }
  0xb7   : > { %v2681_v57 = vrot.slane %v2564_v37, 5  ;;  %741 = vst [vmem:[#allocation2 + $0x54] sm:$0xf] %v740_v46  ;;  %v2193_v61 = vrot.slane %v2191_v55, 5  ;;  %v10394_v40 = vld [vmem:[#allocation2 + $0x48] sm:$0xff]   ;;  %v3197_v10 = vrot.slane %v3195_v48, 5  ;;  %v488_v17 = vsel %vm10821_vm12, %v480_v50, %v487_v4 }
  0xb8   : > { %v2183_v58 = vrot.slane %v2181_v53, 5  ;;  %v2187_v59 = vrot.slane %v2185_v35, 4  ;;  %2812 = vrot.lane.b32.xlu0 %v9344_v14, %s10573_s28  ;;  %v3060_v63 = vld [vmem:[#allocation2 + $0x4c] sm:$0xf]  ;;  %v3061_v7 = vld [vmem:[#allocation2 + $0x50] sm:$0x1]  ;;  %v744_v8 = vsel %vm10830_vm13, %v489_v6, %v743_v60 }
  0xb9   : > { %v2683_v62 = vrot.slane %v2681_v57, 4  ;;  %v2682_v2 = vsel %vm10789_vm6, %v9329_v32, %v2681_v57  ;;  %v3201_v25 = vshll.u32 %v3060_v63, 16  ;;  %v3605_v11 = vld [vmem:[#allocation2 + $0x4c] sm:$0xf]  ;;  %v3205_v18 = vshrl.u32 %v3060_v63, 16 }
  0xba   : > { %v2188_v0 = vor.u32 %v2187_v59, %v2183_v58  ;;  %v2184_v5 = vsel %vm10809_vm11, %v2179_v54, %v2183_v58  ;;  %742 = vst.msk [vmem:[#allocation2 + $0x58] sm:$0xf] %vm226_vm0, %v488_v17  ;;  %v3198_v19 = vor.u32 %v3197_v10, %v3194_v23  ;;  %v3211_v21 = vshll.u32 %v3061_v7, 16  ;;  %745 = vst [vmem:[#allocation2 + $0x5c] sm:$0x1] %v744_v8 }
  0xbb   : > { %v2685_v15 = vsel %vm10789_vm6, %v2683_v62, %v2684_v22  ;;  %v3203_v20 = vrot.slane %v3201_v25, 5  ;;  %v3207_v28 = vrot.slane %v3205_v18, 4  ;;  %v3606_v30 = vld [vmem:[#allocation2 + $0x50] sm:$0x1]  ;;  %v3718_v32 = vrot.slane %v3605_v11, 5 }
  0xbc   : > { %v2189_v13 = vrot.slane %v2188_v0, 4  ;;  %2990 = vrot.lane.b32.xlu0 %v10394_v40, %s10572_s27  ;;  %v9345_v33 = vcombine.low %v2682_v2, %v2685_v15  ;;  %v3199_v39 = vrot.slane %v3198_v19, 4  ;;  %v3213_v44 = vrot.slane %v3211_v21, 5  ;;  %v973_v29 = vld [vmem:[#allocation2 + $0x4c] sm:$0xf]  ;;  %v11122_v49 = vpop.permute.xlu0 %1437 }
  0xbd   : > { %v3208_v41 = vor.u32 %v3207_v28, %v3203_v20  ;;  %v3719_v47 = vsel %vm10789_vm6, %v9392_v31, %v3718_v32  ;;  %v3720_v14 = vrot.slane %v3718_v32, 4  ;;  %v3721_v12 = vrot.slane %v3606_v30, 5  ;;  %v974_v24 = vld [vmem:[#allocation2 + $0x50] sm:$0x1] }
  0xbe   : > { %v2194_v27 = vsel %vm10809_vm11, %v2189_v13, %v2193_v61  ;;  %v3062_v38 = vld [vmem:[#allocation2 + $0x54] sm:$0xf]  ;;  %v3204_v16 = vsel %vm10809_vm11, %v3199_v39, %v3203_v20  ;;  %v1150_v37 = vshrl.u32 %v972_v26, 16  ;;  %v1153_v55 = vshll.u32 %v972_v26, 16  ;;  %v11131_v61 = vpop.permute.xlu1 %1761 }
  0xbf   : > { %v9313_v43 = vcombine.low %v2184_v5, %v2194_v27  ;;  %v3216_v42 = vshrl.u32 %v3062_v38, 16  ;;  %v3219_v45 = vshll.u32 %v3062_v38, 16  ;;  %v3607_v48 = vld [vmem:[#allocation2 + $0x54] sm:$0xe]  ;;  %v3209_v52 = vrot.slane %v3208_v41, 4 }
  0xc0   : > { %v9393_v50 = vrot.slane %v3607_v48, 9  ;;  %v3722_v54 = vsel %vm10789_vm6, %v3720_v14, %v3721_v12  ;;  %v1159_v56 = vshll.u32 %v973_v29, 16  ;;  %v1163_v57 = vshrl.u32 %v973_v29, 16  ;;  %v975_v17 = vld [vmem:[#allocation2 + $0x54] sm:$0xf] }
  0xc1   : > { %2493 = vrot.lane.b32.xlu1 %v9313_v43, %s10575_s30  ;;  %v3218_v53 = vrot.slane %v3216_v42, 4  ;;  %v3221_v35 = vrot.slane %v3219_v45, 5  ;;  %v10395_v46 = vld [vmem:[#allocation2 + $0x54] sm:$0xff]   ;;  %v3214_v58 = vsel %vm10809_vm11, %v3209_v52, %v3213_v44  ;;  %v1152_v60 = vrot.slane %v1150_v37, 4  ;;  %v3064_v40 = vld [vmem:[#allocation2 + $0x5c] sm:$0x1] }
  0xc2   : > { %v3063_v59 = vld [vmem:[#allocation2 + $0x58] sm:$0xf]  ;;  %v9376_v62 = vcombine.low %v3204_v16, %v3214_v58  ;;  %v9408_v2 = vcombine.low %v3719_v47, %v3722_v54  ;;  %v3235_v7 = vshll.u32 %v3064_v40, 16  ;;  %v3609_v9 = vld [vmem:[#allocation2 + $0x5c] sm:$0x1]  ;;  %v1155_v23 = vrot.slane %v1153_v55, 5 }
  0xc3   : > { %v3222_v22 = vor.u32 %v3221_v35, %v3218_v53  ;;  %v3225_v63 = vshll.u32 %v3063_v59, 16  ;;  %v3229_v0 = vshrl.u32 %v3063_v59, 16  ;;  %v3608_v4 = vld [vmem:[#allocation2 + $0x58] sm:$0xf]  ;;  %v11134_v10 = vpop.permute.xlu0 %1938  ;;  %v3728_v13 = vrot.slane %v3609_v9, 5 }
  0xc4   : > { %v3725_v5 = vrot.slane %v3608_v4, 5  ;;  %3535 = vrot.lane.b32.xlu0 %v9376_v62, %s10576_s6  ;;  %v1161_v15 = vrot.slane %v1159_v56, 5  ;;  %v3237_v18 = vrot.slane %v3235_v7, 5  ;;  %v1156_v21 = vor.u32 %v1155_v23, %v1152_v60  ;;  %v976_v30 = vld [vmem:[#allocation2 + $0x58] sm:$0xf] }
  0xc5   : > { %2814 = vrot.lane.b32.xlu1 %v9345_v33, %s10573_s28  ;;  %v3223_v6 = vrot.slane %v3222_v22, 4  ;;  %v3227_v25 = vrot.slane %v3225_v63, 5  ;;  %v3231_v11 = vrot.slane %v3229_v0, 4  ;;  %v1165_v27 = vrot.slane %v1163_v57, 4  ;;  %v977_v43 = vld [vmem:[#allocation2 + $0x5c] sm:$0x1] }
  0xc6   : > { %v11139_v19 = vsel %vm10789_vm6, %v9393_v50, %v3725_v5  ;;  %v3727_v20 = vrot.slane %v3725_v5, 4  ;;  %v1169_v28 = vshll.u32 %v974_v24, 16  ;;  %v1157_v32 = vrot.slane %v1156_v21, 4  ;;  %v11146_v44 = vpop.permute.xlu1 %1940  ;;  %v1520_v48 = vld [vmem:[#allocation2 + $0x48] sm:$0xe] }
  0xc7   : > { %v3228_v8 = vsel %vm10809_vm11, %v3223_v6, %v3227_v25  ;;  %v3232_v26 = vor.u32 %v3231_v11, %v3227_v25  ;;  %v1174_v33 = vshrl.u32 %v975_v17, 16  ;;  %v1177_v39 = vshll.u32 %v975_v17, 16  ;;  %v11148_v38 = vpop.permute.xlu0 %2982  ;;  %v1521_v29 = vld [vmem:[#allocation2 + $0x4c] sm:$0xf]  ;;  %v1522_v52 = vld [vmem:[#allocation2 + $0x50] sm:$0x1] }
  0xc8   : > { %v3729_v31 = vsel %vm10789_vm6, %v3727_v20, %v3728_v13  ;;  %3856 = vrot.lane.b32.xlu0 %v9408_v2, %s10574_s29  ;;  %v1166_v45 = vor.u32 %v1165_v27, %v1161_v15  ;;  %v1171_v47 = vrot.slane %v1169_v28, 5  ;;  %v1162_v16 = vsel %vm10809_vm11, %v1157_v32, %v1161_v15  ;;  %v1523_v55 = vld [vmem:[#allocation2 + $0x54] sm:$0xe]  ;;  %v1524_v59 = vld [vmem:[#allocation2 + $0x58] sm:$0xf] }
  0xc9   : > { %2992 = vrot.lane.b32.xlu1 %v10395_v46, %s10572_s27  ;;  %v3233_v41 = vrot.slane %v3232_v26, 4  ;;  %v9409_v42 = vcombine.low %v11139_v19, %v3729_v31  ;;  %v1176_v14 = vrot.slane %v1174_v33, 4  ;;  %v1179_v12 = vrot.slane %v1177_v39, 5  ;;  %v350_v22 = vld [vmem:[%s10787_s23 + $0x38] sm:$0xf] }
  0xca   : > { %v1183_v50 = vshll.u32 %v976_v30, 16  ;;  %v1167_v35 = vrot.slane %v1166_v45, 4  ;;  %v1187_v37 = vshrl.u32 %v976_v30, 16  ;;  %v1193_v54 = vshll.u32 %v977_v43, 16  ;;  %v1525_v63 = vld [vmem:[#allocation2 + $0x5c] sm:$0x1]  ;;  %v11161_v9 = vpop.permute.xlu1 %2984 }
  0xcb   : > { %v3238_v53 = vsel %vm10809_vm11, %v3233_v41, %v3237_v18  ;;  %v1180_v57 = vor.u32 %v1179_v12, %v1176_v14  ;;  %v9266_v58 = vrot.slane %v1520_v48, 9  ;;  %v1645_v40 = vrot.slane %v1521_v29, 5  ;;  %v351_v7 = vld [vmem:[%s10787_s23 + $0x3c] sm:$0xf]  ;;  %v2021_v15 = vld [vmem:[#allocation2 + $0x54] sm:$0xf] }
  0xcc   : > { %v9377_v56 = vcombine.low %v3228_v8, %v3238_v53  ;;  %v1185_v46 = vrot.slane %v1183_v50, 5  ;;  %v1172_v24 = vsel %vm10809_vm11, %v1167_v35, %v1171_v47  ;;  %v1189_v60 = vrot.slane %v1187_v37, 4  ;;  %v11163_v5 = vpop.permute.xlu0 %2804  ;;  %v2022_v21 = vld [vmem:[#allocation2 + $0x58] sm:$0xf]  ;;  %v746_v30 = vld [vmem:[#allocation2 + $0x60] sm:$0xf] }
  0xcd   : > { %v1195_v62 = vrot.slane %v1193_v54, 5  ;;  %v9250_v0 = vcombine.low %v1162_v16, %v1172_v24  ;;  %v1181_v2 = vrot.slane %v1180_v57, 4  ;;  %v1648_v4 = vrot.slane %v1522_v52, 5  ;;  %v2023_v31 = vld [vmem:[#allocation2 + $0x5c] sm:$0x1]  ;;  %v10396_v33 = vld [vmem:[#allocation2 + $0x54] sm:$0xff]  }
  0xce   : > { %3537 = vrot.lane.b32.xlu1 %v9377_v56, %s10576_s6  ;;  %v9267_v6 = vrot.slane %v1523_v55, 9  ;;  %v1190_v23 = vor.u32 %v1189_v60, %v1185_v46  ;;  %v1646_v25 = vsel %vm10789_vm6, %v9266_v58, %v1645_v40  ;;  %v1647_v11 = vrot.slane %v1645_v40, 4  ;;  %v11174_v32 = vld [vmem:[#allocation2 + $0x54] sm:$0xe]  ;;  %v11181_v14 = vld [vmem:[#allocation2 + $0x58] sm:$0xf]  ;;  %v1764_v54 = vpop.permute.xlu1 %1763 }
  0xcf   : > { %v1652_v13 = vrot.slane %v1524_v59, 5  ;;  %1449 = vrot.lane.b32.xlu0 %v9250_v0, %s10570_s25  ;;  %v1186_v17 = vsel %vm10809_vm11, %v1181_v2, %v1185_v46  ;;  %v1655_v18 = vrot.slane %v1525_v63, 5  ;;  %v491_v19 = vshrl.u32 %v350_v22, 16  ;;  %v11183_v12 = vld [vmem:[#allocation2 + $0x5c] sm:$0x1]  ;;  %v10398_v37 = vld [vmem:[#allocation2] sm:$0xff]  }
  0xd0   : > { %v494_v20 = vshll.u32 %v350_v22, 16  ;;  %v1191_v8 = vrot.slane %v1190_v23, 4  ;;  %v1649_v26 = vsel %vm10789_vm6, %v1647_v11, %v1648_v4  ;;  %v499_v41 = vshrl.u32 %v351_v7, 16  ;;  %v750_v35 = vld [vmem:[#allocation2 + $0x68] sm:$0x1]  ;;  %v11186_v55 = vpop.permute.xlu0 %3848  ;;  %v10401_v56 = vld [vmem:[#allocation2 + $0xc] sm:$0xff]  }
  0xd1   : > { %v1653_v27 = vsel %vm10789_vm6, %v9267_v6, %v1652_v13  ;;  %v1654_v28 = vrot.slane %v1652_v13, 4  ;;  %v9282_v43 = vcombine.low %v1646_v25, %v1649_v26  ;;  %v493_v39 = vrot.slane %v491_v19, 7  ;;  %v10406_v57 = vld [vmem:[#allocation2 + $0x18] sm:$0xff]   ;;  %v10407_v46 = vld [vmem:[#allocation2 + $0x24] sm:$0xff]   ;;  %v10413_v58 = vld [vmem:[#allocation2 + $0x30] sm:$0xff]   ;;  %938 = vst.msk [vmem:[#allocation3] sm:$0xff] %vm937_vm14, %v10398_v37 }
  0xd2   : > { %3858 = vrot.lane.b32.xlu1 %v9409_v42, %s10574_s29  ;;  %v502_v45 = vshll.u32 %v351_v7, 16  ;;  %v1196_v47 = vsel %vm10809_vm11, %v1191_v8, %v1195_v62  ;;  %v2196_v29 = vshrl.u32 %v2021_v15, 16  ;;  %v2199_v16 = vshll.u32 %v2021_v15, 16  ;;  %v352_v2 = vld [vmem:[%s10787_s23 + $0x40] sm:$0xf]  ;;  %939 = vst.msk [vmem:[#allocation3 + $0x8] sm:$0xff] %vm937_vm14, %v10401_v56 }
  0xd3   : > { %v1656_v48 = vsel %vm10789_vm6, %v1654_v28, %v1655_v18  ;;  %v9251_v50 = vcombine.low %v1186_v17, %v1196_v47  ;;  %1773 = vrot.lane.b32.xlu0 %v9282_v43, %s10569_s24  ;;  %v496_v52 = vor.u32 %v494_v20, %v493_v39  ;;  %v497_v53 = vrot.slane %v493_v39, 4  ;;  %v353_v4 = vld [vmem:[%s10787_s23 + $0x44] sm:$0xf]  ;;  %v10414_v6 = vld [vmem:[#allocation2 + $0x3c] sm:$0xff]   ;;  %940 = vst.msk [vmem:[#allocation3 + $0x10] sm:$0xff] %vm937_vm14, %v10406_v57 }
  0xd4   : > { %v9283_v42 = vcombine.low %v1653_v27, %v1656_v48  ;;  %v501_v59 = vrot.slane %v499_v41, 7  ;;  %v2198_v22 = vrot.slane %v2196_v29, 4  ;;  %v2201_v24 = vrot.slane %v2199_v16, 5  ;;  %v11204_v27 = vpop.permute.xlu1 %2806  ;;  %941 = vst.msk [vmem:[#allocation3 + $0x18] sm:$0xff] %vm937_vm14, %v10407_v46  ;;  %942 = vst.msk [vmem:[#allocation3 + $0x20] sm:$0xff] %vm937_vm14, %v10413_v58 }
  0xd5   : > { %v2205_v60 = vshll.u32 %v2022_v21, 16  ;;  %v747_v62 = vsel %vm10803_vm10, %v496_v52, %v746_v30  ;;  %v2209_v40 = vshrl.u32 %v2022_v21, 16  ;;  %v2215_v63 = vshll.u32 %v2023_v31, 16  ;;  %943 = vst.msk [vmem:[#allocation3 + $0x28] sm:$0xff] %vm937_vm14, %v10414_v6  ;;  %v757_v56 = vld [vmem:[#allocation2 + $0x74] sm:$0x1] }
  0xd6   : > { %1451 = vrot.lane.b32.xlu1 %v9251_v50, %s10570_s25  ;;  %v9330_v0 = vrot.slane %v11174_v32, 9  ;;  %v504_v7 = vor.u32 %v502_v45, %v501_v59  ;;  %v506_v23 = vrot.slane %v501_v59, 4  ;;  %748 = vst [vmem:[#allocation2 + $0x60] sm:$0xf] %v747_v62  ;;  %v2202_v25 = vor.u32 %v2201_v24, %v2198_v22  ;;  %1486 = vst.msk [vmem:[#allocation3] sm:$0xff] %vm1485_vm15, %v11122_v49 }
  0xd7   : > { %v2207_v11 = vrot.slane %v2205_v60, 5  ;;  %1950 = vrot.lane.b32.xlu0 %v10396_v33, %s10571_s26  ;;  %v2211_v13 = vrot.slane %v2209_v40, 4  ;;  %v2217_v15 = vrot.slane %v2215_v63, 5  ;;  %v2688_v17 = vrot.slane %v11181_v14, 5  ;;  %1810 = vst.msk [vmem:[#allocation3] sm:$0xff] %vm1809_vm1, %v11131_v61 }
  0xd8   : > { %v2691_v18 = vrot.slane %v11183_v12, 5  ;;  %v505_v19 = vsel %vm10821_vm12, %v497_v53, %v504_v7  ;;  %v2203_v20 = vrot.slane %v2202_v25, 4  ;;  %v751_v21 = vsel %vm10830_vm13, %v506_v23, %v750_v35  ;;  %v753_v14 = vld [vmem:[#allocation2 + $0x6c] sm:$0xf]  ;;  %1987 = vst.msk [vmem:[#allocation3] sm:$0xff] %vm1986_vm2, %v11134_v10  ;;  %v11229_v57 = vpop.permute.xlu1 %3850 }
  0xd9   : > { %749 = vst.msk [vmem:[#allocation2 + $0x64] sm:$0xf] %vm226_vm0, %v505_v19  ;;  %v2212_v8 = vor.u32 %v2211_v13, %v2207_v11  ;;  %752 = vst [vmem:[#allocation2 + $0x68] sm:$0x1] %v751_v21  ;;  %v2690_v26 = vrot.slane %v2688_v17, 4  ;;  %v508_v31 = vshrl.u32 %v352_v2, 16  ;;  %v2689_v48 = vsel %vm10789_vm6, %v9330_v0, %v2688_v17 }
  0xda   : > { %1775 = vrot.lane.b32.xlu1 %v9283_v42, %s10569_s24  ;;  %v2208_v30 = vsel %vm10809_vm11, %v2203_v20, %v2207_v11  ;;  %v516_v32 = vshrl.u32 %v353_v4, 16  ;;  %v511_v33 = vshll.u32 %v352_v2, 16  ;;  %v519_v39 = vshll.u32 %v353_v4, 16 }
  0xdb   : > { %v1440_v28 = vpop.permute.xlu0 %1439  ;;  %v2213_v43 = vrot.slane %v2212_v8, 4  ;;  %v510_v41 = vrot.slane %v508_v31, 7  ;;  %v2692_v29 = vsel %vm10789_vm6, %v2690_v26, %v2691_v18 }
  0xdc   : > { %1487 = vst.msk [vmem:[#allocation3 + $0x8] sm:$0xff] %vm1485_vm15, %v1440_v28  ;;  %v518_v45 = vrot.slane %v516_v32, 7  ;;  %v9346_v59 = vcombine.low %v2689_v48, %v2692_v29 }
  0xdd   : > { %1811 = vst.msk [vmem:[#allocation3 + $0x8] sm:$0xff] %vm1809_vm1, %v1764_v54  ;;  %v2218_v47 = vsel %vm10809_vm11, %v2213_v43, %v2217_v15  ;;  %v2024_v49 = vld [vmem:[#allocation2 + $0x60] sm:$0xf]  ;;  %v513_v52 = vor.u32 %v511_v33, %v510_v41  ;;  %v514_v53 = vrot.slane %v510_v41, 4 }
  0xde   : > { %v2569_v16 = vld [vmem:[#allocation2 + $0x60] sm:$0xe]  ;;  %1988 = vst.msk [vmem:[#allocation3 + $0x8] sm:$0xff] %vm1986_vm2, %v11146_v44  ;;  %v9314_v61 = vcombine.low %v2208_v30, %v2218_v47  ;;  %v2220_v12 = vshrl.u32 %v2024_v49, 16  ;;  %v2223_v50 = vshll.u32 %v2024_v49, 16  ;;  %v521_v35 = vor.u32 %v519_v39, %v518_v45  ;;  %v11245_v30 = vpop.permute.xlu1 %2485 }
  0xdf   : > { %v9331_v42 = vrot.slane %v2569_v16, 9  ;;  %v523_v37 = vrot.slane %v518_v45, 4  ;;  %v3065_v54 = vld [vmem:[#allocation2 + $0x60] sm:$0xf]  ;;  %v754_v4 = vsel %vm10803_vm10, %v513_v52, %v753_v14  ;;  %2533 = vst.msk [vmem:[#allocation3 + $0x8] sm:$0xff] %vm2531_vm3, %v11245_v30 }
  0xe0   : > { %v10397_v46 = vld [vmem:[#allocation2 + $0x60] sm:$0xff]   ;;  %2495 = vrot.lane.b32.xlu0 %v9314_v61, %s10575_s30  ;;  %v2222_v10 = vrot.slane %v2220_v12, 4  ;;  %v2026_v44 = vld [vmem:[#allocation2 + $0x68] sm:$0x1]  ;;  %v2225_v24 = vrot.slane %v2223_v50, 5  ;;  %v522_v40 = vsel %vm10821_vm12, %v514_v53, %v521_v35  ;;  %v3240_v6 = vshrl.u32 %v3065_v54, 16 }
  0xe1   : > { %v2025_v58 = vld [vmem:[#allocation2 + $0x64] sm:$0xf]  ;;  %v11232_v22 = vpop.permute.xlu0 %2483  ;;  %1952 = vrot.lane.b32.xlu1 %v10397_v46, %s10571_s26  ;;  %v2239_v63 = vshll.u32 %v2026_v44, 16  ;;  %v2571_v2 = vld [vmem:[#allocation2 + $0x68] sm:$0x1]  ;;  %v758_v7 = vsel %vm10830_vm13, %v523_v37, %v757_v56  ;;  %v3243_v32 = vshll.u32 %v3065_v54, 16 }
  0xe2   : > { %v2229_v60 = vshll.u32 %v2025_v58, 16  ;;  %v2233_v62 = vshrl.u32 %v2025_v58, 16  ;;  %v2570_v0 = vld [vmem:[#allocation2 + $0x64] sm:$0xf]  ;;  %756 = vst.msk [vmem:[#allocation2 + $0x70] sm:$0xf] %vm226_vm0, %v522_v40  ;;  %v2226_v23 = vor.u32 %v2225_v24, %v2222_v10 }
  0xe3   : > { %v2695_v13 = vrot.slane %v2570_v0, 5  ;;  %v10399_v15 = vld [vmem:[#allocation2 + $0x60] sm:$0xff]   ;;  %755 = vst [vmem:[#allocation2 + $0x6c] sm:$0xf] %v754_v4  ;;  %759 = vst [vmem:[#allocation2 + $0x74] sm:$0x1] %v758_v7 }
  0xe4   : > { %v2231_v25 = vrot.slane %v2229_v60, 5  ;;  %v2235_v11 = vrot.slane %v2233_v62, 4  ;;  %v2241_v17 = vrot.slane %v2239_v63, 5  ;;  %2816 = vrot.lane.b32.xlu0 %v9346_v59, %s10573_s28  ;;  %v2698_v18 = vrot.slane %v2571_v2, 5  ;;  %v3066_v19 = vld [vmem:[#allocation2 + $0x64] sm:$0xf] }
  0xe5   : > { %v3067_v20 = vld [vmem:[#allocation2 + $0x68] sm:$0x1]  ;;  %v2227_v21 = vrot.slane %v2226_v23, 4  ;;  %v2696_v26 = vsel %vm10789_vm6, %v9331_v42, %v2695_v13  ;;  %v2697_v28 = vrot.slane %v2695_v13, 4  ;;  %v3242_v31 = vrot.slane %v3240_v6, 4  ;;  %2532 = vst.msk [vmem:[#allocation3] sm:$0xff] %vm2531_vm3, %v11232_v22 }
  0xe6   : > { %v2236_v8 = vor.u32 %v2235_v11, %v2231_v25  ;;  %v3249_v43 = vshll.u32 %v3066_v19, 16  ;;  %v3253_v33 = vshrl.u32 %v3066_v19, 16  ;;  %v3610_v39 = vld [vmem:[#allocation2 + $0x60] sm:$0xe]  ;;  %v3259_v48 = vshll.u32 %v3067_v20, 16  ;;  %v11256_v40 = vpop.permute.xlu1 %3529  ;;  %2854 = vst.msk [vmem:[#allocation3 + $0x8] sm:$0xff] %vm13880_vm4, %v11204_v27 }
  0xe7   : > { %v2232_v45 = vsel %vm10809_vm11, %v2227_v21, %v2231_v25  ;;  %v2699_v49 = vsel %vm10789_vm6, %v2697_v28, %v2698_v18  ;;  %v3245_v29 = vrot.slane %v3243_v32, 5  ;;  %v3611_v61 = vld [vmem:[#allocation2 + $0x64] sm:$0xf]  ;;  %v9394_v53 = vrot.slane %v3610_v39, 9  ;;  %v3612_v58 = vld [vmem:[#allocation2 + $0x68] sm:$0x1] }
  0xe8   : > { %v11247_v41 = vpop.permute.xlu0 %3527  ;;  %v2237_v47 = vrot.slane %v2236_v8, 4  ;;  %2994 = vrot.lane.b32.xlu0 %v10399_v15, %s10572_s27  ;;  %v3251_v16 = vrot.slane %v3249_v43, 5  ;;  %v3255_v14 = vrot.slane %v3253_v33, 4  ;;  %v9347_v50 = vcombine.low %v2696_v26, %v2699_v49  ;;  %v978_v62 = vld [vmem:[#allocation2 + $0x60] sm:$0xf]  ;;  %2853 = vst.msk [vmem:[#allocation3] sm:$0xff] %vm13880_vm4, %v11163_v5 }
  0xe9   : > { %v3261_v42 = vrot.slane %v3259_v48, 5  ;;  %v3069_v52 = vld [vmem:[#allocation2 + $0x70] sm:$0xf]  ;;  %v3246_v37 = vor.u32 %v3245_v29, %v3242_v31  ;;  %v3732_v60 = vrot.slane %v3611_v61, 5  ;;  %v3735_v31 = vrot.slane %v3612_v58, 5  ;;  %3032 = vst.msk [vmem:[#allocation3 + $0x8] sm:$0xff] %vm13879_vm5, %v11161_v9 }
  0xea   : > { %v2242_v12 = vsel %vm10809_vm11, %v2237_v47, %v2241_v17  ;;  %v3256_v54 = vor.u32 %v3255_v14, %v3251_v16  ;;  %v3068_v56 = vld [vmem:[#allocation2 + $0x6c] sm:$0xf]  ;;  %v3273_v46 = vshll.u32 %v3069_v52, 16  ;;  %v3070_v10 = vld [vmem:[#allocation2 + $0x74] sm:$0x1]  ;;  %v3277_v24 = vshrl.u32 %v3069_v52, 16 }
  0xeb   : > { %v9315_v35 = vcombine.low %v2232_v45, %v2242_v12  ;;  %v3264_v59 = vshrl.u32 %v3068_v56, 16  ;;  %v3267_v44 = vshll.u32 %v3068_v56, 16  ;;  %v3247_v0 = vrot.slane %v3246_v37, 4  ;;  %v3613_v7 = vld [vmem:[#allocation2 + $0x6c] sm:$0xe]  ;;  %3031 = vst.msk [vmem:[#allocation3] sm:$0xff] %vm13879_vm5, %v11148_v38 }
  0xec   : > { %v3257_v2 = vrot.slane %v3256_v54, 4  ;;  %v3275_v4 = vrot.slane %v3273_v46, 5  ;;  %v3283_v6 = vshll.u32 %v3070_v10, 16  ;;  %v3279_v11 = vrot.slane %v3277_v24, 4  ;;  %v3614_v15 = vld [vmem:[#allocation2 + $0x70] sm:$0xf] }
  0xed   : > { %v1442_v63 = vpop.permute.xlu0 %1441  ;;  %2497 = vrot.lane.b32.xlu1 %v9315_v35, %s10575_s30  ;;  %v3266_v23 = vrot.slane %v3264_v59, 4  ;;  %v3269_v25 = vrot.slane %v3267_v44, 5  ;;  %v3733_v13 = vsel %vm10789_vm6, %v9394_v53, %v3732_v60  ;;  %v3252_v17 = vsel %vm10809_vm11, %v3247_v0, %v3251_v16  ;;  %v3615_v21 = vld [vmem:[#allocation2 + $0x74] sm:$0x1]  ;;  %v979_v32 = vld [vmem:[#allocation2 + $0x64] sm:$0xf] }
  0xee   : > { %1488 = vst.msk [vmem:[#allocation3 + $0x10] sm:$0xff] %vm1485_vm15, %v1442_v63  ;;  %v3262_v18 = vsel %vm10809_vm11, %v3257_v2, %v3261_v42  ;;  %v3285_v19 = vrot.slane %v3283_v6, 5  ;;  %v3734_v20 = vrot.slane %v3732_v60, 4  ;;  %v3280_v28 = vor.u32 %v3279_v11, %v3275_v4  ;;  %v10400_v39 = vld [vmem:[#allocation2 + $0x6c] sm:$0xff]   ;;  %v980_v61 = vld [vmem:[#allocation2 + $0x68] sm:$0x1] }
  0xef   : > { %v9378_v8 = vcombine.low %v3252_v17, %v3262_v18  ;;  %v3270_v26 = vor.u32 %v3269_v25, %v3266_v23  ;;  %v9395_v45 = vrot.slane %v3613_v7, 9  ;;  %v3739_v47 = vrot.slane %v3614_v15, 5  ;;  %v981_v35 = vld [vmem:[#allocation2 + $0x6c] sm:$0xf]  ;;  %v982_v58 = vld [vmem:[#allocation2 + $0x70] sm:$0xf] }
  0xf0   : > { %v3742_v49 = vrot.slane %v3615_v21, 5  ;;  %v1198_v48 = vshrl.u32 %v978_v62, 16  ;;  %v3281_v16 = vrot.slane %v3280_v28, 4  ;;  %v3736_v14 = vsel %vm10789_vm6, %v3734_v20, %v3735_v31  ;;  %v983_v63 = vld [vmem:[#allocation2 + $0x74] sm:$0x1]  ;;  %3577 = vst.msk [vmem:[#allocation3 + $0x8] sm:$0xff] %vm3575_vm8, %v11256_v40 }
  0xf1   : > { %v1444_v43 = vpop.permute.xlu1 %1443  ;;  %v1766_v33 = vpop.permute.xlu0 %1765  ;;  %2818 = vrot.lane.b32.xlu1 %v9347_v50, %s10573_s28  ;;  %3539 = vrot.lane.b32.xlu0 %v9378_v8, %s10576_s6  ;;  %v3271_v29 = vrot.slane %v3270_v26, 4  ;;  %v1201_v12 = vshll.u32 %v978_v62, 16  ;;  %v9410_v42 = vcombine.low %v3733_v13, %v3736_v14  ;;  %v11274_v50 = vsel %vm10789_vm6, %v9395_v45, %v3739_v47  ;;  %v1526_v7 = vld [vmem:[#allocation2 + $0x60] sm:$0xe]  ;;  %v1527_v23 = vld [vmem:[#allocation2 + $0x64] sm:$0xf] }
  0xf2   : > { %1489 = vst.msk [vmem:[#allocation3 + $0x18] sm:$0xff] %vm1485_vm15, %v1444_v43  ;;  %v3741_v52 = vrot.slane %v3739_v47, 4  ;;  %v1200_v53 = vrot.slane %v1198_v48, 4  ;;  %v3286_v54 = vsel %vm10809_vm11, %v3281_v16, %v3285_v19  ;;  %v1207_v46 = vshll.u32 %v979_v32, 16  ;;  %v1528_v17 = vld [vmem:[#allocation2 + $0x68] sm:$0x1] }
  0xf3   : > { %1812 = vst.msk [vmem:[#allocation3 + $0x10] sm:$0xff] %vm1809_vm1, %v1766_v33  ;;  %v3276_v37 = vsel %vm10809_vm11, %v3271_v29, %v3275_v4  ;;  %v1203_v56 = vrot.slane %v1201_v12, 5  ;;  %v1211_v60 = vshrl.u32 %v979_v32, 16  ;;  %v1217_v62 = vshll.u32 %v980_v61, 16  ;;  %v1529_v8 = vld [vmem:[#allocation2 + $0x6c] sm:$0xe] }
  0xf4   : > { %v9379_v44 = vcombine.low %v3276_v37, %v3286_v54  ;;  %v3743_v24 = vsel %vm10789_vm6, %v3741_v52, %v3742_v49  ;;  %v1209_v4 = vrot.slane %v1207_v46, 5  ;;  %v1222_v6 = vshrl.u32 %v981_v35, 16  ;;  %v354_v26 = vld [vmem:[%s10787_s23 + $0x48] sm:$0xf]  ;;  %v1530_v33 = vld [vmem:[#allocation2 + $0x70] sm:$0xf] }
  0xf5   : > { %v1768_v10 = vpop.permute.xlu1 %1767  ;;  %v1943_v59 = vpop.permute.xlu0 %1942  ;;  %2996 = vrot.lane.b32.xlu1 %v10400_v39, %s10572_s27  ;;  %3860 = vrot.lane.b32.xlu0 %v9410_v42, %s10574_s29  ;;  %v9411_v0 = vcombine.low %v11274_v50, %v3743_v24  ;;  %v1204_v2 = vor.u32 %v1203_v56, %v1200_v53  ;;  %v1213_v25 = vrot.slane %v1211_v60, 4  ;;  %v1219_v11 = vrot.slane %v1217_v62, 5  ;;  %v10419_v45 = vld [vmem:[#allocation2 + $0x48] sm:$0xff]   ;;  %v1531_v16 = vld [vmem:[#allocation2 + $0x74] sm:$0x1]  ;;  %3576 = vst.msk [vmem:[#allocation3] sm:$0xff] %vm3575_vm8, %v11247_v41 }
  0xf6   : > { %1813 = vst.msk [vmem:[#allocation3 + $0x18] sm:$0xff] %vm1809_vm1, %v1768_v10  ;;  %v1225_v13 = vshll.u32 %v981_v35, 16  ;;  %v1231_v15 = vshll.u32 %v982_v58, 16  ;;  %v1224_v19 = vrot.slane %v1222_v6, 4  ;;  %v1235_v20 = vshrl.u32 %v982_v58, 16  ;;  %v10420_v14 = vld [vmem:[#allocation2 + $0x54] sm:$0xff]  }
  0xf7   : > { %1989 = vst.msk [vmem:[#allocation3 + $0x10] sm:$0xff] %vm1986_vm2, %v1943_v59  ;;  %v1205_v18 = vrot.slane %v1204_v2, 4  ;;  %v1241_v21 = vshll.u32 %v983_v63, 16  ;;  %v1214_v28 = vor.u32 %v1213_v25, %v1209_v4  ;;  %v9268_v43 = vrot.slane %v1526_v7, 9  ;;  %v355_v10 = vld [vmem:[%s10787_s23 + $0x4c] sm:$0xf] }
  0xf8   : > { %v1227_v31 = vrot.slane %v1225_v13, 5  ;;  %v1233_v32 = vrot.slane %v1231_v15, 5  ;;  %v1237_v49 = vrot.slane %v1235_v20, 4  ;;  %v1659_v29 = vrot.slane %v1527_v23, 5  ;;  %944 = vst.msk [vmem:[#allocation3 + $0x30] sm:$0xff] %vm937_vm14, %v10419_v45  ;;  %945 = vst.msk [vmem:[#allocation3 + $0x38] sm:$0xff] %vm937_vm14, %v10420_v14 }
  0xf9   : > { %3541 = vrot.lane.b32.xlu1 %v9379_v44, %s10576_s6  ;;  %v1945_v39 = vpop.permute.xlu1 %1944  ;;  %v1210_v47 = vsel %vm10809_vm11, %v1205_v18, %v1209_v4  ;;  %v1243_v48 = vrot.slane %v1241_v21, 5  ;;  %v1215_v61 = vrot.slane %v1214_v28, 4  ;;  %v1662_v42 = vrot.slane %v1528_v17, 5  ;;  %v2027_v63 = vld [vmem:[#allocation2 + $0x6c] sm:$0xf]  ;;  %3898 = vst.msk [vmem:[#allocation3 + $0x8] sm:$0xff] %vm3896_vm7, %v11229_v57 }
  0xfa   : > { %1990 = vst.msk [vmem:[#allocation3 + $0x18] sm:$0xff] %vm1986_vm2, %v1945_v39  ;;  %v1228_v12 = vor.u32 %v1227_v31, %v1224_v19  ;;  %v9269_v50 = vrot.slane %v1529_v8, 9  ;;  %v1238_v53 = vor.u32 %v1237_v49, %v1233_v32  ;;  %v1660_v35 = vsel %vm10789_vm6, %v9268_v43, %v1659_v29  ;;  %v2028_v2 = vld [vmem:[#allocation2 + $0x70] sm:$0xf]  ;;  %v760_v23 = vld [vmem:[#allocation2 + $0x78] sm:$0xf] }
  0xfb   : > { %v1661_v37 = vrot.slane %v1659_v29, 4  ;;  %v1666_v54 = vrot.slane %v1530_v33, 5  ;;  %v1220_v56 = vsel %vm10809_vm11, %v1215_v61, %v1219_v11  ;;  %v1669_v58 = vrot.slane %v1531_v16, 5  ;;  %v2029_v25 = vld [vmem:[#allocation2 + $0x74] sm:$0x1]  ;;  %v10402_v31 = vld [vmem:[#allocation2 + $0x6c] sm:$0xff]  }
  0xfc   : > { %v1229_v46 = vrot.slane %v1228_v12, 4  ;;  %v525_v59 = vshrl.u32 %v354_v26, 16  ;;  %v9252_v44 = vcombine.low %v1210_v47, %v1220_v56  ;;  %v1239_v24 = vrot.slane %v1238_v53, 4  ;;  %v764_v8 = vld [vmem:[#allocation2 + $0x80] sm:$0x1]  ;;  %3897 = vst.msk [vmem:[#allocation3] sm:$0xff] %vm3896_vm7, %v11186_v55 }
  0xfd   : > { %v2488_v52 = vpop.permute.xlu0 %2487  ;;  %3862 = vrot.lane.b32.xlu1 %v9411_v0, %s10574_s29  ;;  %v1663_v60 = vsel %vm10789_vm6, %v1661_v37, %v1662_v42  ;;  %v1667_v62 = vsel %vm10789_vm6, %v9269_v50, %v1666_v54  ;;  %v1668_v6 = vrot.slane %v1666_v54, 4  ;;  %v528_v15 = vshll.u32 %v354_v26, 16  ;;  %v2572_v47 = vld [vmem:[#allocation2 + $0x6c] sm:$0xe]  ;;  %v2573_v30 = vld [vmem:[#allocation2 + $0x70] sm:$0xf] }
  0xfe   : > { %v1234_v0 = vsel %vm10809_vm11, %v1229_v46, %v1233_v32  ;;  %v9284_v4 = vcombine.low %v1660_v35, %v1663_v60  ;;  %v527_v7 = vrot.slane %v525_v59, 7  ;;  %1453 = vrot.lane.b32.xlu0 %v9252_v44, %s10570_s25  ;;  %v1244_v13 = vsel %vm10809_vm11, %v1239_v24, %v1243_v48  ;;  %2534 = vst.msk [vmem:[#allocation3 + $0x10] sm:$0xff] %vm2531_vm3, %v2488_v52  ;;  %v2574_v49 = vld [vmem:[#allocation2 + $0x74] sm:$0x1]  ;;  %v11329_v16 = vld [vmem:[%s10787_s23 + $0x50] sm:$0xf] }
  0xff   : > { %v533_v17 = vshrl.u32 %v355_v10, 16  ;;  %v536_v18 = vshll.u32 %v355_v10, 16  ;;  %v9253_v19 = vcombine.low %v1234_v0, %v1244_v13  ;;  %v1670_v20 = vsel %vm10789_vm6, %v1668_v6, %v1669_v58  ;;  %v10409_v22 = vld [vmem:[%s13872_s1 + $0x10] ss:$0 sps:$4 sm:$0x33]  }
 0x100   : > { %v531_v21 = vrot.slane %v527_v7, 4  ;;  %v9285_v28 = vcombine.low %v1667_v62, %v1670_v20  ;;  %v530_v32 = vor.u32 %v528_v15, %v527_v7  ;;  %v2244_v26 = vshrl.u32 %v2027_v63, 16  ;;  %v11332_v52 = vld [vmem:[%s10787_s23 + $0x54] sm:$0xf]  ;;  %10366 = vmatprep.subr.msk.bf16.mxu0 %vm4005_vm9, %v10409_v22 }
 0x101   : > { %v2809_v11 = vpop.permute.xlu0 %2808  ;;  %v535_v43 = vrot.slane %v533_v17, 7  ;;  %1455 = vrot.lane.b32.xlu1 %v9253_v19, %s10570_s25  ;;  %v2247_v33 = vshll.u32 %v2027_v63, 16  ;;  %v2253_v39 = vshll.u32 %v2028_v2, 16  ;;  %v2257_v45 = vshrl.u32 %v2028_v2, 16  ;;  %v767_v2 = vld [vmem:[#allocation2 + $0x84] sm:$0xf] }
 0x102   : > { %2855 = vst.msk [vmem:[#allocation3 + $0x10] sm:$0xff] %vm13880_vm4, %v2809_v11  ;;  %1777 = vrot.lane.b32.xlu0 %v9284_v4, %s10569_s24  ;;  %v761_v5 = vsel %vm10803_vm10, %v530_v32, %v760_v23  ;;  %v2263_v29 = vshll.u32 %v2029_v25, 16  ;;  %v2246_v61 = vrot.slane %v2244_v26, 4  ;;  %v9332_v58 = vrot.slane %v2572_v47, 9 }
 0x103   : > { %v538_v27 = vor.u32 %v536_v18, %v535_v43  ;;  %v540_v48 = vrot.slane %v535_v43, 4  ;;  %762 = vst [vmem:[#allocation2 + $0x78] sm:$0xf] %v761_v5  ;;  %v2249_v12 = vrot.slane %v2247_v33, 5  ;;  %v2255_v42 = vrot.slane %v2253_v39, 5 }
 0x104   : > { %v2259_v50 = vrot.slane %v2257_v45, 4  ;;  %v2265_v37 = vrot.slane %v2263_v29, 5  ;;  %v2702_v10 = vrot.slane %v2573_v30, 5  ;;  %v2705_v59 = vrot.slane %v2574_v49, 5 }
 0x105   : > { %v2987_v14 = vpop.permute.xlu0 %2986  ;;  %v539_v35 = vsel %vm10821_vm12, %v531_v21, %v538_v27  ;;  %v765_v54 = vsel %vm10830_vm13, %v540_v48, %v764_v8  ;;  %1779 = vrot.lane.b32.xlu1 %v9285_v28, %s10569_s24  ;;  %v2250_v56 = vor.u32 %v2249_v12, %v2246_v61  ;;  %v542_v38 = vshrl.u32 %v11329_v16, 16 }
 0x106   : > { %v2490_v53 = vpop.permute.xlu1 %2489  ;;  %763 = vst.msk [vmem:[#allocation2 + $0x7c] sm:$0xf] %vm226_vm0, %v539_v35  ;;  %v2260_v46 = vor.u32 %v2259_v50, %v2255_v42  ;;  %766 = vst [vmem:[#allocation2 + $0x80] sm:$0x1] %v765_v54  ;;  %1954 = vrot.lane.b32.xlu0 %v10402_v31, %s10571_s26  ;;  %v2703_v41 = vsel %vm10789_vm6, %v9332_v58, %v2702_v10  ;;  %v2704_v40 = vrot.slane %v2702_v10, 4  ;;  %v545_v60 = vshll.u32 %v11329_v16, 16 }
 0x107   : > { %2535 = vst.msk [vmem:[#allocation3 + $0x18] sm:$0xff] %vm2531_vm3, %v2490_v53  ;;  %v2251_v44 = vrot.slane %v2250_v56, 4  ;;  %v550_v62 = vshrl.u32 %v11332_v52, 16  ;;  %v11366_v63 = vrot.slane %v542_v38, 7  ;;  %v4007_v0 = vsel %vm4005_vm9, %v10409_v22, 0  ;;  %v3913_v16 = vld [vmem:[#allocation3] sm:$0xff] }
 0x108   : > { %3033 = vst.msk [vmem:[#allocation3 + $0x10] sm:$0xff] %vm13879_vm5, %v2987_v14  ;;  %v2261_v24 = vrot.slane %v2260_v46, 4  ;;  %v2706_v23 = vsel %vm10789_vm6, %v2704_v40, %v2705_v59  ;;  %10269 = vmatpush3.bf16.msra.mxu0 %v4007_v0  ;;  %v553_v17 = vshll.u32 %v11332_v52, 16  ;;  %vm3956_vm9 = vcmask 293888   ;;  %v771_v40 = vld [vmem:[#allocation2 + $0x8c] sm:$0x1] }
 0x109   : > { %v2256_v57 = vsel %vm10809_vm11, %v2251_v44, %v2255_v42  ;;  %v9348_v21 = vcombine.low %v2703_v41, %v2706_v23  ;;  %v547_v8 = vor.u32 %v545_v60, %v11366_v63  ;;  %v548_v28 = vrot.slane %v11366_v63, 4  ;;  %10270 = vmatprep.mubr.msk.bf16.mxu0 %vm3956_vm9, %v3913_v16  ;;  %v3914_v44 = vld [vmem:[#allocation3 + $0x8] sm:$0xff] }
 0x10a   : > { %v2811_v9 = vpop.permute.xlu1 %2810  ;;  %v2266_v55 = vsel %vm10809_vm11, %v2261_v24, %v2265_v37  ;;  %v2030_v7 = vld [vmem:[#allocation2 + $0x78] sm:$0xf]  ;;  %v552_v12 = vrot.slane %v550_v62, 7 }
 0x10b   : > { %2856 = vst.msk [vmem:[#allocation3 + $0x18] sm:$0xff] %vm13880_vm4, %v2811_v9  ;;  %v9316_v6 = vcombine.low %v2256_v57, %v2266_v55  ;;  %v2575_v25 = vld [vmem:[#allocation2 + $0x78] sm:$0xe]  ;;  %v2268_v11 = vshrl.u32 %v2030_v7, 16  ;;  %v2271_v13 = vshll.u32 %v2030_v7, 16  ;;  %v768_v22 = vsel %vm10803_vm10, %v547_v8, %v767_v2  ;;  %10271 = vmatmul.mubr.msk.bf16.vlgmr.msra.gmra.mrb[0].mxu0 %vm3956_vm9, %v3914_v44 }
 0x10c   : > { %v3532_v4 = vpop.permute.xlu0 %3531  ;;  %v9333_v15 = vrot.slane %v2575_v25, 9  ;;  %769 = vst [vmem:[#allocation2 + $0x84] sm:$0xf] %v768_v22  ;;  %v3071_v42 = vld [vmem:[#allocation2 + $0x78] sm:$0xf]  ;;  %v555_v56 = vor.u32 %v553_v17, %v552_v12  ;;  %v557_v46 = vrot.slane %v552_v12, 4 }
 0x10d   : > { %3578 = vst.msk [vmem:[#allocation3 + $0x10] sm:$0xff] %vm3575_vm8, %v3532_v4  ;;  %v10403_v19 = vld [vmem:[#allocation2 + $0x78] sm:$0xff]   ;;  %2499 = vrot.lane.b32.xlu0 %v9316_v6, %s10575_s30  ;;  %v2032_v31 = vld [vmem:[#allocation2 + $0x80] sm:$0x1]  ;;  %v2270_v32 = vrot.slane %v2268_v11, 4  ;;  %v2273_v43 = vrot.slane %v2271_v13, 5 }
 0x10e   : > { %v2989_v18 = vpop.permute.xlu1 %2988  ;;  %v2031_v20 = vld [vmem:[#allocation2 + $0x7c] sm:$0xf]  ;;  %1956 = vrot.lane.b32.xlu1 %v10403_v19, %s10571_s26  ;;  %v2287_v45 = vshll.u32 %v2032_v31, 16  ;;  %v2577_v30 = vld [vmem:[#allocation2 + $0x80] sm:$0x1]  ;;  %v3288_v10 = vshrl.u32 %v3071_v42, 16  ;;  %v556_v57 = vsel %vm10821_vm12, %v548_v28, %v555_v56  ;;  %v772_v19 = vsel %vm10830_vm13, %v557_v46, %v771_v40 }
 0x10f   : > { %3034 = vst.msk [vmem:[#allocation3 + $0x18] sm:$0xff] %vm13879_vm5, %v2989_v18  ;;  %v2277_v26 = vshll.u32 %v2031_v20, 16  ;;  %v2281_v33 = vshrl.u32 %v2031_v20, 16  ;;  %v2576_v47 = vld [vmem:[#allocation2 + $0x7c] sm:$0xf]  ;;  %v2274_v27 = vor.u32 %v2273_v43, %v2270_v32  ;;  %v2712_v61 = vrot.slane %v2577_v30, 5 }
 0x110   : > { %v3853_v39 = vpop.permute.xlu0 %3852  ;;  %v10408_v49 = vld [vmem:[#allocation2 + $0x78] sm:$0xff]   ;;  %v2709_v29 = vrot.slane %v2576_v47, 5  ;;  %v2289_v14 = vrot.slane %v2287_v45, 5  ;;  %v3073_v58 = vld [vmem:[#allocation2 + $0x80] sm:$0x1]  ;;  %v3291_v59 = vshll.u32 %v3071_v42, 16 }
 0x111   : > { %3899 = vst.msk [vmem:[#allocation3 + $0x10] sm:$0xff] %vm3896_vm7, %v3853_v39  ;;  %v2279_v48 = vrot.slane %v2277_v26, 5  ;;  %v2283_v5 = vrot.slane %v2281_v33, 4  ;;  %2820 = vrot.lane.b32.xlu0 %v9348_v21, %s10573_s28  ;;  %v2275_v52 = vrot.slane %v2274_v27, 4  ;;  %v3072_v54 = vld [vmem:[#allocation2 + $0x7c] sm:$0xf] }
 0x112   : > { %v11384_v35 = vsel %vm10789_vm6, %v9333_v15, %v2709_v29  ;;  %v2711_v37 = vrot.slane %v2709_v29, 4  ;;  %v3297_v41 = vshll.u32 %v3072_v54, 16  ;;  %v3616_v60 = vld [vmem:[#allocation2 + $0x78] sm:$0xe]  ;;  %v3290_v55 = vrot.slane %v3288_v10, 4 }
 0x113   : > { %v3534_v50 = vpop.permute.xlu1 %3533  ;;  %v2284_v53 = vor.u32 %v2283_v5, %v2279_v48  ;;  %v2280_v24 = vsel %vm10809_vm11, %v2275_v52, %v2279_v48  ;;  %v3293_v63 = vrot.slane %v3291_v59, 5  ;;  %v3617_v2 = vld [vmem:[#allocation2 + $0x7c] sm:$0xf]  ;;  %v3618_v0 = vld [vmem:[#allocation2 + $0x80] sm:$0x1]  ;;  %v3301_v23 = vshrl.u32 %v3072_v54, 16 }
 0x114   : > { %3579 = vst.msk [vmem:[#allocation3 + $0x18] sm:$0xff] %vm3575_vm8, %v3534_v50  ;;  %v2713_v9 = vsel %vm10789_vm6, %v2711_v37, %v2712_v61  ;;  %v3299_v7 = vrot.slane %v3297_v41, 5  ;;  %v3307_v25 = vshll.u32 %v3073_v58, 16  ;;  %v984_v11 = vld [vmem:[#allocation2 + $0x78] sm:$0xf]  ;;  %v9396_v21 = vrot.slane %v3616_v60, 9 }
 0x115   : > { %v2285_v38 = vrot.slane %v2284_v53, 4  ;;  %v9349_v62 = vcombine.low %v11384_v35, %v2713_v9  ;;  %2998 = vrot.lane.b32.xlu0 %v10408_v49, %s10572_s27  ;;  %770 = vst.msk [vmem:[#allocation2 + $0x88] sm:$0xf] %vm226_vm0, %v556_v57  ;;  %v3294_v18 = vor.u32 %v3293_v63, %v3290_v55  ;;  %v3074_v20 = vld [vmem:[#allocation2 + $0x84] sm:$0xf]  ;;  %v3303_v8 = vrot.slane %v3301_v23, 4 }
 0x116   : > { %v3309_v28 = vrot.slane %v3307_v25, 5  ;;  %773 = vst [vmem:[#allocation2 + $0x8c] sm:$0x1] %v772_v19  ;;  %v3312_v31 = vshrl.u32 %v3074_v20, 16  ;;  %v3315_v32 = vshll.u32 %v3074_v20, 16  ;;  %v3746_v33 = vrot.slane %v3617_v2, 5 }
 0x117   : > { %v3855_v4 = vpop.permute.xlu1 %3854  ;;  %v2290_v6 = vsel %vm10809_vm11, %v2285_v38, %v2289_v14  ;;  %v3619_v43 = vld [vmem:[#allocation2 + $0x84] sm:$0xe]  ;;  %v3295_v26 = vrot.slane %v3294_v18, 4  ;;  %v3749_v39 = vrot.slane %v3618_v0, 5  ;;  %v11406_v47 = vld [vmem:[#allocation2 + $0x7c] sm:$0xf]  ;;  %v3304_v30 = vor.u32 %v3303_v8, %v3299_v7 }
 0x118   : > { %3900 = vst.msk [vmem:[#allocation3 + $0x18] sm:$0xff] %vm3896_vm7, %v3855_v4  ;;  %v1446_v13 = vpop.permute.xlu0 %1445  ;;  %v3915_v15 = vld [vmem:[#allocation3 + $0x10] sm:$0xff]  ;;  %v9317_v17 = vcombine.low %v2280_v24, %v2290_v6  ;;  %v9397_v45 = vrot.slane %v3619_v43, 9  ;;  %v3314_v49 = vrot.slane %v3312_v31, 4  ;;  %v3317_v22 = vrot.slane %v3315_v32, 5 }
 0x119   : > { %1490 = vst.msk [vmem:[#allocation3 + $0x20] sm:$0xff] %vm1485_vm15, %v1446_v13  ;;  %10274 = vmatprep.mubr.msk.bf16.mxu0 %vm3956_vm9, %v3915_v15  ;;  %v1246_v27 = vshrl.u32 %v984_v11, 16  ;;  %v3300_v5 = vsel %vm10809_vm11, %v3295_v26, %v3299_v7  ;;  %v3747_v29 = vsel %vm10789_vm6, %v9396_v21, %v3746_v33  ;;  %v3748_v16 = vrot.slane %v3746_v33, 4  ;;  %v986_v44 = vld [vmem:[#allocation2 + $0x80] sm:$0x1] }
 0x11a   : > { %2501 = vrot.lane.b32.xlu1 %v9317_v17, %s10575_s30  ;;  %v1249_v14 = vshll.u32 %v984_v11, 16  ;;  %v3305_v12 = vrot.slane %v3304_v30, 4  ;;  %v3318_v42 = vor.u32 %v3317_v22, %v3314_v49  ;;  %v1255_v52 = vshll.u32 %v11406_v47, 16  ;;  %v987_v6 = vld [vmem:[#allocation2 + $0x84] sm:$0xf] }
 0x11b   : > { %v1248_v50 = vrot.slane %v1246_v27, 4  ;;  %v3750_v37 = vsel %vm10789_vm6, %v3748_v16, %v3749_v39  ;;  %v1259_v18 = vshrl.u32 %v11406_v47, 16  ;;  %v1532_v21 = vld [vmem:[#allocation2 + $0x78] sm:$0xe]  ;;  %v1265_v31 = vshll.u32 %v986_v44, 16  ;;  %v10425_v49 = vld [vmem:[#allocation2 + $0x60] sm:$0xff]  }
 0x11c   : > { %v1770_v48 = vpop.permute.xlu0 %1769  ;;  %v10410_v53 = vld [vmem:[#allocation2 + $0x84] sm:$0xff]   ;;  %v1251_v54 = vrot.slane %v1249_v14, 5  ;;  %v3310_v56 = vsel %vm10809_vm11, %v3305_v12, %v3309_v28  ;;  %v3319_v46 = vrot.slane %v3318_v42, 4  ;;  %v9412_v41 = vcombine.low %v3747_v29, %v3750_v37  ;;  %946 = vst.msk [vmem:[#allocation3 + $0x40] sm:$0xff] %vm937_vm14, %v10425_v49 }
 0x11d   : > { %v1448_v61 = vpop.permute.xlu1 %1447  ;;  %1814 = vst.msk [vmem:[#allocation3 + $0x20] sm:$0xff] %vm1809_vm1, %v1770_v48  ;;  %v3075_v35 = vld [vmem:[#allocation2 + $0x88] sm:$0xf]  ;;  %v9380_v38 = vcombine.low %v3300_v5, %v3310_v56  ;;  %v3076_v9 = vld [vmem:[#allocation2 + $0x8c] sm:$0x1]  ;;  %v1257_v11 = vrot.slane %v1255_v52, 5 }
 0x11e   : > { %1491 = vst.msk [vmem:[#allocation3 + $0x28] sm:$0xff] %vm1485_vm15, %v1448_v61  ;;  %2822 = vrot.lane.b32.xlu1 %v9349_v62, %s10573_s28  ;;  %v3321_v58 = vshll.u32 %v3075_v35, 16  ;;  %v3325_v10 = vshrl.u32 %v3075_v35, 16  ;;  %v3620_v59 = vld [vmem:[#allocation2 + $0x88] sm:$0xf]  ;;  %v1252_v62 = vor.u32 %v1251_v54, %v1248_v50  ;;  %v3331_v0 = vshll.u32 %v3076_v9, 16 }
 0x11f   : > { %v3621_v40 = vld [vmem:[#allocation2 + $0x8c] sm:$0x1]  ;;  %v3753_v60 = vrot.slane %v3620_v59, 5  ;;  %v3916_v55 = vld [vmem:[#allocation3 + $0x18] sm:$0xff]  ;;  %3543 = vrot.lane.b32.xlu0 %v9380_v38, %s10576_s6  ;;  %v988_v19 = vld [vmem:[#allocation2 + $0x88] sm:$0xf] }
 0x120   : > { %v1947_v24 = vpop.permute.xlu0 %1946  ;;  %v3323_v63 = vrot.slane %v3321_v58, 5  ;;  %v3327_v2 = vrot.slane %v3325_v10, 4  ;;  %v3756_v4 = vrot.slane %v3621_v40, 5  ;;  %10275 = vmatmul.mubr.msk.bf16.gmra.mrb[4].mxu0 %vm3956_vm9, %v3916_v55  ;;  %v1253_v25 = vrot.slane %v1252_v62, 4  ;;  %v989_v20 = vld [vmem:[#allocation2 + $0x8c] sm:$0x1] }
 0x121   : > { %v1772_v57 = vpop.permute.xlu1 %1771  ;;  %1991 = vst.msk [vmem:[#allocation3 + $0x20] sm:$0xff] %vm1986_vm2, %v1947_v24  ;;  %v11427_v7 = vsel %vm10789_vm6, %v9397_v45, %v3753_v60  ;;  %v3755_v23 = vrot.slane %v3753_v60, 4  ;;  %v3333_v17 = vrot.slane %v3331_v0, 5  ;;  %v1270_v32 = vshrl.u32 %v987_v6, 16  ;;  %v1533_v45 = vld [vmem:[#allocation2 + $0x7c] sm:$0xf] }
 0x122   : > { %1815 = vst.msk [vmem:[#allocation3 + $0x28] sm:$0xff] %vm1809_vm1, %v1772_v57  ;;  %3000 = vrot.lane.b32.xlu1 %v10410_v53, %s10572_s27  ;;  %v3324_v13 = vsel %vm10809_vm11, %v3319_v46, %v3323_v63  ;;  %v3328_v15 = vor.u32 %v3327_v2, %v3323_v63  ;;  %v1258_v28 = vsel %vm10809_vm11, %v1253_v25, %v1257_v11  ;;  %v1261_v33 = vrot.slane %v1259_v18, 4  ;;  %v1534_v5 = vld [vmem:[#allocation2 + $0x80] sm:$0x1]  ;;  %v1535_v12 = vld [vmem:[#allocation2 + $0x84] sm:$0xe] }
 0x123   : > { %v3757_v8 = vsel %vm10789_vm6, %v3755_v23, %v3756_v4  ;;  %v1273_v39 = vshll.u32 %v987_v6, 16  ;;  %3864 = vrot.lane.b32.xlu0 %v9412_v41, %s10574_s29  ;;  %v1267_v47 = vrot.slane %v1265_v31, 5  ;;  %v1272_v22 = vrot.slane %v1270_v32, 4  ;;  %v1536_v42 = vld [vmem:[#allocation2 + $0x88] sm:$0xf]  ;;  %v10426_v54 = vld [vmem:[#allocation2 + $0x6c] sm:$0xff]  }
 0x124   : > { %v3329_v43 = vrot.slane %v3328_v15, 4  ;;  %v9413_v26 = vcombine.low %v11427_v7, %v3757_v8  ;;  %v1279_v27 = vshll.u32 %v988_v19, 16  ;;  %v1283_v48 = vshrl.u32 %v988_v19, 16  ;;  %v358_v59 = vld [vmem:[%s10787_s23 + $0x58] sm:$0xf]  ;;  %947 = vst.msk [vmem:[#allocation3 + $0x48] sm:$0xff] %vm937_vm14, %v10426_v54 }
 0x125   : > { %v1262_v16 = vor.u32 %v1261_v33, %v1257_v11  ;;  %v1275_v14 = vrot.slane %v1273_v39, 5  ;;  %v1289_v61 = vshll.u32 %v989_v20, 16  ;;  %v9270_v37 = vrot.slane %v1532_v21, 9  ;;  %v1537_v9 = vld [vmem:[#allocation2 + $0x8c] sm:$0x1] }
 0x126   : > { %v2492_v30 = vpop.permute.xlu0 %2491  ;;  %v3334_v29 = vsel %vm10809_vm11, %v3329_v43, %v3333_v17  ;;  %v1281_v53 = vrot.slane %v1279_v27, 5  ;;  %v1285_v35 = vrot.slane %v1283_v48, 4  ;;  %v1673_v10 = vrot.slane %v1533_v45, 5  ;;  %v359_v63 = vld [vmem:[%s10787_s23 + $0x5c] sm:$0xf] }
 0x127   : > { %2536 = vst.msk [vmem:[#allocation3 + $0x20] sm:$0xff] %vm2531_vm3, %v2492_v30  ;;  %v1949_v50 = vpop.permute.xlu1 %1948  ;;  %v9381_v52 = vcombine.low %v3324_v13, %v3334_v29  ;;  %v1263_v56 = vrot.slane %v1262_v16, 4  ;;  %v1276_v46 = vor.u32 %v1275_v14, %v1272_v22  ;;  %v1291_v58 = vrot.slane %v1289_v61, 5  ;;  %v2033_v13 = vld [vmem:[#allocation2 + $0x84] sm:$0xf]  ;;  %v10429_v48 = vld [vmem:[#allocation2 + $0x78] sm:$0xff]  }
 0x128   : > { %1992 = vst.msk [vmem:[#allocation3 + $0x28] sm:$0xff] %vm1986_vm2, %v1949_v50  ;;  %v1286_v24 = vor.u32 %v1285_v35, %v1281_v53  ;;  %v1676_v38 = vrot.slane %v1534_v5, 5  ;;  %v9271_v41 = vrot.slane %v1535_v12, 9  ;;  %v1680_v40 = vrot.slane %v1536_v42, 5  ;;  %v2034_v15 = vld [vmem:[#allocation2 + $0x88] sm:$0xf] }
 0x129   : > { %3545 = vrot.lane.b32.xlu1 %v9381_v52, %s10576_s6  ;;  %v1268_v60 = vsel %vm10809_vm11, %v1263_v56, %v1267_v47  ;;  %v1277_v62 = vrot.slane %v1276_v46, 4  ;;  %v1674_v57 = vsel %vm10789_vm6, %v9270_v37, %v1673_v10  ;;  %v1675_v55 = vrot.slane %v1673_v10, 4  ;;  %v774_v8 = vld [vmem:[#allocation2 + $0x90] sm:$0xf]  ;;  %v2578_v39 = vld [vmem:[#allocation2 + $0x84] sm:$0xe] }
 0x12a   : > { %v2813_v44 = vpop.permute.xlu0 %2812  ;;  %v9254_v2 = vcombine.low %v1258_v28, %v1268_v60  ;;  %v1287_v0 = vrot.slane %v1286_v24, 4  ;;  %v11454_v4 = vsel %vm10789_vm6, %v9271_v41, %v1680_v40  ;;  %v1682_v6 = vrot.slane %v1680_v40, 4  ;;  %v2035_v28 = vld [vmem:[#allocation2 + $0x8c] sm:$0x1]  ;;  %v2579_v22 = vld [vmem:[#allocation2 + $0x88] sm:$0xf] }
 0x12b   : > { %2857 = vst.msk [vmem:[#allocation3 + $0x20] sm:$0xff] %vm13880_vm4, %v2813_v44  ;;  %v1282_v7 = vsel %vm10809_vm11, %v1277_v62, %v1281_v53  ;;  %v1677_v23 = vsel %vm10789_vm6, %v1675_v55, %v1676_v38  ;;  %v1683_v25 = vrot.slane %v1537_v9, 5  ;;  %v559_v11 = vshrl.u32 %v358_v59, 16  ;;  %v2580_v27 = vld [vmem:[#allocation2 + $0x8c] sm:$0x1]  ;;  %v10430_v5 = vld [vmem:[#allocation2 + $0x84] sm:$0xff]  }
 0x12c   : > { %1457 = vrot.lane.b32.xlu0 %v9254_v2, %s10570_s25  ;;  %v1292_v18 = vsel %vm10809_vm11, %v1287_v0, %v1291_v58  ;;  %v9286_v19 = vcombine.low %v1674_v57, %v1677_v23  ;;  %v562_v20 = vshll.u32 %v358_v59, 16  ;;  %v567_v21 = vshrl.u32 %v359_v63, 16  ;;  %v360_v12 = vld [vmem:[%s10787_s23 + $0x60] sm:$0xf]  ;;  %v361_v42 = vld [vmem:[%s10787_s23 + $0x64] sm:$0xf] }
 0x12d   : > { %3866 = vrot.lane.b32.xlu1 %v9413_v26, %s10574_s29  ;;  %v9255_v31 = vcombine.low %v1282_v7, %v1292_v18  ;;  %v1684_v32 = vsel %vm10789_vm6, %v1682_v6, %v1683_v25  ;;  %v561_v43 = vrot.slane %v559_v11, 7  ;;  %v570_v33 = vshll.u32 %v359_v63, 16  ;;  %v778_v26 = vld [vmem:[#allocation2 + $0x98] sm:$0x1]  ;;  %v10411_v52 = vld [vmem:[#allocation2 + $0x84] sm:$0xff]   ;;  %948 = vst.msk [vmem:[#allocation3 + $0x50] sm:$0xff] %vm937_vm14, %v10429_v48 }
 0x12e   : > { %v2991_v17 = vpop.permute.xlu0 %2990  ;;  %v9287_v45 = vcombine.low %v11454_v4, %v1684_v32  ;;  %v569_v30 = vrot.slane %v567_v21, 7  ;;  %v2292_v49 = vshrl.u32 %v2033_v13, 16  ;;  %v2295_v47 = vshll.u32 %v2033_v13, 16  ;;  %949 = vst.msk [vmem:[#allocation3 + $0x58] sm:$0xff] %vm937_vm14, %v10430_v5  ;;  %v11482_v9 = vld [vmem:[%s10787_s23 + $0x68] sm:$0xf] }
 0x12f   : > { %3035 = vst.msk [vmem:[#allocation3 + $0x20] sm:$0xff] %vm13879_vm5, %v2991_v17  ;;  %v564_v29 = vor.u32 %v562_v20, %v561_v43  ;;  %v565_v16 = vrot.slane %v561_v43, 4  ;;  %v2301_v14 = vshll.u32 %v2034_v15, 16  ;;  %v2305_v61 = vshrl.u32 %v2034_v15, 16  ;;  %v11486_v55 = vld [vmem:[%s10787_s23 + $0x6c] sm:$0xf] }
 0x130   : > { %1781 = vrot.lane.b32.xlu0 %v9286_v19, %s10569_s24  ;;  %v572_v53 = vor.u32 %v570_v33, %v569_v30  ;;  %v574_v35 = vrot.slane %v569_v30, 4  ;;  %v2294_v37 = vrot.slane %v2292_v49, 4  ;;  %v2297_v54 = vrot.slane %v2295_v47, 5  ;;  %v781_v18 = vld [vmem:[#allocation2 + $0x9c] sm:$0xf] }
 0x131   : > { %1459 = vrot.lane.b32.xlu1 %v9255_v31, %s10570_s25  ;;  %v775_v56 = vsel %vm10803_vm10, %v564_v29, %v774_v8  ;;  %v2303_v46 = vrot.slane %v2301_v14, 5  ;;  %v2307_v58 = vrot.slane %v2305_v61, 4  ;;  %v2311_v10 = vshll.u32 %v2035_v28, 16 }
 0x132   : > { %v573_v59 = vsel %vm10821_vm12, %v565_v16, %v572_v53  ;;  %776 = vst [vmem:[#allocation2 + $0x90] sm:$0xf] %v775_v56  ;;  %v2298_v44 = vor.u32 %v2297_v54, %v2294_v37  ;;  %v779_v24 = vsel %vm10830_vm13, %v574_v35, %v778_v26  ;;  %v9334_v38 = vrot.slane %v2578_v39, 9 }
 0x133   : > { %v2494_v50 = vpop.permute.xlu1 %2493  ;;  %777 = vst.msk [vmem:[#allocation2 + $0x94] sm:$0xf] %vm226_vm0, %v573_v59  ;;  %v2308_v41 = vor.u32 %v2307_v58, %v2303_v46  ;;  %v2313_v40 = vrot.slane %v2311_v10, 5  ;;  %780 = vst [vmem:[#allocation2 + $0x98] sm:$0x1] %v779_v24  ;;  %v2716_v60 = vrot.slane %v2579_v22, 5 }
 0x134   : > { %2537 = vst.msk [vmem:[#allocation3 + $0x28] sm:$0xff] %vm2531_vm3, %v2494_v50  ;;  %v2719_v62 = vrot.slane %v2580_v27, 5  ;;  %1958 = vrot.lane.b32.xlu0 %v10411_v52, %s10571_s26  ;;  %v2299_v63 = vrot.slane %v2298_v44, 4  ;;  %v576_v2 = vshrl.u32 %v360_v12, 16  ;;  %v579_v0 = vshll.u32 %v360_v12, 16 }
 0x135   : > { %1783 = vrot.lane.b32.xlu1 %v9287_v45, %s10569_s24  ;;  %v584_v4 = vshrl.u32 %v361_v42, 16  ;;  %v2309_v6 = vrot.slane %v2308_v41, 4  ;;  %v2718_v7 = vrot.slane %v2716_v60, 4  ;;  %v587_v23 = vshll.u32 %v361_v42, 16 }
 0x136   : > { %v3536_v25 = vpop.permute.xlu0 %3535  ;;  %v2304_v11 = vsel %vm10809_vm11, %v2299_v63, %v2303_v46  ;;  %v2717_v13 = vsel %vm10789_vm6, %v9334_v38, %v2716_v60  ;;  %v578_v15 = vrot.slane %v576_v2, 7  ;;  %v593_v8 = vshrl.u32 %v11482_v9, 16 }
 0x137   : > { %v2815_v57 = vpop.permute.xlu1 %2814  ;;  %v11495_v17 = vrot.slane %v584_v4, 7  ;;  %3580 = vst.msk [vmem:[#allocation3 + $0x20] sm:$0xff] %vm3575_vm8, %v3536_v25  ;;  %v2314_v19 = vsel %vm10809_vm11, %v2309_v6, %v2313_v40  ;;  %v2720_v20 = vsel %vm10789_vm6, %v2718_v7, %v2719_v62  ;;  %v596_v28 = vshll.u32 %v11482_v9, 16 }
 0x138   : > { %2858 = vst.msk [vmem:[#allocation3 + $0x28] sm:$0xff] %vm13880_vm4, %v2815_v57  ;;  %v9318_v31 = vcombine.low %v2304_v11, %v2314_v19  ;;  %v581_v32 = vor.u32 %v579_v0, %v578_v15  ;;  %v582_v43 = vrot.slane %v578_v15, 4  ;;  %v601_v33 = vshrl.u32 %v11486_v55, 16  ;;  %v785_v57 = vld [vmem:[#allocation2 + $0xa4] sm:$0x1] }
 0x139   : > { %v2036_v26 = vld [vmem:[#allocation2 + $0x90] sm:$0xf]  ;;  %v589_v45 = vor.u32 %v587_v23, %v11495_v17  ;;  %v9350_v27 = vcombine.low %v2717_v13, %v2720_v20  ;;  %v591_v59 = vrot.slane %v11495_v17, 4 }
 0x13a   : > { %v2581_v39 = vld [vmem:[#allocation2 + $0x90] sm:$0xe]  ;;  %v3857_v30 = vpop.permute.xlu0 %3856  ;;  %2503 = vrot.lane.b32.xlu0 %v9318_v31, %s10575_s30  ;;  %v2037_v47 = vld [vmem:[#allocation2 + $0x94] sm:$0xf]  ;;  %v2316_v22 = vshrl.u32 %v2036_v26, 16  ;;  %v782_v48 = vsel %vm10803_vm10, %v581_v32, %v781_v18  ;;  %v2319_v29 = vshll.u32 %v2036_v26, 16 }
 0x13b   : > { %v2993_v21 = vpop.permute.xlu1 %2992  ;;  %v10412_v49 = vld [vmem:[#allocation2 + $0x90] sm:$0xff]   ;;  %3901 = vst.msk [vmem:[#allocation3 + $0x20] sm:$0xff] %vm3896_vm7, %v3857_v30  ;;  %v2038_v5 = vld [vmem:[#allocation2 + $0x98] sm:$0x1]  ;;  %v2325_v16 = vshll.u32 %v2037_v47, 16  ;;  %v2329_v14 = vshrl.u32 %v2037_v47, 16  ;;  %v590_v53 = vsel %vm10821_vm12, %v582_v43, %v589_v45 }
 0x13c   : > { %3036 = vst.msk [vmem:[#allocation3 + $0x28] sm:$0xff] %vm13879_vm5, %v2993_v21  ;;  %v9335_v61 = vrot.slane %v2581_v39, 9  ;;  %783 = vst [vmem:[#allocation2 + $0x9c] sm:$0xf] %v782_v48  ;;  %1960 = vrot.lane.b32.xlu1 %v10412_v49, %s10571_s26  ;;  %v2318_v12 = vrot.slane %v2316_v22, 4  ;;  %v2335_v42 = vshll.u32 %v2038_v5, 16  ;;  %v786_v22 = vsel %vm10830_vm13, %v591_v59, %v785_v57 }
 0x13d   : > { %v2582_v50 = vld [vmem:[#allocation2 + $0x94] sm:$0xf]  ;;  %v2583_v52 = vld [vmem:[#allocation2 + $0x98] sm:$0x1]  ;;  %v2321_v35 = vrot.slane %v2319_v29, 5  ;;  %v2327_v37 = vrot.slane %v2325_v16, 5 }
 0x13e   : > { %v2331_v54 = vrot.slane %v2329_v14, 4  ;;  %v2723_v56 = vrot.slane %v2582_v50, 5  ;;  %784 = vst.msk [vmem:[#allocation2 + $0xa0] sm:$0xf] %vm226_vm0, %v590_v53  ;;  %v2337_v46 = vrot.slane %v2335_v42, 5  ;;  %2824 = vrot.lane.b32.xlu0 %v9350_v27, %s10573_s28  ;;  %v2726_v58 = vrot.slane %v2583_v52, 5 }
 0x13f   : > { %v10415_v10 = vld [vmem:[#allocation2 + $0x90] sm:$0xff]   ;;  %v2322_v24 = vor.u32 %v2321_v35, %v2318_v12  ;;  %v3079_v63 = vld [vmem:[#allocation2 + $0x98] sm:$0x1]  ;;  %787 = vst [vmem:[#allocation2 + $0xa4] sm:$0x1] %v786_v22 }
 0x140   : > { %v3538_v44 = vpop.permute.xlu1 %3537  ;;  %v2332_v38 = vor.u32 %v2331_v54, %v2327_v37  ;;  %v11519_v41 = vsel %vm10789_vm6, %v9335_v61, %v2723_v56  ;;  %v2725_v40 = vrot.slane %v2723_v56, 4  ;;  %v3077_v60 = vld [vmem:[#allocation2 + $0x90] sm:$0xf]  ;;  %v3078_v62 = vld [vmem:[#allocation2 + $0x94] sm:$0xf]  ;;  %v3355_v13 = vshll.u32 %v3079_v63, 16 }
 0x141   : > { %3581 = vst.msk [vmem:[#allocation3 + $0x28] sm:$0xff] %vm3575_vm8, %v3538_v44  ;;  %v3336_v2 = vshrl.u32 %v3077_v60, 16  ;;  %v3339_v0 = vshll.u32 %v3077_v60, 16  ;;  %v3345_v4 = vshll.u32 %v3078_v62, 16  ;;  %v3349_v6 = vshrl.u32 %v3078_v62, 16  ;;  %v1450_v7 = vpop.permute.xlu0 %1449  ;;  %v10431_v22 = vld [vmem:[#allocation2 + $0x90] sm:$0xff]  }
 0x142   : > { %v2323_v23 = vrot.slane %v2322_v24, 4  ;;  %v2333_v25 = vrot.slane %v2332_v38, 4  ;;  %v2727_v11 = vsel %vm10789_vm6, %v2725_v40, %v2726_v58  ;;  %v3622_v15 = vld [vmem:[#allocation2 + $0x90] sm:$0xe]  ;;  %1492 = vst.msk [vmem:[#allocation3 + $0x30] sm:$0xff] %vm1485_vm15, %v1450_v7  ;;  %v3917_v17 = vld [vmem:[#allocation3 + $0x20] sm:$0xff]  ;;  %3002 = vrot.lane.b32.xlu0 %v10415_v10, %s10572_s27 }
 0x143   : > { %v9351_v18 = vcombine.low %v11519_v41, %v2727_v11  ;;  %v3338_v19 = vrot.slane %v3336_v2, 4  ;;  %v3341_v20 = vrot.slane %v3339_v0, 5  ;;  %v3347_v21 = vrot.slane %v3345_v4, 5  ;;  %10278 = vmatprep.mubr.msk.bf16.mxu0 %vm3956_vm9, %v3917_v17  ;;  %v3080_v45 = vld [vmem:[#allocation2 + $0x9c] sm:$0xf]  ;;  %950 = vst.msk [vmem:[#allocation3 + $0x60] sm:$0xff] %vm937_vm14, %v10431_v22 }
 0x144   : > { %v3859_v31 = vpop.permute.xlu1 %3858  ;;  %v2328_v32 = vsel %vm10809_vm11, %v2323_v23, %v2327_v37  ;;  %v2338_v43 = vsel %vm10809_vm11, %v2333_v25, %v2337_v46  ;;  %v3351_v26 = vrot.slane %v3349_v6, 4  ;;  %v3357_v39 = vrot.slane %v3355_v13, 5  ;;  %v3623_v30 = vld [vmem:[#allocation2 + $0x94] sm:$0xf]  ;;  %v3624_v12 = vld [vmem:[#allocation2 + $0x98] sm:$0x1] }
 0x145   : > { %3902 = vst.msk [vmem:[#allocation3 + $0x28] sm:$0xff] %vm3896_vm7, %v3859_v31  ;;  %v9319_v49 = vcombine.low %v2328_v32, %v2338_v43  ;;  %v3342_v47 = vor.u32 %v3341_v20, %v3338_v19  ;;  %v3081_v27 = vld [vmem:[#allocation2 + $0xa0] sm:$0xf]  ;;  %v3360_v48 = vshrl.u32 %v3080_v45, 16  ;;  %v1774_v5 = vpop.permute.xlu0 %1773  ;;  %v3363_v16 = vshll.u32 %v3080_v45, 16 }
 0x146   : > { %v3352_v29 = vor.u32 %v3351_v26, %v3347_v21  ;;  %v3369_v14 = vshll.u32 %v3081_v27, 16  ;;  %v3373_v61 = vshrl.u32 %v3081_v27, 16  ;;  %1816 = vst.msk [vmem:[#allocation3 + $0x30] sm:$0xff] %vm1809_vm1, %v1774_v5  ;;  %v9398_v52 = vrot.slane %v3622_v15, 9  ;;  %v3625_v35 = vld [vmem:[#allocation2 + $0x9c] sm:$0xe] }
 0x147   : > { %2505 = vrot.lane.b32.xlu1 %v9319_v49, %s10575_s30  ;;  %v3343_v42 = vrot.slane %v3342_v47, 4  ;;  %v3362_v50 = vrot.slane %v3360_v48, 4  ;;  %v3760_v53 = vrot.slane %v3623_v30, 5  ;;  %v3365_v56 = vrot.slane %v3363_v16, 5  ;;  %v3626_v10 = vld [vmem:[#allocation2 + $0xa0] sm:$0xf] }
 0x148   : > { %v1452_v37 = vpop.permute.xlu1 %1451  ;;  %v3353_v54 = vrot.slane %v3352_v29, 4  ;;  %v11537_v46 = vrot.slane %v3369_v14, 5  ;;  %v3375_v58 = vrot.slane %v3373_v61, 4  ;;  %v3763_v38 = vrot.slane %v3624_v12, 5  ;;  %v990_v41 = vld [vmem:[#allocation2 + $0x90] sm:$0xf] }
 0x149   : > { %1493 = vst.msk [vmem:[#allocation3 + $0x38] sm:$0xff] %vm1485_vm15, %v1452_v37  ;;  %v3348_v59 = vsel %vm10809_vm11, %v3343_v42, %v3347_v21  ;;  %v3761_v44 = vsel %vm10789_vm6, %v9398_v52, %v3760_v53  ;;  %v3762_v24 = vrot.slane %v3760_v53, 4  ;;  %v1951_v40 = vpop.permute.xlu0 %1950  ;;  %v10416_v60 = vld [vmem:[#allocation2 + $0x9c] sm:$0xff]   ;;  %v3366_v57 = vor.u32 %v3365_v56, %v3362_v50  ;;  %v991_v7 = vld [vmem:[#allocation2 + $0x94] sm:$0xf] }
 0x14a   : > { %v3358_v62 = vsel %vm10809_vm11, %v3353_v54, %v3357_v39  ;;  %v3376_v63 = vor.u32 %v3375_v58, %v11537_v46  ;;  %v9399_v2 = vrot.slane %v3625_v35, 9  ;;  %1993 = vst.msk [vmem:[#allocation3 + $0x30] sm:$0xff] %vm1986_vm2, %v1951_v40  ;;  %v3767_v6 = vrot.slane %v3626_v10, 5  ;;  %v992_v23 = vld [vmem:[#allocation2 + $0x98] sm:$0x1] }
 0x14b   : > { %2826 = vrot.lane.b32.xlu1 %v9351_v18, %s10573_s28  ;;  %v9382_v0 = vcombine.low %v3348_v59, %v3358_v62  ;;  %v3764_v4 = vsel %vm10789_vm6, %v3762_v24, %v3763_v38  ;;  %v1294_v25 = vshrl.u32 %v990_v41, 16  ;;  %v3367_v13 = vrot.slane %v3366_v57, 4  ;;  %v993_v19 = vld [vmem:[#allocation2 + $0x9c] sm:$0xf]  ;;  %v3082_v21 = vld [vmem:[#allocation2 + $0xa4] sm:$0x1] }
 0x14c   : > { %v1776_v11 = vpop.permute.xlu1 %1775  ;;  %v3377_v15 = vrot.slane %v3376_v63, 4  ;;  %v1297_v17 = vshll.u32 %v990_v41, 16  ;;  %v3918_v20 = vld [vmem:[#allocation3 + $0x28] sm:$0xff]  ;;  %v9414_v18 = vcombine.low %v3761_v44, %v3764_v4  ;;  %v11555_v32 = vsel %vm10789_vm6, %v9399_v2, %v3767_v6  ;;  %v1538_v16 = vld [vmem:[#allocation2 + $0x90] sm:$0xe] }
 0x14d   : > { %1817 = vst.msk [vmem:[#allocation3 + $0x38] sm:$0xff] %vm1809_vm1, %v1776_v11  ;;  %3547 = vrot.lane.b32.xlu0 %v9382_v0, %s10576_s6  ;;  %v3627_v31 = vld [vmem:[#allocation2 + $0xa4] sm:$0x1]  ;;  %v3769_v43 = vrot.slane %v3767_v6, 4  ;;  %v1296_v26 = vrot.slane %v1294_v25, 4  ;;  %10279 = vmatmul.mubr.msk.bf16.gmra.mrb[8].mxu0 %vm3956_vm9, %v3918_v20  ;;  %v3372_v39 = vsel %vm10809_vm11, %v3367_v13, %v11537_v46  ;;  %v3379_v45 = vshll.u32 %v3082_v21, 16 }
 0x14e   : > { %v3770_v30 = vrot.slane %v3627_v31, 5  ;;  %v1299_v49 = vrot.slane %v1297_v17, 5  ;;  %v994_v47 = vld [vmem:[#allocation2 + $0xa0] sm:$0xf]  ;;  %v1303_v27 = vshll.u32 %v991_v7, 16  ;;  %v1307_v48 = vshrl.u32 %v991_v7, 16 }
 0x14f   : > { %3004 = vrot.lane.b32.xlu1 %v10416_v60, %s10572_s27  ;;  %v1313_v5 = vshll.u32 %v992_v23, 16  ;;  %v1318_v29 = vshrl.u32 %v993_v19, 16  ;;  %v3381_v14 = vrot.slane %v3379_v45, 5  ;;  %v995_v42 = vld [vmem:[#allocation2 + $0xa4] sm:$0x1]  ;;  %v1321_v50 = vshll.u32 %v993_v19, 16 }
 0x150   : > { %v3771_v61 = vsel %vm10789_vm6, %v3769_v43, %v3770_v30  ;;  %v1300_v12 = vor.u32 %v1299_v49, %v1296_v26  ;;  %v1539_v52 = vld [vmem:[#allocation2 + $0x94] sm:$0xf]  ;;  %v1305_v35 = vrot.slane %v1303_v27, 5  ;;  %v1309_v37 = vrot.slane %v1307_v48, 4  ;;  %v1540_v56 = vld [vmem:[#allocation2 + $0x98] sm:$0x1] }
 0x151   : > { %3868 = vrot.lane.b32.xlu0 %v9414_v18, %s10574_s29  ;;  %v9415_v53 = vcombine.low %v11555_v32, %v3771_v61  ;;  %v1315_v54 = vrot.slane %v1313_v5, 5  ;;  %v10432_v46 = vld [vmem:[#allocation2 + $0x9c] sm:$0xff]   ;;  %v3382_v58 = vsel %vm10809_vm11, %v3377_v15, %v3381_v14  ;;  %v1320_v59 = vrot.slane %v1318_v29, 4  ;;  %v1543_v13 = vld [vmem:[#allocation2 + $0xa4] sm:$0x1] }
 0x152   : > { %v1301_v10 = vrot.slane %v1300_v12, 4  ;;  %v1323_v44 = vrot.slane %v1321_v50, 5  ;;  %v2496_v24 = vpop.permute.xlu0 %2495  ;;  %v9383_v38 = vcombine.low %v3372_v39, %v3382_v58  ;;  %v1310_v41 = vor.u32 %v1309_v37, %v1305_v35  ;;  %v1541_v62 = vld [vmem:[#allocation2 + $0x9c] sm:$0xe]  ;;  %951 = vst.msk [vmem:[#allocation3 + $0x68] sm:$0xff] %vm937_vm14, %v10432_v46 }
 0x153   : > { %v1327_v40 = vshll.u32 %v994_v47, 16  ;;  %v1331_v60 = vshrl.u32 %v994_v47, 16  ;;  %2538 = vst.msk [vmem:[#allocation3 + $0x30] sm:$0xff] %vm2531_vm3, %v2496_v24  ;;  %v1337_v2 = vshll.u32 %v995_v42, 16  ;;  %v9272_v0 = vrot.slane %v1538_v16, 9  ;;  %v1953_v6 = vpop.permute.xlu1 %1952 }
 0x154   : > { %v1306_v57 = vsel %vm10809_vm11, %v1301_v10, %v1305_v35  ;;  %v1324_v63 = vor.u32 %v1323_v44, %v1320_v59  ;;  %v1542_v4 = vld [vmem:[#allocation2 + $0xa0] sm:$0xf]  ;;  %3549 = vrot.lane.b32.xlu1 %v9383_v38, %s10576_s6  ;;  %v1311_v7 = vrot.slane %v1310_v41, 4  ;;  %v1687_v11 = vrot.slane %v1539_v52, 5  ;;  %1994 = vst.msk [vmem:[#allocation3 + $0x38] sm:$0xff] %vm1986_vm2, %v1953_v6 }
 0x155   : > { %v1329_v23 = vrot.slane %v1327_v40, 5  ;;  %v1333_v25 = vrot.slane %v1331_v60, 4  ;;  %v1339_v17 = vrot.slane %v1337_v2, 5  ;;  %v1690_v19 = vrot.slane %v1540_v56, 5  ;;  %v2039_v26 = vld [vmem:[#allocation2 + $0x9c] sm:$0xf] }
 0x156   : > { %v1325_v15 = vrot.slane %v1324_v63, 4  ;;  %v9273_v20 = vrot.slane %v1541_v62, 9  ;;  %v2817_v21 = vpop.permute.xlu0 %2816  ;;  %v1316_v18 = vsel %vm10809_vm11, %v1311_v7, %v1315_v54  ;;  %v1688_v32 = vsel %vm10789_vm6, %v9272_v0, %v1687_v11  ;;  %v788_v47 = vld [vmem:[#allocation2 + $0xa8] sm:$0xf]  ;;  %v2040_v22 = vld [vmem:[#allocation2 + $0xa0] sm:$0xf] }
 0x157   : > { %v1334_v31 = vor.u32 %v1333_v25, %v1329_v23  ;;  %v1689_v43 = vrot.slane %v1687_v11, 4  ;;  %2859 = vst.msk [vmem:[#allocation3 + $0x30] sm:$0xff] %vm13880_vm4, %v2817_v21  ;;  %v9256_v39 = vcombine.low %v1306_v57, %v1316_v18  ;;  %v1694_v30 = vrot.slane %v1542_v4, 5  ;;  %v2041_v16 = vld [vmem:[#allocation2 + $0xa4] sm:$0x1]  ;;  %v10417_v41 = vld [vmem:[#allocation2 + $0x9c] sm:$0xff]  }
 0x158   : > { %v1330_v45 = vsel %vm10809_vm11, %v1325_v15, %v1329_v23  ;;  %v1697_v49 = vrot.slane %v1543_v13, 5  ;;  %3870 = vrot.lane.b32.xlu1 %v9415_v53, %s10574_s29  ;;  %v595_v5 = vrot.slane %v593_v8, 7  ;;  %v603_v29 = vrot.slane %v601_v33, 7  ;;  %v792_v50 = vld [vmem:[#allocation2 + $0xb0] sm:$0x1] }
 0x159   : > { %v1335_v27 = vrot.slane %v1334_v31, 4  ;;  %v1691_v48 = vsel %vm10789_vm6, %v1689_v43, %v1690_v19  ;;  %1461 = vrot.lane.b32.xlu0 %v9256_v39, %s10570_s25  ;;  %v1695_v61 = vsel %vm10789_vm6, %v9273_v20, %v1694_v30  ;;  %v1696_v12 = vrot.slane %v1694_v30, 4  ;;  %v2584_v52 = vld [vmem:[#allocation2 + $0x9c] sm:$0xe]  ;;  %v2585_v54 = vld [vmem:[#allocation2 + $0xa0] sm:$0xf] }
 0x15a   : > { %v9288_v14 = vcombine.low %v1688_v32, %v1691_v48  ;;  %v604_v42 = vshll.u32 %v11486_v55, 16  ;;  %v2995_v53 = vpop.permute.xlu0 %2994  ;;  %v598_v33 = vor.u32 %v596_v28, %v595_v5  ;;  %v599_v35 = vrot.slane %v595_v5, 4  ;;  %v2586_v56 = vld [vmem:[#allocation2 + $0xa4] sm:$0x1]  ;;  %v364_v59 = vld [vmem:[%s10787_s23 + $0x70] sm:$0xf] }
 0x15b   : > { %v1340_v8 = vsel %vm10809_vm11, %v1335_v27, %v1339_v17  ;;  %v608_v37 = vrot.slane %v603_v29, 4  ;;  %3037 = vst.msk [vmem:[#allocation3 + $0x30] sm:$0xff] %vm13879_vm5, %v2995_v53  ;;  %v1698_v55 = vsel %vm10789_vm6, %v1696_v12, %v1697_v49  ;;  %v2340_v10 = vshrl.u32 %v2039_v26, 16  ;;  %v11602_v44 = vld [vmem:[%s10787_s23 + $0x74] sm:$0xf] }
 0x15c   : > { %v9257_v46 = vcombine.low %v1330_v45, %v1340_v8  ;;  %v606_v58 = vor.u32 %v604_v42, %v603_v29  ;;  %v9289_v24 = vcombine.low %v1695_v61, %v1698_v55  ;;  %v789_v9 = vsel %vm10803_vm10, %v598_v33, %v788_v47  ;;  %v11615_v7 = vld [vmem:[%s10787_s23 + $0x78] sm:$0xf]  ;;  %v795_v30 = vld [vmem:[#allocation2 + $0xb4] sm:$0xf] }
 0x15d   : > { %v2343_v28 = vshll.u32 %v2039_v26, 16  ;;  %v2349_v38 = vshll.u32 %v2040_v22, 16  ;;  %1785 = vrot.lane.b32.xlu0 %v9288_v14, %s10569_s24  ;;  %790 = vst [vmem:[#allocation2 + $0xa8] sm:$0xf] %v789_v9  ;;  %v2342_v60 = vrot.slane %v2340_v10, 4  ;;  %v2353_v62 = vshrl.u32 %v2040_v22, 16 }
 0x15e   : > { %1463 = vrot.lane.b32.xlu1 %v9257_v46, %s10570_s25  ;;  %v607_v40 = vsel %vm10821_vm12, %v599_v35, %v606_v58  ;;  %v2359_v57 = vshll.u32 %v2041_v16, 16  ;;  %v793_v4 = vsel %vm10830_vm13, %v608_v37, %v792_v50  ;;  %v9336_v6 = vrot.slane %v2584_v52, 9 }
 0x15f   : > { %v2498_v63 = vpop.permute.xlu1 %2497  ;;  %791 = vst.msk [vmem:[#allocation2 + $0xac] sm:$0xf] %vm226_vm0, %v607_v40  ;;  %v2345_v2 = vrot.slane %v2343_v28, 5  ;;  %v2351_v0 = vrot.slane %v2349_v38, 5  ;;  %v2355_v23 = vrot.slane %v2353_v62, 4  ;;  %v2730_v25 = vrot.slane %v2585_v54, 5 }
 0x160   : > { %2539 = vst.msk [vmem:[#allocation3 + $0x38] sm:$0xff] %vm2531_vm3, %v2498_v63  ;;  %794 = vst [vmem:[#allocation2 + $0xb0] sm:$0x1] %v793_v4  ;;  %v2733_v11 = vrot.slane %v2586_v56, 5  ;;  %v610_v15 = vshrl.u32 %v364_v59, 16  ;;  %v613_v17 = vshll.u32 %v364_v59, 16 }
 0x161   : > { %v2346_v13 = vor.u32 %v2345_v2, %v2342_v60  ;;  %v618_v19 = vshrl.u32 %v11602_v44, 16  ;;  %1962 = vrot.lane.b32.xlu0 %v10417_v41, %s10571_s26  ;;  %v2356_v20 = vor.u32 %v2355_v23, %v2351_v0  ;;  %v2361_v21 = vrot.slane %v2359_v57, 5 }
 0x162   : > { %1787 = vrot.lane.b32.xlu1 %v9289_v24, %s10569_s24  ;;  %v11622_v18 = vsel %vm10789_vm6, %v9336_v6, %v2730_v25  ;;  %v2732_v31 = vrot.slane %v2730_v25, 4  ;;  %v612_v26 = vrot.slane %v610_v15, 7  ;;  %v621_v45 = vshll.u32 %v11602_v44, 16 }
 0x163   : > { %v2819_v32 = vpop.permute.xlu1 %2818  ;;  %v2347_v43 = vrot.slane %v2346_v13, 4  ;;  %v11624_v39 = vrot.slane %v618_v19, 7  ;;  %v3540_v49 = vpop.permute.xlu0 %3539  ;;  %v2357_v47 = vrot.slane %v2356_v20, 4  ;;  %v627_v27 = vshrl.u32 %v11615_v7, 16  ;;  %v799_v20 = vld [vmem:[#allocation2 + $0xbc] sm:$0x1] }
 0x164   : > { %2860 = vst.msk [vmem:[#allocation3 + $0x38] sm:$0xff] %vm13880_vm4, %v2819_v32  ;;  %v2734_v22 = vsel %vm10789_vm6, %v2732_v31, %v2733_v11  ;;  %v630_v48 = vshll.u32 %v11615_v7, 16  ;;  %v2042_v29 = vld [vmem:[#allocation2 + $0xa8] sm:$0xf]  ;;  %v615_v14 = vor.u32 %v613_v17, %v612_v26  ;;  %v616_v62 = vrot.slane %v612_v26, 4 }
 0x165   : > { %3582 = vst.msk [vmem:[#allocation3 + $0x30] sm:$0xff] %vm3575_vm8, %v3540_v49  ;;  %v2352_v5 = vsel %vm10809_vm11, %v2347_v43, %v2351_v0  ;;  %v2587_v16 = vld [vmem:[#allocation2 + $0xa8] sm:$0xe]  ;;  %v2362_v12 = vsel %vm10809_vm11, %v2357_v47, %v2361_v21  ;;  %v2364_v50 = vshrl.u32 %v2042_v29, 16  ;;  %v9352_v52 = vcombine.low %v11622_v18, %v2734_v22 }
 0x166   : > { %v10418_v61 = vld [vmem:[#allocation2 + $0xa8] sm:$0xff]   ;;  %v9320_v8 = vcombine.low %v2352_v5, %v2362_v12  ;;  %v2367_v35 = vshll.u32 %v2042_v29, 16  ;;  %v623_v59 = vor.u32 %v621_v45, %v11624_v39  ;;  %v796_v44 = vsel %vm10803_vm10, %v615_v14, %v795_v30 }
 0x167   : > { %v2043_v42 = vld [vmem:[#allocation2 + $0xac] sm:$0xf]  ;;  %v2997_v53 = vpop.permute.xlu1 %2996  ;;  %v2044_v33 = vld [vmem:[#allocation2 + $0xb0] sm:$0x1]  ;;  %v3861_v56 = vpop.permute.xlu0 %3860  ;;  %1964 = vrot.lane.b32.xlu1 %v10418_v61, %s10571_s26  ;;  %v2366_v46 = vrot.slane %v2364_v50, 4  ;;  %v9337_v38 = vrot.slane %v2587_v16, 9 }
 0x168   : > { %v2373_v37 = vshll.u32 %v2043_v42, 16  ;;  %v2377_v54 = vshrl.u32 %v2043_v42, 16  ;;  %3038 = vst.msk [vmem:[#allocation3 + $0x38] sm:$0xff] %vm13879_vm5, %v2997_v53  ;;  %v2383_v55 = vshll.u32 %v2044_v33, 16  ;;  %v2588_v58 = vld [vmem:[#allocation2 + $0xac] sm:$0xf]  ;;  %2507 = vrot.lane.b32.xlu0 %v9320_v8, %s10575_s30  ;;  %v624_v15 = vsel %vm10821_vm12, %v616_v62, %v623_v59 }
 0x169   : > { %v2589_v10 = vld [vmem:[#allocation2 + $0xb0] sm:$0x1]  ;;  %3903 = vst.msk [vmem:[#allocation3 + $0x30] sm:$0xff] %vm3896_vm7, %v3861_v56  ;;  %v2369_v24 = vrot.slane %v2367_v35, 5  ;;  %797 = vst [vmem:[#allocation2 + $0xb4] sm:$0xf] %v796_v44 }
 0x16a   : > { %v2375_v9 = vrot.slane %v2373_v37, 5  ;;  %v2379_v28 = vrot.slane %v2377_v54, 4  ;;  %v2385_v41 = vrot.slane %v2383_v55, 5  ;;  %v2737_v40 = vrot.slane %v2588_v58, 5  ;;  %v3083_v4 = vld [vmem:[#allocation2 + $0xa8] sm:$0xf] }
 0x16b   : > { %v2740_v60 = vrot.slane %v2589_v10, 5  ;;  %v3542_v57 = vpop.permute.xlu1 %3541  ;;  %v2370_v63 = vor.u32 %v2369_v24, %v2366_v46  ;;  %v625_v0 = vrot.slane %v11624_v39, 4  ;;  %v3084_v6 = vld [vmem:[#allocation2 + $0xac] sm:$0xf]  ;;  %v11646_v23 = vrot.slane %v627_v27, 7 }
 0x16c   : > { %v2380_v2 = vor.u32 %v2379_v28, %v2375_v9  ;;  %3583 = vst.msk [vmem:[#allocation3 + $0x38] sm:$0xff] %vm3575_vm8, %v3542_v57  ;;  %v11651_v25 = vsel %vm10789_vm6, %v9337_v38, %v2737_v40  ;;  %v2739_v11 = vrot.slane %v2737_v40, 4  ;;  %v10421_v13 = vld [vmem:[#allocation2 + $0xa8] sm:$0xff]   ;;  %v3085_v17 = vld [vmem:[#allocation2 + $0xb0] sm:$0x1]  ;;  %v3384_v19 = vshrl.u32 %v3083_v4, 16  ;;  %2828 = vrot.lane.b32.xlu0 %v9352_v52, %s10573_s28 }
 0x16d   : > { %v2371_v21 = vrot.slane %v2370_v63, 4  ;;  %798 = vst.msk [vmem:[#allocation2 + $0xb8] sm:$0xf] %vm226_vm0, %v624_v15  ;;  %v3387_v31 = vshll.u32 %v3083_v4, 16  ;;  %v3393_v32 = vshll.u32 %v3084_v6, 16  ;;  %v3397_v45 = vshrl.u32 %v3084_v6, 16 }
 0x16e   : > { %v2381_v18 = vrot.slane %v2380_v2, 4  ;;  %v3628_v43 = vld [vmem:[#allocation2 + $0xa8] sm:$0xe]  ;;  %v2741_v26 = vsel %vm10789_vm6, %v2739_v11, %v2740_v60  ;;  %v3386_v39 = vrot.slane %v3384_v19, 4  ;;  %v3403_v30 = vshll.u32 %v3085_v17, 16 }
 0x16f   : > { %v3629_v49 = vld [vmem:[#allocation2 + $0xac] sm:$0xf]  ;;  %v3863_v47 = vpop.permute.xlu1 %3862  ;;  %v2376_v22 = vsel %vm10809_vm11, %v2371_v21, %v2375_v9  ;;  %v9353_v5 = vcombine.low %v11651_v25, %v2741_v26  ;;  %v3389_v29 = vrot.slane %v3387_v31, 5  ;;  %v3630_v16 = vld [vmem:[#allocation2 + $0xb0] sm:$0x1]  ;;  %v3395_v12 = vrot.slane %v3393_v32, 5 }
 0x170   : > { %v2386_v27 = vsel %vm10809_vm11, %v2381_v18, %v2385_v41  ;;  %3904 = vst.msk [vmem:[#allocation3 + $0x38] sm:$0xff] %vm3896_vm7, %v3863_v47  ;;  %v3919_v14 = vld [vmem:[#allocation3 + $0x30] sm:$0xff]  ;;  %v3399_v42 = vrot.slane %v3397_v45, 4  ;;  %v3405_v50 = vrot.slane %v3403_v30, 5  ;;  %3006 = vrot.lane.b32.xlu0 %v10421_v13, %s10572_s27  ;;  %v800_v53 = vsel %vm10830_vm13, %v625_v0, %v799_v20  ;;  %v3086_v8 = vld [vmem:[#allocation2 + $0xb4] sm:$0xf]  ;;  %v1454_v54 = vpop.permute.xlu0 %1453 }
 0x171   : > { %v9321_v61 = vcombine.low %v2376_v22, %v2386_v27  ;;  %10282 = vmatprep.mubr.msk.bf16.mxu0 %vm3956_vm9, %v3919_v14  ;;  %v3390_v52 = vor.u32 %v3389_v29, %v3386_v39  ;;  %v9400_v33 = vrot.slane %v3628_v43, 9  ;;  %v3774_v35 = vrot.slane %v3629_v49, 5  ;;  %v3631_v37 = vld [vmem:[#allocation2 + $0xb4] sm:$0xe]  ;;  %801 = vst [vmem:[#allocation2 + $0xbc] sm:$0x1] %v800_v53 }
 0x172   : > { %v3400_v56 = vor.u32 %v3399_v42, %v3395_v12  ;;  %v3408_v46 = vshrl.u32 %v3086_v8, 16  ;;  %v3411_v55 = vshll.u32 %v3086_v8, 16  ;;  %v3777_v58 = vrot.slane %v3630_v16, 5  ;;  %1494 = vst.msk [vmem:[#allocation3 + $0x40] sm:$0xff] %vm1485_vm15, %v1454_v54  ;;  %v996_v44 = vld [vmem:[#allocation2 + $0xa8] sm:$0xf] }
 0x173   : > { %2509 = vrot.lane.b32.xlu1 %v9321_v61, %s10575_s30  ;;  %v3391_v10 = vrot.slane %v3390_v52, 4  ;;  %v3776_v59 = vrot.slane %v3774_v35, 4  ;;  %v11672_v24 = vld [vmem:[%s10787_s23 + $0x7c] sm:$0xf]  ;;  %v11676_v38 = vsel %vm10789_vm6, %v9400_v33, %v3774_v35  ;;  %v9401_v41 = vrot.slane %v3631_v37, 9  ;;  %v1456_v60 = vpop.permute.xlu1 %1455  ;;  %v10433_v30 = vld [vmem:[#allocation2 + $0xa8] sm:$0xff]  }
 0x174   : > { %v3401_v9 = vrot.slane %v3400_v56, 4  ;;  %v3087_v28 = vld [vmem:[#allocation2 + $0xb8] sm:$0xf]  ;;  %v632_v40 = vor.u32 %v630_v48, %v11646_v23  ;;  %v3410_v57 = vrot.slane %v3408_v46, 4  ;;  %v3413_v63 = vrot.slane %v3411_v55, 5  ;;  %1495 = vst.msk [vmem:[#allocation3 + $0x48] sm:$0xff] %vm1485_vm15, %v1456_v60  ;;  %v1778_v4 = vpop.permute.xlu0 %1777 }
 0x175   : > { %v3396_v62 = vsel %vm10809_vm11, %v3391_v10, %v3395_v12  ;;  %v3417_v2 = vshll.u32 %v3087_v28, 16  ;;  %v3632_v0 = vld [vmem:[#allocation2 + $0xb8] sm:$0xf]  ;;  %v3421_v11 = vshrl.u32 %v3087_v28, 16  ;;  %v3778_v7 = vsel %vm10789_vm6, %v3776_v59, %v3777_v58  ;;  %v802_v13 = vld [vmem:[#allocation2 + $0xc0] sm:$0xf] }
 0x176   : > { %v10422_v6 = vld [vmem:[#allocation2 + $0xb4] sm:$0xff]   ;;  %v3406_v25 = vsel %vm10809_vm11, %v3401_v9, %v3405_v50  ;;  %v3781_v48 = vrot.slane %v3632_v0, 5  ;;  %1818 = vst.msk [vmem:[#allocation3 + $0x40] sm:$0xff] %vm1809_vm1, %v1778_v4  ;;  %v3414_v17 = vor.u32 %v3413_v63, %v3410_v57  ;;  %v997_v20 = vld [vmem:[#allocation2 + $0xac] sm:$0xf]  ;;  %v635_v21 = vshrl.u32 %v11672_v24, 16 }
 0x177   : > { %2830 = vrot.lane.b32.xlu1 %v9353_v5, %s10573_s28  ;;  %v9384_v15 = vcombine.low %v3396_v62, %v3406_v25  ;;  %v3419_v19 = vrot.slane %v3417_v2, 5  ;;  %v3920_v18 = vld [vmem:[#allocation3 + $0x38] sm:$0xff]  ;;  %v3423_v31 = vrot.slane %v3421_v11, 4  ;;  %v9416_v32 = vcombine.low %v11676_v38, %v3778_v7  ;;  %v1780_v45 = vpop.permute.xlu1 %1779  ;;  %952 = vst.msk [vmem:[#allocation3 + $0x70] sm:$0xff] %vm937_vm14, %v10433_v30  ;;  %v1000_v35 = vld [vmem:[#allocation2 + $0xb8] sm:$0xf] }
 0x178   : > { %v3783_v43 = vrot.slane %v3781_v48, 4  ;;  %v998_v26 = vld [vmem:[#allocation2 + $0xb0] sm:$0x1]  ;;  %v1342_v39 = vshrl.u32 %v996_v44, 16  ;;  %10283 = vmatmul.mubr.msk.bf16.gmra.mrb[12].mxu0 %vm3956_vm9, %v3920_v18  ;;  %v3088_v49 = vld [vmem:[#allocation2 + $0xbc] sm:$0x1]  ;;  %v11696_v27 = vsel %vm10789_vm6, %v9401_v41, %v3781_v48  ;;  %v803_v29 = vsel %vm10803_vm10, %v632_v40, %v802_v13  ;;  %v1955_v16 = vpop.permute.xlu0 %1954 }
 0x179   : > { %3551 = vrot.lane.b32.xlu0 %v9384_v15, %s10576_s6  ;;  %v3415_v47 = vrot.slane %v3414_v17, 4  ;;  %v3633_v22 = vld [vmem:[#allocation2 + $0xbc] sm:$0x1]  ;;  %v1345_v5 = vshll.u32 %v996_v44, 16  ;;  %1819 = vst.msk [vmem:[#allocation3 + $0x48] sm:$0xff] %vm1809_vm1, %v1780_v45  ;;  %v3424_v14 = vor.u32 %v3423_v31, %v3419_v19  ;;  %v3427_v61 = vshll.u32 %v3088_v49, 16 }
 0x17a   : > { %v3784_v12 = vrot.slane %v3633_v22, 5  ;;  %v1344_v42 = vrot.slane %v1342_v39, 4  ;;  %v999_v50 = vld [vmem:[#allocation2 + $0xb4] sm:$0xf]  ;;  %804 = vst [vmem:[#allocation2 + $0xc0] sm:$0xf] %v803_v29 }
 0x17b   : > { %3008 = vrot.lane.b32.xlu1 %v10422_v6, %s10572_s27  ;;  %1995 = vst.msk [vmem:[#allocation3 + $0x40] sm:$0xff] %vm1986_vm2, %v1955_v16  ;;  %v10434_v52 = vld [vmem:[#allocation2 + $0xb4] sm:$0xff]   ;;  %v3420_v34 = vsel %vm10809_vm11, %v3415_v47, %v3419_v19  ;;  %v1347_v53 = vrot.slane %v1345_v5, 5  ;;  %v1351_v8 = vshll.u32 %v997_v20, 16  ;;  %v1355_v33 = vshrl.u32 %v997_v20, 16 }
 0x17c   : > { %v3425_v37 = vrot.slane %v3424_v14, 4  ;;  %v3429_v54 = vrot.slane %v3427_v61, 5  ;;  %v3785_v56 = vsel %vm10789_vm6, %v3783_v43, %v3784_v12  ;;  %v1361_v46 = vshll.u32 %v998_v26, 16  ;;  %v1001_v55 = vld [vmem:[#allocation2 + $0xbc] sm:$0x1]  ;;  %953 = vst.msk [vmem:[#allocation3 + $0x78] sm:$0xff] %vm937_vm14, %v10434_v52 }
 0x17d   : > { %v1544_v58 = vld [vmem:[#allocation2 + $0xa8] sm:$0xe]  ;;  %3872 = vrot.lane.b32.xlu0 %v9416_v32, %s10574_s29  ;;  %v9417_v10 = vcombine.low %v11696_v27, %v3785_v56  ;;  %v1348_v59 = vor.u32 %v1347_v53, %v1344_v42  ;;  %v1353_v44 = vrot.slane %v1351_v8, 5  ;;  %v1357_v9 = vrot.slane %v1355_v33, 4  ;;  %v1545_v60 = vld [vmem:[#allocation2 + $0xac] sm:$0xf] }
 0x17e   : > { %v3430_v28 = vsel %vm10809_vm11, %v3425_v37, %v3429_v54  ;;  %v1363_v38 = vrot.slane %v1361_v46, 5  ;;  %v1366_v41 = vshrl.u32 %v999_v50, 16  ;;  %v1369_v40 = vshll.u32 %v999_v50, 16  ;;  %v1546_v0 = vld [vmem:[#allocation2 + $0xb0] sm:$0x1] }
 0x17f   : > { %v9385_v62 = vcombine.low %v3420_v34, %v3430_v28  ;;  %v1349_v57 = vrot.slane %v1348_v59, 4  ;;  %v1358_v63 = vor.u32 %v1357_v9, %v1353_v44  ;;  %v1375_v2 = vshll.u32 %v1000_v35, 16  ;;  %v1547_v4 = vld [vmem:[#allocation2 + $0xb4] sm:$0xe]  ;;  %v2500_v6 = vpop.permute.xlu0 %2499  ;;  %v1548_v13 = vld [vmem:[#allocation2 + $0xb8] sm:$0xf] }
 0x180   : > { %v1368_v25 = vrot.slane %v1366_v41, 4  ;;  %v1371_v11 = vrot.slane %v1369_v40, 5  ;;  %v1379_v7 = vshrl.u32 %v1000_v35, 16  ;;  %v1385_v48 = vshll.u32 %v1001_v55, 16  ;;  %2540 = vst.msk [vmem:[#allocation3 + $0x40] sm:$0xff] %vm2531_vm3, %v2500_v6  ;;  %v1957_v18 = vpop.permute.xlu1 %1956 }
 0x181   : > { %3553 = vrot.lane.b32.xlu1 %v9385_v62, %s10576_s6  ;;  %v1354_v15 = vsel %vm10809_vm11, %v1349_v57, %v1353_v44  ;;  %v1359_v17 = vrot.slane %v1358_v63, 4  ;;  %v1377_v19 = vrot.slane %v1375_v2, 5  ;;  %v9274_v20 = vrot.slane %v1544_v58, 9  ;;  %v1549_v39 = vld [vmem:[#allocation2 + $0xbc] sm:$0x1]  ;;  %1996 = vst.msk [vmem:[#allocation3 + $0x48] sm:$0xff] %vm1986_vm2, %v1957_v18 }
 0x182   : > { %v1372_v31 = vor.u32 %v1371_v11, %v1368_v25  ;;  %v1381_v32 = vrot.slane %v1379_v7, 4  ;;  %v1387_v43 = vrot.slane %v1385_v48, 5  ;;  %v1701_v26 = vrot.slane %v1545_v60, 5  ;;  %v2045_v14 = vld [vmem:[#allocation2 + $0xb4] sm:$0xf] }
 0x183   : > { %v1364_v45 = vsel %vm10809_vm11, %v1359_v17, %v1363_v38  ;;  %v1704_v30 = vrot.slane %v1546_v0, 5  ;;  %v9275_v49 = vrot.slane %v1547_v4, 9  ;;  %v1708_v47 = vrot.slane %v1548_v13, 5  ;;  %v2821_v22 = vpop.permute.xlu0 %2820  ;;  %v2046_v52 = vld [vmem:[#allocation2 + $0xb8] sm:$0xf] }
 0x184   : > { %v9258_v27 = vcombine.low %v1354_v15, %v1364_v45  ;;  %v1373_v5 = vrot.slane %v1372_v31, 4  ;;  %v1382_v29 = vor.u32 %v1381_v32, %v1377_v19  ;;  %v1702_v16 = vsel %vm10789_vm6, %v9274_v20, %v1701_v26  ;;  %2861 = vst.msk [vmem:[#allocation3 + $0x40] sm:$0xff] %vm13880_vm4, %v2821_v22  ;;  %v806_v34 = vld [vmem:[#allocation2 + $0xc8] sm:$0x1]  ;;  %v2047_v37 = vld [vmem:[#allocation2 + $0xbc] sm:$0x1] }
 0x185   : > { %3874 = vrot.lane.b32.xlu1 %v9417_v10, %s10574_s29  ;;  %v1703_v61 = vrot.slane %v1701_v26, 4  ;;  %v1709_v12 = vsel %vm10789_vm6, %v9275_v49, %v1708_v47  ;;  %v1710_v42 = vrot.slane %v1708_v47, 4  ;;  %v1711_v50 = vrot.slane %v1549_v39, 5  ;;  %v2048_v58 = vld [vmem:[#allocation2 + $0xc0] sm:$0xf] }
 0x186   : > { %1465 = vrot.lane.b32.xlu0 %v9258_v27, %s10570_s25  ;;  %v1378_v53 = vsel %vm10809_vm11, %v1373_v5, %v1377_v19  ;;  %v1383_v8 = vrot.slane %v1382_v29, 4  ;;  %v633_v33 = vrot.slane %v11646_v23, 4  ;;  %v637_v35 = vrot.slane %v635_v21, 7  ;;  %v2590_v10 = vld [vmem:[#allocation2 + $0xb4] sm:$0xe] }
 0x187   : > { %v1705_v54 = vsel %vm10789_vm6, %v1703_v61, %v1704_v30  ;;  %v1712_v56 = vsel %vm10789_vm6, %v1710_v42, %v1711_v50  ;;  %v638_v46 = vshll.u32 %v11672_v24, 16  ;;  %v2388_v55 = vshrl.u32 %v2045_v14, 16  ;;  %v2999_v59 = vpop.permute.xlu0 %2998  ;;  %v2591_v21 = vld [vmem:[#allocation2 + $0xb8] sm:$0xf]  ;;  %v2592_v62 = vld [vmem:[#allocation2 + $0xbc] sm:$0x1] }
 0x188   : > { %v1388_v44 = vsel %vm10809_vm11, %v1383_v8, %v1387_v43  ;;  %v9290_v23 = vcombine.low %v1702_v16, %v1705_v54  ;;  %v9291_v9 = vcombine.low %v1709_v12, %v1712_v56  ;;  %v642_v28 = vrot.slane %v637_v35, 4  ;;  %3039 = vst.msk [vmem:[#allocation3 + $0x40] sm:$0xff] %vm13879_vm5, %v2999_v59  ;;  %v11740_v57 = vld [vmem:[#allocation2 + $0xc0] sm:$0xf]  ;;  %v10423_v24 = vld [vmem:[#allocation2 + $0xb4] sm:$0xff]  }
 0x189   : > { %v9259_v38 = vcombine.low %v1378_v53, %v1388_v44  ;;  %v640_v41 = vor.u32 %v638_v46, %v637_v35  ;;  %v2390_v40 = vrot.slane %v2388_v55, 4  ;;  %v2391_v60 = vshll.u32 %v2045_v14, 16  ;;  %v11748_v48 = vld [vmem:[#allocation2 + $0xc0] sm:$0xe]  ;;  %v11751_v20 = vld [vmem:[#allocation2 + $0xcc] sm:$0xf] }
 0x18a   : > { %1789 = vrot.lane.b32.xlu0 %v9290_v23, %s10569_s24  ;;  %v2397_v63 = vshll.u32 %v2046_v52, 16  ;;  %v2401_v2 = vshrl.u32 %v2046_v52, 16  ;;  %v2407_v0 = vshll.u32 %v2047_v37, 16  ;;  %v807_v4 = vsel %vm10830_vm13, %v642_v28, %v806_v34 }
 0x18b   : > { %1467 = vrot.lane.b32.xlu1 %v9259_v38, %s10570_s25  ;;  %v641_v6 = vsel %vm10821_vm12, %v633_v33, %v640_v41  ;;  %v2393_v25 = vrot.slane %v2391_v60, 5  ;;  %808 = vst [vmem:[#allocation2 + $0xc8] sm:$0x1] %v807_v4  ;;  %v2412_v11 = vshrl.u32 %v2048_v58, 16  ;;  %v2415_v7 = vshll.u32 %v2048_v58, 16 }
 0x18c   : > { %v2502_v13 = vpop.permute.xlu1 %2501  ;;  %805 = vst.msk [vmem:[#allocation2 + $0xc4] sm:$0xf] %vm226_vm0, %v641_v6  ;;  %v2399_v15 = vrot.slane %v2397_v63, 5  ;;  %v2403_v17 = vrot.slane %v2401_v2, 4  ;;  %v9338_v19 = vrot.slane %v2590_v10, 9  ;;  %v2744_v32 = vrot.slane %v2591_v21, 5 }
 0x18d   : > { %2541 = vst.msk [vmem:[#allocation3 + $0x48] sm:$0xff] %vm2531_vm3, %v2502_v13  ;;  %v2394_v3 = vor.u32 %v2393_v25, %v2390_v40  ;;  %v2414_v18 = vrot.slane %v2412_v11, 4  ;;  %v2417_v31 = vrot.slane %v2415_v7, 5  ;;  %v2409_v26 = vrot.slane %v2407_v0, 5  ;;  %v3093_v60 = vld [vmem:[#allocation2 + $0xd0] sm:$0xf] }
 0x18e   : > { %1966 = vrot.lane.b32.xlu0 %v10423_v24, %s10571_s26  ;;  %v2404_v43 = vor.u32 %v2403_v17, %v2399_v15  ;;  %v2747_v39 = vrot.slane %v2592_v62, 5  ;;  %v3432_v45 = vshrl.u32 %v11740_v57, 16  ;;  %v2746_v47 = vrot.slane %v2744_v32, 4  ;;  %v3094_v62 = vld [vmem:[#allocation2 + $0xd4] sm:$0x1]  ;;  %v10435_v25 = vld [vmem:[%s13874_s3 + $0xc0] sm:$0xff]  }
 0x18f   : > { %1791 = vrot.lane.b32.xlu1 %v9291_v9, %s10569_s24  ;;  %v2395_v30 = vrot.slane %v2394_v3, 4  ;;  %v2418_v49 = vor.u32 %v2417_v31, %v2414_v18  ;;  %v9339_v5 = vrot.slane %v11748_v48, 9  ;;  %v2745_v14 = vsel %vm10789_vm6, %v9338_v19, %v2744_v32  ;;  %v11776_v4 = vld [vmem:[#allocation2 + $0xc0] sm:$0xe]  ;;  %9904 = vmatprep.subr.bf16.mxu0 %v10435_v25 }
 0x190   : > { %v2823_v22 = vpop.permute.xlu1 %2822  ;;  %v2405_v27 = vrot.slane %v2404_v43, 4  ;;  %v3434_v29 = vrot.slane %v3432_v45, 4  ;;  %v3435_v61 = vshll.u32 %v11740_v57, 16  ;;  %v3456_v12 = vshrl.u32 %v11751_v20, 16  ;;  %v10436_v32 = vld [vmem:[%s13874_s3 + $0x40] sm:$0xff]  }
 0x191   : > { %2862 = vst.msk [vmem:[#allocation3 + $0x48] sm:$0xff] %vm13880_vm4, %v2823_v22  ;;  %v2400_v16 = vsel %vm10809_vm11, %v2395_v30, %v2399_v15  ;;  %v11767_v52 = vrot.slane %v2418_v49, 4  ;;  %v2748_v34 = vsel %vm10789_vm6, %v2746_v47, %v2747_v39  ;;  %v3459_v8 = vshll.u32 %v11751_v20, 16  ;;  %v3544_v46 = vpop.permute.xlu0 %3543  ;;  %v10437_v15 = vld [vmem:[%s13874_s3 + $0x80] sm:$0xff]   ;;  %9792 = vmatprep.subr.bf16.mxu1 %v10436_v32 }
 0x192   : > { %v2410_v42 = vsel %vm10809_vm11, %v2405_v27, %v2409_v26  ;;  %v2050_v50 = vld [vmem:[#allocation2 + $0xc8] sm:$0x1]  ;;  %3584 = vst.msk [vmem:[#allocation3 + $0x40] sm:$0xff] %vm3575_vm8, %v3544_v46  ;;  %v9354_v44 = vcombine.low %v2745_v14, %v2748_v34  ;;  %v3437_v41 = vrot.slane %v3435_v61, 5  ;;  %v3458_v3 = vrot.slane %v3456_v12, 4  ;;  %9905 = vmatpush3.bf16.msra.mxu0 %v10437_v15  ;;  %v10438_v30 = vld [vmem:[%s13874_s3] sm:$0xff]  }
 0x193   : > { %v2595_v53 = vld [vmem:[#allocation2 + $0xc8] sm:$0x1]  ;;  %v10424_v33 = vld [vmem:[#allocation2 + $0xc0] sm:$0xff]   ;;  %v9322_v35 = vcombine.low %v2400_v16, %v2410_v42  ;;  %v2431_v54 = vshll.u32 %v2050_v50, 16  ;;  %v3461_v45 = vrot.slane %v3459_v8, 5  ;;  %v3465_v47 = vshll.u32 %v3093_v60, 16  ;;  %9793 = vmatpush3.bf16.msra.mxu1 %v10438_v30 }
 0x194   : > { %v2049_v37 = vld [vmem:[#allocation2 + $0xc4] sm:$0xf]  ;;  %v3001_v56 = vpop.permute.xlu1 %3000  ;;  %v3091_v59 = vld [vmem:[#allocation2 + $0xc8] sm:$0x1]  ;;  %1968 = vrot.lane.b32.xlu1 %v10424_v33, %s10571_s26  ;;  %v2754_v9 = vrot.slane %v2595_v53, 5  ;;  %v3438_v48 = vor.u32 %v3437_v41, %v3434_v29  ;;  %v3469_v22 = vshrl.u32 %v3093_v60, 16 }
 0x195   : > { %v2421_v55 = vshll.u32 %v2049_v37, 16  ;;  %v2425_v58 = vshrl.u32 %v2049_v37, 16  ;;  %v2594_v10 = vld [vmem:[#allocation2 + $0xc4] sm:$0xf]  ;;  %3040 = vst.msk [vmem:[#allocation3 + $0x48] sm:$0xff] %vm13879_vm5, %v3001_v56  ;;  %2511 = vrot.lane.b32.xlu0 %v9322_v35, %s10575_s30  ;;  %v2433_v57 = vrot.slane %v2431_v54, 5  ;;  %v3865_v6 = vpop.permute.xlu0 %3864  ;;  %v3462_v12 = vor.u32 %v3461_v45, %v3458_v3 }
 0x196   : > { %v2751_v23 = vrot.slane %v2594_v10, 5  ;;  %v3090_v28 = vld [vmem:[#allocation2 + $0xc4] sm:$0xf]  ;;  %v3451_v0 = vshll.u32 %v3091_v59, 16  ;;  %3905 = vst.msk [vmem:[#allocation3 + $0x40] sm:$0xff] %vm3896_vm7, %v3865_v6  ;;  %v3439_v39 = vrot.slane %v3438_v48, 4 }
 0x197   : > { %v2423_v21 = vrot.slane %v2421_v55, 5  ;;  %v2427_v38 = vrot.slane %v2425_v58, 4  ;;  %v3441_v40 = vshll.u32 %v3090_v28, 16  ;;  %v10427_v63 = vld [vmem:[#allocation2 + $0xc0] sm:$0xff]   ;;  %v3445_v2 = vshrl.u32 %v3090_v28, 16  ;;  %v10439_v16 = vld [vmem:[%s13874_s3 + $0xc8] sm:$0xff]  }
 0x198   : > { %v2753_v24 = vrot.slane %v2751_v23, 4  ;;  %v11783_v7 = vsel %vm10789_vm6, %v9339_v5, %v2751_v23  ;;  %v3453_v20 = vrot.slane %v3451_v0, 5  ;;  %v3635_v18 = vld [vmem:[#allocation2 + $0xc4] sm:$0xf]  ;;  %v3636_v31 = vld [vmem:[#allocation2 + $0xc8] sm:$0x1]  ;;  %9906 = vmatprep.subr.bf16.mxu0 %v10439_v16 }
 0x199   : > { %v2428_v11 = vor.u32 %v2427_v38, %v2423_v21  ;;  %v3443_v13 = vrot.slane %v3441_v40, 5  ;;  %v2424_v17 = vsel %vm10809_vm11, %v11767_v52, %v2423_v21  ;;  %2832 = vrot.lane.b32.xlu0 %v9354_v44, %s10573_s28  ;;  %v3447_v19 = vrot.slane %v3445_v2, 4  ;;  %v11801_v5 = vld [vmem:[#allocation2 + $0xd0] sm:$0xf]  ;;  %v10441_v50 = vld [vmem:[%s13874_s3 + $0x88] sm:$0xff]   ;;  %v10447_v0 = vld [vmem:[%s13874_s3 + $0xd8] sm:$0xff]  }
 0x19a   : > { %v2755_v26 = vsel %vm10789_vm6, %v2753_v24, %v2754_v9  ;;  %v3475_v27 = vshll.u32 %v3094_v62, 16  ;;  %v9402_v42 = vrot.slane %v11776_v4, 9  ;;  %v3467_v53 = vrot.slane %v3465_v47, 5  ;;  %v10440_v33 = vld [vmem:[%s13874_s3 + $0x48] sm:$0xff]   ;;  %9907 = vmatpush3.bf16.msra.mxu0 %v10441_v50  ;;  %v10443_v40 = vld [vmem:[%s13874_s3 + $0xd0] sm:$0xff]   ;;  %v10448_v48 = vld [vmem:[%s13874_s3 + $0x58] sm:$0xff]  }
 0x19b   : > { %v2429_v43 = vrot.slane %v2428_v11, 4  ;;  %v3448_v49 = vor.u32 %v3447_v19, %v3443_v13  ;;  %v3546_v29 = vpop.permute.xlu1 %3545  ;;  %v3444_v61 = vsel %vm10809_vm11, %v3439_v39, %v3443_v13  ;;  %v3471_v8 = vrot.slane %v3469_v22, 4  ;;  %9794 = vmatprep.subr.bf16.mxu1 %v10440_v33  ;;  %v10442_v23 = vld [vmem:[%s13874_s3 + $0x8] sm:$0xff]   ;;  %v3639_v62 = vld [vmem:[#allocation2 + $0xd4] sm:$0x1]  ;;  %9908 = vmatprep.subr.bf16.mxu0 %v10443_v40  ;;  %v10450_v3 = vld [vmem:[%s13874_s3 + $0x18] sm:$0xff]  }
 0x19c   : > { %3585 = vst.msk [vmem:[#allocation3 + $0x48] sm:$0xff] %vm3575_vm8, %v3546_v29  ;;  %v9355_v35 = vcombine.low %v11783_v7, %v2755_v26  ;;  %v3788_v37 = vrot.slane %v3635_v18, 5  ;;  %v3791_v54 = vrot.slane %v3636_v31, 5  ;;  %v3463_v46 = vrot.slane %v3462_v12, 4  ;;  %v3637_v38 = vld [vmem:[#allocation2 + $0xcc] sm:$0xe]  ;;  %9795 = vmatpush3.bf16.msra.mxu1 %v10442_v23 }
 0x19d   : > { %v2434_v14 = vsel %vm10809_vm11, %v2429_v43, %v2433_v57  ;;  %3010 = vrot.lane.b32.xlu0 %v10427_v63, %s10572_s27  ;;  %v3449_v34 = vrot.slane %v3448_v49, 4  ;;  %v3472_v55 = vor.u32 %v3471_v8, %v3467_v53  ;;  %v3477_v58 = vrot.slane %v3475_v27, 5  ;;  %v3921_v44 = vld [vmem:[#allocation3 + $0x40] sm:$0xff]  ;;  %v10444_v57 = vld [vmem:[%s13874_s3 + $0x50] sm:$0xff]   ;;  %v10451_v26 = vld [vmem:[%s13874_s3 + $0xe0] sm:$0xff]  }
 0x19e   : > { %v9323_v52 = vcombine.low %v2424_v17, %v2434_v14  ;;  %v1458_v59 = vpop.permute.xlu0 %1457  ;;  %v3789_v28 = vsel %vm10789_vm6, %v9402_v42, %v3788_v37  ;;  %v3790_v21 = vrot.slane %v3788_v37, 4  ;;  %v3795_v41 = vrot.slane %v11801_v5, 5  ;;  %10286 = vmatprep.mubr.msk.bf16.mxu0 %vm3956_vm9, %v3921_v44  ;;  %v10445_v24 = vld [vmem:[%s13874_s3 + $0x90] sm:$0xff]   ;;  %9796 = vmatprep.subr.bf16.mxu1 %v10444_v57  ;;  %v10453_v30 = vld [vmem:[%s13874_s3 + $0xa0] sm:$0xff]   ;;  %v10455_v22 = vld [vmem:[%s13874_s3 + $0xe8] sm:$0xff]  }
 0x19f   : > { %v3454_v56 = vsel %vm10809_vm11, %v3449_v34, %v3453_v20  ;;  %v3867_v10 = vpop.permute.xlu1 %3866  ;;  %1496 = vst.msk [vmem:[#allocation3 + $0x50] sm:$0xff] %vm1485_vm15, %v1458_v59  ;;  %v3473_v60 = vrot.slane %v3472_v55, 4  ;;  %v10446_v2 = vld [vmem:[%s13874_s3 + $0x10] sm:$0xff]   ;;  %v9403_v25 = vrot.slane %v3637_v38, 9  ;;  %v3468_v13 = vsel %vm10809_vm11, %v3463_v46, %v3467_v53  ;;  %9909 = vmatpush3.bf16.msra.mxu0 %v10445_v24  ;;  %v10449_v20 = vld [vmem:[%s13874_s3 + $0x98] sm:$0xff]   ;;  %v10452_v49 = vld [vmem:[%s13874_s3 + $0x60] sm:$0xff]  }
 0x1a0   : > { %2513 = vrot.lane.b32.xlu1 %v9323_v52, %s10575_s30  ;;  %v9386_v9 = vcombine.low %v3444_v61, %v3454_v56  ;;  %3906 = vst.msk [vmem:[#allocation3 + $0x48] sm:$0xff] %vm3896_vm7, %v3867_v10  ;;  %v3792_v63 = vsel %vm10789_vm6, %v3790_v21, %v3791_v54  ;;  %v10428_v4 = vld [vmem:[#allocation2 + $0xcc] sm:$0xff]   ;;  %v3797_v17 = vrot.slane %v3795_v41, 4  ;;  %v3798_v19 = vrot.slane %v3639_v62, 5  ;;  %9797 = vmatpush3.bf16.msra.mxu1 %v10446_v2  ;;  %v10454_v47 = vld [vmem:[%s13874_s3 + $0x20] sm:$0xff]   ;;  %v10463_v44 = vld [vmem:[%s13874_s3 + $0xf8] sm:$0xff]  }
 0x1a1   : > { %v9418_v6 = vcombine.low %v3789_v28, %v3792_v63  ;;  %v3478_v15 = vsel %vm10809_vm11, %v3473_v60, %v3477_v58  ;;  %9910 = vmatprep.subr.bf16.mxu0 %v10447_v0  ;;  %9798 = vmatprep.subr.bf16.mxu1 %v10448_v48  ;;  %v3796_v39 = vsel %vm10789_vm6, %v9403_v25, %v3795_v41  ;;  %v10456_v27 = vld [vmem:[%s13874_s3 + $0x68] sm:$0xff]   ;;  %v10459_v61 = vld [vmem:[%s13874_s3 + $0xf0] sm:$0xff]   ;;  %v4879_v42 = vld [vmem:[#allocation4] sm:$0xf]  ;;  %vm4619_vm0 = vcmask 1043456  }
 0x1a2   : > { %3555 = vrot.lane.b32.xlu0 %v9386_v9, %s10576_s6  ;;  %v1782_v7 = vpop.permute.xlu0 %1781  ;;  %v9387_v18 = vcombine.low %v3468_v13, %v3478_v15  ;;  %v3799_v45 = vsel %vm10789_vm6, %v3797_v17, %v3798_v19  ;;  %v10457_v16 = vld [vmem:[%s13874_s3 + $0xa8] sm:$0xff]   ;;  %v10460_v12 = vld [vmem:[%s13874_s3 + $0x70] sm:$0xff]   ;;  %v4880_v50 = vld [vmem:[#allocation4 + $0x4] sm:$0xf]  ;;  %v4928_v53 = vshrl.u32 %v4879_v42, 16  ;;  %v4931_v8 = vshll.u32 %v4879_v42, 16 }
 0x1a3   : > { %v1460_v11 = vpop.permute.xlu1 %1459  ;;  %1820 = vst.msk [vmem:[#allocation3 + $0x50] sm:$0xff] %vm1809_vm1, %v1782_v7  ;;  %9911 = vmatpush3.bf16.msra.mxu0 %v10449_v20  ;;  %v9419_v5 = vcombine.low %v3796_v39, %v3799_v45  ;;  %v10458_v14 = vld [vmem:[%s13874_s3 + $0x28] sm:$0xff]   ;;  %v4881_v34 = vld [vmem:[#allocation4 + $0x8] sm:$0x1]  ;;  %v4937_v33 = vshll.u32 %v4880_v50, 16  ;;  %v10461_v56 = vld [vmem:[%s13874_s3 + $0xb0] sm:$0xff]  }
 0x1a4   : > { %2834 = vrot.lane.b32.xlu1 %v9355_v35, %s10573_s28  ;;  %1497 = vst.msk [vmem:[#allocation3 + $0x58] sm:$0xff] %vm1485_vm15, %v1460_v11  ;;  %9799 = vmatpush3.bf16.msra.mxu1 %v10450_v3  ;;  %v4941_v35 = vshrl.u32 %v4880_v50, 16  ;;  %v4947_v37 = vshll.u32 %v4881_v34, 16  ;;  %v10462_v46 = vld [vmem:[%s13874_s3 + $0x30] sm:$0xff]   ;;  %v4930_v55 = vrot.slane %v4928_v53, 4  ;;  %v4933_v58 = vrot.slane %v4931_v8, 5 }
 0x1a5   : > { %9912 = vmatprep.subr.bf16.mxu0 %v10451_v26  ;;  %9800 = vmatprep.subr.bf16.mxu1 %v10452_v49  ;;  %v4939_v10 = vrot.slane %v4937_v33, 5  ;;  %v10464_v23 = vld [vmem:[%s13874_s3 + $0x78] sm:$0xff]   ;;  %v11955_v45 = vld [vmem:[%s13873_s2] ss:$0 sm:$0xff]  ;;  %vm4625_vm10 = vcmask 1040384  }
 0x1a6   : > { %3876 = vrot.lane.b32.xlu0 %v9418_v6, %s10574_s29  ;;  %v1959_v43 = vpop.permute.xlu0 %1958  ;;  %v4943_v59 = vrot.slane %v4941_v35, 4  ;;  %v4934_v9 = vor.u32 %v4933_v58, %v4930_v55  ;;  %v4949_v21 = vrot.slane %v4947_v37, 5  ;;  %v10465_v38 = vld [vmem:[%s13874_s3 + $0xb8] sm:$0xff]   ;;  %vm13897_vm13 = vsmask.f32 7938 }
 0x1a7   : > { %v1784_v31 = vpop.permute.xlu1 %1783  ;;  %v3922_v32 = vld [vmem:[#allocation3 + $0x48] sm:$0xff]  ;;  %1997 = vst.msk [vmem:[#allocation3 + $0x50] sm:$0xff] %vm1986_vm2, %v1959_v43  ;;  %9913 = vmatpush3.bf16.msra.mxu0 %v10453_v30  ;;  %v10466_v41 = vld [vmem:[%s13874_s3 + $0x38] sm:$0xff]   ;;  %vm11966_vm14 = vmand %vm4619_vm0, %vm13897_vm13 }
 0x1a8   : > { %3012 = vrot.lane.b32.xlu1 %v10428_v4, %s10572_s27  ;;  %1821 = vst.msk [vmem:[#allocation3 + $0x58] sm:$0xff] %vm1809_vm1, %v1784_v31  ;;  %10287 = vmatmul.mubr.msk.bf16.gmra.mrb[16].mxu0 %vm3956_vm9, %v3922_v32  ;;  %v4944_v28 = vor.u32 %v4943_v59, %v4939_v10  ;;  %v4935_v60 = vrot.slane %v4934_v9, 4  ;;  %v10468_v57 = vld [vmem:[#allocation4] sm:$0xff]   ;;  %v4630_v59 = vld [vmem:[#allocation4 + $0x18] sm:$0xf] }
 0x1a9   : > { %9801 = vmatpush3.bf16.msra.mxu1 %v10454_v47  ;;  %9914 = vmatprep.subr.bf16.mxu0 %v10455_v22 }
 0x1aa   : > { %9802 = vmatprep.subr.bf16.mxu1 %v10456_v27  ;;  %v4945_v62 = vrot.slane %v4944_v28, 4  ;;  %v4940_v24 = vsel %vm10809_vm11, %v4935_v60, %v4939_v10 }
 0x1ab   : > { %9915 = vmatpush3.bf16.msra.mxu0 %v10457_v16 }
 0x1ac   : > { %3557 = vrot.lane.b32.xlu1 %v9387_v18, %s10576_s6  ;;  %v2504_v29 = vpop.permute.xlu0 %2503  ;;  %9916 = vmatprep.subr.bf16.mxu0 %v10459_v61  ;;  %v4950_v63 = vsel %vm10809_vm11, %v4945_v62, %v4949_v21  ;;  %v4621_v21 = vld [vmem:[#allocation4 + $0xc] sm:$0xf] }
 0x1ad   : > { %2542 = vst.msk [vmem:[#allocation3 + $0x50] sm:$0xff] %vm2531_vm3, %v2504_v29  ;;  %9803 = vmatpush3.bf16.msra.mxu1 %v10458_v14  ;;  %v9488_v2 = vcombine.low %v4940_v24, %v4950_v63 }
 0x1ae   : > { %v1961_v52 = vpop.permute.xlu1 %1960  ;;  %9804 = vmatprep.subr.bf16.mxu1 %v10460_v12 }
 0x1af   : > { %1998 = vst.msk [vmem:[#allocation3 + $0x58] sm:$0xff] %vm1986_vm2, %v1961_v52  ;;  %9917 = vmatpush3.bf16.msra.mxu0 %v10461_v56  ;;  %8327 = vmatprep.mubr.bf16.mxu1 %v9488_v2  ;;  %v4634_v2 = vld [vmem:[#allocation4 + $0x20] sm:$0x1] }
 0x1b0   : > { %3878 = vrot.lane.b32.xlu1 %v9419_v5, %s10574_s29  ;;  %v2825_v54 = vpop.permute.xlu0 %2824  ;;  %9918 = vmatprep.subr.bf16.mxu0 %v10463_v44 }
 0x1b1   : > { %2863 = vst.msk [vmem:[#allocation3 + $0x50] sm:$0xff] %vm13880_vm4, %v2825_v54  ;;  %9805 = vmatpush3.bf16.msra.mxu1 %v10462_v46 }
 0x1b2   : > { %9806 = vmatprep.subr.bf16.mxu1 %v10464_v23 }
 0x1b3   : > { %9919 = vmatpush3.bf16.msra.mxu0 %v10465_v38 }
 0x1b4   : > { %v3003_v40 = vpop.permute.xlu0 %3002 }
 0x1b5   : > { %3041 = vst.msk [vmem:[#allocation3 + $0x50] sm:$0xff] %vm13879_vm5, %v3003_v40  ;;  %9807 = vmatpush3.bf16.msra.mxu1 %v10466_v41 }
 0x1b8   : > { %8328 = vmatmul.mubr.bf16.vlgmr.msra.gmra.mrb[0].mxu1 %v10468_v57 }
 0x1b9   : > { %v2506_v0 = vpop.permute.xlu1 %2505 }
 0x1ba   : > { %2543 = vst.msk [vmem:[#allocation3 + $0x58] sm:$0xff] %vm2531_vm3, %v2506_v0 }
 0x1bd   : > { %v2827_v4 = vpop.permute.xlu1 %2826 }
 0x1be   : > { %2864 = vst.msk [vmem:[#allocation3 + $0x58] sm:$0xff] %vm13880_vm4, %v2827_v4 }
 0x1bf   : > { %v3548_v6 = vpop.permute.xlu0 %3547 }
 0x1c0   : > { %3586 = vst.msk [vmem:[#allocation3 + $0x50] sm:$0xff] %vm3575_vm8, %v3548_v6 }
 0x1c1   : > { %v3005_v25 = vpop.permute.xlu1 %3004 }
 0x1c2   : > { %3042 = vst.msk [vmem:[#allocation3 + $0x58] sm:$0xff] %vm13879_vm5, %v3005_v25 }
 0x1c3   : > { %v3869_v11 = vpop.permute.xlu0 %3868 }
 0x1c4   : > { %3907 = vst.msk [vmem:[#allocation3 + $0x50] sm:$0xff] %vm3896_vm7, %v3869_v11 }
 0x1c6   : > { %v3550_v7 = vpop.permute.xlu1 %3549 }
 0x1c7   : > { %3587 = vst.msk [vmem:[#allocation3 + $0x58] sm:$0xff] %vm3575_vm8, %v3550_v7  ;;  %v4627_v7 = vld [vmem:[#allocation4 + $0x14] sm:$0x1] }
 0x1ca   : > { %v3871_v48 = vpop.permute.xlu1 %3870 }
 0x1cb   : > { %v3923_v13 = vld [vmem:[#allocation3 + $0x50] sm:$0xff]  ;;  %3908 = vst.msk [vmem:[#allocation3 + $0x58] sm:$0xff] %vm3896_vm7, %v3871_v48  ;;  %v1462_v15 = vpop.permute.xlu0 %1461 }
 0x1cc   : > { %10290 = vmatprep.mubr.msk.bf16.mxu0 %vm3956_vm9, %v3923_v13  ;;  %1498 = vst.msk [vmem:[#allocation3 + $0x60] sm:$0xff] %vm1485_vm15, %v1462_v15 }
 0x1cf   : > { %v1786_v19 = vpop.permute.xlu0 %1785 }
 0x1d0   : > { %v1464_v17 = vpop.permute.xlu1 %1463  ;;  %1822 = vst.msk [vmem:[#allocation3 + $0x60] sm:$0xff] %vm1809_vm1, %v1786_v19 }
 0x1d1   : > { %1499 = vst.msk [vmem:[#allocation3 + $0x68] sm:$0xff] %vm1485_vm15, %v1464_v17 }
 0x1d2   : > { %v3924_v20 = vld [vmem:[#allocation3 + $0x58] sm:$0xff] }
 0x1d3   : > { %10291 = vmatmul.mubr.msk.bf16.gmra.mrb[20].mxu0 %vm3956_vm9, %v3924_v20  ;;  %v1963_v18 = vpop.permute.xlu0 %1962 }
 0x1d4   : > { %v1788_v3 = vpop.permute.xlu1 %1787  ;;  %1999 = vst.msk [vmem:[#allocation3 + $0x60] sm:$0xff] %vm1986_vm2, %v1963_v18 }
 0x1d5   : > { %1823 = vst.msk [vmem:[#allocation3 + $0x68] sm:$0xff] %vm1809_vm1, %v1788_v3 }
 0x1d9   : > { %v1965_v31 = vpop.permute.xlu1 %1964 }
 0x1da   : > { %2000 = vst.msk [vmem:[#allocation3 + $0x68] sm:$0xff] %vm1986_vm2, %v1965_v31  ;;  %v2508_v32 = vpop.permute.xlu0 %2507 }
 0x1db   : > { %2544 = vst.msk [vmem:[#allocation3 + $0x60] sm:$0xff] %vm2531_vm3, %v2508_v32 }
 0x1de   : > { %v2829_v43 = vpop.permute.xlu0 %2828  ;;  %v10272_v30 = vpop.f32.mrb[0].mxu0 }
 0x1df   : > { %2865 = vst.msk [vmem:[#allocation3 + $0x60] sm:$0xff] %vm13880_vm4, %v2829_v43  ;;  %v4052_v47 = vadd.f32 %v10272_v30, %v11955_v45  ;;  %v4043_v22 = vpop.f32.mrb[1].mxu0 }
 0x1e0   : > { %v4044_v27 = vadd.f32 %v11955_v45, %v4043_v22  ;;  %v10273_v5 = vpop.f32.mrb[2].mxu0 }
 0x1e1   : > { %v4172_v29 = vmax.f32 %v4052_v47, 0.0  ;;  %v4055_v16 = vadd.f32 %v10273_v5, %v11955_v45  ;;  %v4046_v14 = vpop.f32.mrb[3].mxu0 }
 0x1e2   : > { %v3007_v26 = vpop.permute.xlu0 %3006  ;;  %v4170_v12 = vmax.f32 %v4044_v27, 0.0  ;;  %v4047_v42 = vadd.f32 %v11955_v45, %v4046_v14 }
 0x1e3   : > { %3043 = vst.msk [vmem:[#allocation3 + $0x60] sm:$0xff] %vm13879_vm5, %v3007_v26  ;;  %v9743_v52 = vpack.c.bf16 %v4172_v29, %v4172_v29  ;;  %v4173_v34 = vmax.f32 %v4055_v16, 0.0 }
 0x1e4   : > { %v9741_v53 = vpack.c.bf16 %v4170_v12, %v4170_v12  ;;  %v4171_v8 = vmax.f32 %v4047_v42, 0.0 }
 0x1e5   : > { %v2510_v39 = vpop.permute.xlu1 %2509  ;;  %v4316_v33 = vshrl.u32 %v9743_v52, 16  ;;  %v9744_v35 = vpack.c.bf16 %v4173_v34, %v4173_v34  ;;  %v4319_v55 = vshll.u32 %v9743_v52, 16 }
 0x1e6   : > { %2545 = vst.msk [vmem:[#allocation3 + $0x68] sm:$0xff] %vm2531_vm3, %v2510_v39  ;;  %v4299_v54 = vshrl.u32 %v9741_v53, 16  ;;  %v9742_v56 = vpack.c.bf16 %v4171_v8, %v4171_v8  ;;  %v4302_v23 = vshll.u32 %v9741_v53, 16 }
 0x1e7   : > { %v4318_v46 = vrot.slane %v4316_v33, 7  ;;  %v4324_v58 = vshrl.u32 %v9744_v35, 16  ;;  %v4327_v41 = vshll.u32 %v9744_v35, 16  ;;  %v4637_v35 = vld [vmem:[#allocation4 + $0x24] sm:$0xf] }
 0x1e8   : > { %v4301_v44 = vrot.slane %v4299_v54, 7  ;;  %v4307_v9 = vshrl.u32 %v9742_v56, 16  ;;  %v4310_v40 = vshll.u32 %v9742_v56, 16 }
 0x1e9   : > { %v2831_v49 = vpop.permute.xlu1 %2830  ;;  %v4321_v28 = vor.u32 %v4319_v55, %v4318_v46  ;;  %v4326_v38 = vrot.slane %v4324_v58, 7  ;;  %v4322_v62 = vrot.slane %v4318_v46, 4  ;;  %v4648_v55 = vld [vmem:[#allocation4 + $0x38] sm:$0x1] }
 0x1ea   : > { %2866 = vst.msk [vmem:[#allocation3 + $0x68] sm:$0xff] %vm13880_vm4, %v2831_v49  ;;  %v4304_v57 = vor.u32 %v4302_v23, %v4301_v44  ;;  %v4305_v24 = vrot.slane %v4301_v44, 4  ;;  %v4309_v0 = vrot.slane %v4307_v9, 7  ;;  %v4641_v9 = vld [vmem:[#allocation4 + $0x2c] sm:$0x1] }
 0x1eb   : > { %v3552_v61 = vpop.permute.xlu0 %3551  ;;  %v4631_v6 = vsel %vm11966_vm14, %v4321_v28, %v4630_v59  ;;  %v4329_v25 = vor.u32 %v4327_v41, %v4326_v38  ;;  %v4331_v11 = vrot.slane %v4326_v38, 4 }
 0x1ec   : > { %3588 = vst.msk [vmem:[#allocation3 + $0x60] sm:$0xff] %vm3575_vm8, %v3552_v61  ;;  %4632 = vst [vmem:[#allocation4 + $0x18] sm:$0xf] %v4631_v6  ;;  %v4622_v15 = vsel %vm11966_vm14, %v4304_v57, %v4621_v21  ;;  %v4312_v17 = vor.u32 %v4310_v40, %v4309_v0  ;;  %v4314_v19 = vrot.slane %v4309_v0, 4 }
 0x1ed   : > { %v3009_v50 = vpop.permute.xlu1 %3008  ;;  %4623 = vst [vmem:[#allocation4 + $0xc] sm:$0xf] %v4622_v15  ;;  %v4330_v18 = vsel %vm10821_vm12, %v4322_v62, %v4329_v25 }
 0x1ee   : > { %3044 = vst.msk [vmem:[#allocation3 + $0x68] sm:$0xff] %vm13879_vm5, %v3009_v50  ;;  %vm13900_vm5 = vsmask.f32 256  ;;  %4633 = vst [vmem:[#allocation4 + $0x1c] sm:$0xf] %v4330_v18  ;;  %v4313_v49 = vsel %vm10821_vm12, %v4305_v24, %v4312_v17 }
 0x1ef   : > { %v3873_v37 = vpop.permute.xlu0 %3872  ;;  %vm11972_vm4 = vmand %vm4625_vm10, %vm13900_vm5  ;;  %4624 = vst [vmem:[#allocation4 + $0x10] sm:$0xf] %v4313_v49  ;;  %v4644_v50 = vld [vmem:[#allocation4 + $0x30] sm:$0xf] }
 0x1f0   : > { %3909 = vst.msk [vmem:[#allocation3 + $0x60] sm:$0xff] %vm3896_vm7, %v3873_v37  ;;  %v4635_v31 = vsel %vm11972_vm4, %v4331_v11, %v4634_v2  ;;  %v4628_v47 = vsel %vm11972_vm4, %v4314_v19, %v4627_v7 }
 0x1f1   : > { %4636 = vst [vmem:[#allocation4 + $0x20] sm:$0x1] %v4635_v31  ;;  %4629 = vst [vmem:[#allocation4 + $0x14] sm:$0x1] %v4628_v47 }
 0x1f3   : > { %v3554_v60 = vpop.permute.xlu1 %3553  ;;  %v10276_v4 = vpop.f32.mrb[4].mxu0 }
 0x1f4   : > { %3589 = vst.msk [vmem:[#allocation3 + $0x68] sm:$0xff] %vm3575_vm8, %v3554_v60  ;;  %v4068_v48 = vadd.f32 %v10276_v4, %v11955_v45  ;;  %v4059_v13 = vpop.f32.mrb[5].mxu0  ;;  %v4882_v0 = vld [vmem:[#allocation4 + $0xc] sm:$0xf] }
 0x1f5   : > { %v4060_v20 = vadd.f32 %v11955_v45, %v4059_v13  ;;  %v10277_v3 = vpop.f32.mrb[6].mxu0  ;;  %v4955_v19 = vshll.u32 %v4882_v0, 16  ;;  %v4886_v47 = vld [vmem:[#allocation4 + $0x1c] sm:$0xf] }
 0x1f6   : > { %v4176_v32 = vmax.f32 %v4068_v48, 0.0  ;;  %v4071_v43 = vadd.f32 %v10277_v3, %v11955_v45  ;;  %v4062_v26 = vpop.f32.mrb[7].mxu0  ;;  %v4883_v4 = vld [vmem:[#allocation4 + $0x10] sm:$0xf]  ;;  %v4952_v48 = vshrl.u32 %v4882_v0, 16 }
 0x1f7   : > { %v3875_v39 = vpop.permute.xlu1 %3874  ;;  %v3925_v30 = vld [vmem:[#allocation3 + $0x60] sm:$0xff]  ;;  %v4174_v22 = vmax.f32 %v4060_v20, 0.0  ;;  %v4063_v27 = vadd.f32 %v11955_v45, %v4062_v26  ;;  %v4961_v20 = vshll.u32 %v4883_v4, 16 }
 0x1f8   : > { %3910 = vst.msk [vmem:[#allocation3 + $0x68] sm:$0xff] %vm3896_vm7, %v3875_v39  ;;  %v1466_v5 = vpop.permute.xlu0 %1465  ;;  %10294 = vmatprep.mubr.msk.bf16.mxu0 %vm3956_vm9, %v3925_v30  ;;  %v9747_v29 = vpack.c.bf16 %v4176_v32, %v4176_v32  ;;  %v4177_v16 = vmax.f32 %v4071_v43, 0.0  ;;  %v4884_v17 = vld [vmem:[#allocation4 + $0x14] sm:$0x1]  ;;  %v4954_v31 = vrot.slane %v4952_v48, 4  ;;  %v4965_v32 = vshrl.u32 %v4883_v4, 16 }
 0x1f9   : > { %1500 = vst.msk [vmem:[#allocation3 + $0x70] sm:$0xff] %vm1485_vm15, %v1466_v5  ;;  %v9745_v14 = vpack.c.bf16 %v4174_v22, %v4174_v22  ;;  %v4175_v61 = vmax.f32 %v4063_v27, 0.0  ;;  %v4957_v43 = vrot.slane %v4955_v19, 5  ;;  %v4963_v26 = vrot.slane %v4961_v20, 5  ;;  %v4885_v39 = vld [vmem:[#allocation4 + $0x18] sm:$0xf] }
 0x1fa   : > { %v4350_v12 = vshrl.u32 %v9747_v29, 16  ;;  %v9748_v42 = vpack.c.bf16 %v4177_v16, %v4177_v16  ;;  %v4353_v33 = vshll.u32 %v9747_v29, 16  ;;  %v4967_v30 = vrot.slane %v4965_v32, 4  ;;  %v4887_v5 = vld [vmem:[#allocation4 + $0x20] sm:$0x1] }
 0x1fb   : > { %v4333_v52 = vshrl.u32 %v9745_v14, 16  ;;  %v9746_v34 = vpack.c.bf16 %v4175_v61, %v4175_v61  ;;  %v4336_v46 = vshll.u32 %v9745_v14, 16  ;;  %v4971_v49 = vshll.u32 %v4884_v17, 16 }
 0x1fc   : > { %v1790_v53 = vpop.permute.xlu0 %1789  ;;  %v4352_v8 = vrot.slane %v4350_v12, 7  ;;  %v4358_v37 = vshrl.u32 %v9748_v42, 16  ;;  %v4361_v23 = vshll.u32 %v9748_v42, 16  ;;  %v4976_v22 = vshrl.u32 %v4885_v39, 16 }
 0x1fd   : > { %v1468_v54 = vpop.permute.xlu1 %1467  ;;  %1824 = vst.msk [vmem:[#allocation3 + $0x70] sm:$0xff] %vm1809_vm1, %v1790_v53  ;;  %v4335_v56 = vrot.slane %v4333_v52, 7  ;;  %v4341_v58 = vshrl.u32 %v9746_v34, 16  ;;  %v4344_v40 = vshll.u32 %v9746_v34, 16  ;;  %v4958_v27 = vor.u32 %v4957_v43, %v4954_v31 }
 0x1fe   : > { %1501 = vst.msk [vmem:[#allocation3 + $0x78] sm:$0xff] %vm1485_vm15, %v1468_v54  ;;  %v4355_v59 = vor.u32 %v4353_v33, %v4352_v8  ;;  %v4360_v44 = vrot.slane %v4358_v37, 7  ;;  %v4356_v21 = vrot.slane %v4352_v8, 4  ;;  %v4979_v29 = vshll.u32 %v4885_v39, 16 }
 0x1ff   : > { %v3926_v28 = vld [vmem:[#allocation3 + $0x68] sm:$0xff]  ;;  %v4338_v38 = vor.u32 %v4336_v46, %v4335_v56  ;;  %v4343_v41 = vrot.slane %v4341_v58, 7  ;;  %v4339_v57 = vrot.slane %v4335_v56, 4  ;;  %v4985_v16 = vshll.u32 %v4886_v47, 16 }
 0x200   : > { %10295 = vmatmul.mubr.msk.bf16.gmra.mrb[24].mxu0 %vm3956_vm9, %v3926_v28  ;;  %v1967_v60 = vpop.permute.xlu0 %1966  ;;  %v4645_v62 = vsel %vm11966_vm14, %v4355_v59, %v4644_v50  ;;  %v4363_v24 = vor.u32 %v4361_v23, %v4360_v44  ;;  %v4365_v2 = vrot.slane %v4360_v44, 4  ;;  %v4968_v12 = vor.u32 %v4967_v30, %v4963_v26  ;;  %v10471_v30 = vld [vmem:[#allocation4 + $0x18] sm:$0xff]  }
 0x201   : > { %v1792_v6 = vpop.permute.xlu1 %1791  ;;  %2001 = vst.msk [vmem:[#allocation3 + $0x70] sm:$0xff] %vm1986_vm2, %v1967_v60  ;;  %4646 = vst [vmem:[#allocation4 + $0x30] sm:$0xf] %v4645_v62  ;;  %v4638_v25 = vsel %vm11966_vm14, %v4338_v38, %v4637_v35  ;;  %v4346_v11 = vor.u32 %v4344_v40, %v4343_v41  ;;  %v4348_v7 = vrot.slane %v4343_v41, 4  ;;  %v4978_v42 = vrot.slane %v4976_v22, 4 }
 0x202   : > { %1825 = vst.msk [vmem:[#allocation3 + $0x78] sm:$0xff] %vm1809_vm1, %v1792_v6  ;;  %4639 = vst [vmem:[#allocation4 + $0x24] sm:$0xf] %v4638_v25  ;;  %v4364_v13 = vsel %vm10821_vm12, %v4356_v21, %v4363_v24  ;;  %v4649_v15 = vsel %vm11972_vm4, %v4365_v2, %v4648_v55  ;;  %v4959_v50 = vrot.slane %v4958_v27, 4  ;;  %v4981_v52 = vrot.slane %v4979_v29, 5 }
 0x203   : > { %4647 = vst [vmem:[#allocation4 + $0x34] sm:$0xf] %v4364_v13  ;;  %4650 = vst [vmem:[#allocation4 + $0x38] sm:$0x1] %v4649_v15  ;;  %v4347_v3 = vsel %vm10821_vm12, %v4339_v57, %v4346_v11  ;;  %v4642_v18 = vsel %vm11972_vm4, %v4348_v7, %v4641_v9  ;;  %v4987_v34 = vrot.slane %v4985_v16, 5  ;;  %v4989_v53 = vshrl.u32 %v4886_v47, 16 }
 0x204   : > { %4640 = vst [vmem:[#allocation4 + $0x28] sm:$0xf] %v4347_v3  ;;  %4643 = vst [vmem:[#allocation4 + $0x2c] sm:$0x1] %v4642_v18  ;;  %v4969_v8 = vrot.slane %v4968_v12, 4  ;;  %v4973_v33 = vrot.slane %v4971_v49, 5  ;;  %v4982_v35 = vor.u32 %v4981_v52, %v4978_v42  ;;  %v4964_v46 = vsel %vm10809_vm11, %v4959_v50, %v4963_v26 }
 0x205   : > { %v4991_v37 = vrot.slane %v4989_v53, 4  ;;  %v4995_v54 = vshll.u32 %v4887_v5, 16  ;;  %vm13903_vm15 = vcmask 195744   ;;  %v10470_v9 = vld [vmem:[#allocation4 + $0xc] sm:$0xff]   ;;  %vm13904_vm1 = vcmask 228544  }
 0x206   : > { %v1969_v14 = vpop.permute.xlu1 %1968  ;;  %v4974_v55 = vsel %vm10809_vm11, %v4969_v8, %v4973_v33  ;;  %v4983_v59 = vrot.slane %v4982_v35, 4  ;;  %v10483_v15 = vld [vmem:[%s13874_s3 + $0x140] sm:$0xff]  }
 0x207   : > { %v2512_v61 = vpop.permute.xlu0 %2511  ;;  %2002 = vst.msk [vmem:[#allocation3 + $0x78] sm:$0xff] %vm1986_vm2, %v1969_v14  ;;  %v9489_v58 = vcombine.low %v4964_v46, %v4974_v55  ;;  %v4992_v44 = vor.u32 %v4991_v37, %v4987_v34  ;;  %v4997_v40 = vrot.slane %v4995_v54, 5  ;;  %10016 = vmatprep.subr.bf16.mxu1 %v10483_v15  ;;  %v10485_v26 = vld [vmem:[%s13874_s3 + $0x100] sm:$0xff]   ;;  %vm13905_vm2 = vmmov %vm13903_vm15  ;;  %v10489_v54 = vld [vmem:[%s13874_s3 + $0x108] sm:$0xff]  }
 0x208   : > { %2546 = vst.msk [vmem:[#allocation3 + $0x70] sm:$0xff] %vm2531_vm3, %v2512_v61  ;;  %v4988_v24 = vsel %vm10809_vm11, %v4983_v59, %v4987_v34  ;;  %v4891_v19 = vld [vmem:[#allocation4 + $0x30] sm:$0xf]  ;;  %10017 = vmatpush3.bf16.msra.mxu1 %v10485_v26  ;;  %v5392_v59 = vld [vmem:[#allocation4 + $0x4] sm:$0xf] }
 0x209   : > { %v4888_v23 = vld [vmem:[#allocation4 + $0x24] sm:$0xf]  ;;  %8335 = vmatprep.mubr.bf16.mxu1 %v9489_v58  ;;  %v4993_v41 = vrot.slane %v4992_v44, 4  ;;  %v5024_v31 = vshrl.u32 %v4891_v19, 16  ;;  %v5027_v32 = vshll.u32 %v4891_v19, 16  ;;  %v10487_v34 = vld [vmem:[%s13874_s3 + $0x148] sm:$0xff]  }
 0x20a   : > { %v5000_v38 = vshrl.u32 %v4888_v23, 16  ;;  %v5003_v60 = vshll.u32 %v4888_v23, 16  ;;  %8336 = vmatmul.mubr.bf16.gmra.mrb[4].mxu1 %v10470_v9  ;;  %v4892_v20 = vld [vmem:[#allocation4 + $0x34] sm:$0xf]  ;;  %v4893_v18 = vld [vmem:[#allocation4 + $0x38] sm:$0x1]  ;;  %10018 = vmatprep.subr.bf16.mxu1 %v10487_v34 }
 0x20b   : > { %v2833_v56 = vpop.permute.xlu0 %2832  ;;  %v4889_v28 = vld [vmem:[#allocation4 + $0x28] sm:$0xf]  ;;  %v4890_v21 = vld [vmem:[#allocation4 + $0x2c] sm:$0x1]  ;;  %v4998_v4 = vsel %vm10809_vm11, %v4993_v41, %v4997_v40  ;;  %v5033_v43 = vshll.u32 %v4892_v20, 16  ;;  %v5037_v22 = vshrl.u32 %v4892_v20, 16 }
 0x20c   : > { %2867 = vst.msk [vmem:[#allocation3 + $0x70] sm:$0xff] %vm13903_vm15, %v2833_v56  ;;  %v5009_v62 = vshll.u32 %v4889_v28, 16  ;;  %v5002_v2 = vrot.slane %v5000_v38, 4  ;;  %v5013_v0 = vshrl.u32 %v4889_v28, 16  ;;  %v5005_v6 = vrot.slane %v5003_v60, 5  ;;  %10019 = vmatpush3.bf16.msra.mxu1 %v10489_v54  ;;  %v10474_v44 = vld [vmem:[#allocation4 + $0x24] sm:$0xff]  }
 0x20d   : > { %v5019_v11 = vshll.u32 %v4890_v21, 16  ;;  %v9490_v48 = vcombine.low %v4988_v24, %v4998_v4  ;;  %v5026_v29 = vrot.slane %v5024_v31, 4  ;;  %v5029_v16 = vrot.slane %v5027_v32, 5  ;;  %v5391_v21 = vld [vmem:[#allocation4] sm:$0xe]  ;;  %v10475_v19 = vld [vmem:[#allocation4 + $0x30] sm:$0xff]  }
 0x20e   : > { %v5011_v25 = vrot.slane %v5009_v62, 5  ;;  %v5015_v13 = vrot.slane %v5013_v0, 4  ;;  %v5006_v17 = vor.u32 %v5005_v6, %v5002_v2  ;;  %v5035_v14 = vrot.slane %v5033_v43, 5  ;;  %v5393_v60 = vld [vmem:[#allocation4 + $0x8] sm:$0x1] }
 0x20f   : > { %v3011_v57 = vpop.permute.xlu0 %3010  ;;  %8343 = vmatprep.mubr.bf16.mxu1 %v9490_v48  ;;  %v5021_v47 = vrot.slane %v5019_v11, 5  ;;  %v5039_v61 = vrot.slane %v5037_v22, 4  ;;  %v5043_v12 = vshll.u32 %v4893_v18, 16  ;;  %v5030_v52 = vor.u32 %v5029_v16, %v5026_v29  ;;  %v10467_v18 = vld [vmem:[#allocation4 + $0xc] sm:$0xff]   ;;  %v4658_v29 = vld [vmem:[#allocation4 + $0x48] sm:$0xf] }
 0x210   : > { %3045 = vst.msk [vmem:[#allocation3 + $0x70] sm:$0xff] %vm13904_vm1, %v3011_v57  ;;  %v5016_v3 = vor.u32 %v5015_v13, %v5011_v25  ;;  %v5007_v49 = vrot.slane %v5006_v17, 4  ;;  %v5489_v38 = vrot.slane %v5392_v59, 5  ;;  %v9504_v0 = vrot.slane %v5391_v21, 9 }
 0x211   : > { %v5040_v33 = vor.u32 %v5039_v61, %v5035_v14  ;;  %v5031_v37 = vrot.slane %v5030_v52, 4  ;;  %v5045_v46 = vrot.slane %v5043_v12, 5 }
 0x212   : > { %v2514_v7 = vpop.permute.xlu1 %2513  ;;  %v5017_v5 = vrot.slane %v5016_v3, 4  ;;  %8344 = vmatmul.mubr.bf16.gmra.mrb[8].mxu1 %v10471_v30  ;;  %v5012_v42 = vsel %vm10809_vm11, %v5007_v49, %v5011_v25  ;;  %v5491_v11 = vrot.slane %v5489_v38, 4  ;;  %v5490_v43 = vsel %vm10789_vm6, %v9504_v0, %v5489_v38  ;;  %v5396_v38 = vld [vmem:[#allocation4 + $0x14] sm:$0x1] }
 0x213   : > { %2547 = vst.msk [vmem:[#allocation3 + $0x78] sm:$0xff] %vm2531_vm3, %v2514_v7  ;;  %vm13906_vm3 = vmmov %vm13904_vm1  ;;  %v5041_v56 = vrot.slane %v5040_v33, 4  ;;  %v5036_v23 = vsel %vm10809_vm11, %v5031_v37, %v5035_v14  ;;  %v5492_v7 = vrot.slane %v5393_v60, 5  ;;  %v4662_v33 = vld [vmem:[#allocation4 + $0x50] sm:$0x1]  ;;  %v10469_v60 = vld [vmem:[#allocation4 + $0x18] sm:$0xff]  }
 0x214   : > { %v3556_v39 = vpop.permute.xlu0 %3555  ;;  %v5022_v50 = vsel %vm10809_vm11, %v5017_v5, %v5021_v47  ;;  %v5395_v47 = vld [vmem:[#allocation4 + $0x10] sm:$0xf] }
 0x215   : > { %3590 = vst.msk [vmem:[#allocation3 + $0x70] sm:$0xff] %vm3575_vm8, %v3556_v39  ;;  %v9491_v8 = vcombine.low %v5012_v42, %v5022_v50  ;;  %v5046_v55 = vsel %vm10809_vm11, %v5041_v56, %v5045_v46  ;;  %v5493_v26 = vsel %vm10789_vm6, %v5491_v11, %v5492_v7  ;;  %v4651_v50 = vld [vmem:[#allocation4 + $0x3c] sm:$0xf]  ;;  %v5399_v11 = vld [vmem:[#allocation4 + $0x20] sm:$0x1]  ;;  %v10472_v7 = vld [vmem:[#allocation4 + $0x24] sm:$0xff]  }
 0x216   : > { %v2835_v27 = vpop.permute.xlu1 %2834  ;;  %v9492_v9 = vcombine.low %v5036_v23, %v5046_v55  ;;  %v9520_v12 = vcombine.low %v5490_v43, %v5493_v26 }
 0x217   : > { %2868 = vst.msk [vmem:[#allocation3 + $0x78] sm:$0xff] %vm13905_vm2, %v2835_v27  ;;  %8351 = vmatprep.mubr.bf16.mxu1 %v9491_v8 }
 0x218   : > { %v3877_v53 = vpop.permute.xlu0 %3876 }
 0x219   : > { %3911 = vst.msk [vmem:[#allocation3 + $0x70] sm:$0xff] %vm3896_vm7, %v3877_v53  ;;  %v5496_v53 = vrot.slane %v5395_v47, 5  ;;  %v5401_v47 = vld [vmem:[#allocation4 + $0x28] sm:$0xf] }
 0x21a   : > { %v3013_v35 = vpop.permute.xlu1 %3012  ;;  %8352 = vmatmul.mubr.bf16.gmra.mrb[12].mxu1 %v10474_v44 }
 0x21b   : > { %3046 = vst.msk [vmem:[#allocation3 + $0x78] sm:$0xff] %vm13906_vm3, %v3013_v35  ;;  %8359 = vmatprep.mubr.bf16.mxu1 %v9492_v9 }
 0x21e   : > { %v3558_v58 = vpop.permute.xlu1 %3557 }
 0x21f   : > { %3591 = vst.msk [vmem:[#allocation3 + $0x78] sm:$0xff] %vm3575_vm8, %v3558_v58  ;;  %v4655_v58 = vld [vmem:[#allocation4 + $0x44] sm:$0x1] }
 0x220   : > { %v3927_v28 = vld [vmem:[#allocation3 + $0x70] sm:$0xff]  ;;  %v10280_v41 = vpop.f32.mrb[8].mxu0 }
 0x221   : > { %10298 = vmatprep.mubr.msk.bf16.mxu0 %vm3956_vm9, %v3927_v28  ;;  %v4084_v62 = vadd.f32 %v10280_v41, %v11955_v45  ;;  %v4075_v57 = vpop.f32.mrb[9].mxu0 }
 0x222   : > { %v3879_v40 = vpop.permute.xlu1 %3878  ;;  %v4076_v24 = vadd.f32 %v11955_v45, %v4075_v57  ;;  %v10281_v2 = vpop.f32.mrb[10].mxu0  ;;  %8360 = vmatmul.mubr.bf16.gmra.mrb[16].mxu1 %v10475_v19  ;;  %v5498_v57 = vrot.slane %v5496_v53, 4 }
 0x223   : > { %3912 = vst.msk [vmem:[#allocation3 + $0x78] sm:$0xff] %vm3896_vm7, %v3879_v40  ;;  %v4180_v4 = vmax.f32 %v4084_v62, 0.0  ;;  %v4087_v6 = vadd.f32 %v10281_v2, %v11955_v45  ;;  %v4078_v25 = vpop.f32.mrb[11].mxu0  ;;  %v5394_v62 = vld [vmem:[#allocation4 + $0xc] sm:$0xe]  ;;  %v5499_v2 = vrot.slane %v5396_v38, 5 }
 0x224   : > { %v4178_v48 = vmax.f32 %v4076_v24, 0.0  ;;  %v4079_v13 = vadd.f32 %v11955_v45, %v4078_v25  ;;  %v5398_v24 = vld [vmem:[#allocation4 + $0x1c] sm:$0xf]  ;;  %v9505_v0 = vrot.slane %v5394_v62, 9  ;;  %v5397_v25 = vld [vmem:[#allocation4 + $0x18] sm:$0xe] }
 0x225   : > { %v9751_v15 = vpack.c.bf16 %v4180_v4, %v4180_v4  ;;  %v4181_v17 = vmax.f32 %v4087_v6, 0.0  ;;  %v5503_v4 = vrot.slane %v5398_v24, 5  ;;  %v5500_v6 = vsel %vm10789_vm6, %v5498_v57, %v5499_v2  ;;  %v10495_v2 = vld [vmem:[%s13874_s3 + $0x158] sm:$0xff]  }
 0x226   : > { %v9749_v20 = vpack.c.bf16 %v4178_v48, %v4178_v48  ;;  %v4179_v3 = vmax.f32 %v4079_v13, 0.0  ;;  %v5497_v13 = vsel %vm10789_vm6, %v9505_v0, %v5496_v53  ;;  %v10496_v0 = vld [vmem:[%s13874_s3 + $0x1c0] sm:$0xff]  }
 0x227   : > { %v4384_v31 = vshrl.u32 %v9751_v15, 16  ;;  %v9752_v32 = vpack.c.bf16 %v4181_v17, %v4181_v17  ;;  %v4387_v27 = vshll.u32 %v9751_v15, 16  ;;  %10128 = vmatprep.subr.bf16.mxu0 %v10496_v0 }
 0x228   : > { %v4367_v39 = vshrl.u32 %v9749_v20, 16  ;;  %v9750_v30 = vpack.c.bf16 %v4179_v3, %v4179_v3  ;;  %v4370_v14 = vshll.u32 %v9749_v20, 16  ;;  %v9521_v20 = vcombine.low %v5497_v13, %v5500_v6 }
 0x229   : > { %v4386_v22 = vrot.slane %v4384_v31, 7  ;;  %v4392_v5 = vshrl.u32 %v9752_v32, 16  ;;  %v4395_v34 = vshll.u32 %v9752_v32, 16  ;;  %v5505_v3 = vrot.slane %v5503_v4, 4 }
 0x22a   : > { %v3928_v49 = vld [vmem:[#allocation3 + $0x78] sm:$0xff]  ;;  %v4369_v16 = vrot.slane %v4367_v39, 7  ;;  %v4375_v61 = vshrl.u32 %v9750_v30, 16  ;;  %v4378_v37 = vshll.u32 %v9750_v30, 16  ;;  %v9506_v30 = vrot.slane %v5397_v25, 9  ;;  %v10498_v25 = vld [vmem:[%s13874_s3 + $0x118] sm:$0xff]  }
 0x22b   : > { %10299 = vmatmul.mubr.msk.bf16.gmra.mrb[28].mxu0 %vm3956_vm9, %v3928_v49  ;;  %v4389_v42 = vor.u32 %v4387_v27, %v4386_v22  ;;  %v4394_v52 = vrot.slane %v4392_v5, 7  ;;  %v4390_v54 = vrot.slane %v4386_v22, 4  ;;  %v5506_v49 = vrot.slane %v5399_v11, 5  ;;  %v10499_v11 = vld [vmem:[%s13874_s3 + $0x180] sm:$0xff]  }
 0x22c   : > { %8488 = vmatprep.mubr.bf16.mxu0 %v10467_v18  ;;  %v4372_v8 = vor.u32 %v4370_v14, %v4369_v16  ;;  %v4377_v35 = vrot.slane %v4375_v61, 7  ;;  %v4373_v59 = vrot.slane %v4369_v16, 4 }
 0x22d   : > { %v4659_v56 = vsel %vm11966_vm14, %v4389_v42, %v4658_v29  ;;  %v4397_v46 = vor.u32 %v4395_v34, %v4394_v52  ;;  %v4399_v55 = vrot.slane %v4394_v52, 4  ;;  %v5507_v14 = vsel %vm10789_vm6, %v5505_v3, %v5506_v49  ;;  %v5403_v49 = vld [vmem:[#allocation4 + $0x30] sm:$0xe] }
 0x22e   : > { %4660 = vst [vmem:[#allocation4 + $0x48] sm:$0xf] %v4659_v56  ;;  %v4652_v44 = vsel %vm11966_vm14, %v4372_v8, %v4651_v50  ;;  %v4380_v23 = vor.u32 %v4378_v37, %v4377_v35  ;;  %v4382_v9 = vrot.slane %v4377_v35, 4  ;;  %v5510_v42 = vrot.slane %v5401_v47, 5 }
 0x22f   : > { %4653 = vst [vmem:[#allocation4 + $0x3c] sm:$0xf] %v4652_v44  ;;  %v4398_v28 = vsel %vm10821_vm12, %v4390_v54, %v4397_v46  ;;  %v4663_v21 = vsel %vm11972_vm4, %v4399_v55, %v4662_v33  ;;  %v5402_v54 = vld [vmem:[#allocation4 + $0x2c] sm:$0x1] }
 0x230   : > { %4661 = vst [vmem:[#allocation4 + $0x4c] sm:$0xf] %v4398_v28  ;;  %4664 = vst [vmem:[#allocation4 + $0x50] sm:$0x1] %v4663_v21  ;;  %v4381_v41 = vsel %vm10821_vm12, %v4373_v59, %v4380_v23  ;;  %v4656_v40 = vsel %vm11972_vm4, %v4382_v9, %v4655_v58  ;;  %v10491_v23 = vld [vmem:[%s13874_s3 + $0x150] sm:$0xff]   ;;  %v10473_v9 = vld [vmem:[#allocation4 + $0x30] sm:$0xff]  }
 0x231   : > { %4654 = vst [vmem:[#allocation4 + $0x40] sm:$0xf] %v4381_v41  ;;  %4657 = vst [vmem:[#allocation4 + $0x44] sm:$0x1] %v4656_v40  ;;  %v5400_v28 = vld [vmem:[#allocation4 + $0x24] sm:$0xe]  ;;  %10020 = vmatprep.subr.bf16.mxu1 %v10491_v23 }
 0x232   : > { %v5512_v21 = vrot.slane %v5510_v42, 4  ;;  %v10493_v40 = vld [vmem:[%s13874_s3 + $0x110] sm:$0xff]  }
 0x233   : > { %8489 = vmatmul.mubr.bf16.vlgmr.msra.gmra.mrb[32].mxu0 %v9520_v12  ;;  %v5504_v12 = vsel %vm10789_vm6, %v9506_v30, %v5503_v4  ;;  %v5513_v4 = vrot.slane %v5402_v54, 5  ;;  %10021 = vmatpush3.bf16.msra.mxu1 %v10493_v40 }
 0x234   : > { %8496 = vmatprep.mubr.bf16.mxu0 %v10469_v60  ;;  %v9522_v37 = vcombine.low %v5504_v12, %v5507_v14  ;;  %v5404_v60 = vld [vmem:[#allocation4 + $0x34] sm:$0xf]  ;;  %10022 = vmatprep.subr.bf16.mxu1 %v10495_v2  ;;  %v9508_v14 = vrot.slane %v5403_v49, 9 }
 0x235   : > { %v4897_v19 = vld [vmem:[#allocation4 + $0x48] sm:$0xf]  ;;  %10129 = vmatpush3.bf16.msra.mxu0 %v10499_v11  ;;  %v4665_v11 = vld [vmem:[#allocation4 + $0x54] sm:$0xf] }
 0x236   : > { %v4894_v48 = vld [vmem:[#allocation4 + $0x3c] sm:$0xf]  ;;  %v5072_v22 = vshrl.u32 %v4897_v19, 16  ;;  %v5075_v8 = vshll.u32 %v4897_v19, 16  ;;  %v5517_v19 = vrot.slane %v5404_v60, 5 }
 0x237   : > { %v5048_v15 = vshrl.u32 %v4894_v48, 16  ;;  %v5051_v17 = vshll.u32 %v4894_v48, 16  ;;  %v4898_v61 = vld [vmem:[#allocation4 + $0x4c] sm:$0xf]  ;;  %v4899_v34 = vld [vmem:[#allocation4 + $0x50] sm:$0x1]  ;;  %10023 = vmatpush3.bf16.msra.mxu1 %v10498_v25 }
 0x238   : > { %v4895_v18 = vld [vmem:[#allocation4 + $0x40] sm:$0xf]  ;;  %v4896_v31 = vld [vmem:[#allocation4 + $0x44] sm:$0x1]  ;;  %v5074_v53 = vrot.slane %v5072_v22, 4  ;;  %v5081_v33 = vshll.u32 %v4898_v61, 16 }
 0x239   : > { %v5050_v32 = vrot.slane %v5048_v15, 4  ;;  %v5053_v43 = vrot.slane %v5051_v17, 5  ;;  %v5057_v26 = vshll.u32 %v4895_v18, 16  ;;  %v5061_v39 = vshrl.u32 %v4895_v18, 16  ;;  %v10478_v6 = vld [vmem:[#allocation4 + $0x3c] sm:$0xff]  }
 0x23a   : > { %v5067_v16 = vshll.u32 %v4896_v31, 16  ;;  %v5085_v35 = vshrl.u32 %v4898_v61, 16  ;;  %v5077_v55 = vrot.slane %v5075_v8, 5  ;;  %v5083_v58 = vrot.slane %v5081_v33, 5  ;;  %v10476_v31 = vld [vmem:[#allocation4 + $0x3c] sm:$0xff]  }
 0x23b   : > { %8497 = vmatmul.mubr.bf16.gmra.mrb[36].mxu0 %v9521_v20  ;;  %v5054_v27 = vor.u32 %v5053_v43, %v5050_v32  ;;  %v5059_v5 = vrot.slane %v5057_v26, 5  ;;  %v5063_v29 = vrot.slane %v5061_v39, 4  ;;  %v5091_v44 = vshll.u32 %v4899_v34, 16  ;;  %v5405_v26 = vld [vmem:[#allocation4 + $0x38] sm:$0x1] }
 0x23c   : > { %8504 = vmatprep.mubr.bf16.mxu0 %v10472_v7  ;;  %v5069_v46 = vrot.slane %v5067_v16, 5  ;;  %v5087_v59 = vrot.slane %v5085_v35, 4  ;;  %v5078_v57 = vor.u32 %v5077_v55, %v5074_v53  ;;  %v9507_v15 = vrot.slane %v5400_v28, 9  ;;  %v5407_v39 = vld [vmem:[#allocation4 + $0x40] sm:$0xf] }
 0x23d   : > { %v5055_v50 = vrot.slane %v5054_v27, 4  ;;  %v5064_v52 = vor.u32 %v5063_v29, %v5059_v5  ;;  %v5093_v13 = vrot.slane %v5091_v44, 5  ;;  %v5514_v17 = vsel %vm10789_vm6, %v5512_v21, %v5513_v4  ;;  %v5408_v53 = vld [vmem:[#allocation4 + $0x44] sm:$0x1]  ;;  %v5406_v55 = vld [vmem:[#allocation4 + $0x3c] sm:$0xe] }
 0x23e   : > { %v5088_v24 = vor.u32 %v5087_v59, %v5083_v58  ;;  %v5079_v7 = vrot.slane %v5078_v57, 4  ;;  %v5511_v18 = vsel %vm10789_vm6, %v9507_v15, %v5510_v42  ;;  %v5519_v30 = vrot.slane %v5517_v19, 4  ;;  %v5410_v57 = vld [vmem:[#allocation4 + $0x4c] sm:$0xf] }
 0x23f   : > { %v5065_v56 = vrot.slane %v5064_v52, 4  ;;  %v5060_v38 = vsel %vm10809_vm11, %v5055_v50, %v5059_v5  ;;  %v9523_v43 = vcombine.low %v5511_v18, %v5514_v17  ;;  %v5520_v47 = vrot.slane %v5405_v26, 5  ;;  %v10479_v5 = vld [vmem:[#allocation4 + $0x48] sm:$0xff]   ;;  %v4669_v26 = vld [vmem:[#allocation4 + $0x5c] sm:$0x1] }
 0x240   : > { %v5089_v48 = vrot.slane %v5088_v24, 4  ;;  %v5084_v20 = vsel %vm10809_vm11, %v5079_v7, %v5083_v58  ;;  %v5524_v27 = vrot.slane %v5407_v39, 5  ;;  %v5518_v8 = vsel %vm10789_vm6, %v9508_v14, %v5517_v19  ;;  %v10477_v58 = vld [vmem:[#allocation4 + $0x48] sm:$0xff]   ;;  %v4672_v24 = vld [vmem:[#allocation4 + $0x60] sm:$0xf] }
 0x241   : > { %v5070_v41 = vsel %vm10809_vm11, %v5065_v56, %v5069_v46  ;;  %v5521_v61 = vsel %vm10789_vm6, %v5519_v30, %v5520_v47  ;;  %v5527_v23 = vrot.slane %v5408_v53, 5  ;;  %v4676_v17 = vld [vmem:[#allocation4 + $0x68] sm:$0x1] }
 0x242   : > { %v9493_v62 = vcombine.low %v5060_v38, %v5070_v41  ;;  %v5094_v3 = vsel %vm10809_vm11, %v5089_v48, %v5093_v13  ;;  %v9524_v54 = vcombine.low %v5518_v8, %v5521_v61  ;;  %v9509_v41 = vrot.slane %v5406_v55, 9  ;;  %v5409_v61 = vld [vmem:[#allocation4 + $0x48] sm:$0xe] }
 0x243   : > { %8505 = vmatmul.mubr.bf16.gmra.mrb[40].mxu0 %v9522_v37  ;;  %v9494_v32 = vcombine.low %v5084_v20, %v5094_v3  ;;  %v5526_v37 = vrot.slane %v5524_v27, 4  ;;  %v5531_v3 = vrot.slane %v5410_v57, 5 }
 0x244   : > { %8512 = vmatprep.mubr.bf16.mxu0 %v10473_v9  ;;  %8367 = vmatprep.mubr.bf16.mxu1 %v9493_v62 }
 0x245   : > { %8368 = vmatmul.mubr.bf16.gmra.mrb[20].mxu1 %v10478_v6  ;;  %v5528_v40 = vsel %vm10789_vm6, %v5526_v37, %v5527_v23  ;;  %v5525_v6 = vsel %vm10789_vm6, %v9509_v41, %v5524_v27  ;;  %v5533_v14 = vrot.slane %v5531_v3, 4 }
 0x246   : > { %8375 = vmatprep.mubr.bf16.mxu1 %v9494_v32  ;;  %v9525_v13 = vcombine.low %v5525_v6, %v5528_v40 }
 0x24b   : > { %8513 = vmatmul.mubr.bf16.gmra.mrb[44].mxu0 %v9523_v43  ;;  %v10284_v22 = vpop.f32.mrb[12].mxu0 }
 0x24c   : > { %8520 = vmatprep.mubr.bf16.mxu0 %v10476_v31  ;;  %v4100_v29 = vadd.f32 %v10284_v22, %v11955_v45  ;;  %v4091_v16 = vpop.f32.mrb[13].mxu0 }
 0x24d   : > { %v4092_v12 = vadd.f32 %v11955_v45, %v4091_v16  ;;  %v10285_v42 = vpop.f32.mrb[14].mxu0  ;;  %8376 = vmatmul.mubr.bf16.gmra.mrb[24].mxu1 %v10479_v5  ;;  %v5411_v16 = vld [vmem:[#allocation4 + $0x50] sm:$0x1] }
 0x24e   : > { %v4184_v50 = vmax.f32 %v4100_v29, 0.0  ;;  %v4103_v52 = vadd.f32 %v10285_v42, %v11955_v45  ;;  %v4094_v34 = vpop.f32.mrb[15].mxu0  ;;  %v9510_v42 = vrot.slane %v5409_v61, 9 }
 0x24f   : > { %v4182_v33 = vmax.f32 %v4092_v12, 0.0  ;;  %v4095_v35 = vadd.f32 %v11955_v45, %v4094_v34  ;;  %v5534_v12 = vrot.slane %v5411_v16, 5  ;;  %v10507_v16 = vld [vmem:[%s13874_s3 + $0x168] sm:$0xff]  }
 0x250   : > { %v9755_v56 = vpack.c.bf16 %v4184_v50, %v4184_v50  ;;  %v4185_v46 = vmax.f32 %v4103_v52, 0.0  ;;  %v5532_v53 = vsel %vm10789_vm6, %v9510_v42, %v5531_v3 }
 0x251   : > { %v9753_v59 = vpack.c.bf16 %v4182_v33, %v4182_v33  ;;  %v4183_v44 = vmax.f32 %v4095_v35, 0.0  ;;  %v5535_v50 = vsel %vm10789_vm6, %v5533_v14, %v5534_v12  ;;  %v10508_v14 = vld [vmem:[%s13874_s3 + $0x1d0] sm:$0xff]  }
 0x252   : > { %v4418_v9 = vshrl.u32 %v9755_v56, 16  ;;  %v9756_v28 = vpack.c.bf16 %v4185_v46, %v4185_v46  ;;  %v4421_v60 = vshll.u32 %v9755_v56, 16 }
 0x253   : > { %8521 = vmatmul.mubr.bf16.gmra.mrb[48].mxu0 %v9524_v54  ;;  %v4401_v21 = vshrl.u32 %v9753_v59, 16  ;;  %v9754_v38 = vpack.c.bf16 %v4183_v44, %v4183_v44  ;;  %v4404_v0 = vshll.u32 %v9753_v59, 16  ;;  %v9526_v54 = vcombine.low %v5532_v53, %v5535_v50  ;;  %v10510_v50 = vld [vmem:[%s13874_s3 + $0x128] sm:$0xff]  }
 0x254   : > { %8528 = vmatprep.mubr.bf16.mxu0 %v10477_v58  ;;  %v4420_v45 = vrot.slane %v4418_v9, 7  ;;  %v4426_v62 = vshrl.u32 %v9756_v28, 16  ;;  %v4429_v48 = vshll.u32 %v9756_v28, 16 }
 0x255   : > { %v4403_v2 = vrot.slane %v4401_v21, 7  ;;  %v4409_v4 = vshrl.u32 %v9754_v38, 16  ;;  %v4412_v20 = vshll.u32 %v9754_v38, 16 }
 0x256   : > { %v4423_v25 = vor.u32 %v4421_v60, %v4420_v45  ;;  %v4428_v7 = vrot.slane %v4426_v62, 7  ;;  %v4424_v18 = vrot.slane %v4420_v45, 4 }
 0x257   : > { %v4406_v15 = vor.u32 %v4404_v0, %v4403_v2  ;;  %v4411_v19 = vrot.slane %v4409_v4, 7  ;;  %v4407_v39 = vrot.slane %v4403_v2, 4 }
 0x258   : > { %v4673_v31 = vsel %vm11966_vm14, %v4423_v25, %v4672_v24  ;;  %v4431_v32 = vor.u32 %v4429_v48, %v4428_v7  ;;  %v4433_v43 = vrot.slane %v4428_v7, 4 }
 0x259   : > { %4674 = vst [vmem:[#allocation4 + $0x60] sm:$0xf] %v4673_v31  ;;  %v4666_v30 = vsel %vm11966_vm14, %v4406_v15, %v4665_v11  ;;  %v4414_v49 = vor.u32 %v4412_v20, %v4411_v19  ;;  %v4416_v47 = vrot.slane %v4411_v19, 4 }
 0x25a   : > { %4667 = vst [vmem:[#allocation4 + $0x54] sm:$0xf] %v4666_v30  ;;  %v4432_v22 = vsel %vm10821_vm12, %v4424_v18, %v4431_v32  ;;  %v4677_v27 = vsel %vm11972_vm4, %v4433_v43, %v4676_v17  ;;  %v10501_v32 = vld [vmem:[%s13874_s3 + $0x160] sm:$0xff]   ;;  %v10502_v30 = vld [vmem:[%s13874_s3 + $0x1c8] sm:$0xff]  }
 0x25b   : > { %8529 = vmatmul.mubr.bf16.gmra.mrb[52].mxu0 %v9525_v13  ;;  %4675 = vst [vmem:[#allocation4 + $0x64] sm:$0xf] %v4432_v22  ;;  %4678 = vst [vmem:[#allocation4 + $0x68] sm:$0x1] %v4677_v27  ;;  %v4415_v5 = vsel %vm10821_vm12, %v4407_v39, %v4414_v49  ;;  %v4670_v29 = vsel %vm11972_vm4, %v4416_v47, %v4669_v26  ;;  %10024 = vmatprep.subr.bf16.mxu1 %v10501_v32  ;;  %v10504_v27 = vld [vmem:[%s13874_s3 + $0x120] sm:$0xff]  }
 0x25c   : > { %4668 = vst [vmem:[#allocation4 + $0x58] sm:$0xf] %v4415_v5  ;;  %4671 = vst [vmem:[#allocation4 + $0x5c] sm:$0x1] %v4670_v29  ;;  %v10505_v5 = vld [vmem:[%s13874_s3 + $0x188] sm:$0xff]   ;;  %10130 = vmatprep.subr.bf16.mxu0 %v10502_v30  ;;  %10025 = vmatpush3.bf16.msra.mxu1 %v10504_v27 }
 0x25d   : > { %10131 = vmatpush3.bf16.msra.mxu0 %v10505_v5  ;;  %10026 = vmatprep.subr.bf16.mxu1 %v10507_v16 }
 0x25e   : > { %10132 = vmatprep.subr.bf16.mxu0 %v10508_v14 }
 0x260   : > { %v4903_v34 = vld [vmem:[#allocation4 + $0x60] sm:$0xf]  ;;  %10027 = vmatpush3.bf16.msra.mxu1 %v10510_v50  ;;  %v10513_v50 = vld [vmem:[%s13874_s3 + $0x170] sm:$0xff]  }
 0x261   : > { %v4900_v52 = vld [vmem:[#allocation4 + $0x54] sm:$0xf]  ;;  %v5120_v38 = vshrl.u32 %v4903_v34, 16  ;;  %v5123_v11 = vshll.u32 %v4903_v34, 16  ;;  %10028 = vmatprep.subr.bf16.mxu1 %v10513_v50 }
 0x262   : > { %v5096_v8 = vshrl.u32 %v4900_v52, 16  ;;  %v5099_v33 = vshll.u32 %v4900_v52, 16  ;;  %v5412_v35 = vld [vmem:[#allocation4 + $0x54] sm:$0xe]  ;;  %v10481_v56 = vld [vmem:[#allocation4 + $0x60] sm:$0xff]   ;;  %v10511_v52 = vld [vmem:[%s13874_s3 + $0x190] sm:$0xff]  }
 0x263   : > { %v10480_v37 = vld [vmem:[#allocation4 + $0x54] sm:$0xff]   ;;  %v4902_v55 = vld [vmem:[#allocation4 + $0x5c] sm:$0x1]  ;;  %v9511_v62 = vrot.slane %v5412_v35, 9  ;;  %v4904_v24 = vld [vmem:[#allocation4 + $0x64] sm:$0xf]  ;;  %10133 = vmatpush3.bf16.msra.mxu0 %v10511_v52 }
 0x264   : > { %v4901_v46 = vld [vmem:[#allocation4 + $0x58] sm:$0xf]  ;;  %v5098_v58 = vrot.slane %v5096_v8, 4  ;;  %v5101_v59 = vrot.slane %v5099_v33, 5  ;;  %8536 = vmatprep.mubr.bf16.mxu0 %v10480_v37  ;;  %v5115_v9 = vshll.u32 %v4902_v55, 16  ;;  %v5122_v25 = vrot.slane %v5120_v38, 4 }
 0x265   : > { %v5105_v44 = vshll.u32 %v4901_v46, 16  ;;  %v5109_v23 = vshrl.u32 %v4901_v46, 16  ;;  %v5413_v28 = vld [vmem:[#allocation4 + $0x58] sm:$0xf]  ;;  %v5414_v21 = vld [vmem:[#allocation4 + $0x5c] sm:$0x1]  ;;  %8537 = vmatmul.mubr.bf16.gmra.mrb[56].mxu0 %v9526_v54 }
 0x266   : > { %v5102_v41 = vor.u32 %v5101_v59, %v5098_v58  ;;  %v5538_v60 = vrot.slane %v5413_v28, 5  ;;  %8544 = vmatprep.mubr.bf16.mxu0 %v10481_v56  ;;  %v5541_v57 = vrot.slane %v5414_v21, 5  ;;  %v4905_v6 = vld [vmem:[#allocation4 + $0x68] sm:$0x1]  ;;  %v5129_v7 = vshll.u32 %v4904_v24, 16  ;;  %v10482_v29 = vld [vmem:[#allocation4 + $0x54] sm:$0xff]  }
 0x267   : > { %v5107_v40 = vrot.slane %v5105_v44, 5  ;;  %v5111_v45 = vrot.slane %v5109_v23, 4  ;;  %v5133_v48 = vshrl.u32 %v4904_v24, 16  ;;  %v5117_v15 = vrot.slane %v5115_v9, 5  ;;  %v10484_v33 = vld [vmem:[#allocation4 + $0x60] sm:$0xff]  }
 0x268   : > { %v5103_v2 = vrot.slane %v5102_v41, 4  ;;  %v5540_v4 = vrot.slane %v5538_v60, 4  ;;  %v5539_v17 = vsel %vm10789_vm6, %v9511_v62, %v5538_v60  ;;  %v5125_v20 = vrot.slane %v5123_v11, 5  ;;  %v12179_v37 = vld [vmem:[%s13873_s2] ss:$0 sm:$0xff]  ;;  %v10514_v52 = vld [vmem:[%s13874_s3 + $0x1d8] sm:$0xff]  }
 0x269   : > { %v5112_v0 = vor.u32 %v5111_v45, %v5107_v40  ;;  %v5131_v3 = vrot.slane %v5129_v7, 5  ;;  %v5135_v18 = vrot.slane %v5133_v48, 4  ;;  %v5139_v31 = vshll.u32 %v4905_v6, 16  ;;  %v4679_v48 = vld [vmem:[#allocation4 + $0x6c] sm:$0xf]  ;;  %10134 = vmatprep.subr.bf16.mxu0 %v10514_v52 }
 0x26a   : > { %v5542_v19 = vsel %vm10789_vm6, %v5540_v4, %v5541_v57  ;;  %v5108_v43 = vsel %vm10809_vm11, %v5103_v2, %v5107_v40  ;;  %v5126_v47 = vor.u32 %v5125_v20, %v5122_v25  ;;  %v4686_v4 = vld [vmem:[#allocation4 + $0x78] sm:$0xf]  ;;  %v5417_v14 = vld [vmem:[#allocation4 + $0x68] sm:$0x1] }
 0x26b   : > { %v5113_v13 = vrot.slane %v5112_v0, 4  ;;  %v9527_v39 = vcombine.low %v5539_v17, %v5542_v19  ;;  %v5136_v22 = vor.u32 %v5135_v18, %v5131_v3  ;;  %v5141_v42 = vrot.slane %v5139_v31, 5  ;;  %v5416_v0 = vld [vmem:[#allocation4 + $0x64] sm:$0xf]  ;;  %v4690_v19 = vld [vmem:[#allocation4 + $0x80] sm:$0x1] }
 0x26c   : > { %v5127_v61 = vrot.slane %v5126_v47, 4  ;;  %v5545_v18 = vrot.slane %v5416_v0, 5 }
 0x26d   : > { %v5118_v26 = vsel %vm10809_vm11, %v5113_v13, %v5117_v15  ;;  %8545 = vmatmul.mubr.bf16.gmra.mrb[60].mxu0 %v9527_v39  ;;  %v5137_v12 = vrot.slane %v5136_v22, 4  ;;  %v4683_v39 = vld [vmem:[#allocation4 + $0x74] sm:$0x1] }
 0x26e   : > { %v9495_v49 = vcombine.low %v5108_v43, %v5118_v26  ;;  %v5132_v34 = vsel %vm10809_vm11, %v5127_v61, %v5131_v3  ;;  %v5547_v61 = vrot.slane %v5545_v18, 4 }
 0x26f   : > { %v5142_v53 = vsel %vm10809_vm11, %v5137_v12, %v5141_v42  ;;  %v5415_v12 = vld [vmem:[#allocation4 + $0x60] sm:$0xe]  ;;  %v5548_v42 = vrot.slane %v5417_v14, 5 }
 0x270   : > { %8383 = vmatprep.mubr.bf16.mxu1 %v9495_v49  ;;  %v9496_v8 = vcombine.low %v5132_v34, %v5142_v53  ;;  %v10516_v34 = vld [vmem:[%s13874_s3 + $0x130] sm:$0xff]   ;;  %v10517_v53 = vld [vmem:[%s13874_s3 + $0x198] sm:$0xff]  }
 0x271   : > { %8384 = vmatmul.mubr.bf16.gmra.mrb[28].mxu1 %v10482_v29  ;;  %10135 = vmatpush3.bf16.msra.mxu0 %v10517_v53 }
 0x272   : > { %8391 = vmatprep.mubr.bf16.mxu1 %v9496_v8  ;;  %10029 = vmatpush3.bf16.msra.mxu1 %v10516_v34 }
 0x279   : > { %8392 = vmatmul.mubr.bf16.gmra.mrb[32].mxu1 %v10484_v33  ;;  %v9512_v33 = vrot.slane %v5415_v12, 9  ;;  %v10522_v12 = vld [vmem:[%s13874_s3 + $0x138] sm:$0xff]  }
 0x27b   : > { %v10288_v35 = vpop.f32.mrb[16].mxu0 }
 0x27c   : > { %v4116_v54 = vadd.f32 %v12179_v37, %v10288_v35  ;;  %v4107_v56 = vpop.f32.mrb[17].mxu0  ;;  %v5549_v35 = vsel %vm10789_vm6, %v5547_v61, %v5548_v42  ;;  %v10523_v42 = vld [vmem:[%s13874_s3 + $0x1a0] sm:$0xff]  }
 0x27d   : > { %v4108_v46 = vadd.f32 %v12179_v37, %v4107_v56  ;;  %v10289_v55 = vpop.f32.mrb[18].mxu0 }
 0x27e   : > { %v4188_v58 = vmax.f32 %v4116_v54, 0.0  ;;  %v4119_v59 = vadd.f32 %v12179_v37, %v10289_v55  ;;  %v4110_v44 = vpop.f32.mrb[19].mxu0 }
 0x27f   : > { %v4186_v23 = vmax.f32 %v4108_v46, 0.0  ;;  %v4111_v9 = vadd.f32 %v12179_v37, %v4110_v44  ;;  %v5546_v46 = vsel %vm10789_vm6, %v9512_v33, %v5545_v18  ;;  %v10524_v33 = vld [vmem:[%s13874_s3 + $0x1e8] sm:$0xff]  }
 0x280   : > { %v9759_v28 = vpack.c.bf16 %v4188_v58, %v4188_v58  ;;  %v4189_v21 = vmax.f32 %v4119_v59, 0.0 }
 0x281   : > { %v9757_v38 = vpack.c.bf16 %v4186_v23, %v4186_v23  ;;  %v4187_v41 = vmax.f32 %v4111_v9, 0.0  ;;  %v9528_v23 = vcombine.low %v5546_v46, %v5549_v35  ;;  %v6768_v46 = vld [vmem:[#allocation4 + $0x18] sm:$0xf] }
 0x282   : > { %v4452_v40 = vshrl.u32 %v9759_v28, 16  ;;  %v9760_v45 = vpack.c.bf16 %v4189_v21, %v4189_v21  ;;  %v4455_v24 = vshll.u32 %v9759_v28, 16 }
 0x283   : > { %v4435_v60 = vshrl.u32 %v9757_v38, 16  ;;  %v9758_v62 = vpack.c.bf16 %v4187_v41, %v4187_v41  ;;  %v4438_v25 = vshll.u32 %v9757_v38, 16 }
 0x284   : > { %v4454_v57 = vrot.slane %v4452_v40, 7  ;;  %v4460_v2 = vshrl.u32 %v9760_v45, 16  ;;  %v4463_v15 = vshll.u32 %v9760_v45, 16 }
 0x285   : > { %v4437_v6 = vrot.slane %v4435_v60, 7  ;;  %v4443_v11 = vshrl.u32 %v9758_v62, 16  ;;  %v4446_v3 = vshll.u32 %v9758_v62, 16 }
 0x286   : > { %v4457_v7 = vor.u32 %v4455_v24, %v4454_v57  ;;  %v4462_v13 = vrot.slane %v4460_v2, 7  ;;  %v4458_v31 = vrot.slane %v4454_v57, 4 }
 0x287   : > { %v4440_v17 = vor.u32 %v4438_v25, %v4437_v6  ;;  %v4445_v20 = vrot.slane %v4443_v11, 7  ;;  %v4441_v30 = vrot.slane %v4437_v6, 4 }
 0x288   : > { %v4687_v32 = vsel %vm11966_vm14, %v4457_v7, %v4686_v4  ;;  %v4465_v43 = vor.u32 %v4463_v15, %v4462_v13  ;;  %v4467_v26 = vrot.slane %v4462_v13, 4 }
 0x289   : > { %4688 = vst [vmem:[#allocation4 + $0x78] sm:$0xf] %v4687_v32  ;;  %v4680_v49 = vsel %vm11966_vm14, %v4440_v17, %v4679_v48  ;;  %v4448_v47 = vor.u32 %v4446_v3, %v4445_v20  ;;  %v4450_v22 = vrot.slane %v4445_v20, 4 }
 0x28a   : > { %4681 = vst [vmem:[#allocation4 + $0x6c] sm:$0xf] %v4680_v49  ;;  %v4466_v27 = vsel %vm10821_vm12, %v4458_v31, %v4465_v43  ;;  %v4691_v5 = vsel %vm11972_vm4, %v4467_v26, %v4690_v19 }
 0x28b   : > { %4689 = vst [vmem:[#allocation4 + $0x7c] sm:$0xf] %v4466_v27  ;;  %4692 = vst [vmem:[#allocation4 + $0x80] sm:$0x1] %v4691_v5  ;;  %v4449_v29 = vsel %vm10821_vm12, %v4441_v30, %v4448_v47  ;;  %v4684_v16 = vsel %vm11972_vm4, %v4450_v22, %v4683_v39  ;;  %v12209_v8 = vpop.f32.mrb[0].mxu1  ;;  %v10519_v27 = vld [vmem:[%s13874_s3 + $0x178] sm:$0xff]  }
 0x28c   : > { %4682 = vst [vmem:[#allocation4 + $0x70] sm:$0xf] %v4449_v29  ;;  %4685 = vst [vmem:[#allocation4 + $0x74] sm:$0x1] %v4684_v16  ;;  %v9809_v22 = vpop.f32.mrb[1].mxu1  ;;  %v10520_v5 = vld [vmem:[%s13874_s3 + $0x1e0] sm:$0xff]   ;;  %10030 = vmatprep.subr.bf16.mxu1 %v10519_v27 }
 0x28d   : > { %v9811_v61 = vpop.f32.mrb[2].mxu1  ;;  %10136 = vmatprep.subr.bf16.mxu0 %v10520_v5  ;;  %10031 = vmatpush3.bf16.msra.mxu1 %v10522_v12 }
 0x28e   : > { %v9812_v53 = vpop.f32.mrb[3].mxu1  ;;  %10137 = vmatpush3.bf16.msra.mxu0 %v10523_v42 }
 0x28f   : > { %10138 = vmatprep.subr.bf16.mxu0 %v10524_v33 }
 0x290   : > { %v4909_v56 = vld [vmem:[#allocation4 + $0x78] sm:$0xf] }
 0x291   : > { %v4906_v54 = vld [vmem:[#allocation4 + $0x6c] sm:$0xf]  ;;  %v5168_v24 = vshrl.u32 %v4909_v56, 16  ;;  %v5171_v20 = vshll.u32 %v4909_v56, 16  ;;  %v12241_v56 = vadd.f32 %v9812_v53, %v9811_v61 }
 0x292   : > { %v5144_v55 = vshrl.u32 %v4906_v54, 16  ;;  %v5147_v58 = vshll.u32 %v4906_v54, 16  ;;  %v5418_v59 = vld [vmem:[#allocation4 + $0x6c] sm:$0xe]  ;;  %v10488_v9 = vld [vmem:[#allocation4 + $0x78] sm:$0xff]   ;;  %v12239_v54 = vadd.f32 %v9809_v22, %v12209_v8 }
 0x293   : > { %v10486_v44 = vld [vmem:[#allocation4 + $0x6c] sm:$0xff]   ;;  %v4908_v21 = vld [vmem:[#allocation4 + $0x74] sm:$0x1]  ;;  %v9513_v25 = vrot.slane %v5418_v59, 9  ;;  %v4910_v7 = vld [vmem:[#allocation4 + $0x7c] sm:$0xf] }
 0x294   : > { %v4907_v28 = vld [vmem:[#allocation4 + $0x70] sm:$0xf]  ;;  %v5146_v38 = vrot.slane %v5144_v55, 4  ;;  %v5149_v41 = vrot.slane %v5147_v58, 5  ;;  %8552 = vmatprep.mubr.bf16.mxu0 %v10486_v44  ;;  %v5163_v60 = vshll.u32 %v4908_v21, 16  ;;  %v5170_v19 = vrot.slane %v5168_v24, 4 }
 0x295   : > { %v5153_v40 = vshll.u32 %v4907_v28, 16  ;;  %v5157_v45 = vshrl.u32 %v4907_v28, 16  ;;  %v5419_v62 = vld [vmem:[#allocation4 + $0x70] sm:$0xf]  ;;  %v5420_v57 = vld [vmem:[#allocation4 + $0x74] sm:$0x1]  ;;  %8553 = vmatmul.mubr.bf16.gmra.mrb[64].mxu0 %v9528_v23 }
 0x296   : > { %v5150_v2 = vor.u32 %v5149_v41, %v5146_v38  ;;  %v5552_v6 = vrot.slane %v5419_v62, 5  ;;  %8560 = vmatprep.mubr.bf16.mxu0 %v10488_v9  ;;  %v5555_v11 = vrot.slane %v5420_v57, 5  ;;  %v4911_v17 = vld [vmem:[#allocation4 + $0x80] sm:$0x1]  ;;  %v5177_v3 = vshll.u32 %v4910_v7, 16  ;;  %v10490_v35 = vld [vmem:[#allocation4 + $0x6c] sm:$0xff]  }
 0x297   : > { %v5155_v0 = vrot.slane %v5153_v40, 5  ;;  %v5159_v4 = vrot.slane %v5157_v45, 4  ;;  %v5181_v18 = vshrl.u32 %v4910_v7, 16  ;;  %v5165_v32 = vrot.slane %v5163_v60, 5  ;;  %v10525_v44 = vld [vmem:[%s13874_s3 + $0x1a8] sm:$0xff]   ;;  %v10526_v28 = vld [vmem:[%s13874_s3 + $0x1f0] sm:$0xff]  }
 0x298   : > { %v5151_v48 = vrot.slane %v5150_v2, 4  ;;  %v5554_v15 = vrot.slane %v5552_v6, 4  ;;  %v5187_v26 = vshll.u32 %v4911_v17, 16  ;;  %v5553_v39 = vsel %vm10789_vm6, %v9513_v25, %v5552_v6  ;;  %v6769_v23 = vld [vmem:[#allocation4 + $0x1c] sm:$0xf]  ;;  %10139 = vmatpush3.bf16.msra.mxu0 %v10525_v44  ;;  %v10529_v24 = vld [vmem:[%s13874_s3 + $0x1f8] sm:$0xff]  }
 0x299   : > { %v5160_v13 = vor.u32 %v5159_v4, %v5155_v0  ;;  %v5173_v30 = vrot.slane %v5171_v20, 5  ;;  %v5179_v49 = vrot.slane %v5177_v3, 5  ;;  %v5183_v47 = vrot.slane %v5181_v18, 4  ;;  %v6770_v40 = vld [vmem:[#allocation4 + $0x20] sm:$0x1]  ;;  %v10528_v45 = vld [vmem:[%s13874_s3 + $0x1b0] sm:$0xff]   ;;  %10140 = vmatprep.subr.bf16.mxu0 %v10526_v28 }
 0x29a   : > { %v5556_v43 = vsel %vm10789_vm6, %v5554_v15, %v5555_v11  ;;  %v5156_v29 = vsel %vm10809_vm11, %v5151_v48, %v5155_v0  ;;  %v5189_v59 = vrot.slane %v5187_v26, 5  ;;  %v6817_v21 = vshrl.u32 %v6768_v46, 16  ;;  %v5823_v62 = vld [vmem:[#allocation4 + $0xc] sm:$0xf]  ;;  %v5824_v2 = vld [vmem:[#allocation4 + $0x10] sm:$0xf] }
 0x29b   : > { %v5161_v31 = vrot.slane %v5160_v13, 4  ;;  %v9529_v14 = vcombine.low %v5553_v39, %v5556_v43  ;;  %v5174_v52 = vor.u32 %v5173_v30, %v5170_v19  ;;  %v5184_v34 = vor.u32 %v5183_v47, %v5179_v49  ;;  %v10492_v25 = vld [vmem:[#allocation4 + $0x78] sm:$0xff]   ;;  %v12259_v11 = vld [vmem:[#allocation4 + $0x10] sm:$0xf]  ;;  %v10530_v15 = vld [vmem:[%s13874_s3 + $0x1b8] sm:$0xff]  }
 0x29c   : > { %v6820_v38 = vshll.u32 %v6768_v46, 16  ;;  %v6826_v60 = vshll.u32 %v6769_v23, 16  ;;  %v6830_v57 = vshrl.u32 %v6769_v23, 16  ;;  %v6819_v0 = vrot.slane %v6817_v21, 4  ;;  %10141 = vmatpush3.bf16.msra.mxu0 %v10528_v45  ;;  %v10532_v43 = vld [vmem:[%s13874_s3 + $0x200] sm:$0xff]  }
 0x29d   : > { %v5166_v16 = vsel %vm10809_vm11, %v5161_v31, %v5165_v32  ;;  %8561 = vmatmul.mubr.bf16.gmra.mrb[68].mxu0 %v9529_v14  ;;  %v5175_v55 = vrot.slane %v5174_v52, 4  ;;  %v5185_v58 = vrot.slane %v5184_v34, 4  ;;  %v6836_v6 = vshll.u32 %v6770_v40, 16  ;;  %v12269_v32 = vld [vmem:[#allocation4 + $0xc] sm:$0xe]  ;;  %10142 = vmatprep.subr.bf16.mxu0 %v10529_v24 }
 0x29e   : > { %v9497_v50 = vcombine.low %v5156_v29, %v5166_v16  ;;  %v6822_v4 = vrot.slane %v6820_v38, 5  ;;  %v5872_v7 = vshrl.u32 %v5823_v62, 16  ;;  %v5875_v48 = vshll.u32 %v5823_v62, 16  ;;  %v12277_v47 = vld [vmem:[#allocation4 + $0x14] sm:$0x1]  ;;  %10350 = vmatprep.subr.bf16.mxu1 %v10532_v43 }
 0x29f   : > { %v5180_v8 = vsel %vm10809_vm11, %v5175_v55, %v5179_v49  ;;  %v5190_v9 = vsel %vm10809_vm11, %v5185_v58, %v5189_v59  ;;  %v5881_v17 = vshll.u32 %v5824_v2, 16  ;;  %v5885_v19 = vshrl.u32 %v5824_v2, 16  ;;  %v12298_v44 = vld [vmem:[#allocation4 + $0x24] sm:$0xf]  ;;  %v6772_v45 = vld [vmem:[#allocation4 + $0x28] sm:$0xf] }
 0x2a0   : > { %8399 = vmatprep.mubr.bf16.mxu1 %v9497_v50  ;;  %v9498_v41 = vcombine.low %v5180_v8, %v5190_v9  ;;  %v12265_v18 = vrot.slane %v6826_v60, 5  ;;  %v12267_v31 = vrot.slane %v6830_v57, 4  ;;  %v6823_v30 = vor.u32 %v6822_v4, %v6819_v0  ;;  %10143 = vmatpush3.bf16.msra.mxu0 %v10530_v15  ;;  %v12309_v24 = vld [vmem:[#allocation4 + $0x7c] sm:$0xf]  ;;  %v4700_v0 = vld [vmem:[#allocation4 + $0x90] sm:$0xf] }
 0x2a1   : > { %8400 = vmatmul.mubr.bf16.gmra.mrb[36].mxu1 %v10490_v35  ;;  %v12275_v49 = vrot.slane %v6836_v6, 5  ;;  %v6433_v22 = vrot.slane %v12259_v11, 5  ;;  %v12281_v16 = vrot.slane %v5872_v7, 4  ;;  %v12283_v14 = vrot.slane %v5875_v48, 5  ;;  %v12292_v35 = vld [vmem:[#allocation4 + $0x14] sm:$0x1]  ;;  %10302 = vmatprep.subr.bf16.mxu0 %v10532_v43 }
 0x2a2   : > { %8407 = vmatprep.mubr.bf16.mxu1 %v9498_v41  ;;  %v12286_v42 = vrot.slane %v5881_v17, 5  ;;  %v12288_v50 = vrot.slane %v5885_v19, 4  ;;  %v9568_v53 = vrot.slane %v12269_v32, 9  ;;  %v6436_v33 = vrot.slane %v12277_v47, 5 }
 0x2a3   : > { %v12294_v58 = vrot.slane %v6823_v30, 4  ;;  %v6833_v59 = vor.u32 %v12267_v31, %v12265_v18  ;;  %v12302_v9 = vrot.slane %v6433_v22, 4  ;;  %v5878_v28 = vor.u32 %v12283_v14, %v12281_v16  ;;  %v5826_v16 = vld [vmem:[#allocation4 + $0x18] sm:$0xf] }
 0x2a4   : > { %v5888_v41 = vor.u32 %v12288_v50, %v12286_v42  ;;  %v5891_v40 = vshll.u32 %v12292_v35, 16  ;;  %v6841_v2 = vshrl.u32 %v12298_v44, 16  ;;  %v6844_v7 = vshll.u32 %v12298_v44, 16  ;;  %v12326_v44 = vld [vmem:[#allocation4 + $0x18] sm:$0xe] }
 0x2a5   : > { %v6850_v19 = vshll.u32 %v6772_v45, 16  ;;  %v12383_v47 = vsel %vm10789_vm6, %v9568_v53, %v6433_v22  ;;  %v6829_v11 = vsel %vm10809_vm11, %v12294_v58, %v12265_v18 }
 0x2a6   : > { %v10292_v13 = vpop.f32.mrb[20].mxu0 }
 0x2a7   : > { %v4132_v20 = vadd.f32 %v12179_v37, %v10292_v13  ;;  %v4123_v3 = vpop.f32.mrb[21].mxu0  ;;  %v4693_v13 = vld [vmem:[#allocation4 + $0x84] sm:$0xf] }
 0x2a8   : > { %v4124_v26 = vadd.f32 %v12179_v37, %v4123_v3  ;;  %v10293_v39 = vpop.f32.mrb[22].mxu0  ;;  %v4704_v3 = vld [vmem:[#allocation4 + $0x98] sm:$0x1] }
 0x2a9   : > { %8408 = vmatmul.mubr.bf16.gmra.mrb[40].mxu1 %v10492_v25  ;;  %v4192_v27 = vmax.f32 %v4132_v20, 0.0  ;;  %v4135_v5 = vadd.f32 %v12179_v37, %v10293_v39  ;;  %v4126_v29 = vpop.f32.mrb[23].mxu0 }
 0x2aa   : > { %v4190_v61 = vmax.f32 %v4124_v26, 0.0  ;;  %v4127_v12 = vadd.f32 %v12179_v37, %v4126_v29  ;;  %v5559_v26 = vrot.slane %v12309_v24, 5  ;;  %v4697_v29 = vld [vmem:[#allocation4 + $0x8c] sm:$0x1]  ;;  %v12338_v24 = vrot.slane %v5888_v41, 4 }
 0x2ab   : > { %v9763_v52 = vpack.c.bf16 %v4192_v27, %v4192_v27  ;;  %v4193_v34 = vmax.f32 %v4135_v5, 0.0 }
 0x2ac   : > { %v9761_v46 = vpack.c.bf16 %v4190_v61, %v4190_v61  ;;  %v4191_v55 = vmax.f32 %v4127_v12, 0.0 }
 0x2ad   : > { %v4486_v23 = vshrl.u32 %v9763_v52, 16  ;;  %v9764_v8 = vpack.c.bf16 %v4193_v34, %v4193_v34  ;;  %v4489_v62 = vshll.u32 %v9763_v52, 16  ;;  %v12318_v52 = vld [vmem:[#allocation4 + $0x2c] sm:$0x1] }
 0x2ae   : > { %v4469_v21 = vshrl.u32 %v9761_v46, 16  ;;  %v9762_v38 = vpack.c.bf16 %v4191_v55, %v4191_v55  ;;  %v4472_v6 = vshll.u32 %v9761_v46, 16  ;;  %v12324_v46 = vrot.slane %v6833_v59, 4 }
 0x2af   : > { %v4488_v60 = vrot.slane %v4486_v23, 7  ;;  %v4494_v57 = vshrl.u32 %v9764_v8, 16  ;;  %v4497_v17 = vshll.u32 %v9764_v8, 16  ;;  %v6854_v55 = vshrl.u32 %v6772_v45, 16  ;;  %v12328_v23 = vld [vmem:[#allocation4 + $0x1c] sm:$0xf] }
 0x2b0   : > { %v4471_v4 = vrot.slane %v4469_v21, 7  ;;  %v4477_v25 = vshrl.u32 %v9762_v38, 16  ;;  %v4480_v43 = vshll.u32 %v9762_v38, 16  ;;  %v5423_v38 = vld [vmem:[#allocation4 + $0x80] sm:$0x1]  ;;  %v5561_v59 = vrot.slane %v5559_v26, 4 }
 0x2b1   : > { %v4491_v48 = vor.u32 %v4489_v62, %v4488_v60  ;;  %v4496_v15 = vrot.slane %v4494_v57, 7  ;;  %v4492_v39 = vrot.slane %v4488_v60, 4  ;;  %v12334_v60 = vld [vmem:[#allocation4 + $0x1c] sm:$0xf]  ;;  %v5896_v62 = vshrl.u32 %v5826_v16, 16 }
 0x2b2   : > { %v4474_v20 = vor.u32 %v4472_v6, %v4471_v4  ;;  %v4479_v31 = vrot.slane %v4477_v25, 7  ;;  %v4475_v14 = vrot.slane %v4471_v4, 4  ;;  %v5899_v57 = vshll.u32 %v5826_v16, 16  ;;  %v12342_v4 = vld [vmem:[#allocation4 + $0x30] sm:$0xf] }
 0x2b3   : > { %v4701_v30 = vsel %vm11966_vm14, %v4491_v48, %v4700_v0  ;;  %v4499_v27 = vor.u32 %v4497_v17, %v4496_v15  ;;  %v4501_v5 = vrot.slane %v4496_v15, 4  ;;  %v12336_v45 = vrot.slane %v5878_v28, 4  ;;  %v5421_v6 = vld [vmem:[#allocation4 + $0x78] sm:$0xe] }
 0x2b4   : > { %4702 = vst [vmem:[#allocation4 + $0x90] sm:$0xf] %v4701_v30  ;;  %v4694_v61 = vsel %vm11966_vm14, %v4474_v20, %v4693_v13  ;;  %v4482_v12 = vor.u32 %v4480_v43, %v4479_v31  ;;  %v4484_v50 = vrot.slane %v4479_v31, 4  ;;  %v12340_v0 = vrot.slane %v5891_v40, 5 }
 0x2b5   : > { %4695 = vst [vmem:[#allocation4 + $0x84] sm:$0xf] %v4694_v61  ;;  %v4500_v34 = vsel %vm10821_vm12, %v4492_v39, %v4499_v27  ;;  %v4705_v35 = vsel %vm11972_vm4, %v4501_v5, %v4704_v3  ;;  %v12344_v25 = vrot.slane %v6841_v2, 4  ;;  %v12346_v48 = vrot.slane %v6844_v7, 5 }
 0x2b6   : > { %4703 = vst [vmem:[#allocation4 + $0x94] sm:$0xf] %v4500_v34  ;;  %4706 = vst [vmem:[#allocation4 + $0x98] sm:$0x1] %v4705_v35  ;;  %v4483_v8 = vsel %vm10821_vm12, %v4475_v14, %v4482_v12  ;;  %v4698_v21 = vsel %vm11972_vm4, %v4484_v50, %v4697_v29  ;;  %v12348_v13 = vrot.slane %v6850_v19, 5  ;;  %v6860_v15 = vshll.u32 %v12318_v52, 16 }
 0x2b7   : > { %4696 = vst [vmem:[#allocation4 + $0x88] sm:$0xf] %v4483_v8  ;;  %4699 = vst [vmem:[#allocation4 + $0x8c] sm:$0x1] %v4698_v21  ;;  %v5562_v17 = vrot.slane %v5423_v38, 5  ;;  %v12351_v20 = vrot.slane %v6854_v55, 4  ;;  %v12371_v14 = vsel %vm10789_vm6, %v12302_v9, %v6436_v33  ;;  %v6839_v35 = vsel %vm10809_vm11, %v12324_v46, %v12275_v49 }
 0x2b8   : > { %v9569_v28 = vrot.slane %v12326_v44, 9  ;;  %v6440_v41 = vrot.slane %v12328_v23, 5  ;;  %v12355_v40 = vrot.slane %v5896_v62, 4  ;;  %v12357_v3 = vrot.slane %v5899_v57, 5  ;;  %v6777_v23 = vld [vmem:[#allocation4 + $0x3c] sm:$0xf] }
 0x2b9   : > { %v5905_v2 = vshll.u32 %v12334_v60, 16  ;;  %v5909_v7 = vshrl.u32 %v12334_v60, 16  ;;  %v9514_v31 = vrot.slane %v5421_v6, 9  ;;  %v5563_v19 = vsel %vm10789_vm6, %v5561_v59, %v5562_v17 }
 0x2ba   : > { %v6865_v43 = vshrl.u32 %v12342_v4, 16  ;;  %v6868_v33 = vshll.u32 %v12342_v4, 16 }
 0x2bb   : > { %v4915_v30 = vld [vmem:[#allocation4 + $0x90] sm:$0xf]  ;;  %v5560_v27 = vsel %vm10789_vm6, %v9514_v31, %v5559_v26 }
 0x2bc   : > { %v4912_v39 = vld [vmem:[#allocation4 + $0x84] sm:$0xf]  ;;  %v9530_v12 = vcombine.low %v5560_v27, %v5563_v19  ;;  %v5216_v49 = vshrl.u32 %v4915_v30, 16  ;;  %v12392_v19 = vcombine.low %v6829_v11, %v6839_v35 }
 0x2bd   : > { %v5192_v5 = vshrl.u32 %v4912_v39, 16  ;;  %v5195_v29 = vshll.u32 %v4912_v39, 16  ;;  %v5424_v16 = vld [vmem:[#allocation4 + $0x84] sm:$0xe]  ;;  %v10497_v50 = vld [vmem:[#allocation4 + $0x90] sm:$0xff]   ;;  %v5884_v39 = vsel %vm10809_vm11, %v12336_v45, %v12286_v42 }
 0x2be   : > { %v10494_v61 = vld [vmem:[#allocation4 + $0x84] sm:$0xff]   ;;  %v4914_v9 = vld [vmem:[#allocation4 + $0x8c] sm:$0x1]  ;;  %v9515_v6 = vrot.slane %v5424_v16, 9  ;;  %v4916_v31 = vld [vmem:[#allocation4 + $0x94] sm:$0xf] }
 0x2bf   : > { %v4913_v34 = vld [vmem:[#allocation4 + $0x88] sm:$0xf]  ;;  %v5194_v26 = vrot.slane %v5192_v5, 4  ;;  %v5197_v55 = vrot.slane %v5195_v29, 5  ;;  %8568 = vmatprep.mubr.bf16.mxu0 %v10494_v61  ;;  %v5211_v38 = vshll.u32 %v4914_v9, 16  ;;  %v5894_v29 = vsel %vm10809_vm11, %v12338_v24, %v12340_v0  ;;  %v10503_v44 = vld [vmem:[#allocation4 + $0x90] sm:$0xff]  }
 0x2c0   : > { %v5201_v8 = vshll.u32 %v4913_v34, 16  ;;  %v5205_v21 = vshrl.u32 %v4913_v34, 16  ;;  %v5425_v62 = vld [vmem:[#allocation4 + $0x88] sm:$0xf]  ;;  %v5426_v57 = vld [vmem:[#allocation4 + $0x8c] sm:$0x1]  ;;  %8569 = vmatmul.mubr.bf16.gmra.mrb[72].mxu0 %v9530_v12 }
 0x2c1   : > { %v5198_v22 = vor.u32 %v5197_v55, %v5194_v26  ;;  %v5566_v59 = vrot.slane %v5425_v62, 5  ;;  %8576 = vmatprep.mubr.bf16.mxu0 %v10497_v50  ;;  %v5569_v17 = vrot.slane %v5426_v57, 5  ;;  %v4917_v5 = vld [vmem:[#allocation4 + $0x98] sm:$0x1]  ;;  %v5218_v61 = vrot.slane %v5216_v49, 4 }
 0x2c2   : > { %v5203_v53 = vrot.slane %v5201_v8, 5  ;;  %v5207_v46 = vrot.slane %v5205_v21, 4  ;;  %v5219_v16 = vshll.u32 %v4915_v30, 16  ;;  %v5225_v12 = vshll.u32 %v4916_v31, 16  ;;  %v6775_v34 = vld [vmem:[#allocation4 + $0x34] sm:$0xf] }
 0x2c3   : > { %v5199_v18 = vrot.slane %v5198_v22, 4  ;;  %v5568_v27 = vrot.slane %v5566_v59, 4  ;;  %v5229_v50 = vshrl.u32 %v4916_v31, 16  ;;  %v5213_v9 = vrot.slane %v5211_v38, 5  ;;  %v6340_v62 = vld [vmem:[#allocation4 + $0x20] sm:$0x1] }
 0x2c4   : > { %v5208_v58 = vor.u32 %v5207_v46, %v5203_v53  ;;  %v5567_v26 = vsel %vm10789_vm6, %v9515_v6, %v5566_v59  ;;  %v5221_v45 = vrot.slane %v5219_v16, 5  ;;  %v5227_v55 = vrot.slane %v5225_v12, 5  ;;  %v5828_v22 = vld [vmem:[#allocation4 + $0x20] sm:$0x1]  ;;  %v10500_v59 = vld [vmem:[#allocation4 + $0x84] sm:$0xff]  }
 0x2c5   : > { %v5570_v42 = vsel %vm10789_vm6, %v5568_v27, %v5569_v17  ;;  %v5231_v8 = vrot.slane %v5229_v50, 4  ;;  %v5235_v21 = vshll.u32 %v4917_v5, 16  ;;  %v5204_v24 = vsel %vm10809_vm11, %v5199_v18, %v5203_v53  ;;  %v5829_v12 = vld [vmem:[#allocation4 + $0x24] sm:$0xf] }
 0x2c6   : > { %v5209_v35 = vrot.slane %v5208_v58, 4  ;;  %v9531_v30 = vcombine.low %v5567_v26, %v5570_v42  ;;  %v6874_v57 = vshll.u32 %v6775_v34, 16  ;;  %v5222_v49 = vor.u32 %v5221_v45, %v5218_v61  ;;  %v6776_v61 = vld [vmem:[#allocation4 + $0x38] sm:$0x1] }
 0x2c7   : > { %v5232_v11 = vor.u32 %v5231_v8, %v5227_v55  ;;  %v6878_v46 = vshrl.u32 %v6775_v34, 16  ;;  %v6847_v6 = vor.u32 %v12346_v48, %v12344_v25  ;;  %v6442_v17 = vrot.slane %v6440_v41, 4  ;;  %v12459_v8 = vld [vmem:[#allocation4 + $0x2c] sm:$0x1] }
 0x2c8   : > { %v5214_v0 = vsel %vm10809_vm11, %v5209_v35, %v5213_v9  ;;  %8577 = vmatmul.mubr.bf16.gmra.mrb[76].mxu0 %v9531_v30  ;;  %v6443_v31 = vrot.slane %v6340_v62, 5  ;;  %v12416_v53 = vrot.slane %v5905_v2, 5  ;;  %v5223_v18 = vrot.slane %v5222_v49, 4  ;;  %v12443_v9 = vld [vmem:[#allocation4 + $0x28] sm:$0xf] }
 0x2c9   : > { %v9499_v38 = vcombine.low %v5204_v24, %v5214_v0  ;;  %v5233_v58 = vrot.slane %v5232_v11, 4  ;;  %v5237_v27 = vrot.slane %v5235_v21, 5  ;;  %v5911_v5 = vrot.slane %v5909_v7, 4  ;;  %v5830_v21 = vld [vmem:[#allocation4 + $0x28] sm:$0xf] }
 0x2ca   : > { %v6857_v25 = vor.u32 %v12351_v20, %v12348_v13  ;;  %v5902_v48 = vor.u32 %v12357_v3, %v12355_v40  ;;  %v6867_v16 = vrot.slane %v6865_v43, 4  ;;  %v6870_v2 = vrot.slane %v6868_v33, 5  ;;  %v12441_v33 = vld [vmem:[#allocation4 + $0x24] sm:$0xe]  ;;  %v6778_v0 = vld [vmem:[#allocation4 + $0x40] sm:$0xf] }
 0x2cb   : > { %8415 = vmatprep.mubr.bf16.mxu1 %v9499_v38  ;;  %v5228_v50 = vsel %vm10809_vm11, %v5223_v18, %v5227_v55  ;;  %v5238_v60 = vsel %vm10809_vm11, %v5233_v58, %v5237_v27  ;;  %v12432_v7 = vrot.slane %v6874_v57, 5  ;;  %v6880_v34 = vrot.slane %v6878_v46, 4  ;;  %v4718_v24 = vld [vmem:[#allocation4 + $0xb0] sm:$0x1] }
 0x2cc   : > { %8416 = vmatmul.mubr.bf16.gmra.mrb[44].mxu1 %v10500_v59  ;;  %v9500_v20 = vcombine.low %v5228_v50, %v5238_v60  ;;  %v12436_v40 = vsel %vm10789_vm6, %v6442_v17, %v6443_v31  ;;  %v5915_v3 = vshll.u32 %v5828_v22, 16  ;;  %v6884_v43 = vshll.u32 %v6776_v61, 16 }
 0x2cd   : > { %v12438_v35 = vcombine.low %v5884_v39, %v5894_v29  ;;  %v5912_v4 = vor.u32 %v5911_v5, %v12416_v53  ;;  %v5920_v26 = vshrl.u32 %v5829_v12, 16  ;;  %v5923_v42 = vshll.u32 %v5829_v12, 16 }
 0x2ce   : > { %8423 = vmatprep.mubr.bf16.mxu1 %v9500_v20  ;;  %v12445_v45 = vrot.slane %v6847_v6, 4  ;;  %v12449_v55 = vrot.slane %v6860_v15, 5  ;;  %v12457_v39 = vsel %vm10789_vm6, %v9569_v28, %v6440_v41  ;;  %v6871_v29 = vor.u32 %v6870_v2, %v6867_v16 }
 0x2cf   : > { %v12461_v62 = vrot.slane %v6857_v25, 4  ;;  %v12465_v52 = vrot.slane %v5902_v48, 4  ;;  %v6881_v15 = vor.u32 %v6880_v34, %v12432_v7  ;;  %v12468_v30 = vrot.slane %v5915_v3, 5  ;;  %v12493_v3 = vld [vmem:[#allocation4 + $0x2c] sm:$0x1] }
 0x2d0   : > { %v12470_v28 = vrot.slane %v6884_v43, 5  ;;  %v6447_v57 = vrot.slane %v12443_v9, 5  ;;  %v12474_v49 = vrot.slane %v5912_v4, 4  ;;  %v12477_v22 = vrot.slane %v5920_v26, 4 }
 0x2d1   : > { %v12479_v46 = vrot.slane %v5923_v42, 5  ;;  %v12482_v17 = vrot.slane %v6871_v29, 4  ;;  %v5929_v31 = vshll.u32 %v5830_v21, 16  ;;  %v5933_v18 = vshrl.u32 %v5830_v21, 16  ;;  %v6779_v21 = vld [vmem:[#allocation4 + $0x44] sm:$0x1] }
 0x2d2   : > { %v12485_v5 = vrot.slane %v6881_v15, 4  ;;  %v6889_v61 = vshrl.u32 %v6777_v23, 16  ;;  %v6892_v25 = vshll.u32 %v6777_v23, 16  ;;  %v6898_v12 = vshll.u32 %v6778_v0, 16 }
 0x2d3   : > { %v10296_v38 = vpop.f32.mrb[24].mxu0  ;;  %v6902_v50 = vshrl.u32 %v6778_v0, 16  ;;  %v12491_v20 = vrot.slane %v6447_v57, 4  ;;  %v5926_v43 = vor.u32 %v12479_v46, %v12477_v22  ;;  %v12497_v42 = vrot.slane %v5929_v31, 5 }
 0x2d4   : > { %v4148_v59 = vadd.f32 %v12179_v37, %v10296_v38  ;;  %v4139_v6 = vpop.f32.mrb[25].mxu0  ;;  %8424 = vmatmul.mubr.bf16.gmra.mrb[48].mxu1 %v10503_v44  ;;  %v12499_v29 = vrot.slane %v5933_v18, 4  ;;  %v12501_v0 = vrot.slane %v6889_v61, 4  ;;  %v5939_v31 = vshll.u32 %v12493_v3, 16 }
 0x2d5   : > { %v4140_v58 = vadd.f32 %v12179_v37, %v4139_v6  ;;  %v10297_v27 = vpop.f32.mrb[26].mxu0  ;;  %v12507_v6 = vrot.slane %v6902_v50, 4 }
 0x2d6   : > { %v4196_v48 = vmax.f32 %v4148_v59, 0.0  ;;  %v4151_v16 = vadd.f32 %v12179_v37, %v10297_v27  ;;  %v4142_v2 = vpop.f32.mrb[27].mxu0  ;;  %v12505_v59 = vrot.slane %v6898_v12, 5  ;;  %v5936_v61 = vor.u32 %v12499_v29, %v12497_v42 }
 0x2d7   : > { %v4194_v60 = vmax.f32 %v4140_v58, 0.0  ;;  %v4143_v34 = vadd.f32 %v12179_v37, %v4142_v2  ;;  %v12503_v37 = vrot.slane %v6892_v25, 5  ;;  %v6908_v58 = vshll.u32 %v6779_v21, 16  ;;  %v4714_v25 = vld [vmem:[#allocation4 + $0xa8] sm:$0xf] }
 0x2d8   : > { %v9767_v4 = vpack.c.bf16 %v4196_v48, %v4196_v48  ;;  %v4197_v26 = vmax.f32 %v4151_v16, 0.0  ;;  %v12510_v16 = vld [vmem:[#allocation4 + $0x94] sm:$0xf] }
 0x2d9   : > { %v9765_v15 = vpack.c.bf16 %v4194_v60, %v4194_v60  ;;  %v4195_v23 = vmax.f32 %v4143_v34, 0.0  ;;  %v6895_v50 = vor.u32 %v12503_v37, %v12501_v0  ;;  %v12518_v21 = vld [vmem:[#allocation4 + $0x34] sm:$0xf] }
 0x2da   : > { %v4520_v44 = vshrl.u32 %v9767_v4, 16  ;;  %v9768_v38 = vpack.c.bf16 %v4197_v26, %v4197_v26  ;;  %v4523_v27 = vshll.u32 %v9767_v4, 16  ;;  %v4707_v26 = vld [vmem:[#allocation4 + $0x9c] sm:$0xf]  ;;  %v6905_v4 = vor.u32 %v12507_v6, %v12505_v59 }
 0x2db   : > { %v4503_v22 = vshrl.u32 %v9765_v15, 16  ;;  %v9766_v46 = vpack.c.bf16 %v4195_v23, %v4195_v23  ;;  %v4506_v60 = vshll.u32 %v9765_v15, 16 }
 0x2dc   : > { %v4522_v18 = vrot.slane %v4520_v44, 7  ;;  %v4528_v48 = vshrl.u32 %v9768_v38, 16  ;;  %v4531_v3 = vshll.u32 %v9768_v38, 16 }
 0x2dd   : > { %v4505_v2 = vrot.slane %v4503_v22, 7  ;;  %v4511_v12 = vshrl.u32 %v9766_v46, 16  ;;  %v4514_v29 = vshll.u32 %v9766_v46, 16  ;;  %v5573_v22 = vrot.slane %v12510_v16, 5  ;;  %v5832_v46 = vld [vmem:[#allocation4 + $0x30] sm:$0xf] }
 0x2de   : > { %v4525_v34 = vor.u32 %v4523_v27, %v4522_v18  ;;  %v4530_v23 = vrot.slane %v4528_v48, 7  ;;  %v4526_v15 = vrot.slane %v4522_v18, 4  ;;  %v4711_v27 = vld [vmem:[#allocation4 + $0xa4] sm:$0x1]  ;;  %v12523_v48 = vld [vmem:[#allocation4 + $0x30] sm:$0xe] }
 0x2df   : > { %v4508_v44 = vor.u32 %v4506_v60, %v4505_v2  ;;  %v4513_v32 = vrot.slane %v4511_v12, 7  ;;  %v4509_v38 = vrot.slane %v4505_v2, 4  ;;  %v12527_v12 = vld [vmem:[#allocation4 + $0x38] sm:$0x1]  ;;  %v12536_v2 = vld [vmem:[#allocation4 + $0x34] sm:$0xf] }
 0x2e0   : > { %v4715_v11 = vsel %vm11966_vm14, %v4525_v34, %v4714_v25  ;;  %v4533_v0 = vor.u32 %v4531_v3, %v4530_v23  ;;  %v4535_v37 = vrot.slane %v4530_v23, 4  ;;  %v9814_v25 = vpop.f32.mrb[4].mxu1  ;;  %v12533_v34 = vrot.slane %v5926_v43, 4  ;;  %v5429_v23 = vld [vmem:[#allocation4 + $0x98] sm:$0x1] }
 0x2e1   : > { %4716 = vst [vmem:[#allocation4 + $0xa8] sm:$0xf] %v4715_v11  ;;  %v4708_v6 = vsel %vm11966_vm14, %v4508_v44, %v4707_v26  ;;  %v4516_v60 = vor.u32 %v4514_v29, %v4513_v32  ;;  %v4518_v41 = vrot.slane %v4513_v32, 4  ;;  %v13881_v11 = vrot.slane %v12518_v21, 5  ;;  %v9815_v3 = vpop.f32.mrb[5].mxu1 }
 0x2e2   : > { %4709 = vst [vmem:[#allocation4 + $0x9c] sm:$0xf] %v4708_v6  ;;  %v4534_v18 = vsel %vm10821_vm12, %v4526_v15, %v4533_v0  ;;  %v4719_v16 = vsel %vm11972_vm4, %v4535_v37, %v4718_v24  ;;  %v12542_v44 = vrot.slane %v5939_v31, 5  ;;  %v12544_v24 = vrot.slane %v6908_v58, 5  ;;  %v9817_v15 = vpop.f32.mrb[6].mxu1 }
 0x2e3   : > { %4717 = vst [vmem:[#allocation4 + $0xac] sm:$0xf] %v4534_v18  ;;  %4720 = vst [vmem:[#allocation4 + $0xb0] sm:$0x1] %v4719_v16  ;;  %v4517_v32 = vsel %vm10821_vm12, %v4509_v38, %v4516_v60  ;;  %v4712_v26 = vsel %vm11972_vm4, %v4518_v41, %v4711_v27  ;;  %v5575_v43 = vrot.slane %v5573_v22, 4  ;;  %v12546_v29 = vadd.f32 %v9815_v3, %v9814_v25  ;;  %v9818_v60 = vpop.f32.mrb[7].mxu1 }
 0x2e4   : > { %4710 = vst [vmem:[#allocation4 + $0xa0] sm:$0xf] %v4517_v32  ;;  %4713 = vst [vmem:[#allocation4 + $0xa4] sm:$0x1] %v4712_v26  ;;  %v12549_v37 = vld [vmem:[#allocation4 + $0x38] sm:$0x1]  ;;  %v6863_v41 = vsel %vm10809_vm11, %v12461_v62, %v12449_v55  ;;  %v12561_v16 = vadd.f32 %v9818_v60, %v9817_v15  ;;  %v5908_v62 = vsel %vm10809_vm11, %v12465_v52, %v12416_v53 }
 0x2e5   : > { %13907 = vst [vmem:[#allocation6_spill] sm:$0xff] %v12546_v29  ;;  %v5944_v38 = vshrl.u32 %v5832_v46, 16  ;;  %v5427_v6 = vld [vmem:[#allocation4 + $0x90] sm:$0xe]  ;;  %v12555_v31 = vrot.slane %v5936_v61, 4  ;;  %v12557_v58 = vrot.slane %v6895_v50, 4  ;;  %v6887_v53 = vsel %vm10809_vm11, %v12485_v5, %v12470_v28 }
 0x2e6   : > { %v12559_v27 = vrot.slane %v6905_v4, 4  ;;  %v5576_v18 = vrot.slane %v5429_v23, 5  ;;  %13908 = vst [vmem:[#allocation7_spill] sm:$0xff] %v12561_v16  ;;  %v12565_v25 = vrot.slane %v13881_v11, 4  ;;  %v5947_v26 = vshll.u32 %v5832_v46, 16 }
 0x2e7   : > { %v5953_v3 = vshll.u32 %v12536_v2, 16  ;;  %v9516_v61 = vrot.slane %v5427_v6, 9  ;;  %v6853_v4 = vsel %vm10809_vm11, %v12445_v45, %v12348_v13  ;;  %v12577_v23 = vrot.slane %v5944_v38, 4  ;;  %v6781_v55 = vld [vmem:[#allocation4 + $0x4c] sm:$0xf] }
 0x2e8   : > { %v5577_v50 = vsel %vm10789_vm6, %v5575_v43, %v5576_v18  ;;  %v4921_v60 = vld [vmem:[#allocation4 + $0xa8] sm:$0xf]  ;;  %v12579_v46 = vcombine.low %v6853_v4, %v6863_v41  ;;  %v5918_v43 = vsel %vm10809_vm11, %v12474_v49, %v12468_v30  ;;  %v13909_v13 = vrot.slane %v12441_v33, 9 }
 0x2e9   : > { %v4918_v15 = vld [vmem:[#allocation4 + $0x9c] sm:$0xf]  ;;  %v5574_v38 = vsel %vm10789_vm6, %v9516_v61, %v5573_v22  ;;  %v6877_v33 = vsel %vm10809_vm11, %v12482_v17, %v12432_v7  ;;  %v12614_v61 = vrot.slane %v5947_v26, 5  ;;  %v5264_v11 = vshrl.u32 %v4921_v60, 16 }
 0x2ea   : > { %v12595_v45 = vsel %vm10789_vm6, %v13909_v13, %v6447_v57  ;;  %v5240_v6 = vshrl.u32 %v4918_v15, 16  ;;  %v5243_v41 = vshll.u32 %v4918_v15, 16  ;;  %v5430_v18 = vld [vmem:[#allocation4 + $0x9c] sm:$0xe]  ;;  %v9532_v30 = vcombine.low %v5574_v38, %v5577_v50  ;;  %v10509_v9 = vld [vmem:[#allocation4 + $0xa8] sm:$0xff]  }
 0x2eb   : > { %13910 = vst [vmem:[#allocation8_spill] sm:$0xff] %v12595_v45  ;;  %v10506_v52 = vld [vmem:[#allocation4 + $0x9c] sm:$0xff]   ;;  %v13911_v57 = vrot.slane %v12459_v8, 5  ;;  %v4920_v4 = vld [vmem:[#allocation4 + $0xa4] sm:$0x1]  ;;  %v12616_v7 = vcombine.low %v5908_v62, %v5918_v43  ;;  %v12618_v8 = vcombine.low %v6877_v33, %v6887_v53  ;;  %v9517_v32 = vrot.slane %v5430_v18, 9 }
 0x2ec   : > { %v4919_v49 = vld [vmem:[#allocation4 + $0xa0] sm:$0xf]  ;;  %v5242_v28 = vrot.slane %v5240_v6, 4  ;;  %v5245_v5 = vrot.slane %v5243_v41, 5  ;;  %8584 = vmatprep.mubr.bf16.mxu0 %v10506_v52  ;;  %v5259_v13 = vshll.u32 %v4920_v4, 16  ;;  %v5932_v62 = vsel %vm10809_vm11, %v12533_v34, %v12497_v42  ;;  %v9820_v52 = vpop.f32.mrb[8].mxu1 }
 0x2ed   : > { %v12612_v22 = vsel %vm10789_vm6, %v12491_v20, %v13911_v57  ;;  %v5249_v50 = vshll.u32 %v4919_v49, 16  ;;  %v5253_v15 = vshrl.u32 %v4919_v49, 16  ;;  %v5431_v38 = vld [vmem:[#allocation4 + $0xa0] sm:$0xf]  ;;  %v5432_v0 = vld [vmem:[#allocation4 + $0xa4] sm:$0x1]  ;;  %8585 = vmatmul.mubr.bf16.gmra.mrb[80].mxu0 %v9532_v30 }
 0x2ee   : > { %13912 = vst [vmem:[#allocation9_spill] sm:$0xff] %v12612_v22  ;;  %13913 = vst [vmem:[#allocation10_spill] sm:$0xff] %v12616_v7  ;;  %v5246_v17 = vor.u32 %v5245_v5, %v5242_v28  ;;  %v5580_v26 = vrot.slane %v5431_v38, 5  ;;  %8592 = vmatprep.mubr.bf16.mxu0 %v10509_v9  ;;  %v5583_v6 = vrot.slane %v5432_v0, 5  ;;  %v4922_v41 = vld [vmem:[#allocation4 + $0xac] sm:$0xf]  ;;  %v5942_v9 = vsel %vm10809_vm11, %v12555_v31, %v12542_v44 }
 0x2ef   : > { %v5251_v20 = vrot.slane %v5249_v50, 5  ;;  %v5255_v57 = vrot.slane %v5253_v15, 4  ;;  %v4923_v30 = vld [vmem:[#allocation4 + $0xb0] sm:$0x1]  ;;  %v5266_v18 = vrot.slane %v5264_v11, 4  ;;  %v5267_v0 = vshll.u32 %v4921_v60, 16 }
 0x2f0   : > { %v5247_v43 = vrot.slane %v5246_v17, 4  ;;  %v5582_v49 = vrot.slane %v5580_v26, 4  ;;  %v5273_v33 = vshll.u32 %v4922_v41, 16  ;;  %v5277_v4 = vshrl.u32 %v4922_v41, 16  ;;  %v6780_v28 = vld [vmem:[#allocation4 + $0x48] sm:$0xf] }
 0x2f1   : > { %v5256_v53 = vor.u32 %v5255_v57, %v5251_v20  ;;  %v5261_v50 = vrot.slane %v5259_v13, 5  ;;  %v5581_v15 = vsel %vm10789_vm6, %v9517_v32, %v5580_v26  ;;  %v5269_v34 = vrot.slane %v5267_v0, 5  ;;  %v9821_v60 = vpop.f32.mrb[9].mxu1  ;;  %v5837_v7 = vld [vmem:[#allocation4 + $0x44] sm:$0x1] }
 0x2f2   : > { %v5584_v42 = vsel %vm10789_vm6, %v5582_v49, %v5583_v6  ;;  %v5275_v38 = vrot.slane %v5273_v33, 5  ;;  %v5279_v17 = vrot.slane %v5277_v4, 4  ;;  %v5283_v57 = vshll.u32 %v4923_v30, 16  ;;  %v9823_v26 = vpop.f32.mrb[10].mxu1  ;;  %v10512_v49 = vld [vmem:[#allocation4 + $0x9c] sm:$0xff]  }
 0x2f3   : > { %v5257_v5 = vrot.slane %v5256_v53, 4  ;;  %v5252_v11 = vsel %vm10809_vm11, %v5247_v43, %v5251_v20  ;;  %v9533_v31 = vcombine.low %v5581_v15, %v5584_v42  ;;  %v6913_v13 = vshrl.u32 %v6780_v28, 16  ;;  %v9824_v30 = vpop.f32.mrb[11].mxu1 }
 0x2f4   : > { %v5270_v53 = vor.u32 %v5269_v34, %v5266_v18  ;;  %v5280_v32 = vor.u32 %v5279_v17, %v5275_v38  ;;  %v6916_v6 = vshll.u32 %v6780_v28, 16  ;;  %v12638_v0 = vadd.f32 %v9821_v60, %v9820_v52  ;;  %v9826_v52 = vpop.f32.mrb[12].mxu1 }
 0x2f5   : > { %v5262_v44 = vsel %vm10809_vm11, %v5257_v5, %v5261_v50  ;;  %8593 = vmatmul.mubr.bf16.gmra.mrb[84].mxu0 %v9533_v31  ;;  %v6901_v20 = vsel %vm10809_vm11, %v12557_v58, %v12505_v59  ;;  %v12646_v43 = vrot.slane %v5953_v3, 5  ;;  %v13914_v18 = vshrl.u32 %v12536_v2, 16  ;;  %v9827_v15 = vpop.f32.mrb[13].mxu1 }
 0x2f6   : > { %v9501_v41 = vcombine.low %v5252_v11, %v5262_v44  ;;  %v5271_v4 = vrot.slane %v5270_v53, 4  ;;  %v5281_v28 = vrot.slane %v5280_v32, 4  ;;  %v5285_v5 = vrot.slane %v5283_v57, 5  ;;  %v9829_v17 = vpop.f32.mrb[14].mxu1 }
 0x2f7   : > { %v5959_v33 = vrot.slane %v13914_v18, 4  ;;  %v12650_v50 = vadd.f32 %v9824_v30, %v9823_v26  ;;  %v12652_v42 = vcombine.low %v5932_v62, %v5942_v9  ;;  %v6911_v59 = vsel %vm10809_vm11, %v12559_v27, %v12544_v24  ;;  %v5835_v24 = vld [vmem:[#allocation4 + $0x3c] sm:$0xf]  ;;  %v9830_v11 = vpop.f32.mrb[15].mxu1  ;;  %v12694_v26 = vld [vmem:[#allocation4 + $0x40] sm:$0xf] }
 0x2f8   : > { %8431 = vmatprep.mubr.bf16.mxu1 %v9501_v41  ;;  %v6922_v58 = vshll.u32 %v6781_v55, 16  ;;  %v6926_v3 = vshrl.u32 %v6781_v55, 16  ;;  %v5276_v2 = vsel %vm10809_vm11, %v5271_v4, %v5275_v38  ;;  %v5286_v34 = vsel %vm10809_vm11, %v5281_v28, %v5285_v5  ;;  %v6782_v38 = vld [vmem:[#allocation4 + $0x50] sm:$0x1]  ;;  %v5836_v30 = vld [vmem:[#allocation4 + $0x40] sm:$0xf] }
 0x2f9   : > { %8432 = vmatmul.mubr.bf16.gmra.mrb[52].mxu1 %v10512_v49  ;;  %13915 = vst [vmem:[#allocation11_spill] sm:$0xff] %v12652_v42  ;;  %v13916_v57 = vrot.slane %v12527_v12, 5  ;;  %v5950_v9 = vor.u32 %v12614_v61, %v12577_v23  ;;  %v9502_v27 = vcombine.low %v5276_v2, %v5286_v34  ;;  %v12671_v55 = vadd.f32 %v9827_v15, %v9826_v52  ;;  %v9832_v23 = vpop.f32.mrb[16].mxu1 }
 0x2fa   : > { %v12673_v44 = vrot.slane %v6913_v13, 4  ;;  %v12675_v31 = vrot.slane %v6916_v6, 5  ;;  %v12677_v60 = vadd.f32 %v9830_v11, %v9829_v17  ;;  %v13920_v12 = vrot.slane %v12518_v21, 5  ;;  %v12692_v13 = vld [vmem:[#allocation4 + $0x3c] sm:$0xe]  ;;  %v9833_v21 = vpop.f32.mrb[17].mxu1 }
 0x2fb   : > { %v12667_v62 = vsel %vm10789_vm6, %v12565_v25, %v13916_v57  ;;  %13918 = vst [vmem:[#allocation13_spill] sm:$0xff] %v12671_v55  ;;  %v13921_v25 = vrot.slane %v12523_v48, 9  ;;  %v5960_v61 = vor.u32 %v5959_v33, %v12646_v43  ;;  %v13923_v53 = vshll.u32 %v12549_v37, 16  ;;  %8439 = vmatprep.mubr.bf16.mxu1 %v9502_v27  ;;  %v9835_v28 = vpop.f32.mrb[18].mxu1 }
 0x2fc   : > { %13917 = vst [vmem:[#allocation12_spill] sm:$0xff] %v12667_v62  ;;  %13919 = vst [vmem:[#allocation14_spill] sm:$0xff] %v12677_v60  ;;  %v12696_v6 = vcombine.low %v6901_v20, %v6911_v59  ;;  %v12698_v48 = vrot.slane %v6922_v58, 5  ;;  %v6928_v49 = vrot.slane %v6926_v3, 4  ;;  %v5968_v18 = vshrl.u32 %v5835_v24, 16  ;;  %v10515_v58 = vld [vmem:[#allocation4 + $0xa8] sm:$0xff]  }
 0x2fd   : > { %v12685_v41 = vsel %vm10789_vm6, %v13921_v25, %v13920_v12  ;;  %v12690_v32 = vrot.slane %v13923_v53, 5  ;;  %v12702_v37 = vadd.f32 %v9833_v21, %v9832_v23  ;;  %v6932_v5 = vshll.u32 %v6782_v38, 16  ;;  %v10556_v20 = vld [vmem:[%s13873_s2] ss:$0 sm:$0xff]  ;;  %v9836_v2 = vpop.f32.mrb[19].mxu1 }
 0x2fe   : > { %13922 = vst [vmem:[#allocation15_spill] sm:$0xff] %v12685_v41  ;;  %13924 = vst [vmem:[#allocation16_spill] sm:$0xff] %v12696_v6  ;;  %v10300_v4 = vpop.f32.mrb[28].mxu0  ;;  %v5971_v52 = vshll.u32 %v5835_v24, 16  ;;  %v12707_v3 = vrot.slane %v5950_v9, 4  ;;  %v12712_v11 = vadd.f32 %v9836_v2, %v9835_v28  ;;  %v12714_v24 = vrot.slane %v5960_v61, 4 }
 0x2ff   : > { %v4164_v15 = vadd.f32 %v10556_v20, %v10300_v4  ;;  %v4155_v59 = vpop.f32.mrb[29].mxu0  ;;  %v13882_v38 = vrot.slane %v12694_v26, 5  ;;  %v6929_v9 = vor.u32 %v6928_v49, %v12698_v48  ;;  %v12718_v53 = vld [vmem:[#allocation4 + $0x44] sm:$0x1]  ;;  %v12720_v21 = vrot.slane %v5968_v18, 4 }
 0x300   : > { %v4156_v57 = vadd.f32 %v10556_v20, %v4155_v59  ;;  %v10301_v27 = vpop.f32.mrb[30].mxu0  ;;  %v12722_v59 = vrot.slane %v5971_v52, 5  ;;  %v5977_v28 = vshll.u32 %v5836_v30, 16  ;;  %v12724_v17 = vrot.slane %v6932_v5, 5  ;;  %v4728_v60 = vld [vmem:[#allocation4 + $0xc0] sm:$0xf] }
 0x301   : > { %v4200_v12 = vmax.f32 %v4164_v15, 0.0  ;;  %v4167_v25 = vadd.f32 %v10556_v20, %v10301_v27  ;;  %v4158_v23 = vpop.f32.mrb[31].mxu0  ;;  %8440 = vmatmul.mubr.bf16.gmra.mrb[56].mxu1 %v10515_v58  ;;  %v5981_v34 = vshrl.u32 %v5836_v30, 16  ;;  %v12735_v52 = vrot.slane %v13882_v38, 4  ;;  %v4721_v41 = vld [vmem:[#allocation4 + $0xb4] sm:$0xf] }
 0x302   : > { %v4198_v4 = vmax.f32 %v4156_v57, 0.0  ;;  %v4159_v33 = vadd.f32 %v10556_v20, %v4158_v23  ;;  %v12731_v20 = vrot.slane %v6929_v9, 4  ;;  %v12741_v23 = vrot.slane %v5977_v28, 5 }
 0x303   : > { %v9771_v2 = vpack.c.bf16 %v4200_v12, %v4200_v12  ;;  %v4201_v61 = vmax.f32 %v4167_v25, 0.0  ;;  %v12737_v25 = vld [vmem:[#allocation4 + $0xac] sm:$0xf]  ;;  %v12743_v9 = vrot.slane %v5981_v34, 4  ;;  %v5966_v51 = vsel %vm10809_vm11, %v12714_v24, %v12690_v32 }
 0x304   : > { %v9769_v15 = vpack.c.bf16 %v4198_v4, %v4198_v4  ;;  %v4199_v27 = vmax.f32 %v4159_v33, 0.0  ;;  %v13927_v63 = vor.u32 %v12675_v31, %v12673_v44  ;;  %v12790_v31 = vld [vmem:[#allocation4 + $0x48] sm:$0xf] }
 0x305   : > { %v4554_v58 = vshrl.u32 %v9771_v2, 16  ;;  %v9772_v57 = vpack.c.bf16 %v4201_v61, %v4201_v61  ;;  %v4557_v49 = vshll.u32 %v9771_v2, 16  ;;  %v4732_v2 = vld [vmem:[#allocation4 + $0xc8] sm:$0x1] }
 0x306   : > { %v4537_v5 = vshrl.u32 %v9769_v15, 16  ;;  %v9770_v12 = vpack.c.bf16 %v4199_v27, %v4199_v27  ;;  %v9920_v30 = vpop.f32.mrb[32].mxu0  ;;  %v4540_v38 = vshll.u32 %v9769_v15, 16 }
 0x307   : > { %v4556_v4 = vrot.slane %v4554_v58, 7  ;;  %v4562_v18 = vshrl.u32 %v9772_v57, 16  ;;  %v9921_v61 = vpop.f32.mrb[33].mxu0  ;;  %v4565_v6 = vshll.u32 %v9772_v57, 16 }
 0x308   : > { %v4539_v55 = vrot.slane %v4537_v5, 7  ;;  %v4545_v16 = vshrl.u32 %v9770_v12, 16  ;;  %v12745_v29 = vadd.f32 %v9921_v61, %v9920_v30  ;;  %v9923_v27 = vpop.f32.mrb[34].mxu0  ;;  %v4548_v45 = vshll.u32 %v9770_v12, 16 }
 0x309   : > { %v4559_v62 = vor.u32 %v4557_v49, %v4556_v4  ;;  %v4564_v42 = vrot.slane %v4562_v18, 7  ;;  %v9924_v33 = vpop.f32.mrb[35].mxu0  ;;  %v4560_v5 = vrot.slane %v4556_v4, 4  ;;  %v4725_v49 = vld [vmem:[#allocation4 + $0xbc] sm:$0x1] }
 0x30a   : > { %13925 = vst [vmem:[#allocation17_spill] sm:$0xff] %v12745_v29  ;;  %v4542_v58 = vor.u32 %v4540_v38, %v4539_v55  ;;  %v4547_v22 = vrot.slane %v4545_v16, 7  ;;  %v12748_v34 = vadd.f32 %v9924_v33, %v9923_v27  ;;  %v6783_v29 = vld [vmem:[#allocation4 + $0x54] sm:$0xf]  ;;  %v4543_v18 = vrot.slane %v4539_v55, 4 }
 0x30b   : > { %v4729_v15 = vsel %vm11966_vm14, %v4559_v62, %v4728_v60  ;;  %v4567_v30 = vor.u32 %v4565_v6, %v4564_v42  ;;  %v4569_v61 = vrot.slane %v4564_v42, 4  ;;  %v6784_v16 = vld [vmem:[#allocation4 + $0x58] sm:$0xf]  ;;  %v5984_v42 = vor.u32 %v12743_v9, %v12741_v23  ;;  %v5435_v55 = vld [vmem:[#allocation4 + $0xb0] sm:$0x1] }
 0x30c   : > { %4730 = vst [vmem:[#allocation4 + $0xc0] sm:$0xf] %v4729_v15  ;;  %v4722_v57 = vsel %vm11966_vm14, %v4542_v58, %v4721_v41  ;;  %v4550_v38 = vor.u32 %v4548_v45, %v4547_v22  ;;  %v4552_v28 = vrot.slane %v4547_v22, 4  ;;  %v5987_v62 = vshll.u32 %v5837_v7, 16  ;;  %v12764_v6 = vld [vmem:[#allocation4 + $0x48] sm:$0xe] }
 0x30d   : > { %4723 = vst [vmem:[#allocation4 + $0xb4] sm:$0xf] %v4722_v57  ;;  %v4568_v12 = vsel %vm10821_vm12, %v4560_v5, %v4567_v30  ;;  %v4733_v33 = vsel %vm11972_vm4, %v4569_v61, %v4732_v2  ;;  %v6937_v60 = vshrl.u32 %v6783_v29, 16  ;;  %v6940_v41 = vshll.u32 %v6783_v29, 16  ;;  %v5433_v5 = vld [vmem:[#allocation4 + $0xa8] sm:$0xe] }
 0x30e   : > { %4731 = vst [vmem:[#allocation4 + $0xc4] sm:$0xf] %v4568_v12  ;;  %4734 = vst [vmem:[#allocation4 + $0xc8] sm:$0x1] %v4733_v33  ;;  %v4551_v10 = vsel %vm10821_vm12, %v4543_v18, %v4550_v38  ;;  %v4726_v45 = vsel %vm11972_vm4, %v4552_v28, %v4725_v49  ;;  %v9926_v22 = vpop.f32.mrb[36].mxu0  ;;  %v13926_v9 = vrot.slane %v12737_v25, 5  ;;  %v6935_v15 = vsel %vm10809_vm11, %v12731_v20, %v12724_v17 }
 0x30f   : > { %4724 = vst [vmem:[#allocation4 + $0xb8] sm:$0xf] %v4551_v10  ;;  %4727 = vst [vmem:[#allocation4 + $0xbc] sm:$0x1] %v4726_v45  ;;  %v9927_v4 = vpop.f32.mrb[37].mxu0  ;;  %v6920_v27 = vrot.slane %v13927_v63, 4  ;;  %v13929_v49 = vor.u32 %v12722_v59, %v12720_v21 }
 0x310   : > { %v5589_v7 = vrot.slane %v13926_v9, 4  ;;  %v12775_v28 = vld [vmem:[#allocation4 + $0x5c] sm:$0x1]  ;;  %v6946_v29 = vshll.u32 %v6784_v16, 16  ;;  %v12777_v58 = vadd.f32 %v9927_v4, %v9926_v22  ;;  %v9929_v2 = vpop.f32.mrb[38].mxu0  ;;  %v13928_v30 = vrot.slane %v12718_v53, 5 }
 0x311   : > { %v6950_v44 = vshrl.u32 %v6784_v16, 16  ;;  %v9930_v24 = vpop.f32.mrb[39].mxu0  ;;  %v5590_v61 = vrot.slane %v5435_v55, 5  ;;  %v12795_v18 = vrot.slane %v13929_v49, 4  ;;  %v12797_v57 = vrot.slane %v5984_v42, 4 }
 0x312   : > { %v12788_v32 = vsel %vm10789_vm6, %v12735_v52, %v13928_v30  ;;  %v12799_v17 = vrot.slane %v5987_v62, 5  ;;  %v12801_v53 = vadd.f32 %v9930_v24, %v9929_v2  ;;  %v12803_v20 = vrot.slane %v6937_v60, 4  ;;  %v12848_v30 = vld [vmem:[%s13875_s4] ss:$0 sm:$0xff] }
 0x313   : > { %v12805_v52 = vrot.slane %v6940_v41, 5  ;;  %v6956_v38 = vshll.u32 %v12775_v28, 16  ;;  %v9518_v16 = vrot.slane %v5433_v5, 9  ;;  %v5591_v12 = vsel %vm10789_vm6, %v5589_v7, %v5590_v61  ;;  %v5842_v28 = vld [vmem:[#allocation4 + $0x58] sm:$0xf] }
 0x314   : > { %v12810_v33 = vrot.slane %v6946_v29, 5  ;;  %v4924_v59 = vld [vmem:[#allocation4 + $0xb4] sm:$0xf]  ;;  %v6925_v42 = vsel %vm10809_vm11, %v6920_v27, %v12698_v48  ;;  %v13930_v62 = vrot.slane %v12694_v26, 5  ;;  %v13931_v10 = vrot.slane %v12692_v13, 9 }
 0x315   : > { %v12824_v22 = vrot.slane %v6950_v44, 4  ;;  %v5992_v55 = vshrl.u32 %v12790_v31, 16  ;;  %v13932_v60 = vmov %v13926_v9  ;;  %v5288_v4 = vshrl.u32 %v4924_v59, 16  ;;  %v12831_v48 = vld [vmem:[#allocation4 + $0x4c] sm:$0xf] }
 0x316   : > { %v12822_v45 = vsel %vm10789_vm6, %v13931_v10, %v13930_v62  ;;  %v5588_v41 = vsel %vm10789_vm6, %v9518_v16, %v13932_v60  ;;  %v5291_v9 = vshll.u32 %v4924_v59, 16  ;;  %v5995_v26 = vshll.u32 %v12790_v31, 16  ;;  %v10518_v13 = vld [vmem:[#allocation4 + $0xb4] sm:$0xff]   ;;  %v9932_v27 = vpop.f32.mrb[40].mxu0  ;;  %v4926_v44 = vld [vmem:[#allocation4 + $0xbc] sm:$0x1] }
 0x317   : > { %v9534_v7 = vcombine.low %v5588_v41, %v5591_v12  ;;  %v4925_v63 = vld [vmem:[#allocation4 + $0xb8] sm:$0xf]  ;;  %v13933_v29 = vsel %vm10809_vm11, %v12707_v3, %v12646_v43  ;;  %v12841_v25 = vcombine.low %v6925_v42, %v6935_v15  ;;  %v5290_v24 = vrot.slane %v5288_v4, 4  ;;  %v5436_v12 = vld [vmem:[#allocation4 + $0xb4] sm:$0xe]  ;;  %8600 = vmatprep.mubr.bf16.mxu0 %v10518_v13  ;;  %v10521_v43 = vld [vmem:[#allocation4 + $0xc0] sm:$0xff]  }
 0x318   : > { %v12839_v2 = vcombine.low %v13933_v29, %v5966_v51  ;;  %v5293_v61 = vrot.slane %v5291_v9, 5  ;;  %v5297_v49 = vshll.u32 %v4925_v63, 16  ;;  %v5301_v16 = vshrl.u32 %v4925_v63, 16  ;;  %v5437_v51 = vld [vmem:[#allocation4 + $0xb8] sm:$0xf]  ;;  %v9933_v9 = vpop.f32.mrb[41].mxu0 }
 0x319   : > { %v5307_v3 = vshll.u32 %v4926_v44, 16  ;;  %v5438_v15 = vld [vmem:[#allocation4 + $0xbc] sm:$0x1]  ;;  %v5980_v59 = vsel %vm10809_vm11, %v12795_v18, %v12741_v23  ;;  %v5990_v42 = vsel %vm10809_vm11, %v12797_v57, %v12799_v17  ;;  %v6943_v62 = vor.u32 %v12805_v52, %v12803_v20  ;;  %8601 = vmatmul.mubr.bf16.gmra.mrb[88].mxu0 %v9534_v7  ;;  %v12860_v13 = vld [vmem:[#allocation4 + $0x64] sm:$0xf]  ;;  %v9935_v57 = vpop.f32.mrb[42].mxu0 }
 0x31a   : > { %v5294_v10 = vor.u32 %v5293_v61, %v5290_v24  ;;  %v5299_v60 = vrot.slane %v5297_v49, 5  ;;  %v5303_v41 = vrot.slane %v5301_v16, 4  ;;  %v5594_v4 = vrot.slane %v5437_v51, 5  ;;  %8608 = vmatprep.mubr.bf16.mxu0 %v10521_v43  ;;  %v9838_v20 = vpop.f32.mrb[20].mxu1  ;;  %v9936_v24 = vpop.f32.mrb[43].mxu0 }
 0x31b   : > { %v8346_v23 = vadd.f32 %v12638_v0, %v12848_v30  ;;  %v8349_v18 = vadd.f32 %v12650_v50, %v12848_v30  ;;  %v9934_v63 = vadd.f32 %v9933_v9, %v9932_v27  ;;  %v6001_v17 = vshll.u32 %v12831_v48, 16  ;;  %v9839_v61 = vpop.f32.mrb[21].mxu1  ;;  %v6351_v51 = vld [vmem:[#allocation4 + $0x4c] sm:$0xf] }
 0x31c   : > { %v5295_v52 = vrot.slane %v5294_v10, 4  ;;  %v5304_v7 = vor.u32 %v5303_v41, %v5299_v60  ;;  %v5596_v29 = vrot.slane %v5594_v4, 4  ;;  %v5597_v44 = vrot.slane %v5438_v15, 5  ;;  %v9841_v5 = vpop.f32.mrb[22].mxu1 }
 0x31d   : > { %v9519_v49 = vrot.slane %v5436_v12, 9  ;;  %v12867_v16 = vadd.f32 %v9934_v63, %v8346_v23  ;;  %v9937_v43 = vadd.f32 %v9936_v24, %v9935_v57  ;;  %v12869_v0 = vadd.f32 %v9839_v61, %v9838_v20  ;;  %v9842_v41 = vpop.f32.mrb[23].mxu1  ;;  %v6786_v23 = vld [vmem:[#allocation4 + $0x60] sm:$0xf]  ;;  %v12890_v61 = vld [vmem:[#allocation4 + $0x50] sm:$0x1] }
 0x31e   : > { %v5305_v50 = vrot.slane %v5304_v7, 4  ;;  %v5309_v27 = vrot.slane %v5307_v3, 5  ;;  %v5598_v9 = vsel %vm10789_vm6, %v5596_v29, %v5597_v44  ;;  %v6005_v10 = vshrl.u32 %v12831_v48, 16  ;;  %v9938_v12 = vpop.f32.mrb[44].mxu0 }
 0x31f   : > { %13934 = vst [vmem:[#allocation18_spill] sm:$0xff] %v12867_v16  ;;  %13935 = vst [vmem:[#allocation19_spill] sm:$0xff] %v12869_v0  ;;  %v5595_v15 = vsel %vm10789_vm6, %v9519_v49, %v5594_v4  ;;  %v12876_v21 = vadd.f32 %v9937_v43, %v8349_v18  ;;  %v6970_v63 = vshll.u32 %v12860_v13, 16  ;;  %v12879_v57 = vadd.f32 %v9842_v41, %v9841_v5  ;;  %v9939_v48 = vpop.f32.mrb[45].mxu0  ;;  %v10527_v49 = vld [vmem:[#allocation4 + $0xb4] sm:$0xff]  }
 0x320   : > { %v5300_v3 = vsel %vm10809_vm11, %v5295_v52, %v5299_v60  ;;  %v5310_v20 = vsel %vm10809_vm11, %v5305_v50, %v5309_v27  ;;  %v9535_v7 = vcombine.low %v5595_v15, %v5598_v9  ;;  %v6974_v29 = vshrl.u32 %v12860_v13, 16  ;;  %v9941_v18 = vpop.f32.mrb[46].mxu0  ;;  %v12896_v50 = vld [vmem:[#allocation4 + $0x50] sm:$0x1]  ;;  %v9844_v9 = vpop.f32.mrb[24].mxu1 }
 0x321   : > { %13936 = vst [vmem:[#allocation20_spill] sm:$0xff] %v12876_v21  ;;  %13937 = vst [vmem:[#allocation21_spill] sm:$0xff] %v12879_v57  ;;  %v9503_v44 = vcombine.low %v5300_v3, %v5310_v20  ;;  %v12886_v4 = vadd.f32 %v9939_v48, %v9938_v12  ;;  %v6953_v24 = vor.u32 %v12824_v22, %v12810_v33  ;;  %v6468_v5 = vrot.slane %v6351_v51, 5  ;;  %v9942_v60 = vpop.f32.mrb[47].mxu0  ;;  %v12913_v41 = vld [vmem:[#allocation4 + $0x54] sm:$0xf] }
 0x322   : > { %8609 = vmatmul.mubr.bf16.gmra.mrb[92].mxu0 %v9535_v7  ;;  %v12892_v52 = vcombine.low %v5980_v59, %v5990_v42  ;;  %v12894_v43 = vrot.slane %v6943_v62, 4  ;;  %v12900_v13 = vrot.slane %v5992_v55, 4  ;;  %v6961_v27 = vshrl.u32 %v6786_v23, 16  ;;  %v12911_v42 = vld [vmem:[#allocation4 + $0x68] sm:$0x1]  ;;  %v9845_v55 = vpop.f32.mrb[25].mxu1 }
 0x323   : > { %8447 = vmatprep.mubr.bf16.mxu1 %v9503_v44  ;;  %8810 = vmatprep.mubr.bf16.mxu0 %v12392_v19  ;;  %v12903_v22 = vadd.f32 %v9942_v60, %v9941_v18  ;;  %v12907_v51 = vrot.slane %v5995_v26, 5  ;;  %v12909_v59 = vrot.slane %v6001_v17, 5  ;;  %v6964_v62 = vshll.u32 %v6786_v23, 16  ;;  %v9847_v20 = vpop.f32.mrb[26].mxu1  ;;  %v10531_v60 = vld [vmem:[#allocation4 + $0x18] sm:$0xff]  }
 0x324   : > { %8448 = vmatmul.mubr.bf16.gmra.mrb[60].mxu1 %v10527_v49  ;;  %v6007_v15 = vrot.slane %v6005_v10, 4  ;;  %v12915_v12 = vrot.slane %v6970_v63, 5  ;;  %v6976_v3 = vrot.slane %v6974_v29, 4  ;;  %v12917_v19 = vadd.f32 %v9845_v55, %v9844_v9  ;;  %v9848_v7 = vpop.f32.mrb[27].mxu1  ;;  %v6790_v49 = vld [vmem:[#allocation4 + $0x70] sm:$0xf] }
 0x325   : > { %v13938_v31 = vcombine.low %v12383_v47, %v12371_v14  ;;  %v12922_v26 = vrot.slane %v6953_v24, 4  ;;  %v12926_v17 = vrot.slane %v6956_v38, 5  ;;  %v13939_v23 = vrot.slane %v12764_v6, 9  ;;  %v6789_v6 = vld [vmem:[#allocation4 + $0x6c] sm:$0xf]  ;;  %v10535_v9 = vld [vmem:[%s13874_s3 + $0x208] sm:$0xff]  }
 0x326   : > { %v12937_v48 = vadd.f32 %v12239_v54, %v12848_v30  ;;  %v12943_v47 = vrot.slane %v6468_v5, 4  ;;  %v12945_v38 = vadd.f32 %v9848_v7, %v9847_v20  ;;  %v9944_v29 = vpop.f32.mrb[48].mxu0  ;;  %v5998_v44 = vor.u32 %v12907_v51, %v12900_v13 }
 0x327   : > { %8649 = vmatprep.mubr.bf16.mxu1 %v13938_v31  ;;  %v12932_v10 = vsel %vm10789_vm6, %v13939_v23, %v6468_v5  ;;  %v6011_v18 = vshll.u32 %v12896_v50, 16  ;;  %v6963_v24 = vrot.slane %v6961_v27, 4  ;;  %v6966_v54 = vrot.slane %v6964_v62, 5  ;;  %v9945_v5 = vpop.f32.mrb[49].mxu0 }
 0x328   : > { %v6008_v55 = vor.u32 %v6007_v15, %v12909_v59  ;;  %v6977_v20 = vor.u32 %v6976_v3, %v12915_v12  ;;  %v6980_v31 = vshll.u32 %v12911_v42, 16  ;;  %v6016_v23 = vshrl.u32 %v12913_v41, 16  ;;  %v9947_v27 = vpop.f32.mrb[50].mxu0 }
 0x329   : > { %v8362_v50 = vadd.f32 %v12702_v37, %v12848_v30  ;;  %v9946_v13 = vadd.f32 %v9945_v5, %v9944_v29  ;;  %v6019_v51 = vshll.u32 %v12913_v41, 16  ;;  %v6025_v62 = vshll.u32 %v5842_v28, 16  ;;  %v9948_v7 = vpop.f32.mrb[51].mxu0  ;;  %v10557_v41 = vld [vmem:[%s13874_s3 + $0x200] sm:$0xff]  }
 0x32a   : > { %8811 = vmatmul.mubr.bf16.vlgmr.msra.gmra.mrb[96].mxu0 %v10531_v60  ;;  %v6029_v63 = vshrl.u32 %v5842_v28, 16  ;;  %v6985_v14 = vshrl.u32 %v6789_v6, 16  ;;  %v6988_v21 = vshll.u32 %v6789_v6, 16  ;;  %v6994_v15 = vshll.u32 %v6790_v49, 16  ;;  %v12972_v28 = vld [vmem:[%s13874_s3 + $0x210] sm:$0xff]  }
 0x32b   : > { %8818 = vmatprep.mubr.bf16.mxu0 %v12579_v46  ;;  %v8365_v42 = vadd.f32 %v12712_v11, %v12848_v30  ;;  %v12963_v3 = vadd.f32 %v9946_v13, %v8362_v50  ;;  %v9949_v16 = vadd.f32 %v9948_v7, %v9947_v27  ;;  %v6998_v37 = vshrl.u32 %v6790_v49, 16  ;;  %10303 = vmatpush3.bf16.msra.mxu0 %v10557_v41  ;;  %v6354_v13 = vld [vmem:[#allocation4 + $0x58] sm:$0xf] }
 0x32c   : > { %8650 = vmatmul.mubr.bf16.vlgmr.msra.gmra.mrb[64].mxu1 %v12438_v35  ;;  %v6959_v46 = vsel %vm10809_vm11, %v12922_v26, %v12926_v17  ;;  %v6009_v11 = vrot.slane %v6008_v55, 4  ;;  %v6013_v6 = vrot.slane %v6011_v18, 5  ;;  %v6967_v29 = vor.u32 %v6966_v54, %v6963_v24  ;;  %10304 = vmatprep.subr.bf16.mxu0 %v10535_v9 }
 0x32d   : > { %13940 = vst [vmem:[#allocation22_spill] sm:$0xff] %v12963_v3  ;;  %10358 = vmatpush3.bf16.msra.mxu1 %v10557_v41  ;;  %v13941_v49 = vcombine.low %v12457_v39, %v12436_v40  ;;  %v12981_v35 = vadd.f32 %v9949_v16, %v8365_v42  ;;  %v6978_v60 = vrot.slane %v6977_v20, 4  ;;  %v6018_v5 = vrot.slane %v6016_v23, 4  ;;  %v10533_v39 = vld [vmem:[#allocation4 + $0x24] sm:$0xff]  }
 0x32e   : > { %v6021_v50 = vrot.slane %v6019_v51, 5  ;;  %10351 = vmatprep.subr.bf16.mxu1 %v10535_v9  ;;  %v12983_v27 = vrot.slane %v6025_v62, 5  ;;  %v6031_v7 = vrot.slane %v6029_v63, 4  ;;  %v6987_v26 = vrot.slane %v6985_v14, 4  ;;  %v9950_v54 = vpop.f32.mrb[52].mxu0 }
 0x32f   : > { %8657 = vmatprep.mubr.bf16.mxu1 %v13941_v49  ;;  %13942 = vst [vmem:[#allocation23_spill] sm:$0xff] %v12981_v35  ;;  %v6990_v17 = vrot.slane %v6988_v21, 5  ;;  %v5999_v18 = vrot.slane %v5998_v44, 4  ;;  %v6982_v24 = vrot.slane %v6980_v31, 5  ;;  %v12985_v55 = vrot.slane %v6994_v15, 5  ;;  %10305 = vmatpush3.bf16.msra.mxu0 %v10535_v9  ;;  %v9951_v20 = vpop.f32.mrb[53].mxu0 }
 0x330   : > { %v7000_v41 = vrot.slane %v6998_v37, 4  ;;  %v12989_v40 = vadd.f32 %v12241_v56, %v12848_v30  ;;  %v13943_v16 = vsel %vm10809_vm11, %v12894_v43, %v12810_v33  ;;  %v13944_v21 = vrot.slane %v12890_v61, 5  ;;  %v10541_v56 = vld [vmem:[%s13874_s3 + $0x218] sm:$0xff]   ;;  %v5843_v31 = vld [vmem:[#allocation4 + $0x5c] sm:$0x1]  ;;  %10306 = vmatprep.subr.bf16.mxu0 %v12972_v28  ;;  %v9953_v51 = vpop.f32.mrb[54].mxu0 }
 0x331   : > { %v12996_v63 = vcombine.low %v13943_v16, %v6959_v46  ;;  %v6968_v44 = vrot.slane %v6967_v29, 4  ;;  %10359 = vmatpush3.bf16.msra.mxu1 %v10535_v9  ;;  %v6014_v33 = vsel %vm10809_vm11, %v6009_v11, %v6013_v6  ;;  %v6983_v61 = vsel %vm10809_vm11, %v6978_v60, %v6982_v24  ;;  %v6353_v43 = vld [vmem:[#allocation4 + $0x54] sm:$0xe]  ;;  %v6355_v62 = vld [vmem:[#allocation4 + $0x5c] sm:$0x1]  ;;  %v9954_v15 = vpop.f32.mrb[55].mxu0 }
 0x332   : > { %v13003_v14 = vsel %vm10789_vm6, %v12943_v47, %v13944_v21  ;;  %v6475_v23 = vrot.slane %v6354_v13, 5  ;;  %v13013_v47 = vadd.f32 %v9951_v20, %v9950_v54  ;;  %8819 = vmatmul.mubr.bf16.gmra.mrb[100].mxu0 %v10533_v39  ;;  %10352 = vmatprep.subr.bf16.mxu1 %v12972_v28  ;;  %v6022_v42 = vor.u32 %v6021_v50, %v6018_v5  ;;  %v6791_v9 = vld [vmem:[#allocation4 + $0x74] sm:$0x1]  ;;  %v13947_v60 = vld [vmem:[#allocation10_spill] sm:$0xff] }
 0x333   : > { %v6032_v37 = vor.u32 %v6031_v7, %v12983_v27  ;;  %v6991_v46 = vor.u32 %v6990_v17, %v6987_v26  ;;  %8826 = vmatprep.mubr.bf16.mxu0 %v12618_v8  ;;  %v6004_v11 = vsel %vm10809_vm11, %v5999_v18, %v12909_v59  ;;  %v13021_v6 = vadd.f32 %v9954_v15, %v9953_v51  ;;  %v5844_v59 = vld [vmem:[#allocation4 + $0x60] sm:$0xf]  ;;  %v5845_v7 = vld [vmem:[#allocation4 + $0x64] sm:$0xf]  ;;  %v10544_v26 = vld [vmem:[%s13874_s3 + $0x220] sm:$0xff]  }
 0x334   : > { %13945 = vst [vmem:[#allocation24_spill] sm:$0xff] %v13013_v47  ;;  %v6035_v29 = vshll.u32 %v5843_v31, 16  ;;  %v7001_v49 = vor.u32 %v7000_v41, %v12985_v55  ;;  %10307 = vmatpush3.bf16.msra.mxu0 %v12972_v28  ;;  %8658 = vmatmul.mubr.bf16.gmra.mrb[68].mxu1 %v13947_v60  ;;  %v13028_v50 = vcombine.low %v6004_v11, %v6014_v33  ;;  %v9574_v13 = vrot.slane %v6353_v43, 9  ;;  %v13948_v17 = vld [vmem:[#allocation8_spill] sm:$0xff]  ;;  %v13949_v18 = vld [vmem:[#allocation9_spill] sm:$0xff] }
 0x335   : > { %13946 = vst [vmem:[#allocation25_spill] sm:$0xff] %v13021_v6  ;;  %v6973_v8 = vsel %vm10809_vm11, %v6968_v44, %v12915_v12  ;;  %10308 = vmatprep.subr.bf16.mxu0 %v10541_v56  ;;  %v13950_v24 = vcombine.low %v13948_v17, %v13949_v18  ;;  %10360 = vmatpush3.bf16.msra.mxu1 %v12972_v28  ;;  %v6477_v41 = vrot.slane %v6475_v23, 4  ;;  %v6478_v39 = vrot.slane %v6355_v62, 5  ;;  %v6793_v12 = vld [vmem:[#allocation4 + $0x7c] sm:$0xf]  ;;  %v10534_v15 = vld [vmem:[#allocation4 + $0x30] sm:$0xff]  }
 0x336   : > { %v13040_v54 = vcombine.low %v6973_v8, %v6983_v61  ;;  %v7004_v16 = vshll.u32 %v6791_v9, 16  ;;  %v13044_v21 = vsel %vm10789_vm6, %v9574_v13, %v6475_v23  ;;  %10353 = vmatprep.subr.bf16.mxu1 %v10541_v56  ;;  %v13046_v44 = vrot.slane %v6022_v42, 4  ;;  %v6792_v33 = vld [vmem:[#allocation4 + $0x78] sm:$0xf]  ;;  %v13056_v61 = vld [vmem:[#allocation4 + $0x60] sm:$0xe] }
 0x337   : > { %8665 = vmatprep.mubr.bf16.mxu1 %v13950_v24  ;;  %v13048_v20 = vrot.slane %v6032_v37, 4  ;;  %v13050_v31 = vrot.slane %v6991_v46, 4  ;;  %v13052_v43 = vrot.slane %v6035_v29, 5  ;;  %v13054_v28 = vrot.slane %v7001_v49, 4  ;;  %v13061_v37 = vld [vmem:[%s13874_s3 + $0x228] sm:$0xff]   ;;  %v13951_v17 = vld [vmem:[#allocation16_spill] sm:$0xff] }
 0x338   : > { %v6040_v51 = vshrl.u32 %v5844_v59, 16  ;;  %v6043_v62 = vshll.u32 %v5844_v59, 16  ;;  %10309 = vmatpush3.bf16.msra.mxu0 %v10541_v56  ;;  %v6049_v23 = vshll.u32 %v5845_v7, 16  ;;  %v6053_v9 = vshrl.u32 %v5845_v7, 16  ;;  %v13081_v7 = vld [vmem:[#allocation4 + $0x64] sm:$0xf] }
 0x339   : > { %v7018_v11 = vshll.u32 %v6793_v12, 16  ;;  %v7022_v42 = vshrl.u32 %v6793_v12, 16  ;;  %10310 = vmatprep.subr.bf16.mxu0 %v10544_v26  ;;  %v13065_v46 = vsel %vm10789_vm6, %v6477_v41, %v6478_v39  ;;  %v13067_v29 = vrot.slane %v7004_v16, 5  ;;  %10361 = vmatpush3.bf16.msra.mxu1 %v10541_v56  ;;  %v5847_v56 = vld [vmem:[#allocation4 + $0x6c] sm:$0xf] }
 0x33a   : > { %v7009_v49 = vshrl.u32 %v6792_v33, 16  ;;  %v7012_v60 = vshll.u32 %v6792_v33, 16  ;;  %8827 = vmatmul.mubr.bf16.gmra.mrb[104].mxu0 %v10534_v15  ;;  %10354 = vmatprep.subr.bf16.mxu1 %v10544_v26  ;;  %v13089_v41 = vld [vmem:[#allocation4 + $0x68] sm:$0x1]  ;;  %v13091_v39 = vrot.slane %v6040_v51, 4  ;;  %v13093_v16 = vrot.slane %v6043_v62, 5 }
 0x33b   : > { %8834 = vmatprep.mubr.bf16.mxu0 %v13951_v17  ;;  %v7007_v18 = vsel %vm10809_vm11, %v13054_v28, %v13067_v29  ;;  %v5848_v12 = vld [vmem:[#allocation4 + $0x70] sm:$0xf]  ;;  %v9956_v33 = vpop.f32.mrb[56].mxu0  ;;  %v13952_v15 = vld [vmem:[#allocation11_spill] sm:$0xff]  ;;  %v13096_v5 = vrot.slane %v6049_v23, 5  ;;  %v6055_v17 = vrot.slane %v6053_v9, 4  ;;  %v8378_v23 = vadd.f32 %v12917_v19, %v12848_v30 }
 0x33c   : > { %10311 = vmatpush3.bf16.msra.mxu0 %v10544_v26  ;;  %8666 = vmatmul.mubr.bf16.gmra.mrb[72].mxu1 %v13952_v15  ;;  %v13098_v59 = vld [vmem:[#allocation4 + $0x80] sm:$0x1]  ;;  %v13100_v8 = vrot.slane %v7018_v11, 5  ;;  %v7024_v28 = vrot.slane %v7022_v42, 4  ;;  %v9957_v29 = vpop.f32.mrb[57].mxu0  ;;  %v13105_v51 = vld [vmem:[%s13874_s3 + $0x230] sm:$0xff]  }
 0x33d   : > { %10312 = vmatprep.subr.bf16.mxu0 %v13061_v37  ;;  %v13953_v62 = vld [vmem:[#allocation15_spill] sm:$0xff]  ;;  %v13954_v24 = vld [vmem:[#allocation12_spill] sm:$0xff]  ;;  %v7011_v9 = vrot.slane %v7009_v49, 4  ;;  %v7014_v15 = vrot.slane %v7012_v60, 5  ;;  %v13113_v11 = vld [vmem:[#allocation4 + $0x70] sm:$0xf]  ;;  %10362 = vmatpush3.bf16.msra.mxu1 %v10544_v26  ;;  %v9958_v42 = vadd.f32 %v9957_v29, %v9956_v33 }
 0x33e   : > { %v13955_v13 = vcombine.low %v13953_v62, %v13954_v24  ;;  %v9959_v35 = vpop.f32.mrb[58].mxu0  ;;  %v6064_v3 = vshrl.u32 %v5847_v56, 16  ;;  %v6067_v6 = vshll.u32 %v5847_v56, 16  ;;  %v6073_v47 = vshll.u32 %v5848_v12, 16  ;;  %10355 = vmatprep.subr.bf16.mxu1 %v13061_v37  ;;  %v10536_v26 = vld [vmem:[#allocation4 + $0x3c] sm:$0xff]  }
 0x33f   : > { %v6077_v57 = vshrl.u32 %v5848_v12, 16  ;;  %v9960_v0 = vpop.f32.mrb[59].mxu0  ;;  %v6482_v24 = vrot.slane %v13081_v7, 5  ;;  %v13119_v19 = vadd.f32 %v9958_v42, %v8378_v23  ;;  %v6358_v60 = vld [vmem:[#allocation4 + $0x68] sm:$0x1]  ;;  %v6046_v56 = vor.u32 %v13093_v16, %v13091_v39 }
 0x340   : > { %8673 = vmatprep.mubr.bf16.mxu1 %v13955_v13  ;;  %v8381_v13 = vadd.f32 %v12945_v38, %v12848_v30  ;;  %v9961_v49 = vadd.f32 %v9960_v0, %v9959_v35  ;;  %10313 = vmatpush3.bf16.msra.mxu0 %v13061_v37  ;;  %v6056_v12 = vor.u32 %v6055_v17, %v13096_v5  ;;  %v6059_v33 = vshll.u32 %v13089_v41, 16  ;;  %v13130_v38 = vld [vmem:[%s13874_s3 + $0x238] sm:$0xff]   ;;  %v9962_v23 = vpop.f32.mrb[60].mxu0 }
 0x341   : > { %13956 = vst [vmem:[#allocation10_spill] sm:$0xff] %v13119_v19  ;;  %v7025_v29 = vor.u32 %v7024_v28, %v13100_v8  ;;  %10314 = vmatprep.subr.bf16.mxu0 %v13105_v51  ;;  %v7015_v0 = vor.u32 %v7014_v15, %v7011_v9  ;;  %v7028_v35 = vshll.u32 %v13098_v59, 16  ;;  %v6489_v7 = vrot.slane %v13113_v11, 5  ;;  %10363 = vmatpush3.bf16.msra.mxu1 %v13061_v37  ;;  %v5849_v28 = vld [vmem:[#allocation4 + $0x74] sm:$0x1]  ;;  %v13965_v11 = vld [vmem:[#allocation7_spill] sm:$0xff] }
 0x342   : > { %v13135_v62 = vadd.f32 %v9961_v49, %v8381_v13  ;;  %8835 = vmatmul.mubr.bf16.gmra.mrb[108].mxu0 %v10536_v26  ;;  %v13138_v41 = vrot.slane %v6064_v3, 4  ;;  %v13140_v39 = vrot.slane %v6067_v6, 5  ;;  %v13142_v16 = vrot.slane %v6073_v47, 5  ;;  %10356 = vmatprep.subr.bf16.mxu1 %v13105_v51  ;;  %v6361_v15 = vld [vmem:[#allocation4 + $0x74] sm:$0x1] }
 0x343   : > { %v6079_v17 = vrot.slane %v6077_v57, 4  ;;  %8842 = vmatprep.mubr.bf16.mxu0 %v12841_v25  ;;  %v9590_v59 = vcombine.low %v13044_v21, %v13065_v46  ;;  %v13958_v37 = vsel %vm10809_vm11, %v13048_v20, %v13052_v43  ;;  %v13959_v3 = vsel %vm10809_vm11, %v13046_v44, %v12983_v27  ;;  %v5855_v19 = vld [vmem:[#allocation4 + $0x8c] sm:$0x1] }
 0x344   : > { %13957 = vst [vmem:[#allocation8_spill] sm:$0xff] %v13135_v62  ;;  %v13158_v47 = vcombine.low %v13959_v3, %v13958_v37  ;;  %v13960_v25 = vsel %vm10809_vm11, %v13050_v31, %v12985_v55  ;;  %v6485_v6 = vrot.slane %v6358_v60, 5  ;;  %10315 = vmatpush3.bf16.msra.mxu0 %v13105_v51  ;;  %8674 = vmatmul.mubr.bf16.gmra.mrb[76].mxu1 %v12839_v2  ;;  %v13961_v20 = vrot.slane %v13056_v61, 9  ;;  %v6796_v55 = vld [vmem:[#allocation4 + $0x88] sm:$0xf]  ;;  %v9963_v31 = vpop.f32.mrb[61].mxu0 }
 0x345   : > { %v13165_v57 = vcombine.low %v13960_v25, %v7007_v18  ;;  %v6484_v44 = vrot.slane %v6482_v24, 4  ;;  %v6057_v43 = vrot.slane %v6056_v12, 4  ;;  %v7026_v9 = vrot.slane %v7025_v29, 4  ;;  %10316 = vmatprep.subr.bf16.mxu0 %v13130_v38  ;;  %v9850_v61 = vpop.f32.mrb[28].mxu1  ;;  %v9965_v26 = vpop.f32.mrb[62].mxu0  ;;  %10364 = vmatpush3.bf16.msra.mxu1 %v13105_v51  ;;  %v10537_v25 = vld [vmem:[#allocation4 + $0x48] sm:$0xff]  }
 0x346   : > { %v13173_v27 = vsel %vm10789_vm6, %v13961_v20, %v6482_v24  ;;  %v13962_v18 = vcombine.low %v12822_v45, %v12788_v32  ;;  %v6047_v42 = vrot.slane %v6046_v56, 4  ;;  %v6061_v2 = vrot.slane %v6059_v33, 5  ;;  %v6795_v32 = vld [vmem:[#allocation4 + $0x84] sm:$0xf]  ;;  %v9851_v45 = vpop.f32.mrb[29].mxu1  ;;  %v9966_v56 = vpop.f32.mrb[63].mxu0  ;;  %10357 = vmatprep.subr.bf16.mxu1 %v13130_v38 }
 0x347   : > { %v7016_v13 = vrot.slane %v7015_v0, 4  ;;  %v13179_v49 = vadd.f32 %v9963_v31, %v9962_v23  ;;  %v7030_v24 = vrot.slane %v7028_v35, 5  ;;  %v6491_v60 = vrot.slane %v6489_v7, 4  ;;  %v6359_v33 = vld [vmem:[#allocation4 + $0x6c] sm:$0xe]  ;;  %v9853_v51 = vpop.f32.mrb[30].mxu1 }
 0x348   : > { %8681 = vmatprep.mubr.bf16.mxu1 %v13962_v18  ;;  %v6070_v12 = vor.u32 %v13140_v39, %v13138_v41  ;;  %v6080_v29 = vor.u32 %v6079_v17, %v13142_v16  ;;  %v7042_v0 = vshll.u32 %v6796_v55, 16  ;;  %v7046_v37 = vshrl.u32 %v6796_v55, 16  ;;  %10317 = vmatpush3.bf16.msra.mxu0 %v13130_v38  ;;  %v9854_v20 = vpop.f32.mrb[31].mxu1 }
 0x349   : > { %v13188_v3 = vadd.f32 %v9851_v45, %v9850_v61  ;;  %v13190_v35 = vadd.f32 %v9966_v56, %v9965_v26  ;;  %v13195_v41 = vsel %vm10789_vm6, %v6484_v44, %v6485_v6  ;;  %v6062_v39 = vsel %vm10809_vm11, %v6057_v43, %v6061_v2  ;;  %10365 = vmatpush3.bf16.msra.mxu1 %v13130_v38  ;;  %v5851_v26 = vld [vmem:[#allocation4 + $0x7c] sm:$0xf]  ;;  %v6799_v45 = vld [vmem:[#allocation4 + $0x94] sm:$0xf] }
 0x34a   : > { %v7031_v17 = vsel %vm10809_vm11, %v7026_v9, %v7030_v24  ;;  %v6083_v23 = vshll.u32 %v5849_v28, 16  ;;  %v6492_v55 = vrot.slane %v6361_v15, 5  ;;  %v7033_v31 = vshrl.u32 %v6795_v32, 16  ;;  %8843 = vmatmul.mubr.bf16.gmra.mrb[112].mxu0 %v10537_v25  ;;  %v13963_v24 = vld [vmem:[#allocation6_spill] sm:$0xff] }
 0x34b   : > { %v7036_v18 = vshll.u32 %v6795_v32, 16  ;;  %v13201_v61 = vadd.f32 %v9854_v20, %v9853_v51  ;;  %v6052_v6 = vsel %vm10809_vm11, %v6047_v42, %v13096_v5  ;;  %v7021_v44 = vsel %vm10809_vm11, %v7016_v13, %v13100_v8  ;;  %8850 = vmatprep.mubr.bf16.mxu0 %v12996_v63  ;;  %v5850_v63 = vld [vmem:[#allocation4 + $0x78] sm:$0xf]  ;;  %v6363_v51 = vld [vmem:[#allocation4 + $0x7c] sm:$0xf] }
 0x34c   : > { %v9576_v43 = vrot.slane %v6359_v33, 9  ;;  %v6081_v9 = vrot.slane %v6080_v29, 4  ;;  %v13213_v28 = vsel %vm10789_vm6, %v6491_v60, %v6492_v55  ;;  %v6071_v15 = vrot.slane %v6070_v12, 4  ;;  %8682 = vmatmul.mubr.bf16.gmra.mrb[80].mxu1 %v12892_v52  ;;  %v9856_v56 = vpop.f32.mrb[32].mxu1  ;;  %v5854_v20 = vld [vmem:[#allocation4 + $0x88] sm:$0xf] }
 0x34d   : > { %v13215_v2 = vrot.slane %v7042_v0, 5  ;;  %v7048_v38 = vrot.slane %v7046_v37, 4  ;;  %v13220_v42 = vcombine.low %v6052_v6, %v6062_v39  ;;  %v13222_v8 = vcombine.low %v7021_v44, %v7031_v17  ;;  %v6797_v37 = vld [vmem:[#allocation4 + $0x8c] sm:$0x1]  ;;  %v9857_v25 = vpop.f32.mrb[33].mxu1 }
 0x34e   : > { %v6085_v13 = vrot.slane %v6083_v23, 5  ;;  %v13226_v60 = vadd.f32 %v13963_v24, %v12848_v30  ;;  %v13964_v12 = vcombine.low %v12932_v10, %v13003_v14  ;;  %v13235_v52 = vsel %vm10789_vm6, %v9576_v43, %v6489_v7  ;;  %v6798_v23 = vld [vmem:[#allocation4 + $0x90] sm:$0xf] }
 0x34f   : > { %v7035_v29 = vrot.slane %v7033_v31, 4  ;;  %v7038_v32 = vrot.slane %v7036_v18, 5  ;;  %v6097_v10 = vshll.u32 %v5851_v26, 16  ;;  %v6101_v14 = vshrl.u32 %v5851_v26, 16  ;;  %v9859_v31 = vpop.f32.mrb[34].mxu1  ;;  %v10539_v18 = vld [vmem:[#allocation4 + $0x54] sm:$0xff]  }
 0x350   : > { %8689 = vmatprep.mubr.bf16.mxu1 %v13964_v12  ;;  %v6086_v0 = vsel %vm10809_vm11, %v6081_v9, %v6085_v13  ;;  %v13243_v39 = vadd.f32 %v13965_v11, %v12848_v30  ;;  %v6076_v7 = vsel %vm10809_vm11, %v6071_v15, %v13142_v16  ;;  %v7049_v17 = vor.u32 %v7048_v38, %v13215_v2  ;;  %v9860_v26 = vpop.f32.mrb[35].mxu1  ;;  %v6362_v12 = vld [vmem:[#allocation4 + $0x78] sm:$0xe] }
 0x351   : > { %v13249_v55 = vadd.f32 %v9857_v25, %v9856_v56  ;;  %v6088_v6 = vshrl.u32 %v5850_v63, 16  ;;  %v6091_v44 = vshll.u32 %v5850_v63, 16  ;;  %v7066_v43 = vshll.u32 %v6799_v45, 16  ;;  %v5853_v25 = vld [vmem:[#allocation4 + $0x84] sm:$0xf] }
 0x352   : > { %v7070_v9 = vshrl.u32 %v6799_v45, 16  ;;  %v13251_v13 = vcombine.low %v6076_v7, %v6086_v0  ;;  %v7039_v30 = vor.u32 %v7038_v32, %v7035_v29  ;;  %v7052_v24 = vshll.u32 %v6797_v37, 16  ;;  %8851 = vmatmul.mubr.bf16.gmra.mrb[116].mxu0 %v10539_v18 }
 0x353   : > { %v13253_v11 = vadd.f32 %v9860_v26, %v9859_v31  ;;  %v13255_v16 = vrot.slane %v6097_v10, 5  ;;  %v6103_v15 = vrot.slane %v6101_v14, 4  ;;  %v7057_v38 = vshrl.u32 %v6798_v23, 16  ;;  %8858 = vmatprep.mubr.bf16.mxu0 %v13040_v54  ;;  %v6364_v14 = vld [vmem:[#allocation4 + $0x80] sm:$0x1] }
 0x354   : > { %v7060_v56 = vshll.u32 %v6798_v23, 16  ;;  %v13258_v63 = vrot.slane %v7049_v17, 4  ;;  %v6496_v45 = vrot.slane %v6363_v51, 5  ;;  %v6121_v33 = vshll.u32 %v5854_v20, 16  ;;  %8690 = vmatmul.mubr.bf16.gmra.mrb[84].mxu1 %v13028_v50  ;;  %v5852_v54 = vld [vmem:[#allocation4 + $0x80] sm:$0x1] }
 0x355   : > { %v6125_v0 = vshrl.u32 %v5854_v20, 16  ;;  %v6090_v29 = vrot.slane %v6088_v6, 4  ;;  %v6093_v32 = vrot.slane %v6091_v44, 5  ;;  %v13261_v37 = vrot.slane %v7066_v43, 5  ;;  %8697 = vmatprep.mubr.bf16.mxu1 %v9590_v59  ;;  %v6801_v6 = vld [vmem:[#allocation4 + $0x9c] sm:$0xf] }
 0x356   : > { %v7072_v7 = vrot.slane %v7070_v9, 4  ;;  %v7054_v10 = vrot.slane %v7052_v24, 5  ;;  %v9577_v23 = vrot.slane %v6362_v12, 9  ;;  %v6112_v17 = vshrl.u32 %v5853_v25, 16  ;;  %v13271_v9 = vld [vmem:[#allocation4 + $0x88] sm:$0xf] }
 0x357   : > { %v6115_v31 = vshll.u32 %v5853_v25, 16  ;;  %v7040_v51 = vrot.slane %v7039_v30, 4  ;;  %v6104_v20 = vor.u32 %v6103_v15, %v13255_v16  ;;  %v7059_v18 = vrot.slane %v7057_v38, 4  ;;  %v10540_v59 = vld [vmem:[#allocation4 + $0x60] sm:$0xff]   ;;  %v6800_v12 = vld [vmem:[#allocation4 + $0x98] sm:$0x1] }
 0x358   : > { %v7062_v50 = vrot.slane %v7060_v56, 5  ;;  %v13269_v44 = vsel %vm10789_vm6, %v9577_v23, %v6496_v45  ;;  %v6498_v43 = vrot.slane %v6496_v45, 4  ;;  %v13273_v21 = vrot.slane %v6121_v33, 5  ;;  %v6802_v38 = vld [vmem:[#allocation4 + $0xa0] sm:$0xf] }
 0x359   : > { %v6127_v46 = vrot.slane %v6125_v0, 4  ;;  %v7055_v26 = vsel %vm10809_vm11, %v13258_v63, %v7054_v10  ;;  %v6094_v30 = vor.u32 %v6093_v32, %v6090_v29  ;;  %v6107_v24 = vshll.u32 %v5852_v54, 16 }
 0x35a   : > { %v7073_v15 = vor.u32 %v7072_v7, %v13261_v37  ;;  %v6114_v56 = vrot.slane %v6112_v17, 4  ;;  %v6117_v25 = vrot.slane %v6115_v31, 5  ;;  %v7081_v23 = vshrl.u32 %v6801_v6, 16  ;;  %8859 = vmatmul.mubr.bf16.gmra.mrb[120].mxu0 %v10540_v59 }
 0x35b   : > { %v7084_v45 = vshll.u32 %v6801_v6, 16  ;;  %v6499_v5 = vrot.slane %v6364_v14, 5  ;;  %v6105_v33 = vrot.slane %v6104_v20, 4  ;;  %v7063_v62 = vor.u32 %v7062_v50, %v7059_v18  ;;  %8866 = vmatprep.mubr.bf16.mxu0 %v13165_v57  ;;  %v6367_v20 = vld [vmem:[#allocation4 + $0x8c] sm:$0x1] }
 0x35c   : > { %v6503_v0 = vrot.slane %v13271_v9, 5  ;;  %v7076_v63 = vshll.u32 %v6800_v12, 16  ;;  %v6128_v29 = vor.u32 %v6127_v46, %v13273_v21  ;;  %v7090_v32 = vshll.u32 %v6802_v38, 16  ;;  %8698 = vmatmul.mubr.bf16.gmra.mrb[88].mxu1 %v13158_v47  ;;  %v6365_v9 = vld [vmem:[#allocation4 + $0x84] sm:$0xe]  ;;  %v10542_v12 = vld [vmem:[#allocation4 + $0x6c] sm:$0xff]  }
 0x35d   : > { %v7094_v10 = vshrl.u32 %v6802_v38, 16  ;;  %v13285_v7 = vsel %vm10789_vm6, %v6498_v43, %v6499_v5  ;;  %v6095_v54 = vrot.slane %v6094_v30, 4  ;;  %v6109_v14 = vrot.slane %v6107_v24, 5  ;;  %v6803_v24 = vld [vmem:[#allocation4 + $0xa4] sm:$0x1] }
 0x35e   : > { %v7074_v17 = vrot.slane %v7073_v15, 4  ;;  %v13966_v31 = vcombine.low %v13173_v27, %v13195_v41  ;;  %v6118_v57 = vor.u32 %v6117_v25, %v6114_v56  ;;  %v6131_v18 = vshll.u32 %v5855_v19, 16  ;;  %v6369_v38 = vld [vmem:[#allocation4 + $0x94] sm:$0xf] }
 0x35f   : > { %v7083_v50 = vrot.slane %v7081_v23, 4  ;;  %v7086_v6 = vrot.slane %v7084_v45, 5  ;;  %v7045_v47 = vsel %vm10809_vm11, %v7040_v51, %v13215_v2  ;;  %v6110_v5 = vsel %vm10809_vm11, %v6105_v33, %v6109_v14  ;;  %v5857_v45 = vld [vmem:[#allocation4 + $0x94] sm:$0xf] }
 0x360   : > { %8705 = vmatprep.mubr.bf16.mxu1 %v13966_v31  ;;  %v7064_v43 = vrot.slane %v7063_v62, 4  ;;  %v6505_v46 = vrot.slane %v6503_v0, 4  ;;  %v7078_v59 = vrot.slane %v7076_v63, 5  ;;  %v6129_v30 = vrot.slane %v6128_v29, 4 }
 0x361   : > { %v13295_v27 = vrot.slane %v7090_v32, 5  ;;  %v7096_v41 = vrot.slane %v7094_v10, 4  ;;  %v9625_v19 = vcombine.low %v7045_v47, %v7055_v26  ;;  %v9593_v15 = vcombine.low %v13269_v44, %v13285_v7  ;;  %v6368_v32 = vld [vmem:[#allocation4 + $0x90] sm:$0xe]  ;;  %v6370_v47 = vld [vmem:[#allocation4 + $0x98] sm:$0x1] }
 0x362   : > { %v6100_v2 = vsel %vm10809_vm11, %v6095_v54, %v13255_v16  ;;  %v6506_v51 = vrot.slane %v6367_v20, 5  ;;  %v7079_v62 = vsel %vm10809_vm11, %v7074_v17, %v7078_v59  ;;  %v6119_v56 = vrot.slane %v6118_v57, 4  ;;  %8867 = vmatmul.mubr.bf16.gmra.mrb[124].mxu0 %v10542_v12  ;;  %v6805_v17 = vld [vmem:[#allocation4 + $0xac] sm:$0xf]  ;;  %v5859_v12 = vld [vmem:[#allocation4 + $0x9c] sm:$0xf] }
 0x363   : > { %v6133_v25 = vrot.slane %v6131_v18, 5  ;;  %v7087_v23 = vor.u32 %v7086_v6, %v7083_v50  ;;  %v13304_v33 = vcombine.low %v6100_v2, %v6110_v5  ;;  %v9578_v26 = vrot.slane %v6365_v9, 9  ;;  %8874 = vmatprep.mubr.bf16.mxu0 %v13222_v8  ;;  %v5856_v8 = vld [vmem:[#allocation4 + $0x90] sm:$0xf]  ;;  %v10543_v2 = vld [vmem:[#allocation4 + $0x78] sm:$0xff]  }
 0x364   : > { %v13308_v63 = vsel %vm10789_vm6, %v6505_v46, %v6506_v51  ;;  %v7100_v29 = vshll.u32 %v6803_v24, 16  ;;  %v7069_v16 = vsel %vm10809_vm11, %v7064_v43, %v13261_v37  ;;  %v7097_v54 = vor.u32 %v7096_v41, %v13295_v27  ;;  %8706 = vmatmul.mubr.bf16.gmra.mrb[92].mxu1 %v13220_v42  ;;  %v6804_v43 = vld [vmem:[#allocation4 + $0xa8] sm:$0xf]  ;;  %v5858_v46 = vld [vmem:[#allocation4 + $0x98] sm:$0x1] }
 0x365   : > { %v6134_v10 = vsel %vm10809_vm11, %v6129_v30, %v6133_v25  ;;  %v6510_v14 = vrot.slane %v6369_v38, 5  ;;  %v13318_v31 = vcombine.low %v7069_v16, %v7079_v62  ;;  %v13322_v20 = vsel %vm10789_vm6, %v9578_v26, %v6503_v0  ;;  %v5860_v26 = vld [vmem:[#allocation4 + $0xa0] sm:$0xf] }
 0x366   : > { %v6145_v57 = vshll.u32 %v5857_v45, 16  ;;  %v6149_v18 = vshrl.u32 %v5857_v45, 16  ;;  %v13967_v37 = vcombine.low %v13235_v52, %v13213_v28  ;;  %v9594_v50 = vcombine.low %v13322_v20, %v13308_v63  ;;  %v13345_v16 = vld [vmem:[#allocation4 + $0xa0] sm:$0xf]  ;;  %v10546_v20 = vld [vmem:[#allocation4 + $0x90] sm:$0xff]  }
 0x367   : > { %v6124_v42 = vsel %vm10809_vm11, %v6119_v56, %v13273_v21  ;;  %v7088_v6 = vrot.slane %v7087_v23, 4  ;;  %v9579_v5 = vrot.slane %v6368_v32, 9  ;;  %v7102_v9 = vrot.slane %v7100_v29, 5 }
 0x368   : > { %8713 = vmatprep.mubr.bf16.mxu1 %v13967_v37  ;;  %v13332_v0 = vcombine.low %v6124_v42, %v6134_v10  ;;  %v7114_v59 = vshll.u32 %v6805_v17, 16  ;;  %v7118_v30 = vshrl.u32 %v6805_v17, 16  ;;  %v7098_v24 = vrot.slane %v7097_v54, 4 }
 0x369   : > { %v6512_v28 = vrot.slane %v6510_v14, 4  ;;  %v6136_v52 = vshrl.u32 %v5856_v8, 16  ;;  %v6139_v41 = vshll.u32 %v5856_v8, 16  ;;  %v13336_v51 = vsel %vm10789_vm6, %v9579_v5, %v6510_v14 }
 0x36a   : > { %v13338_v21 = vrot.slane %v6145_v57, 5  ;;  %v6151_v38 = vrot.slane %v6149_v18, 4  ;;  %v7105_v62 = vshrl.u32 %v6804_v43, 16  ;;  %v7093_v56 = vsel %vm10809_vm11, %v7088_v6, %v13295_v27  ;;  %8875 = vmatmul.mubr.bf16.gmra.mrb[128].mxu0 %v10543_v2  ;;  %v9968_v57 = vpop.f32.mrb[64].mxu0 }
 0x36b   : > { %v6513_v25 = vrot.slane %v6370_v47, 5  ;;  %v6155_v23 = vshll.u32 %v5858_v46, 16  ;;  %v7108_v45 = vshll.u32 %v6804_v43, 16  ;;  %v13343_v29 = vrot.slane %v7114_v59, 5  ;;  %8882 = vmatprep.mubr.bf16.mxu0 %v9625_v19  ;;  %v9969_v47 = vpop.f32.mrb[65].mxu0 }
 0x36c   : > { %v7120_v32 = vrot.slane %v7118_v30, 4  ;;  %v6160_v10 = vshrl.u32 %v5859_v12, 16  ;;  %v6163_v54 = vshll.u32 %v5859_v12, 16  ;;  %v7103_v14 = vsel %vm10809_vm11, %v7098_v24, %v7102_v9  ;;  %8714 = vmatmul.mubr.bf16.gmra.mrb[96].mxu1 %v13251_v13  ;;  %v13361_v19 = vld [vmem:[%s13875_s4] ss:$0 sm:$0xff]  ;;  %v9971_v59 = vpop.f32.mrb[66].mxu0 }
 0x36d   : > { %v13351_v17 = vsel %vm10789_vm6, %v6512_v28, %v6513_v25  ;;  %v6138_v27 = vrot.slane %v6136_v52, 4  ;;  %v6141_v8 = vrot.slane %v6139_v41, 5  ;;  %v6152_v18 = vor.u32 %v6151_v38, %v13338_v21  ;;  %8721 = vmatprep.mubr.bf16.mxu1 %v9593_v15  ;;  %v6806_v43 = vld [vmem:[#allocation4 + $0xb0] sm:$0x1]  ;;  %v9972_v15 = vpop.f32.mrb[67].mxu0  ;;  %v10545_v28 = vld [vmem:[#allocation4 + $0x84] sm:$0xff]  }
 0x36e   : > { %v7107_v37 = vrot.slane %v7105_v62, 4  ;;  %v6169_v42 = vshll.u32 %v5860_v26, 16  ;;  %v6173_v6 = vshrl.u32 %v5860_v26, 16  ;;  %v8394_v5 = vadd.f32 %v13361_v19, %v13249_v55  ;;  %v6373_v12 = vld [vmem:[#allocation4 + $0xa4] sm:$0x1] }
 0x36f   : > { %v7110_v13 = vrot.slane %v7108_v45, 5  ;;  %v6517_v9 = vrot.slane %v13345_v16, 5  ;;  %v9970_v46 = vadd.f32 %v9969_v47, %v9968_v57  ;;  %v13366_v30 = vcombine.low %v7093_v56, %v7103_v14  ;;  %v6807_v55 = vld [vmem:[#allocation4 + $0xb4] sm:$0xf]  ;;  %v6808_v26 = vld [vmem:[#allocation4 + $0xb8] sm:$0xf] }
 0x370   : > { %v7121_v24 = vor.u32 %v7120_v32, %v13343_v29  ;;  %v6162_v44 = vrot.slane %v6160_v10, 4  ;;  %v6165_v7 = vrot.slane %v6163_v54, 5  ;;  %v8397_v52 = vadd.f32 %v13361_v19, %v13253_v11  ;;  %v6371_v54 = vld [vmem:[#allocation4 + $0x9c] sm:$0xe] }
 0x371   : > { %v6142_v41 = vor.u32 %v6141_v8, %v6138_v27  ;;  %v13371_v2 = vadd.f32 %v9970_v46, %v8394_v5  ;;  %v9973_v38 = vadd.f32 %v9972_v15, %v9971_v59  ;;  %v6153_v62 = vrot.slane %v6152_v18, 4  ;;  %v5861_v27 = vld [vmem:[#allocation4 + $0xa4] sm:$0x1]  ;;  %v6809_v15 = vld [vmem:[#allocation4 + $0xbc] sm:$0x1] }
 0x372   : > { %v7124_v25 = vshll.u32 %v6806_v43, 16  ;;  %v13373_v45 = vrot.slane %v6169_v42, 5  ;;  %v6175_v56 = vrot.slane %v6173_v6, 4  ;;  %v6157_v32 = vrot.slane %v6155_v23, 5  ;;  %8883 = vmatmul.mubr.bf16.gmra.mrb[132].mxu0 %v10545_v28  ;;  %v9974_v23 = vpop.f32.mrb[68].mxu0 }
 0x373   : > { %v7111_v10 = vor.u32 %v7110_v13, %v7107_v37  ;;  %v6519_v14 = vrot.slane %v6517_v9, 4  ;;  %v13377_v57 = vadd.f32 %v9973_v38, %v8397_v52  ;;  %v7122_v11 = vrot.slane %v7121_v24, 4  ;;  %8890 = vmatprep.mubr.bf16.mxu0 %v13318_v31  ;;  %v13384_v24 = vld [vmem:[#allocation4 + $0xac] sm:$0xf] }
 0x374   : > { %v6166_v8 = vor.u32 %v6165_v7, %v6162_v44  ;;  %v7129_v47 = vshrl.u32 %v6807_v55, 16  ;;  %v7132_v5 = vshll.u32 %v6807_v55, 16  ;;  %v6143_v18 = vrot.slane %v6142_v41, 4  ;;  %8722 = vmatmul.mubr.bf16.gmra.mrb[100].mxu1 %v13304_v33  ;;  %v9975_v44 = vpop.f32.mrb[69].mxu0  ;;  %v9862_v28 = vpop.f32.mrb[36].mxu1 }
 0x375   : > { %v6520_v42 = vrot.slane %v6373_v12, 5  ;;  %v7138_v6 = vshll.u32 %v6808_v26, 16  ;;  %v7142_v43 = vshrl.u32 %v6808_v26, 16  ;;  %v6158_v37 = vsel %vm10809_vm11, %v6153_v62, %v6157_v32  ;;  %8729 = vmatprep.mubr.bf16.mxu1 %v9594_v50  ;;  %v9977_v41 = vpop.f32.mrb[70].mxu0 }
 0x376   : > { %v7126_v13 = vrot.slane %v7124_v25, 5  ;;  %v9580_v46 = vrot.slane %v6371_v54, 9  ;;  %v6176_v59 = vor.u32 %v6175_v56, %v13373_v45  ;;  %v7112_v31 = vrot.slane %v7111_v10, 4  ;;  %v9863_v25 = vpop.f32.mrb[37].mxu1  ;;  %v9978_v63 = vpop.f32.mrb[71].mxu0 }
 0x377   : > { %v13391_v7 = vsel %vm10789_vm6, %v6519_v14, %v6520_v42  ;;  %v6179_v33 = vshll.u32 %v5861_v27, 16  ;;  %v13393_v52 = vadd.f32 %v9975_v44, %v9974_v23  ;;  %v6167_v55 = vrot.slane %v6166_v8, 4  ;;  %v9865_v32 = vpop.f32.mrb[38].mxu1  ;;  %v6811_v44 = vld [vmem:[#allocation4 + $0xc4] sm:$0xf] }
 0x378   : > { %v7127_v12 = vsel %vm10809_vm11, %v7122_v11, %v7126_v13  ;;  %v7131_v38 = vrot.slane %v7129_v47, 4  ;;  %v7134_v62 = vrot.slane %v7132_v5, 5  ;;  %v13397_v50 = vrot.slane %v7138_v6, 5  ;;  %v6374_v11 = vld [vmem:[#allocation4 + $0xa8] sm:$0xe]  ;;  %v9866_v47 = vpop.f32.mrb[39].mxu1 }
 0x379   : > { %v7144_v56 = vrot.slane %v7142_v43, 4  ;;  %v13399_v26 = vadd.f32 %v9863_v25, %v9862_v28  ;;  %v13401_v10 = vadd.f32 %v9978_v63, %v9977_v41  ;;  %v9595_v54 = vcombine.low %v13336_v51, %v13351_v17  ;;  %v5862_v51 = vld [vmem:[#allocation4 + $0xa8] sm:$0xf] }
 0x37a   : > { %v6177_v14 = vrot.slane %v6176_v59, 4  ;;  %v7148_v27 = vshll.u32 %v6809_v15, 16  ;;  %v6524_v8 = vrot.slane %v13384_v24, 5  ;;  %v6148_v5 = vsel %vm10809_vm11, %v6143_v18, %v13338_v21  ;;  %8891 = vmatmul.mubr.bf16.gmra.mrb[136].mxu0 %v10546_v20  ;;  %v6376_v18 = vld [vmem:[#allocation4 + $0xb0] sm:$0x1]  ;;  %v10548_v20 = vld [vmem:[#allocation4 + $0x9c] sm:$0xff]  }
 0x37b   : > { %v7117_v42 = vsel %vm10809_vm11, %v7112_v31, %v13343_v29  ;;  %v13416_v6 = vsel %vm10789_vm6, %v9580_v46, %v6517_v9  ;;  %v13418_v17 = vadd.f32 %v9866_v47, %v9865_v32  ;;  %v9563_v43 = vcombine.low %v6148_v5, %v6158_v37  ;;  %v5863_v59 = vld [vmem:[#allocation4 + $0xac] sm:$0xf]  ;;  %8898 = vmatprep.mubr.bf16.mxu0 %v13366_v30  ;;  %v6810_v24 = vld [vmem:[#allocation4 + $0xc0] sm:$0xf] }
 0x37c   : > { %v9628_v23 = vcombine.low %v7117_v42, %v7127_v12  ;;  %v9596_v13 = vcombine.low %v13416_v6, %v13391_v7  ;;  %v6181_v21 = vrot.slane %v6179_v33, 5  ;;  %v6172_v29 = vsel %vm10809_vm11, %v6167_v55, %v13373_v45  ;;  %8730 = vmatmul.mubr.bf16.gmra.mrb[104].mxu1 %v13332_v0  ;;  %v9868_v12 = vpop.f32.mrb[40].mxu1  ;;  %v5864_v42 = vld [vmem:[#allocation4 + $0xb0] sm:$0x1]  ;;  %v6377_v7 = vld [vmem:[#allocation4 + $0xb4] sm:$0xe] }
 0x37d   : > { %v7135_v16 = vor.u32 %v7134_v62, %v7131_v38  ;;  %v7145_v9 = vor.u32 %v7144_v56, %v13397_v50  ;;  %v9581_v46 = vrot.slane %v6374_v11, 9  ;;  %v13430_v31 = vrot.slane %v7148_v27, 5  ;;  %8737 = vmatprep.mubr.bf16.mxu1 %v9595_v54  ;;  %v9869_v63 = vpop.f32.mrb[41].mxu1  ;;  %v13968_v27 = vld [vmem:[#allocation17_spill] sm:$0xff] }
 0x37e   : > { %v6182_v37 = vsel %vm10809_vm11, %v6177_v14, %v6181_v21  ;;  %v6526_v33 = vrot.slane %v6524_v8, 4  ;;  %v6184_v15 = vshrl.u32 %v5862_v51, 16  ;;  %v6527_v30 = vrot.slane %v6376_v18, 5  ;;  %v9871_v14 = vpop.f32.mrb[42].mxu1  ;;  %v6813_v18 = vld [vmem:[#allocation4 + $0xcc] sm:$0xf] }
 0x37f   : > { %v6187_v28 = vshll.u32 %v5862_v51, 16  ;;  %v6193_v41 = vshll.u32 %v5863_v59, 16  ;;  %v6197_v45 = vshrl.u32 %v5863_v59, 16  ;;  %v7153_v55 = vshrl.u32 %v6810_v24, 16  ;;  %v9872_v21 = vpop.f32.mrb[43].mxu1 }
 0x380   : > { %v7156_v38 = vshll.u32 %v6810_v24, 16  ;;  %v7162_v62 = vshll.u32 %v6811_v44, 16  ;;  %v7166_v25 = vshrl.u32 %v6811_v44, 16  ;;  %v7136_v0 = vrot.slane %v7135_v16, 4  ;;  %v6812_v24 = vld [vmem:[#allocation4 + $0xc8] sm:$0x1] }
 0x381   : > { %v7146_v56 = vrot.slane %v7145_v9, 4  ;;  %v13432_v32 = vadd.f32 %v9869_v63, %v9868_v12  ;;  %v13436_v11 = vadd.f32 %v13968_v27, %v12937_v48  ;;  %v13438_v54 = vcombine.low %v6172_v29, %v6182_v37  ;;  %v6814_v29 = vld [vmem:[#allocation4 + $0xd0] sm:$0xf] }
 0x382   : > { %v13442_v47 = vsel %vm10789_vm6, %v9581_v46, %v6524_v8  ;;  %v13446_v5 = vsel %vm10789_vm6, %v6526_v33, %v6527_v30  ;;  %v6186_v51 = vrot.slane %v6184_v15, 4  ;;  %v6189_v59 = vrot.slane %v6187_v28, 5  ;;  %8899 = vmatmul.mubr.bf16.gmra.mrb[140].mxu0 %v10548_v20  ;;  %v13462_v28 = vld [vmem:[#allocation4 + $0xb8] sm:$0xf] }
 0x383   : > { %v13448_v16 = vrot.slane %v6193_v41, 5  ;;  %v6199_v9 = vrot.slane %v6197_v45, 4  ;;  %v13450_v48 = vadd.f32 %v9872_v21, %v9871_v14  ;;  %v7155_v44 = vrot.slane %v7153_v55, 4  ;;  %8906 = vmatprep.mubr.bf16.mxu0 %v9628_v23  ;;  %v5865_v41 = vld [vmem:[#allocation4 + $0xb4] sm:$0xf] }
 0x384   : > { %v7158_v8 = vrot.slane %v7156_v38, 5  ;;  %v13452_v46 = vrot.slane %v7162_v62, 5  ;;  %v7168_v37 = vrot.slane %v7166_v25, 4  ;;  %v7141_v33 = vsel %vm10809_vm11, %v7136_v0, %v13397_v50  ;;  %8738 = vmatmul.mubr.bf16.gmra.mrb[108].mxu1 %v9563_v43  ;;  %v5866_v23 = vld [vmem:[#allocation4 + $0xb8] sm:$0xf]  ;;  %v10549_v43 = vld [vmem:[#allocation4 + $0xa8] sm:$0xff]  }
 0x385   : > { %v7151_v15 = vsel %vm10809_vm11, %v7146_v56, %v13430_v31  ;;  %v9597_v30 = vcombine.low %v13442_v47, %v13446_v5  ;;  %v13466_v45 = vadd.f32 %v12748_v34, %v12989_v40  ;;  %v7177_v12 = vshrl.u32 %v6813_v18, 16  ;;  %8745 = vmatprep.mubr.bf16.mxu1 %v9596_v13 }
 0x386   : > { %v7180_v55 = vshll.u32 %v6813_v18, 16  ;;  %v7186_v38 = vshll.u32 %v6814_v29, 16  ;;  %v7190_v50 = vshrl.u32 %v6814_v29, 16  ;;  %v6190_v31 = vor.u32 %v6189_v59, %v6186_v51 }
 0x387   : > { %v6200_v62 = vor.u32 %v6199_v9, %v13448_v16  ;;  %v6203_v25 = vshll.u32 %v5864_v42, 16  ;;  %v7172_v63 = vshll.u32 %v6812_v24, 16  ;;  %v7159_v20 = vor.u32 %v7158_v8, %v7155_v44  ;;  %v6815_v9 = vld [vmem:[#allocation4 + $0xd4] sm:$0x1]  ;;  %v6379_v8 = vld [vmem:[#allocation4 + $0xbc] sm:$0x1] }
 0x388   : > { %v7169_v0 = vor.u32 %v7168_v37, %v13452_v46  ;;  %v6531_v34 = vrot.slane %v13462_v28, 5  ;;  %v6208_v40 = vshrl.u32 %v5865_v41, 16  ;;  %v6211_v56 = vshll.u32 %v5865_v41, 16  ;;  %v5869_v41 = vld [vmem:[#allocation4 + $0xc4] sm:$0xf] }
 0x389   : > { %v6217_v14 = vshll.u32 %v5866_v23, 16  ;;  %v6221_v27 = vshrl.u32 %v5866_v23, 16  ;;  %v13476_v47 = vadd.f32 %v12777_v58, %v13226_v60  ;;  %v7179_v6 = vrot.slane %v7177_v12, 4 }
 0x38a   : > { %v7182_v13 = vrot.slane %v7180_v55, 5  ;;  %v13478_v5 = vrot.slane %v7186_v38, 5  ;;  %v7192_v42 = vrot.slane %v7190_v50, 4  ;;  %v9629_v51 = vcombine.low %v7141_v33, %v7151_v15  ;;  %8907 = vmatmul.mubr.bf16.gmra.mrb[144].mxu0 %v10549_v43  ;;  %v13487_v15 = vld [vmem:[#allocation4 + $0xc4] sm:$0xf]  ;;  %v10551_v43 = vld [vmem:[#allocation4 + $0xb4] sm:$0xff]  }
 0x38b   : > { %v6191_v21 = vrot.slane %v6190_v31, 4  ;;  %v6201_v18 = vrot.slane %v6200_v62, 4  ;;  %v6205_v59 = vrot.slane %v6203_v25, 5  ;;  %v7160_v29 = vrot.slane %v7159_v20, 4  ;;  %v5868_v25 = vld [vmem:[#allocation4 + $0xc0] sm:$0xf] }
 0x38c   : > { %v7170_v24 = vrot.slane %v7169_v0, 4  ;;  %v7174_v44 = vrot.slane %v7172_v63, 5  ;;  %v6533_v37 = vrot.slane %v6531_v34, 4  ;;  %8914 = vmatprep.mubr.bf16.mxu0 %v9629_v51  ;;  %v6210_v58 = vrot.slane %v6208_v40, 4  ;;  %8746 = vmatmul.mubr.bf16.gmra.mrb[112].mxu1 %v13438_v54  ;;  %v5867_v54 = vld [vmem:[#allocation4 + $0xbc] sm:$0x1] }
 0x38d   : > { %v13480_v60 = vrot.slane %v6217_v14, 5  ;;  %v6223_v28 = vrot.slane %v6221_v27, 4  ;;  %v13484_v23 = vadd.f32 %v12801_v53, %v13243_v39  ;;  %v6213_v33 = vrot.slane %v6211_v56, 5  ;;  %8753 = vmatprep.mubr.bf16.mxu1 %v9597_v30 }
 0x38e   : > { %v7183_v12 = vor.u32 %v7182_v13, %v7179_v6  ;;  %v7193_v55 = vor.u32 %v7192_v42, %v13478_v5  ;;  %v7196_v38 = vshll.u32 %v6815_v9, 16  ;;  %v6196_v50 = vsel %vm10809_vm11, %v6191_v21, %v13448_v16 }
 0x38f   : > { %v9582_v31 = vrot.slane %v6377_v7, 9  ;;  %v6534_v62 = vrot.slane %v6379_v8, 5  ;;  %v6206_v53 = vsel %vm10809_vm11, %v6201_v18, %v6205_v59  ;;  %v7175_v39 = vsel %vm10809_vm11, %v7170_v24, %v7174_v44  ;;  %v6382_v18 = vld [vmem:[#allocation4 + $0xc8] sm:$0x1] }
 0x390   : > { %v6241_v63 = vshll.u32 %v5869_v41, 16  ;;  %v6245_v20 = vshrl.u32 %v5869_v41, 16  ;;  %v7165_v30 = vsel %vm10809_vm11, %v7160_v29, %v13452_v46  ;;  %v6224_v16 = vor.u32 %v6223_v28, %v13480_v60  ;;  %v13969_v29 = vld [vmem:[#allocation13_spill] sm:$0xff]  ;;  %v13510_v28 = vld [vmem:[#allocation4 + $0x1c] sm:$0xf] }
 0x391   : > { %v6535_v0 = vsel %vm10789_vm6, %v6533_v37, %v6534_v62  ;;  %v6538_v40 = vrot.slane %v13487_v15, 5  ;;  %v6214_v56 = vor.u32 %v6213_v33, %v6210_v58  ;;  %v7184_v14 = vrot.slane %v7183_v12, 4  ;;  %v6380_v37 = vld [vmem:[#allocation4 + $0xc0] sm:$0xe] }
 0x392   : > { %v7194_v27 = vrot.slane %v7193_v55, 4  ;;  %v7198_v7 = vrot.slane %v7196_v38, 5  ;;  %v9630_v6 = vcombine.low %v7165_v30, %v7175_v39  ;;  %v6227_v13 = vshll.u32 %v5867_v54, 16  ;;  %8915 = vmatmul.mubr.bf16.gmra.mrb[148].mxu0 %v10551_v43  ;;  %v5870_v39 = vld [vmem:[#allocation4 + $0xc8] sm:$0x1] }
 0x393   : > { %v6232_v42 = vshrl.u32 %v5868_v25, 16  ;;  %v6235_v51 = vshll.u32 %v5868_v25, 16  ;;  %v9565_v21 = vcombine.low %v6196_v50, %v6206_v53  ;;  %v6532_v46 = vsel %vm10789_vm6, %v9582_v31, %v6531_v34  ;;  %v13517_v50 = vld [vmem:[#allocation4 + $0x34] sm:$0xf]  ;;  %v13970_v31 = vld [vmem:[#allocation14_spill] sm:$0xff]  ;;  %v9980_v30 = vpop.f32.mrb[72].mxu0 }
 0x394   : > { %v13506_v59 = vrot.slane %v6241_v63, 5  ;;  %v6247_v9 = vrot.slane %v6245_v20, 4  ;;  %v8354_v24 = vadd.f32 %v13361_v19, %v13969_v29  ;;  %8922 = vmatprep.mubr.bf16.mxu0 %v9630_v6  ;;  %v9598_v44 = vcombine.low %v6532_v46, %v6535_v0 }
 0x395   : > { %v6225_v8 = vrot.slane %v6224_v16, 4  ;;  %v6540_v58 = vrot.slane %v6538_v40, 4  ;;  %8754 = vmatmul.mubr.bf16.gmra.mrb[116].mxu1 %v9565_v21  ;;  %v6215_v41 = vrot.slane %v6214_v56, 4  ;;  %v7189_v34 = vsel %vm10809_vm11, %v7184_v14, %v13478_v5  ;;  %v10552_v16 = vld [vmem:[#allocation4 + $0xc0] sm:$0xff]  }
 0x396   : > { %v7199_v33 = vsel %vm10809_vm11, %v7194_v27, %v7198_v7  ;;  %8761 = vmatprep.mubr.bf16.mxu1 %v9598_v44  ;;  %v6229_v15 = vrot.slane %v6227_v13, 5  ;;  %v6541_v12 = vrot.slane %v6382_v18, 5  ;;  %v6234_v55 = vrot.slane %v6232_v42, 4  ;;  %v9981_v27 = vpop.f32.mrb[73].mxu0  ;;  %v7282_v42 = vld [vmem:[#allocation4 + $0x20] sm:$0x1] }
 0x397   : > { %v6237_v38 = vrot.slane %v6235_v51, 5  ;;  %v8357_v62 = vadd.f32 %v13361_v19, %v13970_v31  ;;  %v9583_v53 = vrot.slane %v6380_v37, 9  ;;  %v6248_v54 = vor.u32 %v6247_v9, %v13506_v59  ;;  %v7288_v44 = vld [vmem:[#allocation4 + $0x38] sm:$0x1] }
 0x398   : > { %v7378_v25 = vrot.slane %v13510_v28, 5  ;;  %v6230_v5 = vsel %vm10809_vm11, %v6225_v8, %v6229_v15  ;;  %v6542_v63 = vsel %vm10789_vm6, %v6540_v58, %v6541_v12  ;;  %v9631_v20 = vcombine.low %v7189_v34, %v7199_v33  ;;  %v7286_v28 = vld [vmem:[#allocation4 + $0x30] sm:$0xe]  ;;  %v13547_v34 = vld [vmem:[#allocation4 + $0x40] sm:$0xf] }
 0x399   : > { %v13528_v0 = vadd.f32 %v12886_v4, %v8354_v24  ;;  %v6220_v43 = vsel %vm10809_vm11, %v6215_v41, %v13480_v60  ;;  %v6539_v56 = vsel %vm10789_vm6, %v9583_v53, %v6538_v40  ;;  %v7392_v14 = vrot.slane %v13517_v50, 5  ;;  %v9983_v4 = vpop.f32.mrb[74].mxu0  ;;  %v13538_v60 = vld [vmem:[#allocation4 + $0x28] sm:$0xf]  ;;  %v7280_v24 = vld [vmem:[#allocation4 + $0x18] sm:$0xe] }
 0x39a   : > { %v8410_v7 = vadd.f32 %v13361_v19, %v13432_v32  ;;  %v6238_v6 = vor.u32 %v6237_v38, %v6234_v55  ;;  %v6251_v13 = vshll.u32 %v5870_v39, 16  ;;  %v9982_v51 = vadd.f32 %v9981_v27, %v9980_v30  ;;  %8923 = vmatmul.mubr.bf16.gmra.mrb[152].mxu0 %v10552_v16  ;;  %v9984_v29 = vpop.f32.mrb[75].mxu0  ;;  %v13550_v12 = vld [vmem:[#allocation4 + $0x4c] sm:$0xf]  ;;  %v7283_v27 = vld [vmem:[#allocation4 + $0x24] sm:$0xe] }
 0x39b   : > { %v9566_v21 = vcombine.low %v6220_v43, %v6230_v5  ;;  %v9599_v46 = vcombine.low %v6539_v56, %v6542_v63  ;;  %v6249_v18 = vrot.slane %v6248_v54, 4  ;;  %v7380_v9 = vrot.slane %v7378_v25, 4  ;;  %8930 = vmatprep.mubr.bf16.mxu0 %v9631_v20  ;;  %v10554_v38 = vld [vmem:[#allocation4 + $0xcc] sm:$0xff]   ;;  %v9986_v54 = vpop.f32.mrb[76].mxu0 }
 0x39c   : > { %v8413_v40 = vadd.f32 %v13361_v19, %v13450_v48  ;;  %v13542_v32 = vadd.f32 %v9982_v51, %v8410_v7  ;;  %v9985_v8 = vadd.f32 %v9984_v29, %v9983_v4  ;;  %v13545_v37 = vadd.f32 %v12903_v22, %v8357_v62  ;;  %v7285_v53 = vld [vmem:[#allocation4 + $0x2c] sm:$0x1]  ;;  %v9987_v16 = vpop.f32.mrb[77].mxu0  ;;  %v13971_v51 = vld [vmem:[#allocation19_spill] sm:$0xff] }
 0x39d   : > { %8762 = vmatmul.mubr.bf16.gmra.mrb[120].mxu1 %v9566_v21  ;;  %v7381_v58 = vrot.slane %v7282_v42, 5  ;;  %v7394_v41 = vrot.slane %v7392_v14, 4  ;;  %v6239_v33 = vrot.slane %v6238_v6, 4  ;;  %v6253_v15 = vrot.slane %v6251_v13, 5  ;;  %v9989_v42 = vpop.f32.mrb[78].mxu0 }
 0x39e   : > { %8769 = vmatprep.mubr.bf16.mxu1 %v9599_v46  ;;  %v7385_v48 = vrot.slane %v13538_v60, 5  ;;  %v13552_v55 = vadd.f32 %v9985_v8, %v8413_v40  ;;  %v9632_v50 = vrot.slane %v7280_v24, 9  ;;  %v7395_v31 = vrot.slane %v7288_v44, 5  ;;  %v9990_v36 = vpop.f32.mrb[79].mxu0  ;;  %v7289_v60 = vld [vmem:[#allocation4 + $0x3c] sm:$0xe] }
 0x39f   : > { %v7382_v22 = vsel %vm10789_vm6, %v7380_v9, %v7381_v58  ;;  %v6254_v62 = vsel %vm10809_vm11, %v6249_v18, %v6253_v15  ;;  %v7399_v39 = vrot.slane %v13547_v34, 5  ;;  %v9634_v63 = vrot.slane %v7286_v28, 9  ;;  %v9874_v6 = vpop.f32.mrb[44].mxu1  ;;  %v7291_v18 = vld [vmem:[#allocation4 + $0x44] sm:$0x1] }
 0x3a0   : > { %v7379_v5 = vsel %vm10789_vm6, %v9632_v50, %v7378_v25  ;;  %v7396_v20 = vsel %vm10789_vm6, %v7394_v41, %v7395_v31  ;;  %v7406_v30 = vrot.slane %v13550_v12, 5  ;;  %v6244_v43 = vsel %vm10809_vm11, %v6239_v33, %v13506_v59  ;;  %v9875_v9 = vpop.f32.mrb[45].mxu1  ;;  %v7294_v40 = vld [vmem:[#allocation4 + $0x50] sm:$0x1]  ;;  %v7296_v41 = vld [vmem:[#allocation4 + $0x58] sm:$0xf] }
 0x3a1   : > { %v9648_v56 = vcombine.low %v7379_v5, %v7382_v22  ;;  %v7387_v7 = vrot.slane %v7385_v48, 4  ;;  %v13567_v13 = vadd.f32 %v9987_v16, %v9986_v54  ;;  %v8370_v25 = vadd.f32 %v13361_v19, %v13971_v51  ;;  %v9877_v44 = vpop.f32.mrb[46].mxu1  ;;  %v7292_v15 = vld [vmem:[#allocation4 + $0x48] sm:$0xe]  ;;  %v7299_v12 = vld [vmem:[#allocation4 + $0x64] sm:$0xf] }
 0x3a2   : > { %8931 = vmatmul.mubr.bf16.gmra.mrb[156].mxu0 %v10554_v38  ;;  %v9567_v4 = vcombine.low %v6244_v43, %v6254_v62  ;;  %v7393_v21 = vsel %vm10789_vm6, %v9634_v63, %v7392_v14  ;;  %v7388_v46 = vrot.slane %v7285_v53, 5  ;;  %v7401_v29 = vrot.slane %v7399_v39, 4  ;;  %v9878_v34 = vpop.f32.mrb[47].mxu1  ;;  %v13972_v50 = vld [vmem:[#allocation21_spill] sm:$0xff]  ;;  %v13973_v63 = vld [vmem:[#allocation24_spill] sm:$0xff] }
 0x3a3   : > { %10318 = vmatprep.mubr.bf16.mxu0 %v9648_v56  ;;  %v9650_v59 = vcombine.low %v7393_v21, %v7396_v20  ;;  %v13573_v24 = vadd.f32 %v9875_v9, %v9874_v6  ;;  %v13575_v8 = vadd.f32 %v9990_v36, %v9989_v42  ;;  %v9633_v58 = vrot.slane %v7283_v27, 9  ;;  %v7297_v51 = vld [vmem:[#allocation4 + $0x5c] sm:$0x1]  ;;  %v13974_v36 = vld [vmem:[#allocation25_spill] sm:$0xff] }
 0x3a4   : > { %v7408_v28 = vrot.slane %v7406_v30, 4  ;;  %v7389_v14 = vsel %vm10789_vm6, %v7387_v7, %v7388_v46  ;;  %v7402_v33 = vrot.slane %v7291_v18, 5  ;;  %v13579_v38 = vadd.f32 %v9878_v34, %v9877_v44  ;;  %v7300_v46 = vld [vmem:[#allocation4 + $0x68] sm:$0x1] }
 0x3a5   : > { %8770 = vmatmul.mubr.bf16.gmra.mrb[124].mxu1 %v9567_v4  ;;  %v8373_v22 = vadd.f32 %v13361_v19, %v13972_v50  ;;  %v7386_v31 = vsel %vm10789_vm6, %v9633_v58, %v7385_v48  ;;  %v7409_v62 = vrot.slane %v7294_v40, 5  ;;  %v9635_v53 = vrot.slane %v7289_v60, 9  ;;  %v7295_v60 = vld [vmem:[#allocation4 + $0x54] sm:$0xe]  ;;  %v7298_v58 = vld [vmem:[#allocation4 + $0x60] sm:$0xe] }
 0x3a6   : > { %10322 = vmatprep.mubr.bf16.mxu1 %v9650_v59  ;;  %v7403_v54 = vsel %vm10789_vm6, %v7401_v29, %v7402_v33  ;;  %v7413_v5 = vrot.slane %v7296_v41, 5  ;;  %v13588_v20 = vadd.f32 %v13973_v63, %v8370_v25  ;;  %v9649_v16 = vcombine.low %v7386_v31, %v7389_v14  ;;  %v7302_v29 = vld [vmem:[#allocation4 + $0x70] sm:$0xf] }
 0x3a7   : > { %v9636_v43 = vrot.slane %v7292_v15, 9  ;;  %v7410_v56 = vsel %vm10789_vm6, %v7408_v28, %v7409_v62  ;;  %v7420_v27 = vrot.slane %v7299_v12, 5  ;;  %v7400_v7 = vsel %vm10789_vm6, %v9635_v53, %v7399_v39  ;;  %v9880_v6 = vpop.f32.mrb[48].mxu1  ;;  %v7303_v53 = vld [vmem:[#allocation4 + $0x74] sm:$0x1] }
 0x3a8   : > { %v9651_v48 = vcombine.low %v7400_v7, %v7403_v54  ;;  %v9881_v4 = vpop.f32.mrb[49].mxu1  ;;  %v7415_v25 = vrot.slane %v7413_v5, 4  ;;  %v13599_v59 = vadd.f32 %v13974_v36, %v8373_v22  ;;  %v7416_v44 = vrot.slane %v7297_v51, 5  ;;  %v7311_v51 = vld [vmem:[#allocation4 + $0x94] sm:$0xf] }
 0x3a9   : > { %v7407_v42 = vsel %vm10789_vm6, %v9636_v43, %v7406_v30  ;;  %v13596_v18 = vadd.f32 %v9881_v4, %v9880_v6  ;;  %v9883_v9 = vpop.f32.mrb[50].mxu1  ;;  %v7422_v39 = vrot.slane %v7420_v27, 4  ;;  %v7305_v30 = vld [vmem:[#allocation4 + $0x7c] sm:$0xf]  ;;  %v7423_v41 = vrot.slane %v7300_v46, 5 }
 0x3aa   : > { %10319 = vmatmul.mubr.bf16.vlgmr.msra.gmra.mrb[160].mxu0 %v9649_v16  ;;  %v9652_v21 = vcombine.low %v7407_v42, %v7410_v56  ;;  %v9884_v40 = vpop.f32.mrb[51].mxu1  ;;  %v9637_v34 = vrot.slane %v7295_v60, 9  ;;  %v7417_v14 = vsel %vm10789_vm6, %v7415_v25, %v7416_v44  ;;  %v7427_v33 = vrot.slane %v7302_v29, 5  ;;  %v7306_v43 = vld [vmem:[#allocation4 + $0x80] sm:$0x1] }
 0x3ab   : > { %v13601_v28 = vadd.f32 %v9884_v40, %v9883_v9  ;;  %v9638_v15 = vrot.slane %v7298_v58, 9  ;;  %v7424_v12 = vsel %vm10789_vm6, %v7422_v39, %v7423_v41  ;;  %v7434_v50 = vrot.slane %v7305_v30, 5  ;;  %v7301_v56 = vld [vmem:[#allocation4 + $0x6c] sm:$0xe]  ;;  %v7308_v6 = vld [vmem:[#allocation4 + $0x88] sm:$0xf] }
 0x3ac   : > { %v7414_v22 = vsel %vm10789_vm6, %v9637_v34, %v7413_v5  ;;  %v8386_v54 = vadd.f32 %v13361_v19, %v13188_v3  ;;  %v7429_v16 = vrot.slane %v7427_v33, 4  ;;  %v7304_v42 = vld [vmem:[#allocation4 + $0x78] sm:$0xe]  ;;  %v8389_v5 = vadd.f32 %v13361_v19, %v13201_v61  ;;  %v7309_v29 = vld [vmem:[#allocation4 + $0x8c] sm:$0x1] }
 0x3ad   : > { %10323 = vmatmul.mubr.bf16.vlgmr.msra.gmra.mrb[128].mxu1 %v9651_v48  ;;  %v9653_v31 = vcombine.low %v7414_v22, %v7417_v14  ;;  %v7421_v62 = vsel %vm10789_vm6, %v9638_v15, %v7420_v27  ;;  %v7436_v7 = vrot.slane %v7434_v50, 4  ;;  %v7430_v48 = vrot.slane %v7303_v53, 5  ;;  %v7312_v58 = vld [vmem:[#allocation4 + $0x98] sm:$0x1]  ;;  %v7314_v30 = vld [vmem:[#allocation4 + $0xa0] sm:$0xf] }
 0x3ae   : > { %10326 = vmatprep.mubr.bf16.mxu1 %v9652_v21  ;;  %v9654_v63 = vcombine.low %v7421_v62, %v7424_v12  ;;  %v7437_v4 = vrot.slane %v7306_v43, 5  ;;  %v9639_v27 = vrot.slane %v7301_v56, 9  ;;  %v7441_v3 = vrot.slane %v7308_v6, 5  ;;  %v7307_v41 = vld [vmem:[#allocation4 + $0x84] sm:$0xe] }
 0x3af   : > { %v7431_v21 = vsel %vm10789_vm6, %v7429_v16, %v7430_v48  ;;  %v13618_v25 = vadd.f32 %v13179_v49, %v8386_v54  ;;  %v9640_v46 = vrot.slane %v7304_v42, 9  ;;  %v7448_v36 = vrot.slane %v7311_v51, 5  ;;  %v7310_v15 = vld [vmem:[#allocation4 + $0x90] sm:$0xe]  ;;  %v7317_v12 = vld [vmem:[#allocation4 + $0xac] sm:$0xf] }
 0x3b0   : > { %v7438_v9 = vsel %vm10789_vm6, %v7436_v7, %v7437_v4  ;;  %v7428_v60 = vsel %vm10789_vm6, %v9639_v27, %v7427_v33  ;;  %v7443_v44 = vrot.slane %v7441_v3, 4  ;;  %v13627_v49 = vadd.f32 %v13190_v35, %v8389_v5  ;;  %v7313_v56 = vld [vmem:[#allocation4 + $0x9c] sm:$0xe]  ;;  %v7318_v42 = vld [vmem:[#allocation4 + $0xb0] sm:$0x1] }
 0x3b1   : > { %v9655_v39 = vcombine.low %v7428_v60, %v7431_v21  ;;  %v7435_v61 = vsel %vm10789_vm6, %v9640_v46, %v7434_v50  ;;  %v7450_v34 = vrot.slane %v7448_v36, 4  ;;  %v7444_v14 = vrot.slane %v7309_v29, 5  ;;  %v7320_v5 = vld [vmem:[#allocation4 + $0xb8] sm:$0xf] }
 0x3b2   : > { %v9656_v40 = vcombine.low %v7435_v61, %v7438_v9  ;;  %v7451_v33 = vrot.slane %v7312_v58, 5  ;;  %v7455_v22 = vrot.slane %v7314_v30, 5  ;;  %v9642_v62 = vrot.slane %v7310_v15, 9  ;;  %v7316_v9 = vld [vmem:[#allocation4 + $0xa8] sm:$0xe] }
 0x3b3   : > { %v7445_v50 = vsel %vm10789_vm6, %v7443_v44, %v7444_v14  ;;  %v7462_v54 = vrot.slane %v7317_v12, 5  ;;  %v8402_v6 = vadd.f32 %v13361_v19, %v13399_v26  ;;  %v9643_v46 = vrot.slane %v7313_v56, 9 }
 0x3b4   : > { %v7452_v53 = vsel %vm10789_vm6, %v7450_v34, %v7451_v33  ;;  %v7449_v43 = vsel %vm10789_vm6, %v9642_v62, %v7448_v36  ;;  %v7457_v7 = vrot.slane %v7455_v22, 4  ;;  %v8405_v26 = vadd.f32 %v13361_v19, %v13418_v17 }
 0x3b5   : > { %10327 = vmatmul.mubr.bf16.gmra.mrb[132].mxu1 %v9653_v31  ;;  %v9641_v31 = vrot.slane %v7307_v41, 9  ;;  %v9658_v48 = vcombine.low %v7449_v43, %v7452_v53  ;;  %v7464_v27 = vrot.slane %v7462_v54, 4  ;;  %v7465_v29 = vrot.slane %v7318_v42, 5  ;;  %v7319_v53 = vld [vmem:[#allocation4 + $0xb4] sm:$0xe] }
 0x3b6   : > { %10330 = vmatprep.mubr.bf16.mxu1 %v9654_v63  ;;  %v7315_v63 = vld [vmem:[#allocation4 + $0xa4] sm:$0x1]  ;;  %v7469_v44 = vrot.slane %v7320_v5, 5  ;;  %v8429_v58 = vadd.f32 %v13361_v19, %v13601_v28  ;;  %v13650_v41 = vadd.f32 %v13393_v52, %v8402_v6  ;;  %v9644_v34 = vrot.slane %v7316_v9, 9  ;;  %v7322_v43 = vld [vmem:[#allocation4 + $0xc0] sm:$0xe] }
 0x3b7   : > { %v7442_v35 = vsel %vm10789_vm6, %v9641_v31, %v7441_v3  ;;  %v7458_v4 = vrot.slane %v7315_v63, 5  ;;  %v8426_v3 = vadd.f32 %v13361_v19, %v13596_v18  ;;  %v7466_v14 = vsel %vm10789_vm6, %v7464_v27, %v7465_v29  ;;  %v7321_v31 = vld [vmem:[#allocation4 + $0xbc] sm:$0x1] }
 0x3b8   : > { %v9657_v16 = vcombine.low %v7442_v35, %v7445_v50  ;;  %v7456_v15 = vsel %vm10789_vm6, %v9643_v46, %v7455_v22  ;;  %v7463_v28 = vsel %vm10789_vm6, %v9644_v34, %v7462_v54  ;;  %v7326_v50 = vld [vmem:[#allocation4 + $0xd0] sm:$0xf]  ;;  %v7471_v52 = vrot.slane %v7469_v44, 4  ;;  %v7324_v35 = vld [vmem:[#allocation4 + $0xc8] sm:$0x1] }
 0x3b9   : > { %v7459_v61 = vsel %vm10789_vm6, %v7457_v7, %v7458_v4  ;;  %v9660_v62 = vcombine.low %v7463_v28, %v7466_v14  ;;  %v7472_v7 = vrot.slane %v7321_v31, 5  ;;  %v7325_v54 = vld [vmem:[#allocation4 + $0xcc] sm:$0xe]  ;;  %v9645_v5 = vrot.slane %v7319_v53, 9 }
 0x3ba   : > { %v9659_v33 = vcombine.low %v7456_v15, %v7459_v61  ;;  %v7479_v4 = vrot.slane %v7324_v35, 5  ;;  %v8418_v15 = vadd.f32 %v13361_v19, %v13573_v24 }
 0x3bd   : > { %10331 = vmatmul.mubr.bf16.gmra.mrb[136].mxu1 %v9655_v39  ;;  %v7323_v39 = vld [vmem:[#allocation4 + $0xc4] sm:$0xf] }
 0x3be   : > { %10334 = vmatprep.mubr.bf16.mxu1 %v9656_v40  ;;  %v7476_v17 = vrot.slane %v7323_v39, 5  ;;  %v9646_v39 = vrot.slane %v7322_v43, 9 }
 0x3c0   : > { %v9992_v51 = vpop.f32.mrb[80].mxu0  ;;  %v7478_v56 = vrot.slane %v7476_v17, 4  ;;  %v7477_v14 = vsel %vm10789_vm6, %v9646_v39, %v7476_v17  ;;  %v13680_v17 = vadd.f32 %v13567_v13, %v8418_v15  ;;  %v10559_v13 = vld [vmem:[%s13875_s4] ss:$0 sm:$0xff] }
 0x3c1   : > { %v9993_v21 = vpop.f32.mrb[81].mxu0 }
 0x3c2   : > { %v9994_v36 = vadd.f32 %v9993_v21, %v9992_v51  ;;  %v9995_v60 = vpop.f32.mrb[82].mxu0  ;;  %v7483_v51 = vrot.slane %v7326_v50, 5 }
 0x3c3   : > { %v9996_v40 = vpop.f32.mrb[83].mxu0 }
 0x3c4   : > { %v13647_v30 = vadd.f32 %v9994_v36, %v8426_v3  ;;  %v9997_v18 = vadd.f32 %v9996_v40, %v9995_v60  ;;  %v7327_v3 = vld [vmem:[#allocation4 + $0xd4] sm:$0x1]  ;;  %v7470_v60 = vsel %vm10789_vm6, %v9645_v5, %v7469_v44  ;;  %v9647_v40 = vrot.slane %v7325_v54, 9 }
 0x3c5   : > { %10335 = vmatmul.mubr.bf16.gmra.mrb[140].mxu1 %v9657_v16  ;;  %v13661_v16 = vadd.f32 %v13401_v10, %v8405_v26  ;;  %v7473_v10 = vsel %vm10789_vm6, %v7471_v52, %v7472_v7  ;;  %v7480_v26 = vsel %vm10789_vm6, %v7478_v56, %v7479_v4 }
 0x3c6   : > { %10338 = vmatprep.mubr.bf16.mxu1 %v9658_v48  ;;  %v13656_v12 = vadd.f32 %v9997_v18, %v8429_v58  ;;  %v7485_v58 = vrot.slane %v7483_v51, 4  ;;  %v7486_v18 = vrot.slane %v7327_v3, 5  ;;  %v9661_v34 = vcombine.low %v7470_v60, %v7473_v10 }
 0x3c7   : > { %v7484_v44 = vsel %vm10789_vm6, %v9647_v40, %v7483_v51 }
 0x3c8   : > { %v9998_v63 = vpop.f32.mrb[84].mxu0  ;;  %v7487_v28 = vsel %vm10789_vm6, %v7485_v58, %v7486_v18 }
 0x3c9   : > { %v9999_v22 = vpop.f32.mrb[85].mxu0  ;;  %v9663_v24 = vcombine.low %v7484_v44, %v7487_v28 }
 0x3ca   : > { %v10000_v48 = vadd.f32 %v9999_v22, %v9998_v63  ;;  %v10001_v42 = vpop.f32.mrb[86].mxu0 }
 0x3cb   : > { %v10002_v21 = vpop.f32.mrb[87].mxu0 }
 0x3cc   : > { %v9886_v6 = vpop.f32.mrb[52].mxu1  ;;  %v10003_v36 = vadd.f32 %v10002_v21, %v10001_v42 }
 0x3cd   : > { %10339 = vmatmul.mubr.bf16.gmra.mrb[144].mxu1 %v9659_v33  ;;  %v9887_v27 = vpop.f32.mrb[53].mxu1  ;;  %v9662_v33 = vcombine.low %v7477_v14, %v7480_v26 }
 0x3ce   : > { %10342 = vmatprep.mubr.bf16.mxu1 %v9660_v62  ;;  %v9888_v46 = vadd.f32 %v9887_v27, %v9886_v6  ;;  %v9889_v9 = vpop.f32.mrb[54].mxu1  ;;  %v8421_v62 = vadd.f32 %v13361_v19, %v13579_v38 }
 0x3cf   : > { %v9890_v61 = vpop.f32.mrb[55].mxu1 }
 0x3d0   : > { %v9891_v29 = vadd.f32 %v9890_v61, %v9889_v9  ;;  %v13683_v43 = vadd.f32 %v13575_v8, %v8421_v62  ;;  %v8434_v1 = vadd.f32 %v13361_v19, %v9888_v46 }
 0x3d2   : > { %v8437_v56 = vadd.f32 %v13361_v19, %v9891_v29  ;;  %v13687_v22 = vadd.f32 %v10000_v48, %v8434_v1 }
 0x3d4   : > { %v9892_v31 = vpop.f32.mrb[56].mxu1  ;;  %v13689_v7 = vadd.f32 %v10003_v36, %v8437_v56 }
 0x3d5   : > { %10343 = vmatmul.mubr.bf16.gmra.mrb[148].mxu1 %v9661_v34  ;;  %v9893_v50 = vpop.f32.mrb[57].mxu1 }
 0x3d6   : > { %10346 = vmatprep.mubr.bf16.mxu1 %v9662_v33  ;;  %v9894_v53 = vadd.f32 %v9893_v50, %v9892_v31  ;;  %v9895_v52 = vpop.f32.mrb[58].mxu1 }
 0x3d7   : > { %v9896_v35 = vpop.f32.mrb[59].mxu1 }
 0x3d8   : > { %v9897_v63 = vadd.f32 %v9896_v35, %v9895_v52  ;;  %v8442_v42 = vadd.f32 %v10559_v13, %v9894_v53 }
 0x3da   : > { %v8445_v5 = vadd.f32 %v10559_v13, %v9897_v63 }
 0x3dd   : > { %10347 = vmatmul.mubr.bf16.gmra.mrb[152].mxu1 %v9663_v24 }
 0x3ec   : > { %v10004_v38 = vpop.f32.mrb[88].mxu0 }
 0x3ed   : > { %v10005_v6 = vpop.f32.mrb[89].mxu0 }
 0x3ee   : > { %v10006_v54 = vadd.f32 %v10005_v6, %v10004_v38  ;;  %v10007_v51 = vpop.f32.mrb[90].mxu0 }
 0x3ef   : > { %v10008_v8 = vpop.f32.mrb[91].mxu0 }
 0x3f0   : > { %v13694_v4 = vadd.f32 %v10006_v54, %v8442_v42  ;;  %v10009_v27 = vadd.f32 %v10008_v8, %v10007_v51 }
 0x3f2   : > { %v13696_v21 = vadd.f32 %v10009_v27, %v8445_v5 }
 0x3f5   : > { %v10010_v19 = vpop.f32.mrb[92].mxu0 }
 0x3f6   : > { %v10011_v48 = vpop.f32.mrb[93].mxu0 }
 0x3f7   : > { %v9898_v3 = vpop.f32.mrb[60].mxu1  ;;  %v10012_v10 = vadd.f32 %v10011_v48, %v10010_v19  ;;  %v10013_v46 = vpop.f32.mrb[94].mxu0 }
 0x3f8   : > { %v9899_v9 = vpop.f32.mrb[61].mxu1  ;;  %v10014_v36 = vpop.f32.mrb[95].mxu0 }
 0x3f9   : > { %v9900_v60 = vadd.f32 %v9899_v9, %v9898_v3  ;;  %v9901_v39 = vpop.f32.mrb[62].mxu1  ;;  %v10015_v26 = vadd.f32 %v10014_v36, %v10013_v46 }
 0x3fa   : > { %v9902_v61 = vpop.f32.mrb[63].mxu1 }
 0x3fb   : > { %v8450_v29 = vadd.f32 %v10559_v13, %v9900_v60  ;;  %v9903_v40 = vadd.f32 %v9902_v61, %v9901_v39 }
 0x3fd   : > { %v8453_v58 = vadd.f32 %v10559_v13, %v9903_v40  ;;  %v10144_v18 = vpop.f32.mrb[96].mxu0  ;;  %v13698_v34 = vadd.f32 %v10012_v10, %v8450_v29 }
 0x3fe   : > { %v10145_v14 = vpop.f32.mrb[97].mxu0 }
 0x3ff   : > { %v10032_v15 = vpop.f32.mrb[64].mxu1  ;;  %v10146_v33 = vadd.f32 %v10145_v14, %v10144_v18  ;;  %v10147_v44 = vpop.f32.mrb[98].mxu0  ;;  %v13700_v28 = vadd.f32 %v10015_v26, %v8453_v58 }
 0x400   : > { %v10033_v31 = vpop.f32.mrb[65].mxu1  ;;  %v10148_v50 = vpop.f32.mrb[99].mxu0 }
 0x401   : > { %v10034_v62 = vadd.f32 %v10033_v31, %v10032_v15  ;;  %v10035_v53 = vpop.f32.mrb[66].mxu1  ;;  %v10149_v52 = vadd.f32 %v10148_v50, %v10147_v44  ;;  %v13976_v31 = vld [vmem:[#allocation20_spill] sm:$0xff] }
 0x402   : > { %v10036_v24 = vpop.f32.mrb[67].mxu1 }
 0x403   : > { %v8652_v35 = vadd.f32 %v10034_v62, %v13436_v11  ;;  %v10037_v63 = vadd.f32 %v10036_v24, %v10035_v53 }
 0x405   : > { %v8655_v1 = vadd.f32 %v10037_v63, %v13466_v45  ;;  %v10150_v56 = vpop.f32.mrb[100].mxu0  ;;  %v13704_v38 = vadd.f32 %v10146_v33, %v8652_v35  ;;  %v13975_v33 = vld [vmem:[#allocation18_spill] sm:$0xff] }
 0x406   : > { %v10151_v6 = vpop.f32.mrb[101].mxu0 }
 0x407   : > { %v10038_v13 = vpop.f32.mrb[68].mxu1  ;;  %v10152_v42 = vadd.f32 %v10151_v6, %v10150_v56  ;;  %v10153_v54 = vpop.f32.mrb[102].mxu0  ;;  %v13706_v51 = vadd.f32 %v10149_v52, %v8655_v1 }
 0x408   : > { %v10039_v8 = vpop.f32.mrb[69].mxu1  ;;  %v10154_v5 = vpop.f32.mrb[103].mxu0 }
 0x409   : > { %v10040_v27 = vadd.f32 %v10039_v8, %v10038_v13  ;;  %v10041_v19 = vpop.f32.mrb[70].mxu1  ;;  %v10155_v48 = vadd.f32 %v10154_v5, %v10153_v54 }
 0x40a   : > { %v10042_v3 = vpop.f32.mrb[71].mxu1 }
 0x40b   : > { %v8660_v11 = vadd.f32 %v10040_v27, %v13476_v47  ;;  %v10043_v10 = vadd.f32 %v10042_v3, %v10041_v19 }
 0x40d   : > { %v8663_v45 = vadd.f32 %v10043_v10, %v13484_v23  ;;  %v10156_v46 = vpop.f32.mrb[104].mxu0  ;;  %v13710_v9 = vadd.f32 %v10152_v42, %v8660_v11 }
 0x40e   : > { %v10157_v36 = vpop.f32.mrb[105].mxu0 }
 0x40f   : > { %v10044_v60 = vpop.f32.mrb[72].mxu1  ;;  %v10158_v39 = vadd.f32 %v10157_v36, %v10156_v46  ;;  %v10159_v26 = vpop.f32.mrb[106].mxu0  ;;  %v13712_v61 = vadd.f32 %v10155_v48, %v8663_v45 }
 0x410   : > { %v10045_v29 = vpop.f32.mrb[73].mxu1  ;;  %v10160_v40 = vpop.f32.mrb[107].mxu0 }
 0x411   : > { %v10046_v58 = vadd.f32 %v10045_v29, %v10044_v60  ;;  %v10047_v18 = vpop.f32.mrb[74].mxu1  ;;  %v10161_v14 = vadd.f32 %v10160_v40, %v10159_v26 }
 0x412   : > { %v10048_v15 = vpop.f32.mrb[75].mxu1 }
 0x413   : > { %v8668_v47 = vadd.f32 %v10046_v58, %v13975_v33  ;;  %v10049_v44 = vadd.f32 %v10048_v15, %v10047_v18  ;;  %v13977_v58 = vld [vmem:[#allocation22_spill] sm:$0xff] }
 0x415   : > { %v8671_v23 = vadd.f32 %v10049_v44, %v13976_v31  ;;  %v10162_v50 = vpop.f32.mrb[108].mxu0  ;;  %v13716_v62 = vadd.f32 %v10158_v39, %v8668_v47 }
 0x416   : > { %v10163_v53 = vpop.f32.mrb[109].mxu0 }
 0x417   : > { %v10050_v52 = vpop.f32.mrb[76].mxu1  ;;  %v10164_v24 = vadd.f32 %v10163_v53, %v10162_v50  ;;  %v10165_v35 = vpop.f32.mrb[110].mxu0  ;;  %v13718_v63 = vadd.f32 %v10161_v14, %v8671_v23  ;;  %v13978_v14 = vld [vmem:[#allocation23_spill] sm:$0xff] }
 0x418   : > { %v10051_v1 = vpop.f32.mrb[77].mxu1  ;;  %v10166_v56 = vpop.f32.mrb[111].mxu0 }
 0x419   : > { %v10052_v6 = vadd.f32 %v10051_v1, %v10050_v52  ;;  %v10053_v13 = vpop.f32.mrb[78].mxu1  ;;  %v10167_v42 = vadd.f32 %v10166_v56, %v10165_v35 }
 0x41a   : > { %v10054_v54 = vpop.f32.mrb[79].mxu1 }
 0x41b   : > { %v8676_v8 = vadd.f32 %v10052_v6, %v13528_v0  ;;  %v10055_v5 = vadd.f32 %v10054_v54, %v10053_v13 }
 0x41d   : > { %v8679_v27 = vadd.f32 %v10055_v5, %v13545_v37  ;;  %v10168_v19 = vpop.f32.mrb[112].mxu0  ;;  %v13722_v48 = vadd.f32 %v10164_v24, %v8676_v8 }
 0x41e   : > { %v10169_v3 = vpop.f32.mrb[113].mxu0 }
 0x41f   : > { %v10056_v11 = vpop.f32.mrb[80].mxu1  ;;  %v10170_v10 = vadd.f32 %v10169_v3, %v10168_v19  ;;  %v10171_v45 = vpop.f32.mrb[114].mxu0  ;;  %v13724_v46 = vadd.f32 %v10167_v42, %v8679_v27 }
 0x420   : > { %v10057_v36 = vpop.f32.mrb[81].mxu1  ;;  %v10172_v60 = vpop.f32.mrb[115].mxu0 }
 0x421   : > { %v10058_v39 = vadd.f32 %v10057_v36, %v10056_v11  ;;  %v10059_v26 = vpop.f32.mrb[82].mxu1  ;;  %v10173_v29 = vadd.f32 %v10172_v60, %v10171_v45 }
 0x422   : > { %v10060_v40 = vpop.f32.mrb[83].mxu1 }
 0x423   : > { %v8684_v0 = vadd.f32 %v10058_v39, %v13977_v58  ;;  %v10061_v18 = vadd.f32 %v10060_v40, %v10059_v26  ;;  %v13980_v58 = vld [vmem:[#allocation8_spill] sm:$0xff] }
 0x425   : > { %v8687_v37 = vadd.f32 %v10061_v18, %v13978_v14  ;;  %v10174_v15 = vpop.f32.mrb[116].mxu0  ;;  %v13728_v33 = vadd.f32 %v10170_v10, %v8684_v0 }
 0x426   : > { %v10175_v47 = vpop.f32.mrb[117].mxu0 }
 0x427   : > { %v10062_v44 = vpop.f32.mrb[84].mxu1  ;;  %v10176_v31 = vadd.f32 %v10175_v47, %v10174_v15  ;;  %v10177_v23 = vpop.f32.mrb[118].mxu0  ;;  %v13730_v50 = vadd.f32 %v10173_v29, %v8687_v37  ;;  %v13979_v29 = vld [vmem:[#allocation10_spill] sm:$0xff] }
 0x428   : > { %v10063_v53 = vpop.f32.mrb[85].mxu1  ;;  %v10178_v52 = vpop.f32.mrb[119].mxu0 }
 0x429   : > { %v10064_v24 = vadd.f32 %v10063_v53, %v10062_v44  ;;  %v10065_v35 = vpop.f32.mrb[86].mxu1  ;;  %v10179_v1 = vadd.f32 %v10178_v52, %v10177_v23 }
 0x42a   : > { %v10066_v56 = vpop.f32.mrb[87].mxu1 }
 0x42b   : > { %v8692_v6 = vadd.f32 %v10064_v24, %v13588_v20  ;;  %v10067_v13 = vadd.f32 %v10066_v56, %v10065_v35 }
 0x42d   : > { %v8695_v42 = vadd.f32 %v10067_v13, %v13599_v59  ;;  %v10180_v54 = vpop.f32.mrb[120].mxu0  ;;  %v13734_v8 = vadd.f32 %v10176_v31, %v8692_v6 }
 0x42e   : > { %v10181_v5 = vpop.f32.mrb[121].mxu0 }
 0x42f   : > { %v10068_v27 = vpop.f32.mrb[88].mxu1  ;;  %v10182_v19 = vadd.f32 %v10181_v5, %v10180_v54  ;;  %v10183_v3 = vpop.f32.mrb[122].mxu0  ;;  %v13736_v11 = vadd.f32 %v10179_v1, %v8695_v42 }
 0x430   : > { %v10069_v10 = vpop.f32.mrb[89].mxu1  ;;  %v10184_v45 = vpop.f32.mrb[123].mxu0 }
 0x431   : > { %v10070_v36 = vadd.f32 %v10069_v10, %v10068_v27  ;;  %v10071_v60 = vpop.f32.mrb[90].mxu1  ;;  %v10185_v39 = vadd.f32 %v10184_v45, %v10183_v3 }
 0x432   : > { %v10072_v26 = vpop.f32.mrb[91].mxu1 }
 0x433   : > { %v8700_v20 = vadd.f32 %v10070_v36, %v13979_v29  ;;  %v10073_v40 = vadd.f32 %v10072_v26, %v10071_v60 }
 0x435   : > { %v8703_v59 = vadd.f32 %v10073_v40, %v13980_v58  ;;  %v10186_v0 = vpop.f32.mrb[124].mxu0  ;;  %v13740_v18 = vadd.f32 %v10182_v19, %v8700_v20 }
 0x436   : > { %v10187_v14 = vpop.f32.mrb[125].mxu0 }
 0x437   : > { %v10074_v37 = vpop.f32.mrb[92].mxu1  ;;  %v10188_v15 = vadd.f32 %v10187_v14, %v10186_v0  ;;  %v10189_v47 = vpop.f32.mrb[126].mxu0  ;;  %v13742_v44 = vadd.f32 %v10185_v39, %v8703_v59 }
 0x438   : > { %v10075_v31 = vpop.f32.mrb[93].mxu1  ;;  %v10190_v23 = vpop.f32.mrb[127].mxu0 }
 0x439   : > { %v10076_v53 = vadd.f32 %v10075_v31, %v10074_v37  ;;  %v10077_v52 = vpop.f32.mrb[94].mxu1  ;;  %v10191_v24 = vadd.f32 %v10190_v23, %v10189_v47 }
 0x43a   : > { %v10078_v35 = vpop.f32.mrb[95].mxu1 }
 0x43b   : > { %v8708_v1 = vadd.f32 %v10076_v53, %v13618_v25  ;;  %v10079_v56 = vadd.f32 %v10078_v35, %v10077_v52 }
 0x43d   : > { %v8711_v6 = vadd.f32 %v10079_v56, %v13627_v49  ;;  %v10192_v13 = vpop.f32.mrb[128].mxu0  ;;  %v13746_v42 = vadd.f32 %v10188_v15, %v8708_v1 }
 0x43e   : > { %v10193_v54 = vpop.f32.mrb[129].mxu0 }
 0x43f   : > { %v10080_v5 = vpop.f32.mrb[96].mxu1  ;;  %v10194_v27 = vadd.f32 %v10193_v54, %v10192_v13  ;;  %v10195_v19 = vpop.f32.mrb[130].mxu0  ;;  %v13748_v3 = vadd.f32 %v10191_v24, %v8711_v6 }
 0x440   : > { %v10081_v10 = vpop.f32.mrb[97].mxu1  ;;  %v10196_v45 = vpop.f32.mrb[131].mxu0 }
 0x441   : > { %v10082_v36 = vadd.f32 %v10081_v10, %v10080_v5  ;;  %v10083_v60 = vpop.f32.mrb[98].mxu1  ;;  %v10197_v39 = vadd.f32 %v10196_v45, %v10195_v19 }
 0x442   : > { %v10084_v26 = vpop.f32.mrb[99].mxu1 }
 0x443   : > { %v8716_v25 = vadd.f32 %v10082_v36, %v13371_v2  ;;  %v10085_v29 = vadd.f32 %v10084_v26, %v10083_v60 }
 0x445   : > { %v8719_v49 = vadd.f32 %v10085_v29, %v13377_v57  ;;  %v10198_v20 = vpop.f32.mrb[132].mxu0  ;;  %v13752_v40 = vadd.f32 %v10194_v27, %v8716_v25 }
 0x446   : > { %v10199_v58 = vpop.f32.mrb[133].mxu0 }
 0x447   : > { %v10086_v59 = vpop.f32.mrb[100].mxu1  ;;  %v10200_v0 = vadd.f32 %v10199_v58, %v10198_v20  ;;  %v10201_v14 = vpop.f32.mrb[134].mxu0  ;;  %v13754_v37 = vadd.f32 %v10197_v39, %v8719_v49 }
 0x448   : > { %v10087_v15 = vpop.f32.mrb[101].mxu1  ;;  %v10202_v47 = vpop.f32.mrb[135].mxu0 }
 0x449   : > { %v10088_v31 = vadd.f32 %v10087_v15, %v10086_v59  ;;  %v10089_v23 = vpop.f32.mrb[102].mxu1  ;;  %v10203_v53 = vadd.f32 %v10202_v47, %v10201_v14 }
 0x44a   : > { %v10090_v52 = vpop.f32.mrb[103].mxu1 }
 0x44b   : > { %v8724_v2 = vadd.f32 %v10088_v31, %v13650_v41  ;;  %v10091_v24 = vadd.f32 %v10090_v52, %v10089_v23 }
 0x44d   : > { %v8727_v57 = vadd.f32 %v10091_v24, %v13661_v16  ;;  %v10204_v35 = vpop.f32.mrb[136].mxu0  ;;  %v13758_v1 = vadd.f32 %v10200_v0, %v8724_v2 }
 0x44e   : > { %v10205_v56 = vpop.f32.mrb[137].mxu0 }
 0x44f   : > { %v10092_v6 = vpop.f32.mrb[104].mxu1  ;;  %v10206_v13 = vadd.f32 %v10205_v56, %v10204_v35  ;;  %v10207_v54 = vpop.f32.mrb[138].mxu0  ;;  %v13760_v5 = vadd.f32 %v10203_v53, %v8727_v57 }
 0x450   : > { %v10093_v27 = vpop.f32.mrb[105].mxu1  ;;  %v10208_v19 = vpop.f32.mrb[139].mxu0 }
 0x451   : > { %v10094_v10 = vadd.f32 %v10093_v27, %v10092_v6  ;;  %v10095_v45 = vpop.f32.mrb[106].mxu1  ;;  %v10209_v36 = vadd.f32 %v10208_v19, %v10207_v54 }
 0x452   : > { %v10096_v60 = vpop.f32.mrb[107].mxu1 }
 0x453   : > { %v8732_v41 = vadd.f32 %v10094_v10, %v13542_v32  ;;  %v10097_v39 = vadd.f32 %v10096_v60, %v10095_v45 }
 0x455   : > { %v8735_v16 = vadd.f32 %v10097_v39, %v13552_v55  ;;  %v10210_v26 = vpop.f32.mrb[140].mxu0  ;;  %v13764_v25 = vadd.f32 %v10206_v13, %v8732_v41 }
 0x456   : > { %v10211_v29 = vpop.f32.mrb[141].mxu0 }
 0x457   : > { %v10098_v49 = vpop.f32.mrb[108].mxu1  ;;  %v10212_v20 = vadd.f32 %v10211_v29, %v10210_v26  ;;  %v10213_v58 = vpop.f32.mrb[142].mxu0  ;;  %v13766_v59 = vadd.f32 %v10209_v36, %v8735_v16 }
 0x458   : > { %v10099_v0 = vpop.f32.mrb[109].mxu1  ;;  %v10214_v14 = vpop.f32.mrb[143].mxu0 }
 0x459   : > { %v10100_v15 = vadd.f32 %v10099_v0, %v10098_v49  ;;  %v10101_v47 = vpop.f32.mrb[110].mxu1  ;;  %v10215_v31 = vadd.f32 %v10214_v14, %v10213_v58 }
 0x45a   : > { %v10102_v23 = vpop.f32.mrb[111].mxu1 }
 0x45b   : > { %v8740_v32 = vadd.f32 %v10100_v15, %v13680_v17  ;;  %v10103_v53 = vadd.f32 %v10102_v23, %v10101_v47 }
 0x45d   : > { %v8743_v55 = vadd.f32 %v10103_v53, %v13683_v43  ;;  %v10216_v52 = vpop.f32.mrb[144].mxu0  ;;  %v13770_v2 = vadd.f32 %v10212_v20, %v8740_v32 }
 0x45e   : > { %v10217_v24 = vpop.f32.mrb[145].mxu0 }
 0x45f   : > { %v10104_v57 = vpop.f32.mrb[112].mxu1  ;;  %v10218_v35 = vadd.f32 %v10217_v24, %v10216_v52  ;;  %v10219_v56 = vpop.f32.mrb[146].mxu0  ;;  %v13772_v6 = vadd.f32 %v10215_v31, %v8743_v55 }
 0x460   : > { %v10105_v13 = vpop.f32.mrb[113].mxu1  ;;  %v10220_v54 = vpop.f32.mrb[147].mxu0 }
 0x461   : > { %v10106_v27 = vadd.f32 %v10105_v13, %v10104_v57  ;;  %v10107_v19 = vpop.f32.mrb[114].mxu1  ;;  %v10221_v10 = vadd.f32 %v10220_v54, %v10219_v56 }
 0x462   : > { %v10108_v45 = vpop.f32.mrb[115].mxu1 }
 0x463   : > { %v8748_v17 = vadd.f32 %v10106_v27, %v13647_v30  ;;  %v10109_v36 = vadd.f32 %v10108_v45, %v10107_v19 }
 0x465   : > { %v8751_v43 = vadd.f32 %v10109_v36, %v13656_v12  ;;  %v10222_v60 = vpop.f32.mrb[148].mxu0  ;;  %v13776_v41 = vadd.f32 %v10218_v35, %v8748_v17 }
 0x466   : > { %v10223_v39 = vpop.f32.mrb[149].mxu0 }
 0x467   : > { %v10224_v26 = vadd.f32 %v10223_v39, %v10222_v60  ;;  %v10225_v29 = vpop.f32.mrb[150].mxu0  ;;  %v13778_v49 = vadd.f32 %v10221_v10, %v8751_v43 }
 0x468   : > { %v10110_v16 = vpop.f32.mrb[116].mxu1  ;;  %v10226_v58 = vpop.f32.mrb[151].mxu0 }
 0x469   : > { %v10111_v20 = vpop.f32.mrb[117].mxu1  ;;  %v10227_v15 = vadd.f32 %v10226_v58, %v10225_v29 }
 0x46a   : > { %v10112_v0 = vadd.f32 %v10111_v20, %v10110_v16  ;;  %v10113_v14 = vpop.f32.mrb[118].mxu1 }
 0x46b   : > { %v10114_v47 = vpop.f32.mrb[119].mxu1 }
 0x46c   : > { %v8756_v30 = vadd.f32 %v10112_v0, %v13687_v22  ;;  %v10115_v31 = vadd.f32 %v10114_v47, %v10113_v14 }
 0x46d   : > { %v10228_v23 = vpop.f32.mrb[152].mxu0 }
 0x46e   : > { %v8759_v12 = vadd.f32 %v10115_v31, %v13689_v7  ;;  %v13782_v32 = vadd.f32 %v10224_v26, %v8756_v30  ;;  %v10229_v53 = vpop.f32.mrb[153].mxu0 }
 0x46f   : > { %v10230_v52 = vadd.f32 %v10229_v53, %v10228_v23  ;;  %v10231_v24 = vpop.f32.mrb[154].mxu0 }
 0x470   : > { %v10116_v55 = vpop.f32.mrb[120].mxu1  ;;  %v13784_v57 = vadd.f32 %v10227_v15, %v8759_v12  ;;  %v10232_v56 = vpop.f32.mrb[155].mxu0 }
 0x471   : > { %v10117_v35 = vpop.f32.mrb[121].mxu1  ;;  %v10233_v27 = vadd.f32 %v10232_v56, %v10231_v24 }
 0x472   : > { %v10118_v13 = vadd.f32 %v10117_v35, %v10116_v55  ;;  %v10119_v54 = vpop.f32.mrb[122].mxu1 }
 0x473   : > { %v10120_v19 = vpop.f32.mrb[123].mxu1 }
 0x474   : > { %v8764_v22 = vadd.f32 %v10118_v13, %v13694_v4  ;;  %v10121_v10 = vadd.f32 %v10120_v19, %v10119_v54 }
 0x475   : > { %v10234_v45 = vpop.f32.mrb[156].mxu0 }
 0x476   : > { %v8767_v7 = vadd.f32 %v10121_v10, %v13696_v21  ;;  %v13788_v17 = vadd.f32 %v10230_v52, %v8764_v22  ;;  %v10235_v36 = vpop.f32.mrb[157].mxu0 }
 0x477   : > { %v10236_v60 = vadd.f32 %v10235_v36, %v10234_v45  ;;  %v10237_v39 = vpop.f32.mrb[158].mxu0 }
 0x478   : > { %v10122_v43 = vpop.f32.mrb[124].mxu1  ;;  %v13790_v16 = vadd.f32 %v10233_v27, %v8767_v7  ;;  %v10238_v29 = vpop.f32.mrb[159].mxu0 }
 0x479   : > { %v10123_v26 = vpop.f32.mrb[125].mxu1  ;;  %v10239_v0 = vadd.f32 %v10238_v29, %v10237_v39 }
 0x47a   : > { %v10124_v20 = vadd.f32 %v10123_v26, %v10122_v43  ;;  %v10125_v58 = vpop.f32.mrb[126].mxu1 }
 0x47b   : > { %v10126_v14 = vpop.f32.mrb[127].mxu1 }
 0x47c   : > { %v8772_v4 = vadd.f32 %v10124_v20, %v13698_v34  ;;  %v10127_v15 = vadd.f32 %v10126_v14, %v10125_v58 }
 0x47d   : > { %v10320_v47 = vpop.f32.mrb[160].mxu0 }
 0x47e   : > { %v8775_v21 = vadd.f32 %v10127_v15, %v13700_v28  ;;  %v13795_v30 = vadd.f32 %v10236_v60, %v8772_v4  ;;  %v8982_v31 = vadd.f32 %v10320_v47, %v13710_v9  ;;  %v8973_v12 = vpop.f32.mrb[161].mxu0 }
 0x47f   : > { %v8974_v23 = vadd.f32 %v8973_v12, %v13704_v38  ;;  %v10321_v34 = vpop.f32.mrb[162].mxu0 }
 0x480   : > { %v10324_v53 = vpop.f32.mrb[128].mxu1  ;;  %v13804_v55 = vadd.f32 %v10239_v0, %v8775_v21  ;;  %v9102_v28 = vmax.f32 %v8982_v31, 0.0  ;;  %v8985_v24 = vadd.f32 %v10321_v34, %v13712_v61  ;;  %v8976_v35 = vpop.f32.mrb[163].mxu0 }
 0x481   : > { %v8998_v52 = vadd.f32 %v10324_v53, %v13722_v48  ;;  %v8989_v9 = vpop.f32.mrb[129].mxu1  ;;  %v9100_v56 = vmax.f32 %v8974_v23, 0.0  ;;  %v8977_v38 = vadd.f32 %v8976_v35, %v13706_v51 }
 0x482   : > { %v8990_v13 = vadd.f32 %v8989_v9, %v13716_v62  ;;  %v10325_v54 = vpop.f32.mrb[130].mxu1  ;;  %9134 = vst [vmem:[%s13801_s21 + $0x10] sm:$0xff] %v9102_v28  ;;  %v9103_v19 = vmax.f32 %v8985_v24, 0.0 }
 0x483   : > { %v9106_v27 = vmax.f32 %v8998_v52, 0.0  ;;  %v9001_v48 = vadd.f32 %v10325_v54, %v13724_v46  ;;  %v8992_v61 = vpop.f32.mrb[131].mxu1  ;;  %9132 = vst [vmem:[%s13801_s21] sm:$0xff] %v9100_v56  ;;  %v9101_v10 = vmax.f32 %v8977_v38, 0.0 }
 0x484   : > { %v9104_v22 = vmax.f32 %v8990_v13, 0.0  ;;  %v8993_v7 = vadd.f32 %v8992_v61, %v13718_v63  ;;  %9135 = vst [vmem:[%s13801_s21 + $0x18] sm:$0xff] %v9103_v19 }
 0x485   : > { %9138 = vst [vmem:[%s13801_s21 + $0x30] sm:$0xff] %v9106_v27  ;;  %v9107_v62 = vmax.f32 %v9001_v48, 0.0  ;;  %9133 = vst [vmem:[%s13801_s21 + $0x8] sm:$0xff] %v9101_v10 }
 0x486   : > { %9136 = vst [vmem:[%s13801_s21 + $0x20] sm:$0xff] %v9104_v22  ;;  %v9105_v51 = vmax.f32 %v8993_v7, 0.0 }
 0x487   : > { %9139 = vst [vmem:[%s13801_s21 + $0x38] sm:$0xff] %v9107_v62 }
 0x488   : > { %9137 = vst [vmem:[%s13801_s21 + $0x28] sm:$0xff] %v9105_v51  ;;  %v10328_v45 = vpop.f32.mrb[132].mxu1 }
 0x489   : > { %v9014_v46 = vadd.f32 %v10328_v45, %v13734_v8  ;;  %v9005_v36 = vpop.f32.mrb[133].mxu1 }
 0x48a   : > { %v9006_v43 = vadd.f32 %v9005_v36, %v13728_v33  ;;  %v10329_v60 = vpop.f32.mrb[134].mxu1 }
 0x48b   : > { %v9110_v63 = vmax.f32 %v9014_v46, 0.0  ;;  %v9017_v39 = vadd.f32 %v10329_v60, %v13736_v11  ;;  %v9008_v26 = vpop.f32.mrb[135].mxu1 }
 0x48c   : > { %v9108_v29 = vmax.f32 %v9006_v43, 0.0  ;;  %v9009_v20 = vadd.f32 %v9008_v26, %v13730_v50 }
 0x48d   : > { %9142 = vst [vmem:[%s13801_s21 + $0x50] sm:$0xff] %v9110_v63  ;;  %v9111_v58 = vmax.f32 %v9017_v39, 0.0 }
 0x48e   : > { %9140 = vst [vmem:[%s13801_s21 + $0x40] sm:$0xff] %v9108_v29  ;;  %v9109_v0 = vmax.f32 %v9009_v20, 0.0 }
 0x48f   : > { %9143 = vst [vmem:[%s13801_s21 + $0x58] sm:$0xff] %v9111_v58 }
 0x490   : > { %9141 = vst [vmem:[%s13801_s21 + $0x48] sm:$0xff] %v9109_v0  ;;  %v10332_v8 = vpop.f32.mrb[136].mxu1 }
 0x491   : > { %v9030_v33 = vadd.f32 %v10332_v8, %v13746_v42  ;;  %v9021_v14 = vpop.f32.mrb[137].mxu1 }
 0x492   : > { %v9022_v11 = vadd.f32 %v9021_v14, %v13740_v18  ;;  %v10333_v4 = vpop.f32.mrb[138].mxu1 }
 0x493   : > { %v9114_v15 = vmax.f32 %v9030_v33, 0.0  ;;  %v9033_v50 = vadd.f32 %v10333_v4, %v13748_v3  ;;  %v9024_v21 = vpop.f32.mrb[139].mxu1 }
 0x494   : > { %v9112_v47 = vmax.f32 %v9022_v11, 0.0  ;;  %v9025_v31 = vadd.f32 %v9024_v21, %v13742_v44 }
 0x495   : > { %9146 = vst [vmem:[%s13801_s21 + $0x70] sm:$0xff] %v9114_v15  ;;  %v9115_v12 = vmax.f32 %v9033_v50, 0.0 }
 0x496   : > { %9144 = vst [vmem:[%s13801_s21 + $0x60] sm:$0xff] %v9112_v47  ;;  %v9113_v23 = vmax.f32 %v9025_v31, 0.0 }
 0x497   : > { %9147 = vst [vmem:[%s13801_s21 + $0x78] sm:$0xff] %v9115_v12 }
 0x498   : > { %9145 = vst [vmem:[%s13801_s21 + $0x68] sm:$0xff] %v9113_v23  ;;  %v10336_v42 = vpop.f32.mrb[140].mxu1 }
 0x499   : > { %v9046_v18 = vadd.f32 %v10336_v42, %v13758_v1  ;;  %v9037_v53 = vpop.f32.mrb[141].mxu1 }
 0x49a   : > { %v9038_v3 = vadd.f32 %v9037_v53, %v13752_v40  ;;  %v10337_v34 = vpop.f32.mrb[142].mxu1 }
 0x49b   : > { %v9118_v28 = vmax.f32 %v9046_v18, 0.0  ;;  %v9049_v44 = vadd.f32 %v10337_v34, %v13760_v5  ;;  %v9040_v52 = vpop.f32.mrb[143].mxu1 }
 0x49c   : > { %v9116_v24 = vmax.f32 %v9038_v3, 0.0  ;;  %v9041_v9 = vadd.f32 %v9040_v52, %v13754_v37 }
 0x49d   : > { %9150 = vst [vmem:[%s13801_s21 + $0x90] sm:$0xff] %v9118_v28  ;;  %v9119_v35 = vmax.f32 %v9049_v44, 0.0 }
 0x49e   : > { %9148 = vst [vmem:[%s13801_s21 + $0x80] sm:$0xff] %v9116_v24  ;;  %v9117_v56 = vmax.f32 %v9041_v9, 0.0 }
 0x49f   : > { %9151 = vst [vmem:[%s13801_s21 + $0x98] sm:$0xff] %v9119_v35 }
 0x4a0   : > { %9149 = vst [vmem:[%s13801_s21 + $0x88] sm:$0xff] %v9117_v56  ;;  %v10340_v1 = vpop.f32.mrb[144].mxu1 }
 0x4a1   : > { %v9062_v40 = vadd.f32 %v10340_v1, %v13770_v2  ;;  %v9053_v13 = vpop.f32.mrb[145].mxu1 }
 0x4a2   : > { %v9054_v5 = vadd.f32 %v9053_v13, %v13764_v25  ;;  %v10341_v38 = vpop.f32.mrb[146].mxu1 }
 0x4a3   : > { %v9122_v54 = vmax.f32 %v9062_v40, 0.0  ;;  %v9065_v37 = vadd.f32 %v10341_v38, %v13772_v6  ;;  %v9056_v27 = vpop.f32.mrb[147].mxu1 }
 0x4a4   : > { %v9120_v19 = vmax.f32 %v9054_v5, 0.0  ;;  %v9057_v48 = vadd.f32 %v9056_v27, %v13766_v59 }
 0x4a5   : > { %9154 = vst [vmem:[%s13801_s21 + $0xb0] sm:$0xff] %v9122_v54  ;;  %v9123_v61 = vmax.f32 %v9065_v37, 0.0 }
 0x4a6   : > { %9152 = vst [vmem:[%s13801_s21 + $0xa0] sm:$0xff] %v9120_v19  ;;  %v9121_v22 = vmax.f32 %v9057_v48, 0.0 }
 0x4a7   : > { %9155 = vst [vmem:[%s13801_s21 + $0xb8] sm:$0xff] %v9123_v61 }
 0x4a8   : > { %9153 = vst [vmem:[%s13801_s21 + $0xa8] sm:$0xff] %v9121_v22  ;;  %v10344_v2 = vpop.f32.mrb[148].mxu1 }
 0x4a9   : > { %v9078_v25 = vadd.f32 %v10344_v2, %v13782_v32  ;;  %v9069_v10 = vpop.f32.mrb[149].mxu1 }
 0x4aa   : > { %v9070_v6 = vadd.f32 %v9069_v10, %v13776_v41  ;;  %v10345_v7 = vpop.f32.mrb[150].mxu1 }
 0x4ab   : > { %v9126_v62 = vmax.f32 %v9078_v25, 0.0  ;;  %v9081_v59 = vadd.f32 %v10345_v7, %v13784_v57  ;;  %v9072_v51 = vpop.f32.mrb[151].mxu1 }
 0x4ac   : > { %v9124_v45 = vmax.f32 %v9070_v6, 0.0  ;;  %v9073_v46 = vadd.f32 %v9072_v51, %v13778_v49 }
 0x4ad   : > { %9158 = vst [vmem:[%s13801_s21 + $0xd0] sm:$0xff] %v9126_v62  ;;  %v9127_v36 = vmax.f32 %v9081_v59, 0.0 }
 0x4ae   : > { %9156 = vst [vmem:[%s13801_s21 + $0xc0] sm:$0xff] %v9124_v45  ;;  %v9125_v43 = vmax.f32 %v9073_v46, 0.0 }
 0x4af   : > { %9159 = vst [vmem:[%s13801_s21 + $0xd8] sm:$0xff] %v9127_v36 }
 0x4b0   : > { %9157 = vst [vmem:[%s13801_s21 + $0xc8] sm:$0xff] %v9125_v43  ;;  %v10348_v32 = vpop.f32.mrb[152].mxu1 }
 0x4b1   : > { %v9094_v41 = vadd.f32 %v10348_v32, %v13795_v30  ;;  %v9085_v60 = vpop.f32.mrb[153].mxu1 }
 0x4b2   : > { %v9086_v57 = vadd.f32 %v9085_v60, %v13788_v17  ;;  %v10349_v63 = vpop.f32.mrb[154].mxu1 }
 0x4b3   : > { %v9130_v39 = vmax.f32 %v9094_v41, 0.0  ;;  %v9097_v49 = vadd.f32 %v10349_v63, %v13804_v55  ;;  %v9088_v26 = vpop.f32.mrb[155].mxu1 }
 0x4b4   : > { %v9128_v29 = vmax.f32 %v9086_v57, 0.0  ;;  %v9089_v20 = vadd.f32 %v9088_v26, %v13790_v16 }
 0x4b5   : > { %9162 = vst [vmem:[%s13801_s21 + $0xf0] sm:$0xff] %v9130_v39  ;;  %v9131_v58 = vmax.f32 %v9097_v49, 0.0 }
 0x4b6   : > { %9160 = vst [vmem:[%s13801_s21 + $0xe0] sm:$0xff] %v9128_v29  ;;  %v9129_v0 = vmax.f32 %v9089_v20, 0.0 }
 0x4b7   : > { %9163 = vst [vmem:[%s13801_s21 + $0xf8] sm:$0xff] %v9131_v58 }
 0x4b8   : > { %9161 = vst [vmem:[%s13801_s21 + $0xe8] sm:$0xff] %v9129_v0 }
 0x4b9 PF: > { %s15_s18 = sadd.s32 1, %s10566_s18  }
 0x4ba   : > { %p12_p4 = scmp.ge.s32.totalorder %s15_s18, 4  }
 0x4bc   :  { %14 = sbr.rel (!%p12_p4) target bundleno = 1 (0x1), region = 74 }

</bundles_post_ra>
